<compile_context>
chip_gen: v5e
topology: v5e:2x2
jax: 0.10.0
libtpu: 0.0.40
codegen_flags: <defaults>
</compile_context>

<pallas_src>
import jax
import jax.numpy as jnp
from jax import lax
from jax.experimental import pallas as pl
from jax.experimental.pallas import tpu as pltpu

_LANE = 128
_SUBLANE = 8


def _make_basic_block_kernel(H, W, Hp, Wp, cp):
    """Builds the fused kernel for fixed (padded) spatial/channel sizes."""
    n = H * Wp  # rows of every matmul / roll (flattened padded rows)

    def kernel(x_ref, w1_ref, b1_ref, w2_ref, b2_ref, out_ref,
               xbuf_ref, mid_ref, acc_ref):
        # x_ref   : (1, H, W, cp)   bf16 input block (channels lane-padded)
        # w1_ref  : (3, 3, cp, cp)  bf16, BN1 scale folded in
        # b1_ref  : (1, cp)         f32 folded BN1 bias (+conv1 bias)
        # w2_ref  : (3, 3, cp, cp)  bf16, BN2 scale folded in
        # b2_ref  : (1, cp)         f32 folded BN2 bias (+conv2 bias)
        # out_ref : (1, H, W, cp)   bf16
        # xbuf_ref: (Hp, Wp, cp)    bf16 scratch, zero-padded input layout
        # mid_ref : (Hp, Wp, cp)    bf16 scratch, zero-padded conv1 act
        # acc_ref : (H, Wp, cp)     f32 scratch conv accumulator

        # ---- zero the pad regions (tiny, tile-aligned) and stage x --------
        # Data lives in rows [1, H+1), cols [0, W); rows 0 / H+1 and cols
        # [W, Wp) stay zero.  Zeroed every step so we never rely on
        # program_id==0 init under a "parallel" (core-sharded) batch axis.
        zcol = jnp.zeros((Hp, Wp - W, cp), jnp.bfloat16)
        zrow = jnp.zeros((1, W, cp), jnp.bfloat16)
        for buf in (xbuf_ref, mid_ref):
            buf[:, W:Wp, :] = zcol
            buf[0:1, 0:W, :] = zrow
            buf[H + 1:Hp, 0:W, :] = zrow
        xbuf_ref[1:H + 1, 0:W, :] = x_ref[0]          # aligned (col offset 0)

        def conv3x3(buf_ref, w_ref):
            # 3x3 SAME conv: 9 (H*Wp, cp) x (cp, cp) bf16 MXU matmuls with
            # f32 accumulation in acc_ref.  Row offsets (ky) come from
            # aligned slab loads; column offsets (kx) from an XLU roll of
            # the f32 result.  roll(r, 1)[i] == r[i-1] (jnp.roll semantics);
            # the wrapped entries come from zero pad columns, so no masks.
            first = True
            for ky in range(3):
                lhs = buf_ref[ky:ky + H, :, :].reshape(n, cp)  # free reshape
                for kx in range(3):
                    r = jnp.dot(lhs, w_ref[ky, kx],
                                preferred_element_type=jnp.float32)
                    if kx != 1:
                        r = pltpu.roll(r, shift=(1 - kx) % n, axis=0)
                    r = r.reshape(H, Wp, cp)
                    if first:
                        acc_ref[...] = r
                        first = False
                    else:
                        acc_ref[...] += r

        # ---- conv1 (BN1 scale pre-folded) + bias + ReLU -> mid (bf16) -----
        conv3x3(xbuf_ref, w1_ref)
        h1 = jnp.maximum(acc_ref[:, 0:W, :] + b1_ref[...].reshape(1, 1, cp),
                         0.0)
        mid_ref[1:H + 1, 0:W, :] = h1.astype(jnp.bfloat16)

        # ---- conv2 (BN2 scale pre-folded) + bias + residual + ReLU --------
        conv3x3(mid_ref, w2_ref)
        res = x_ref[0].astype(jnp.float32)
        out = jnp.maximum(acc_ref[:, 0:W, :] + b2_ref[...].reshape(1, 1, cp)
                          + res, 0.0)
        out_ref[...] = out.reshape(1, H, W, cp).astype(out_ref.dtype)

    return kernel


def basic_block_pallas(x_nhwc, w1, s1, b1, w2, s2, b2):
    """Fused BasicBlock forward.

    x_nhwc: (N, H, W, C); w1/w2: (3,3,Cin,Cout) HWIO; s*/b*: (Cout,) folded
    eval-mode BN scale / bias (conv bias already folded into b*).
    """
    N, H, W, C = x_nhwc.shape
    Cout = w1.shape[-1]
    assert C == Cout, "residual add requires inplanes == planes (downsample=None)"
    cp = max(_LANE, ((C + _LANE - 1) // _LANE) * _LANE)

    # Padded row width: >= W+2 zeros of right-pad and a multiple of 8 so the
    # in-kernel (H, Wp, cp) <-> (H*Wp, cp) reshapes are layout-free.
    wpad = (-W) % _SUBLANE
    if wpad < 2:
        wpad += _SUBLANE
    Wp = W + wpad
    Hp = H + 2
    assert Wp % _SUBLANE == 0 and Wp >= W + 2

    # Fold BN scale into the conv weights, zero-pad channels to 128 lanes and
    # cast MXU operands to bf16 (accumulation in-kernel is f32).
    def _prep_w(w, s):
        w = w.astype(jnp.float32) * s.astype(jnp.float32)[None, None, None, :]
        w = jnp.pad(w, ((0, 0), (0, 0),
                        (0, cp - w.shape[2]), (0, cp - w.shape[3])))
        return w.astype(jnp.bfloat16)

    w1p = _prep_w(w1, s1)
    w2p = _prep_w(w2, s2)
    b1p = jnp.pad(b1.astype(jnp.float32), (0, cp - Cout)).reshape(1, cp)
    b2p = jnp.pad(b2.astype(jnp.float32), (0, cp - Cout)).reshape(1, cp)

    # Lane-dense activations: zero-pad channels, bf16.  No spatial padding in
    # HBM (halo handled with zero pad rows/cols in the VMEM scratch).
    xp = jnp.pad(x_nhwc, ((0, 0), (0, 0), (0, 0),
                          (0, cp - C))).astype(jnp.bfloat16)

    kernel = _make_basic_block_kernel(H, W, Hp, Wp, cp)

    grid_spec = pltpu.PrefetchScalarGridSpec(
        num_scalar_prefetch=0,
        grid=(N,),
        in_specs=[
            pl.BlockSpec((1, H, W, cp), lambda nidx: (nidx, 0, 0, 0)),
            pl.BlockSpec((3, 3, cp, cp), lambda nidx: (0, 0, 0, 0)),
            pl.BlockSpec((1, cp), lambda nidx: (0, 0)),
            pl.BlockSpec((3, 3, cp, cp), lambda nidx: (0, 0, 0, 0)),
            pl.BlockSpec((1, cp), lambda nidx: (0, 0)),
        ],
        out_specs=pl.BlockSpec((1, H, W, cp), lambda nidx: (nidx, 0, 0, 0)),
        scratch_shapes=[
            pltpu.VMEM((Hp, Wp, cp), jnp.bfloat16),   # zero-padded input
            pltpu.VMEM((Hp, Wp, cp), jnp.bfloat16),   # zero-padded conv1 act
            pltpu.VMEM((H, Wp, cp), jnp.float32),     # f32 conv accumulator
        ],
    )

    out_p = pl.pallas_call(
        kernel,
        out_shape=jax.ShapeDtypeStruct((N, H, W, cp), jnp.bfloat16),
        grid_spec=grid_spec,
        compiler_params=pltpu.CompilerParams(
            dimension_semantics=("parallel",)),  # batch -> both TCs on v7x
    )(xp, w1p, b1p, w2p, b2p)

    return out_p[..., :C]


# ---------------- pure-JAX reference (for correctness check) ----------------
def _conv3x3_ref(x_nhwc, w_hwio, bias):
    y = lax.conv_general_dilated(
        x_nhwc, w_hwio, window_strides=(1, 1), padding="SAME",
        dimension_numbers=("NHWC", "HWIO", "NHWC"))
    return y + bias


def basic_block_ref(x_nhwc, p):
    eps = 1e-5
    out = _conv3x3_ref(x_nhwc, p["w1"], p["cb1"])
    out = (out - p["m1"]) / jnp.sqrt(p["v1"] + eps) * p["g1"] + p["be1"]
    out = jnp.maximum(out, 0.0)
    out = _conv3x3_ref(out, p["w2"], p["cb2"])
    out = (out - p["m2"]) / jnp.sqrt(p["v2"] + eps) * p["g2"] + p["be2"]
    out = jnp.maximum(out + x_nhwc, 0.0)
    return out


def _fold_bn(conv_bias, gamma, beta, mean, var, eps=1e-5):
    scale = gamma / jnp.sqrt(var + eps)
    bias = beta + (conv_bias - mean) * scale
    return scale, bias


if __name__ == "__main__":
    key = jax.random.PRNGKey(0)
    ks = jax.random.split(key, 12)

    N, C, H, W = 2, 4, 16, 16        # inplanes = planes = 4, stride = 1
    x_nchw = jax.random.normal(ks[0], (N, C, H, W), jnp.float32)

    # deterministic synthetic parameters (shapes from BasicBlock.__init__)
    params = {
        "w1":  0.2 * jax.random.normal(ks[1], (3, 3, C, C), jnp.float32),  # HWIO
        "cb1": 0.1 * jax.random.normal(ks[2], (C,), jnp.float32),
        "g1":  1.0 + 0.1 * jax.random.normal(ks[3], (C,), jnp.float32),
        "be1": 0.1 * jax.random.normal(ks[4], (C,), jnp.float32),
        "m1":  0.05 * jax.random.normal(ks[5], (C,), jnp.float32),
        "v1":  1.0 + 0.1 * jax.nn.sigmoid(jax.random.normal(ks[6], (C,), jnp.float32)),
        "w2":  0.2 * jax.random.normal(ks[7], (3, 3, C, C), jnp.float32),
        "cb2": 0.1 * jax.random.normal(ks[8], (C,), jnp.float32),
        "g2":  1.0 + 0.1 * jax.random.normal(ks[9], (C,), jnp.float32),
        "be2": 0.1 * jax.random.normal(ks[10], (C,), jnp.float32),
        "m2":  0.05 * jax.random.normal(ks[11], (C,), jnp.float32),
        "v2":  1.0 + 0.1 * jax.nn.sigmoid(jax.random.normal(ks[6] + 1, (C,), jnp.float32)),
    }

    # NCHW (PyTorch convention) -> NHWC for the TPU kernel
    x_nhwc = jnp.transpose(x_nchw, (0, 2, 3, 1))

    s1, b1 = _fold_bn(params["cb1"], params["g1"], params["be1"],
                      params["m1"], params["v1"])
    s2, b2 = _fold_bn(params["cb2"], params["g2"], params["be2"],
                      params["m2"], params["v2"])

    out_nhwc = basic_block_pallas(x_nhwc, params["w1"], s1, b1,
                                  params["w2"], s2, b2)
    out_nhwc = jax.block_until_ready(out_nhwc)

    ref_nhwc = basic_block_ref(x_nhwc, params)
    err = float(jnp.max(jnp.abs(out_nhwc - ref_nhwc)))
    scale = float(jnp.maximum(1.0, jnp.max(jnp.abs(ref_nhwc))))
    # bf16 MXU operands + bf16 output vs f32 reference: loosened tolerance.
    assert err < 3e-2 * scale, f"max abs error {err} (ref scale {scale})"

    # back to NCHW to match the PyTorch module's output convention
    out_nchw = jnp.transpose(out_nhwc, (0, 3, 1, 2))
    jax.block_until_ready(out_nchw)
    print("KERNEL_OK")
</pallas_src>

<mosaic_0001>
module attributes {stable_mosaic.version = 11 : i64} {
  func.func @kernel(%arg0: i32, %arg1: memref<1x16x16x128xbf16, #tpu.memory_space<vmem>>, %arg2: memref<3x3x128x128xbf16, #tpu.memory_space<vmem>>, %arg3: memref<1x128xf32, #tpu.memory_space<vmem>>, %arg4: memref<3x3x128x128xbf16, #tpu.memory_space<vmem>>, %arg5: memref<1x128xf32, #tpu.memory_space<vmem>>, %arg6: memref<1x16x16x128xbf16, #tpu.memory_space<vmem>>, %arg7: memref<18x24x128xbf16, #tpu.memory_space<vmem>>, %arg8: memref<18x24x128xbf16, #tpu.memory_space<vmem>>, %arg9: memref<16x24x128xf32, #tpu.memory_space<vmem>>) attributes {dimension_semantics = [#tpu.dimension_semantics<parallel>], iteration_bounds = array<i64: 2>, scalar_prefetch = 0 : i64, scratch_operands = 3 : i64, tpu.core_type = #tpu.core_type<tc>, window_params = [{transform_indices = @transform_0, window_bounds = array<i64: 1, 16, 16, 128>}, {pipeline_mode = #tpu.pipeline_mode<synchronous>, transform_indices = @transform_1, window_bounds = array<i64: 3, 3, 128, 128>}, {pipeline_mode = #tpu.pipeline_mode<synchronous>, transform_indices = @transform_2, window_bounds = array<i64: 1, 128>}, {pipeline_mode = #tpu.pipeline_mode<synchronous>, transform_indices = @transform_3, window_bounds = array<i64: 3, 3, 128, 128>}, {pipeline_mode = #tpu.pipeline_mode<synchronous>, transform_indices = @transform_4, window_bounds = array<i64: 1, 128>}, {transform_indices = @transform_5, window_bounds = array<i64: 1, 16, 16, 128>}]} {
    %cst = arith.constant 0.000000e+00 : bf16
    %0 = vector.broadcast %cst : bf16 to vector<18x8x128xbf16>
    %cst_0 = arith.constant 0.000000e+00 : bf16
    %1 = vector.broadcast %cst_0 : bf16 to vector<1x16x128xbf16>
    %c0 = arith.constant 0 : index
    %c16 = arith.constant 16 : index
    %c0_1 = arith.constant 0 : index
    %2 = vector.load %arg7[%c0, %c16, %c0_1] : memref<18x24x128xbf16, #tpu.memory_space<vmem>>, vector<18x8x128xbf16>
    tpu.vector_store %arg7[%c0, %c16, %c0_1], %0 {strides = array<i32>} : memref<18x24x128xbf16, #tpu.memory_space<vmem>>, vector<18x8x128xbf16>,
    %c0_2 = arith.constant 0 : index
    %c0_3 = arith.constant 0 : index
    %c0_4 = arith.constant 0 : index
    %3 = vector.load %arg7[%c0_2, %c0_3, %c0_4] : memref<18x24x128xbf16, #tpu.memory_space<vmem>>, vector<1x16x128xbf16>
    tpu.vector_store %arg7[%c0_2, %c0_3, %c0_4], %1 {strides = array<i32>} : memref<18x24x128xbf16, #tpu.memory_space<vmem>>, vector<1x16x128xbf16>,
    %c17 = arith.constant 17 : index
    %c0_5 = arith.constant 0 : index
    %c0_6 = arith.constant 0 : index
    %4 = vector.load %arg7[%c17, %c0_5, %c0_6] : memref<18x24x128xbf16, #tpu.memory_space<vmem>>, vector<1x16x128xbf16>
    tpu.vector_store %arg7[%c17, %c0_5, %c0_6], %1 {strides = array<i32>} : memref<18x24x128xbf16, #tpu.memory_space<vmem>>, vector<1x16x128xbf16>,
    %c0_7 = arith.constant 0 : index
    %c16_8 = arith.constant 16 : index
    %c0_9 = arith.constant 0 : index
    %5 = vector.load %arg8[%c0_7, %c16_8, %c0_9] : memref<18x24x128xbf16, #tpu.memory_space<vmem>>, vector<18x8x128xbf16>
    tpu.vector_store %arg8[%c0_7, %c16_8, %c0_9], %0 {strides = array<i32>} : memref<18x24x128xbf16, #tpu.memory_space<vmem>>, vector<18x8x128xbf16>,
    %c0_10 = arith.constant 0 : index
    %c0_11 = arith.constant 0 : index
    %c0_12 = arith.constant 0 : index
    %6 = vector.load %arg8[%c0_10, %c0_11, %c0_12] : memref<18x24x128xbf16, #tpu.memory_space<vmem>>, vector<1x16x128xbf16>
    tpu.vector_store %arg8[%c0_10, %c0_11, %c0_12], %1 {strides = array<i32>} : memref<18x24x128xbf16, #tpu.memory_space<vmem>>, vector<1x16x128xbf16>,
    %c17_13 = arith.constant 17 : index
    %c0_14 = arith.constant 0 : index
    %c0_15 = arith.constant 0 : index
    %7 = vector.load %arg8[%c17_13, %c0_14, %c0_15] : memref<18x24x128xbf16, #tpu.memory_space<vmem>>, vector<1x16x128xbf16>
    tpu.vector_store %arg8[%c17_13, %c0_14, %c0_15], %1 {strides = array<i32>} : memref<18x24x128xbf16, #tpu.memory_space<vmem>>, vector<1x16x128xbf16>,
    %c0_16 = arith.constant 0 : index
    %c0_17 = arith.constant 0 : index
    %c0_18 = arith.constant 0 : index
    %c0_19 = arith.constant 0 : index
    %8 = vector.load %arg1[%c0_16, %c0_17, %c0_18, %c0_19] : memref<1x16x16x128xbf16, #tpu.memory_space<vmem>>, vector<1x16x16x128xbf16>
    %9 = vector.shape_cast %8 : vector<1x16x16x128xbf16> to vector<16x16x128xbf16>
    %c1 = arith.constant 1 : index
    %c0_20 = arith.constant 0 : index
    %c0_21 = arith.constant 0 : index
    %10 = vector.load %arg7[%c1, %c0_20, %c0_21] : memref<18x24x128xbf16, #tpu.memory_space<vmem>>, vector<16x16x128xbf16>
    tpu.vector_store %arg7[%c1, %c0_20, %c0_21], %9 {strides = array<i32>} : memref<18x24x128xbf16, #tpu.memory_space<vmem>>, vector<16x16x128xbf16>,
    %c0_22 = arith.constant 0 : index
    %c0_23 = arith.constant 0 : index
    %c0_24 = arith.constant 0 : index
    %11 = vector.load %arg7[%c0_22, %c0_23, %c0_24] : memref<18x24x128xbf16, #tpu.memory_space<vmem>>, vector<16x24x128xbf16>
    %12 = vector.shape_cast %11 : vector<16x24x128xbf16> to vector<384x128xbf16>
    %c0_25 = arith.constant 0 : index
    %c0_26 = arith.constant 0 : index
    %c0_27 = arith.constant 0 : index
    %c0_28 = arith.constant 0 : index
    %13 = vector.load %arg2[%c0_25, %c0_26, %c0_27, %c0_28] : memref<3x3x128x128xbf16, #tpu.memory_space<vmem>>, vector<1x1x128x128xbf16>
    %14 = vector.shape_cast %13 : vector<1x1x128x128xbf16> to vector<128x128xbf16>
    %cst_29 = arith.constant dense<0.000000e+00> : vector<384x128xf32>
    %15 = tpu.matmul %12, %14, %cst_29 {dimension_numbers = #tpu.dot_dimension_numbers<[1], [0], [0], [1], [0, 0, 1, 1], [], []>} : vector<384x128xbf16>, vector<128x128xbf16>, vector<384x128xf32> -> vector<384x128xf32>
    %c1_i32 = arith.constant 1 : i32
    %16 = tpu.dynamic_rotate %15 by %c1_i32 dim 0 : vector<384x128xf32>, i32 -> vector<384x128xf32>
    %17 = vector.shape_cast %16 : vector<384x128xf32> to vector<16x24x128xf32>
    %c0_30 = arith.constant 0 : index
    %c0_31 = arith.constant 0 : index
    %c0_32 = arith.constant 0 : index
    %18 = vector.load %arg9[%c0_30, %c0_31, %c0_32] : memref<16x24x128xf32, #tpu.memory_space<vmem>>, vector<16x24x128xf32>
    tpu.vector_store %arg9[%c0_30, %c0_31, %c0_32], %17 {strides = array<i32>} : memref<16x24x128xf32, #tpu.memory_space<vmem>>, vector<16x24x128xf32>,
    %c0_33 = arith.constant 0 : index
    %c1_34 = arith.constant 1 : index
    %c0_35 = arith.constant 0 : index
    %c0_36 = arith.constant 0 : index
    %19 = vector.load %arg2[%c0_33, %c1_34, %c0_35, %c0_36] : memref<3x3x128x128xbf16, #tpu.memory_space<vmem>>, vector<1x1x128x128xbf16>
    %20 = vector.shape_cast %19 : vector<1x1x128x128xbf16> to vector<128x128xbf16>
    %cst_37 = arith.constant dense<0.000000e+00> : vector<384x128xf32>
    %21 = tpu.matmul %12, %20, %cst_37 {dimension_numbers = #tpu.dot_dimension_numbers<[1], [0], [0], [1], [0, 0, 1, 1], [], []>} : vector<384x128xbf16>, vector<128x128xbf16>, vector<384x128xf32> -> vector<384x128xf32>
    %22 = vector.shape_cast %21 : vector<384x128xf32> to vector<16x24x128xf32>
    %c0_38 = arith.constant 0 : index
    %c0_39 = arith.constant 0 : index
    %c0_40 = arith.constant 0 : index
    %23 = vector.load %arg9[%c0_38, %c0_39, %c0_40] : memref<16x24x128xf32, #tpu.memory_space<vmem>>, vector<16x24x128xf32>
    %24 = arith.addf %23, %22 : vector<16x24x128xf32>
    %c0_41 = arith.constant 0 : index
    %c0_42 = arith.constant 0 : index
    %c0_43 = arith.constant 0 : index
    %25 = vector.load %arg9[%c0_41, %c0_42, %c0_43] : memref<16x24x128xf32, #tpu.memory_space<vmem>>, vector<16x24x128xf32>
    tpu.vector_store %arg9[%c0_41, %c0_42, %c0_43], %24 {strides = array<i32>} : memref<16x24x128xf32, #tpu.memory_space<vmem>>, vector<16x24x128xf32>,
    %c0_44 = arith.constant 0 : index
    %c2 = arith.constant 2 : index
    %c0_45 = arith.constant 0 : index
    %c0_46 = arith.constant 0 : index
    %26 = vector.load %arg2[%c0_44, %c2, %c0_45, %c0_46] : memref<3x3x128x128xbf16, #tpu.memory_space<vmem>>, vector<1x1x128x128xbf16>
    %27 = vector.shape_cast %26 : vector<1x1x128x128xbf16> to vector<128x128xbf16>
    %cst_47 = arith.constant dense<0.000000e+00> : vector<384x128xf32>
    %28 = tpu.matmul %12, %27, %cst_47 {dimension_numbers = #tpu.dot_dimension_numbers<[1], [0], [0], [1], [0, 0, 1, 1], [], []>} : vector<384x128xbf16>, vector<128x128xbf16>, vector<384x128xf32> -> vector<384x128xf32>
    %c383_i32 = arith.constant 383 : i32
    %29 = tpu.dynamic_rotate %28 by %c383_i32 dim 0 : vector<384x128xf32>, i32 -> vector<384x128xf32>
    %30 = vector.shape_cast %29 : vector<384x128xf32> to vector<16x24x128xf32>
    %c0_48 = arith.constant 0 : index
    %c0_49 = arith.constant 0 : index
    %c0_50 = arith.constant 0 : index
    %31 = vector.load %arg9[%c0_48, %c0_49, %c0_50] : memref<16x24x128xf32, #tpu.memory_space<vmem>>, vector<16x24x128xf32>
    %32 = arith.addf %31, %30 : vector<16x24x128xf32>
    %c0_51 = arith.constant 0 : index
    %c0_52 = arith.constant 0 : index
    %c0_53 = arith.constant 0 : index
    %33 = vector.load %arg9[%c0_51, %c0_52, %c0_53] : memref<16x24x128xf32, #tpu.memory_space<vmem>>, vector<16x24x128xf32>
    tpu.vector_store %arg9[%c0_51, %c0_52, %c0_53], %32 {strides = array<i32>} : memref<16x24x128xf32, #tpu.memory_space<vmem>>, vector<16x24x128xf32>,
    %c1_54 = arith.constant 1 : index
    %c0_55 = arith.constant 0 : index
    %c0_56 = arith.constant 0 : index
    %34 = vector.load %arg7[%c1_54, %c0_55, %c0_56] : memref<18x24x128xbf16, #tpu.memory_space<vmem>>, vector<16x24x128xbf16>
    %35 = vector.shape_cast %34 : vector<16x24x128xbf16> to vector<384x128xbf16>
    %c1_57 = arith.constant 1 : index
    %c0_58 = arith.constant 0 : index
    %c0_59 = arith.constant 0 : index
    %c0_60 = arith.constant 0 : index
    %36 = vector.load %arg2[%c1_57, %c0_58, %c0_59, %c0_60] : memref<3x3x128x128xbf16, #tpu.memory_space<vmem>>, vector<1x1x128x128xbf16>
    %37 = vector.shape_cast %36 : vector<1x1x128x128xbf16> to vector<128x128xbf16>
    %cst_61 = arith.constant dense<0.000000e+00> : vector<384x128xf32>
    %38 = tpu.matmul %35, %37, %cst_61 {dimension_numbers = #tpu.dot_dimension_numbers<[1], [0], [0], [1], [0, 0, 1, 1], [], []>} : vector<384x128xbf16>, vector<128x128xbf16>, vector<384x128xf32> -> vector<384x128xf32>
    %c1_i32_62 = arith.constant 1 : i32
    %39 = tpu.dynamic_rotate %38 by %c1_i32_62 dim 0 : vector<384x128xf32>, i32 -> vector<384x128xf32>
    %40 = vector.shape_cast %39 : vector<384x128xf32> to vector<16x24x128xf32>
    %c0_63 = arith.constant 0 : index
    %c0_64 = arith.constant 0 : index
    %c0_65 = arith.constant 0 : index
    %41 = vector.load %arg9[%c0_63, %c0_64, %c0_65] : memref<16x24x128xf32, #tpu.memory_space<vmem>>, vector<16x24x128xf32>
    %42 = arith.addf %41, %40 : vector<16x24x128xf32>
    %c0_66 = arith.constant 0 : index
    %c0_67 = arith.constant 0 : index
    %c0_68 = arith.constant 0 : index
    %43 = vector.load %arg9[%c0_66, %c0_67, %c0_68] : memref<16x24x128xf32, #tpu.memory_space<vmem>>, vector<16x24x128xf32>
    tpu.vector_store %arg9[%c0_66, %c0_67, %c0_68], %42 {strides = array<i32>} : memref<16x24x128xf32, #tpu.memory_space<vmem>>, vector<16x24x128xf32>,
    %c1_69 = arith.constant 1 : index
    %c1_70 = arith.constant 1 : index
    %c0_71 = arith.constant 0 : index
    %c0_72 = arith.constant 0 : index
    %44 = vector.load %arg2[%c1_69, %c1_70, %c0_71, %c0_72] : memref<3x3x128x128xbf16, #tpu.memory_space<vmem>>, vector<1x1x128x128xbf16>
    %45 = vector.shape_cast %44 : vector<1x1x128x128xbf16> to vector<128x128xbf16>
    %cst_73 = arith.constant dense<0.000000e+00> : vector<384x128xf32>
    %46 = tpu.matmul %35, %45, %cst_73 {dimension_numbers = #tpu.dot_dimension_numbers<[1], [0], [0], [1], [0, 0, 1, 1], [], []>} : vector<384x128xbf16>, vector<128x128xbf16>, vector<384x128xf32> -> vector<384x128xf32>
    %47 = vector.shape_cast %46 : vector<384x128xf32> to vector<16x24x128xf32>
    %c0_74 = arith.constant 0 : index
    %c0_75 = arith.constant 0 : index
    %c0_76 = arith.constant 0 : index
    %48 = vector.load %arg9[%c0_74, %c0_75, %c0_76] : memref<16x24x128xf32, #tpu.memory_space<vmem>>, vector<16x24x128xf32>
    %49 = arith.addf %48, %47 : vector<16x24x128xf32>
    %c0_77 = arith.constant 0 : index
    %c0_78 = arith.constant 0 : index
    %c0_79 = arith.constant 0 : index
    %50 = vector.load %arg9[%c0_77, %c0_78, %c0_79] : memref<16x24x128xf32, #tpu.memory_space<vmem>>, vector<16x24x128xf32>
    tpu.vector_store %arg9[%c0_77, %c0_78, %c0_79], %49 {strides = array<i32>} : memref<16x24x128xf32, #tpu.memory_space<vmem>>, vector<16x24x128xf32>,
    %c1_80 = arith.constant 1 : index
    %c2_81 = arith.constant 2 : index
    %c0_82 = arith.constant 0 : index
    %c0_83 = arith.constant 0 : index
    %51 = vector.load %arg2[%c1_80, %c2_81, %c0_82, %c0_83] : memref<3x3x128x128xbf16, #tpu.memory_space<vmem>>, vector<1x1x128x128xbf16>
    %52 = vector.shape_cast %51 : vector<1x1x128x128xbf16> to vector<128x128xbf16>
    %cst_84 = arith.constant dense<0.000000e+00> : vector<384x128xf32>
    %53 = tpu.matmul %35, %52, %cst_84 {dimension_numbers = #tpu.dot_dimension_numbers<[1], [0], [0], [1], [0, 0, 1, 1], [], []>} : vector<384x128xbf16>, vector<128x128xbf16>, vector<384x128xf32> -> vector<384x128xf32>
    %c383_i32_85 = arith.constant 383 : i32
    %54 = tpu.dynamic_rotate %53 by %c383_i32_85 dim 0 : vector<384x128xf32>, i32 -> vector<384x128xf32>
    %55 = vector.shape_cast %54 : vector<384x128xf32> to vector<16x24x128xf32>
    %c0_86 = arith.constant 0 : index
    %c0_87 = arith.constant 0 : index
    %c0_88 = arith.constant 0 : index
    %56 = vector.load %arg9[%c0_86, %c0_87, %c0_88] : memref<16x24x128xf32, #tpu.memory_space<vmem>>, vector<16x24x128xf32>
    %57 = arith.addf %56, %55 : vector<16x24x128xf32>
    %c0_89 = arith.constant 0 : index
    %c0_90 = arith.constant 0 : index
    %c0_91 = arith.constant 0 : index
    %58 = vector.load %arg9[%c0_89, %c0_90, %c0_91] : memref<16x24x128xf32, #tpu.memory_space<vmem>>, vector<16x24x128xf32>
    tpu.vector_store %arg9[%c0_89, %c0_90, %c0_91], %57 {strides = array<i32>} : memref<16x24x128xf32, #tpu.memory_space<vmem>>, vector<16x24x128xf32>,
    %c2_92 = arith.constant 2 : index
    %c0_93 = arith.constant 0 : index
    %c0_94 = arith.constant 0 : index
    %59 = vector.load %arg7[%c2_92, %c0_93, %c0_94] : memref<18x24x128xbf16, #tpu.memory_space<vmem>>, vector<16x24x128xbf16>
    %60 = vector.shape_cast %59 : vector<16x24x128xbf16> to vector<384x128xbf16>
    %c2_95 = arith.constant 2 : index
    %c0_96 = arith.constant 0 : index
    %c0_97 = arith.constant 0 : index
    %c0_98 = arith.constant 0 : index
    %61 = vector.load %arg2[%c2_95, %c0_96, %c0_97, %c0_98] : memref<3x3x128x128xbf16, #tpu.memory_space<vmem>>, vector<1x1x128x128xbf16>
    %62 = vector.shape_cast %61 : vector<1x1x128x128xbf16> to vector<128x128xbf16>
    %cst_99 = arith.constant dense<0.000000e+00> : vector<384x128xf32>
    %63 = tpu.matmul %60, %62, %cst_99 {dimension_numbers = #tpu.dot_dimension_numbers<[1], [0], [0], [1], [0, 0, 1, 1], [], []>} : vector<384x128xbf16>, vector<128x128xbf16>, vector<384x128xf32> -> vector<384x128xf32>
    %c1_i32_100 = arith.constant 1 : i32
    %64 = tpu.dynamic_rotate %63 by %c1_i32_100 dim 0 : vector<384x128xf32>, i32 -> vector<384x128xf32>
    %65 = vector.shape_cast %64 : vector<384x128xf32> to vector<16x24x128xf32>
    %c0_101 = arith.constant 0 : index
    %c0_102 = arith.constant 0 : index
    %c0_103 = arith.constant 0 : index
    %66 = vector.load %arg9[%c0_101, %c0_102, %c0_103] : memref<16x24x128xf32, #tpu.memory_space<vmem>>, vector<16x24x128xf32>
    %67 = arith.addf %66, %65 : vector<16x24x128xf32>
    %c0_104 = arith.constant 0 : index
    %c0_105 = arith.constant 0 : index
    %c0_106 = arith.constant 0 : index
    %68 = vector.load %arg9[%c0_104, %c0_105, %c0_106] : memref<16x24x128xf32, #tpu.memory_space<vmem>>, vector<16x24x128xf32>
    tpu.vector_store %arg9[%c0_104, %c0_105, %c0_106], %67 {strides = array<i32>} : memref<16x24x128xf32, #tpu.memory_space<vmem>>, vector<16x24x128xf32>,
    %c2_107 = arith.constant 2 : index
    %c1_108 = arith.constant 1 : index
    %c0_109 = arith.constant 0 : index
    %c0_110 = arith.constant 0 : index
    %69 = vector.load %arg2[%c2_107, %c1_108, %c0_109, %c0_110] : memref<3x3x128x128xbf16, #tpu.memory_space<vmem>>, vector<1x1x128x128xbf16>
    %70 = vector.shape_cast %69 : vector<1x1x128x128xbf16> to vector<128x128xbf16>
    %cst_111 = arith.constant dense<0.000000e+00> : vector<384x128xf32>
    %71 = tpu.matmul %60, %70, %cst_111 {dimension_numbers = #tpu.dot_dimension_numbers<[1], [0], [0], [1], [0, 0, 1, 1], [], []>} : vector<384x128xbf16>, vector<128x128xbf16>, vector<384x128xf32> -> vector<384x128xf32>
    %72 = vector.shape_cast %71 : vector<384x128xf32> to vector<16x24x128xf32>
    %c0_112 = arith.constant 0 : index
    %c0_113 = arith.constant 0 : index
    %c0_114 = arith.constant 0 : index
    %73 = vector.load %arg9[%c0_112, %c0_113, %c0_114] : memref<16x24x128xf32, #tpu.memory_space<vmem>>, vector<16x24x128xf32>
    %74 = arith.addf %73, %72 : vector<16x24x128xf32>
    %c0_115 = arith.constant 0 : index
    %c0_116 = arith.constant 0 : index
    %c0_117 = arith.constant 0 : index
    %75 = vector.load %arg9[%c0_115, %c0_116, %c0_117] : memref<16x24x128xf32, #tpu.memory_space<vmem>>, vector<16x24x128xf32>
    tpu.vector_store %arg9[%c0_115, %c0_116, %c0_117], %74 {strides = array<i32>} : memref<16x24x128xf32, #tpu.memory_space<vmem>>, vector<16x24x128xf32>,
    %c2_118 = arith.constant 2 : index
    %c2_119 = arith.constant 2 : index
    %c0_120 = arith.constant 0 : index
    %c0_121 = arith.constant 0 : index
    %76 = vector.load %arg2[%c2_118, %c2_119, %c0_120, %c0_121] : memref<3x3x128x128xbf16, #tpu.memory_space<vmem>>, vector<1x1x128x128xbf16>
    %77 = vector.shape_cast %76 : vector<1x1x128x128xbf16> to vector<128x128xbf16>
    %cst_122 = arith.constant dense<0.000000e+00> : vector<384x128xf32>
    %78 = tpu.matmul %60, %77, %cst_122 {dimension_numbers = #tpu.dot_dimension_numbers<[1], [0], [0], [1], [0, 0, 1, 1], [], []>} : vector<384x128xbf16>, vector<128x128xbf16>, vector<384x128xf32> -> vector<384x128xf32>
    %c383_i32_123 = arith.constant 383 : i32
    %79 = tpu.dynamic_rotate %78 by %c383_i32_123 dim 0 : vector<384x128xf32>, i32 -> vector<384x128xf32>
    %80 = vector.shape_cast %79 : vector<384x128xf32> to vector<16x24x128xf32>
    %c0_124 = arith.constant 0 : index
    %c0_125 = arith.constant 0 : index
    %c0_126 = arith.constant 0 : index
    %81 = vector.load %arg9[%c0_124, %c0_125, %c0_126] : memref<16x24x128xf32, #tpu.memory_space<vmem>>, vector<16x24x128xf32>
    %82 = arith.addf %81, %80 : vector<16x24x128xf32>
    %c0_127 = arith.constant 0 : index
    %c0_128 = arith.constant 0 : index
    %c0_129 = arith.constant 0 : index
    %83 = vector.load %arg9[%c0_127, %c0_128, %c0_129] : memref<16x24x128xf32, #tpu.memory_space<vmem>>, vector<16x24x128xf32>
    tpu.vector_store %arg9[%c0_127, %c0_128, %c0_129], %82 {strides = array<i32>} : memref<16x24x128xf32, #tpu.memory_space<vmem>>, vector<16x24x128xf32>,
    %c0_130 = arith.constant 0 : index
    %c0_131 = arith.constant 0 : index
    %c0_132 = arith.constant 0 : index
    %84 = vector.load %arg9[%c0_130, %c0_131, %c0_132] : memref<16x24x128xf32, #tpu.memory_space<vmem>>, vector<16x16x128xf32>
    %c0_133 = arith.constant 0 : index
    %c0_134 = arith.constant 0 : index
    %85 = vector.load %arg3[%c0_133, %c0_134] : memref<1x128xf32, #tpu.memory_space<vmem>>, vector<1x128xf32>
    %86 = vector.shape_cast %85 : vector<1x128xf32> to vector<1x1x128xf32>
    %87 = vector.broadcast %86 : vector<1x1x128xf32> to vector<16x16x128xf32>
    %88 = arith.addf %84, %87 : vector<16x16x128xf32>
    %cst_135 = arith.constant 0.000000e+00 : f32
    %89 = vector.broadcast %cst_135 : f32 to vector<16x16x128xf32>
    %90 = arith.maximumf %88, %89 : vector<16x16x128xf32>
    %91 = arith.truncf %90 : vector<16x16x128xf32> to vector<16x16x128xbf16>
    %c1_136 = arith.constant 1 : index
    %c0_137 = arith.constant 0 : index
    %c0_138 = arith.constant 0 : index
    %92 = vector.load %arg8[%c1_136, %c0_137, %c0_138] : memref<18x24x128xbf16, #tpu.memory_space<vmem>>, vector<16x16x128xbf16>
    tpu.vector_store %arg8[%c1_136, %c0_137, %c0_138], %91 {strides = array<i32>} : memref<18x24x128xbf16, #tpu.memory_space<vmem>>, vector<16x16x128xbf16>,
    %c0_139 = arith.constant 0 : index
    %c0_140 = arith.constant 0 : index
    %c0_141 = arith.constant 0 : index
    %93 = vector.load %arg8[%c0_139, %c0_140, %c0_141] : memref<18x24x128xbf16, #tpu.memory_space<vmem>>, vector<16x24x128xbf16>
    %94 = vector.shape_cast %93 : vector<16x24x128xbf16> to vector<384x128xbf16>
    %c0_142 = arith.constant 0 : index
    %c0_143 = arith.constant 0 : index
    %c0_144 = arith.constant 0 : index
    %c0_145 = arith.constant 0 : index
    %95 = vector.load %arg4[%c0_142, %c0_143, %c0_144, %c0_145] : memref<3x3x128x128xbf16, #tpu.memory_space<vmem>>, vector<1x1x128x128xbf16>
    %96 = vector.shape_cast %95 : vector<1x1x128x128xbf16> to vector<128x128xbf16>
    %cst_146 = arith.constant dense<0.000000e+00> : vector<384x128xf32>
    %97 = tpu.matmul %94, %96, %cst_146 {dimension_numbers = #tpu.dot_dimension_numbers<[1], [0], [0], [1], [0, 0, 1, 1], [], []>} : vector<384x128xbf16>, vector<128x128xbf16>, vector<384x128xf32> -> vector<384x128xf32>
    %c1_i32_147 = arith.constant 1 : i32
    %98 = tpu.dynamic_rotate %97 by %c1_i32_147 dim 0 : vector<384x128xf32>, i32 -> vector<384x128xf32>
    %99 = vector.shape_cast %98 : vector<384x128xf32> to vector<16x24x128xf32>
    %c0_148 = arith.constant 0 : index
    %c0_149 = arith.constant 0 : index
    %c0_150 = arith.constant 0 : index
    %100 = vector.load %arg9[%c0_148, %c0_149, %c0_150] : memref<16x24x128xf32, #tpu.memory_space<vmem>>, vector<16x24x128xf32>
    tpu.vector_store %arg9[%c0_148, %c0_149, %c0_150], %99 {strides = array<i32>} : memref<16x24x128xf32, #tpu.memory_space<vmem>>, vector<16x24x128xf32>,
    %c0_151 = arith.constant 0 : index
    %c1_152 = arith.constant 1 : index
    %c0_153 = arith.constant 0 : index
    %c0_154 = arith.constant 0 : index
    %101 = vector.load %arg4[%c0_151, %c1_152, %c0_153, %c0_154] : memref<3x3x128x128xbf16, #tpu.memory_space<vmem>>, vector<1x1x128x128xbf16>
    %102 = vector.shape_cast %101 : vector<1x1x128x128xbf16> to vector<128x128xbf16>
    %cst_155 = arith.constant dense<0.000000e+00> : vector<384x128xf32>
    %103 = tpu.matmul %94, %102, %cst_155 {dimension_numbers = #tpu.dot_dimension_numbers<[1], [0], [0], [1], [0, 0, 1, 1], [], []>} : vector<384x128xbf16>, vector<128x128xbf16>, vector<384x128xf32> -> vector<384x128xf32>
    %104 = vector.shape_cast %103 : vector<384x128xf32> to vector<16x24x128xf32>
    %c0_156 = arith.constant 0 : index
    %c0_157 = arith.constant 0 : index
    %c0_158 = arith.constant 0 : index
    %105 = vector.load %arg9[%c0_156, %c0_157, %c0_158] : memref<16x24x128xf32, #tpu.memory_space<vmem>>, vector<16x24x128xf32>
    %106 = arith.addf %105, %104 : vector<16x24x128xf32>
    %c0_159 = arith.constant 0 : index
    %c0_160 = arith.constant 0 : index
    %c0_161 = arith.constant 0 : index
    %107 = vector.load %arg9[%c0_159, %c0_160, %c0_161] : memref<16x24x128xf32, #tpu.memory_space<vmem>>, vector<16x24x128xf32>
    tpu.vector_store %arg9[%c0_159, %c0_160, %c0_161], %106 {strides = array<i32>} : memref<16x24x128xf32, #tpu.memory_space<vmem>>, vector<16x24x128xf32>,
    %c0_162 = arith.constant 0 : index
    %c2_163 = arith.constant 2 : index
    %c0_164 = arith.constant 0 : index
    %c0_165 = arith.constant 0 : index
    %108 = vector.load %arg4[%c0_162, %c2_163, %c0_164, %c0_165] : memref<3x3x128x128xbf16, #tpu.memory_space<vmem>>, vector<1x1x128x128xbf16>
    %109 = vector.shape_cast %108 : vector<1x1x128x128xbf16> to vector<128x128xbf16>
    %cst_166 = arith.constant dense<0.000000e+00> : vector<384x128xf32>
    %110 = tpu.matmul %94, %109, %cst_166 {dimension_numbers = #tpu.dot_dimension_numbers<[1], [0], [0], [1], [0, 0, 1, 1], [], []>} : vector<384x128xbf16>, vector<128x128xbf16>, vector<384x128xf32> -> vector<384x128xf32>
    %c383_i32_167 = arith.constant 383 : i32
    %111 = tpu.dynamic_rotate %110 by %c383_i32_167 dim 0 : vector<384x128xf32>, i32 -> vector<384x128xf32>
    %112 = vector.shape_cast %111 : vector<384x128xf32> to vector<16x24x128xf32>
    %c0_168 = arith.constant 0 : index
    %c0_169 = arith.constant 0 : index
    %c0_170 = arith.constant 0 : index
    %113 = vector.load %arg9[%c0_168, %c0_169, %c0_170] : memref<16x24x128xf32, #tpu.memory_space<vmem>>, vector<16x24x128xf32>
    %114 = arith.addf %113, %112 : vector<16x24x128xf32>
    %c0_171 = arith.constant 0 : index
    %c0_172 = arith.constant 0 : index
    %c0_173 = arith.constant 0 : index
    %115 = vector.load %arg9[%c0_171, %c0_172, %c0_173] : memref<16x24x128xf32, #tpu.memory_space<vmem>>, vector<16x24x128xf32>
    tpu.vector_store %arg9[%c0_171, %c0_172, %c0_173], %114 {strides = array<i32>} : memref<16x24x128xf32, #tpu.memory_space<vmem>>, vector<16x24x128xf32>,
    %c1_174 = arith.constant 1 : index
    %c0_175 = arith.constant 0 : index
    %c0_176 = arith.constant 0 : index
    %116 = vector.load %arg8[%c1_174, %c0_175, %c0_176] : memref<18x24x128xbf16, #tpu.memory_space<vmem>>, vector<16x24x128xbf16>
    %117 = vector.shape_cast %116 : vector<16x24x128xbf16> to vector<384x128xbf16>
    %c1_177 = arith.constant 1 : index
    %c0_178 = arith.constant 0 : index
    %c0_179 = arith.constant 0 : index
    %c0_180 = arith.constant 0 : index
    %118 = vector.load %arg4[%c1_177, %c0_178, %c0_179, %c0_180] : memref<3x3x128x128xbf16, #tpu.memory_space<vmem>>, vector<1x1x128x128xbf16>
    %119 = vector.shape_cast %118 : vector<1x1x128x128xbf16> to vector<128x128xbf16>
    %cst_181 = arith.constant dense<0.000000e+00> : vector<384x128xf32>
    %120 = tpu.matmul %117, %119, %cst_181 {dimension_numbers = #tpu.dot_dimension_numbers<[1], [0], [0], [1], [0, 0, 1, 1], [], []>} : vector<384x128xbf16>, vector<128x128xbf16>, vector<384x128xf32> -> vector<384x128xf32>
    %c1_i32_182 = arith.constant 1 : i32
    %121 = tpu.dynamic_rotate %120 by %c1_i32_182 dim 0 : vector<384x128xf32>, i32 -> vector<384x128xf32>
    %122 = vector.shape_cast %121 : vector<384x128xf32> to vector<16x24x128xf32>
    %c0_183 = arith.constant 0 : index
    %c0_184 = arith.constant 0 : index
    %c0_185 = arith.constant 0 : index
    %123 = vector.load %arg9[%c0_183, %c0_184, %c0_185] : memref<16x24x128xf32, #tpu.memory_space<vmem>>, vector<16x24x128xf32>
    %124 = arith.addf %123, %122 : vector<16x24x128xf32>
    %c0_186 = arith.constant 0 : index
    %c0_187 = arith.constant 0 : index
    %c0_188 = arith.constant 0 : index
    %125 = vector.load %arg9[%c0_186, %c0_187, %c0_188] : memref<16x24x128xf32, #tpu.memory_space<vmem>>, vector<16x24x128xf32>
    tpu.vector_store %arg9[%c0_186, %c0_187, %c0_188], %124 {strides = array<i32>} : memref<16x24x128xf32, #tpu.memory_space<vmem>>, vector<16x24x128xf32>,
    %c1_189 = arith.constant 1 : index
    %c1_190 = arith.constant 1 : index
    %c0_191 = arith.constant 0 : index
    %c0_192 = arith.constant 0 : index
    %126 = vector.load %arg4[%c1_189, %c1_190, %c0_191, %c0_192] : memref<3x3x128x128xbf16, #tpu.memory_space<vmem>>, vector<1x1x128x128xbf16>
    %127 = vector.shape_cast %126 : vector<1x1x128x128xbf16> to vector<128x128xbf16>
    %cst_193 = arith.constant dense<0.000000e+00> : vector<384x128xf32>
    %128 = tpu.matmul %117, %127, %cst_193 {dimension_numbers = #tpu.dot_dimension_numbers<[1], [0], [0], [1], [0, 0, 1, 1], [], []>} : vector<384x128xbf16>, vector<128x128xbf16>, vector<384x128xf32> -> vector<384x128xf32>
    %129 = vector.shape_cast %128 : vector<384x128xf32> to vector<16x24x128xf32>
    %c0_194 = arith.constant 0 : index
    %c0_195 = arith.constant 0 : index
    %c0_196 = arith.constant 0 : index
    %130 = vector.load %arg9[%c0_194, %c0_195, %c0_196] : memref<16x24x128xf32, #tpu.memory_space<vmem>>, vector<16x24x128xf32>
    %131 = arith.addf %130, %129 : vector<16x24x128xf32>
    %c0_197 = arith.constant 0 : index
    %c0_198 = arith.constant 0 : index
    %c0_199 = arith.constant 0 : index
    %132 = vector.load %arg9[%c0_197, %c0_198, %c0_199] : memref<16x24x128xf32, #tpu.memory_space<vmem>>, vector<16x24x128xf32>
    tpu.vector_store %arg9[%c0_197, %c0_198, %c0_199], %131 {strides = array<i32>} : memref<16x24x128xf32, #tpu.memory_space<vmem>>, vector<16x24x128xf32>,
    %c1_200 = arith.constant 1 : index
    %c2_201 = arith.constant 2 : index
    %c0_202 = arith.constant 0 : index
    %c0_203 = arith.constant 0 : index
    %133 = vector.load %arg4[%c1_200, %c2_201, %c0_202, %c0_203] : memref<3x3x128x128xbf16, #tpu.memory_space<vmem>>, vector<1x1x128x128xbf16>
    %134 = vector.shape_cast %133 : vector<1x1x128x128xbf16> to vector<128x128xbf16>
    %cst_204 = arith.constant dense<0.000000e+00> : vector<384x128xf32>
    %135 = tpu.matmul %117, %134, %cst_204 {dimension_numbers = #tpu.dot_dimension_numbers<[1], [0], [0], [1], [0, 0, 1, 1], [], []>} : vector<384x128xbf16>, vector<128x128xbf16>, vector<384x128xf32> -> vector<384x128xf32>
    %c383_i32_205 = arith.constant 383 : i32
    %136 = tpu.dynamic_rotate %135 by %c383_i32_205 dim 0 : vector<384x128xf32>, i32 -> vector<384x128xf32>
    %137 = vector.shape_cast %136 : vector<384x128xf32> to vector<16x24x128xf32>
    %c0_206 = arith.constant 0 : index
    %c0_207 = arith.constant 0 : index
    %c0_208 = arith.constant 0 : index
    %138 = vector.load %arg9[%c0_206, %c0_207, %c0_208] : memref<16x24x128xf32, #tpu.memory_space<vmem>>, vector<16x24x128xf32>
    %139 = arith.addf %138, %137 : vector<16x24x128xf32>
    %c0_209 = arith.constant 0 : index
    %c0_210 = arith.constant 0 : index
    %c0_211 = arith.constant 0 : index
    %140 = vector.load %arg9[%c0_209, %c0_210, %c0_211] : memref<16x24x128xf32, #tpu.memory_space<vmem>>, vector<16x24x128xf32>
    tpu.vector_store %arg9[%c0_209, %c0_210, %c0_211], %139 {strides = array<i32>} : memref<16x24x128xf32, #tpu.memory_space<vmem>>, vector<16x24x128xf32>,
    %c2_212 = arith.constant 2 : index
    %c0_213 = arith.constant 0 : index
    %c0_214 = arith.constant 0 : index
    %141 = vector.load %arg8[%c2_212, %c0_213, %c0_214] : memref<18x24x128xbf16, #tpu.memory_space<vmem>>, vector<16x24x128xbf16>
    %142 = vector.shape_cast %141 : vector<16x24x128xbf16> to vector<384x128xbf16>
    %c2_215 = arith.constant 2 : index
    %c0_216 = arith.constant 0 : index
    %c0_217 = arith.constant 0 : index
    %c0_218 = arith.constant 0 : index
    %143 = vector.load %arg4[%c2_215, %c0_216, %c0_217, %c0_218] : memref<3x3x128x128xbf16, #tpu.memory_space<vmem>>, vector<1x1x128x128xbf16>
    %144 = vector.shape_cast %143 : vector<1x1x128x128xbf16> to vector<128x128xbf16>
    %cst_219 = arith.constant dense<0.000000e+00> : vector<384x128xf32>
    %145 = tpu.matmul %142, %144, %cst_219 {dimension_numbers = #tpu.dot_dimension_numbers<[1], [0], [0], [1], [0, 0, 1, 1], [], []>} : vector<384x128xbf16>, vector<128x128xbf16>, vector<384x128xf32> -> vector<384x128xf32>
    %c1_i32_220 = arith.constant 1 : i32
    %146 = tpu.dynamic_rotate %145 by %c1_i32_220 dim 0 : vector<384x128xf32>, i32 -> vector<384x128xf32>
    %147 = vector.shape_cast %146 : vector<384x128xf32> to vector<16x24x128xf32>
    %c0_221 = arith.constant 0 : index
    %c0_222 = arith.constant 0 : index
    %c0_223 = arith.constant 0 : index
    %148 = vector.load %arg9[%c0_221, %c0_222, %c0_223] : memref<16x24x128xf32, #tpu.memory_space<vmem>>, vector<16x24x128xf32>
    %149 = arith.addf %148, %147 : vector<16x24x128xf32>
    %c0_224 = arith.constant 0 : index
    %c0_225 = arith.constant 0 : index
    %c0_226 = arith.constant 0 : index
    %150 = vector.load %arg9[%c0_224, %c0_225, %c0_226] : memref<16x24x128xf32, #tpu.memory_space<vmem>>, vector<16x24x128xf32>
    tpu.vector_store %arg9[%c0_224, %c0_225, %c0_226], %149 {strides = array<i32>} : memref<16x24x128xf32, #tpu.memory_space<vmem>>, vector<16x24x128xf32>,
    %c2_227 = arith.constant 2 : index
    %c1_228 = arith.constant 1 : index
    %c0_229 = arith.constant 0 : index
    %c0_230 = arith.constant 0 : index
    %151 = vector.load %arg4[%c2_227, %c1_228, %c0_229, %c0_230] : memref<3x3x128x128xbf16, #tpu.memory_space<vmem>>, vector<1x1x128x128xbf16>
    %152 = vector.shape_cast %151 : vector<1x1x128x128xbf16> to vector<128x128xbf16>
    %cst_231 = arith.constant dense<0.000000e+00> : vector<384x128xf32>
    %153 = tpu.matmul %142, %152, %cst_231 {dimension_numbers = #tpu.dot_dimension_numbers<[1], [0], [0], [1], [0, 0, 1, 1], [], []>} : vector<384x128xbf16>, vector<128x128xbf16>, vector<384x128xf32> -> vector<384x128xf32>
    %154 = vector.shape_cast %153 : vector<384x128xf32> to vector<16x24x128xf32>
    %c0_232 = arith.constant 0 : index
    %c0_233 = arith.constant 0 : index
    %c0_234 = arith.constant 0 : index
    %155 = vector.load %arg9[%c0_232, %c0_233, %c0_234] : memref<16x24x128xf32, #tpu.memory_space<vmem>>, vector<16x24x128xf32>
    %156 = arith.addf %155, %154 : vector<16x24x128xf32>
    %c0_235 = arith.constant 0 : index
    %c0_236 = arith.constant 0 : index
    %c0_237 = arith.constant 0 : index
    %157 = vector.load %arg9[%c0_235, %c0_236, %c0_237] : memref<16x24x128xf32, #tpu.memory_space<vmem>>, vector<16x24x128xf32>
    tpu.vector_store %arg9[%c0_235, %c0_236, %c0_237], %156 {strides = array<i32>} : memref<16x24x128xf32, #tpu.memory_space<vmem>>, vector<16x24x128xf32>,
    %c2_238 = arith.constant 2 : index
    %c2_239 = arith.constant 2 : index
    %c0_240 = arith.constant 0 : index
    %c0_241 = arith.constant 0 : index
    %158 = vector.load %arg4[%c2_238, %c2_239, %c0_240, %c0_241] : memref<3x3x128x128xbf16, #tpu.memory_space<vmem>>, vector<1x1x128x128xbf16>
    %159 = vector.shape_cast %158 : vector<1x1x128x128xbf16> to vector<128x128xbf16>
    %cst_242 = arith.constant dense<0.000000e+00> : vector<384x128xf32>
    %160 = tpu.matmul %142, %159, %cst_242 {dimension_numbers = #tpu.dot_dimension_numbers<[1], [0], [0], [1], [0, 0, 1, 1], [], []>} : vector<384x128xbf16>, vector<128x128xbf16>, vector<384x128xf32> -> vector<384x128xf32>
    %c383_i32_243 = arith.constant 383 : i32
    %161 = tpu.dynamic_rotate %160 by %c383_i32_243 dim 0 : vector<384x128xf32>, i32 -> vector<384x128xf32>
    %162 = vector.shape_cast %161 : vector<384x128xf32> to vector<16x24x128xf32>
    %c0_244 = arith.constant 0 : index
    %c0_245 = arith.constant 0 : index
    %c0_246 = arith.constant 0 : index
    %163 = vector.load %arg9[%c0_244, %c0_245, %c0_246] : memref<16x24x128xf32, #tpu.memory_space<vmem>>, vector<16x24x128xf32>
    %164 = arith.addf %163, %162 : vector<16x24x128xf32>
    %c0_247 = arith.constant 0 : index
    %c0_248 = arith.constant 0 : index
    %c0_249 = arith.constant 0 : index
    %165 = vector.load %arg9[%c0_247, %c0_248, %c0_249] : memref<16x24x128xf32, #tpu.memory_space<vmem>>, vector<16x24x128xf32>
    tpu.vector_store %arg9[%c0_247, %c0_248, %c0_249], %164 {strides = array<i32>} : memref<16x24x128xf32, #tpu.memory_space<vmem>>, vector<16x24x128xf32>,
    %c0_250 = arith.constant 0 : index
    %c0_251 = arith.constant 0 : index
    %c0_252 = arith.constant 0 : index
    %c0_253 = arith.constant 0 : index
    %166 = vector.load %arg1[%c0_250, %c0_251, %c0_252, %c0_253] : memref<1x16x16x128xbf16, #tpu.memory_space<vmem>>, vector<1x16x16x128xbf16>
    %167 = vector.shape_cast %166 : vector<1x16x16x128xbf16> to vector<16x16x128xbf16>
    %168 = arith.extf %167 : vector<16x16x128xbf16> to vector<16x16x128xf32>
    %c0_254 = arith.constant 0 : index
    %c0_255 = arith.constant 0 : index
    %c0_256 = arith.constant 0 : index
    %169 = vector.load %arg9[%c0_254, %c0_255, %c0_256] : memref<16x24x128xf32, #tpu.memory_space<vmem>>, vector<16x16x128xf32>
    %c0_257 = arith.constant 0 : index
    %c0_258 = arith.constant 0 : index
    %170 = vector.load %arg5[%c0_257, %c0_258] : memref<1x128xf32, #tpu.memory_space<vmem>>, vector<1x128xf32>
    %171 = vector.shape_cast %170 : vector<1x128xf32> to vector<1x1x128xf32>
    %172 = vector.broadcast %171 : vector<1x1x128xf32> to vector<16x16x128xf32>
    %173 = arith.addf %169, %172 : vector<16x16x128xf32>
    %174 = arith.addf %173, %168 : vector<16x16x128xf32>
    %cst_259 = arith.constant 0.000000e+00 : f32
    %175 = vector.broadcast %cst_259 : f32 to vector<16x16x128xf32>
    %176 = arith.maximumf %174, %175 : vector<16x16x128xf32>
    %177 = vector.shape_cast %176 : vector<16x16x128xf32> to vector<1x16x16x128xf32>
    %178 = arith.truncf %177 : vector<1x16x16x128xf32> to vector<1x16x16x128xbf16>
    %c0_260 = arith.constant 0 : index
    %c0_261 = arith.constant 0 : index
    %c0_262 = arith.constant 0 : index
    %c0_263 = arith.constant 0 : index
    %179 = vector.load %arg6[%c0_260, %c0_261, %c0_262, %c0_263] : memref<1x16x16x128xbf16, #tpu.memory_space<vmem>>, vector<1x16x16x128xbf16>
    tpu.vector_store %arg6[%c0_260, %c0_261, %c0_262, %c0_263], %178 {strides = array<i32>} : memref<1x16x16x128xbf16, #tpu.memory_space<vmem>>, vector<1x16x16x128xbf16>,
    return
  }
  func.func @transform_0(%arg0: i32) -> (i32, i32, i32, i32) {
    %c0_i32 = arith.constant 0 : i32
    %c0_i32_0 = arith.constant 0 : i32
    %c0_i32_1 = arith.constant 0 : i32
    %c0_i32_2 = arith.constant 0 : i32
    return %arg0, %c0_i32, %c0_i32_0, %c0_i32_1 : i32, i32, i32, i32
  }
  func.func @transform_1(%arg0: i32) -> (i32, i32, i32, i32) {
    %c0_i32 = arith.constant 0 : i32
    %c0_i32_0 = arith.constant 0 : i32
    %c0_i32_1 = arith.constant 0 : i32
    %c0_i32_2 = arith.constant 0 : i32
    %c0_i32_3 = arith.constant 0 : i32
    return %c0_i32, %c0_i32_0, %c0_i32_1, %c0_i32_2 : i32, i32, i32, i32
  }
  func.func @transform_2(%arg0: i32) -> (i32, i32) {
    %c0_i32 = arith.constant 0 : i32
    %c0_i32_0 = arith.constant 0 : i32
    %c0_i32_1 = arith.constant 0 : i32
    return %c0_i32, %c0_i32_0 : i32, i32
  }
  func.func @transform_3(%arg0: i32) -> (i32, i32, i32, i32) {
    %c0_i32 = arith.constant 0 : i32
    %c0_i32_0 = arith.constant 0 : i32
    %c0_i32_1 = arith.constant 0 : i32
    %c0_i32_2 = arith.constant 0 : i32
    %c0_i32_3 = arith.constant 0 : i32
    return %c0_i32, %c0_i32_0, %c0_i32_1, %c0_i32_2 : i32, i32, i32, i32
  }
  func.func @transform_4(%arg0: i32) -> (i32, i32) {
    %c0_i32 = arith.constant 0 : i32
    %c0_i32_0 = arith.constant 0 : i32
    %c0_i32_1 = arith.constant 0 : i32
    return %c0_i32, %c0_i32_0 : i32, i32
  }
  func.func @transform_5(%arg0: i32) -> (i32, i32, i32, i32) {
    %c0_i32 = arith.constant 0 : i32
    %c0_i32_0 = arith.constant 0 : i32
    %c0_i32_1 = arith.constant 0 : i32
    %c0_i32_2 = arith.constant 0 : i32
    return %arg0, %c0_i32, %c0_i32_0, %c0_i32_1 : i32, i32, i32, i32
  }
}

</mosaic_0001>

<bundles_post_ra>
// kernel: tpu_custom_call.1
= control target key start
LH: loop header
LB: loop body
LE: loop exit
PB: predicated region body
PF: predicated region fallthrough
CT: control target
= control target key end

     0   :  { %10 = vsyncpa [#allocation6], 0  ;;  %s12922_s0 = inlined_call_operand.hbm [shape: bf16[2,16,16,128], index: 0, kind: input, shape index: {}]   ;;  %s12923_s1 = inlined_call_operand.hbm [shape: bf16[3,3,128,128], index: 1, kind: input, shape index: {}]   ;;  %s12924_s2 = inlined_call_operand.vmem [shape: f32[1,128], index: 2, kind: input, shape index: {}]   ;;  %s12925_s3 = inlined_call_operand.hbm [shape: bf16[3,3,128,128], index: 3, kind: input, shape index: {}]   ;;  %s12926_s4 = inlined_call_operand.vmem [shape: f32[1,128], index: 4, kind: input, shape index: {}]   ;;  %s12927_s5 = inlined_call_operand.hbm [shape: bf16[2,16,16,128], index: 5, kind: output, shape index: {}]  }
   0x1   :  { %12 = vsyncpa [#allocation6 + $0x1], 0 }
   0x2   :  { %13 = vsyncpa [#allocation9], 0 }
   0x3   :  { %14 = vsyncpa [#allocation7], 0 }
   0x4   :  { %16 = vsyncpa [#allocation7 + $0x1], 0  ;;  %s11146_s18 = smov 0   ;;  %s11148_s19 = smov 0  }
   0x5   :  { %s11150_s20 = smov 0   ;;  %s11152_s21 = smov 0  }
   0x6 LB: > { %s11167_s22 = sadd.s32 4294967295, %s11107_s21   ;;  %s9123_s23 = sadd.s32 4294967294, %s11107_s21   ;;  %s11107_s21 = sphi %s11152_s21, %s12943_s21   ;;  %s11103_s20 = sphi %s11150_s20, %s12942_s20   ;;  %s11099_s19 = sphi %s11148_s19, %s12941_s19   ;;  %s11095_s18 = sphi %s11146_s18, %s12940_s18  }
   0x7   : > { %p42_p0 = scmp.ne.s32.totalorder %s11099_s19, %s11095_s18  ;;  %p43_p1 = scmp.eq.s32.totalorder %s11167_s22, 0 }
   0x8   : > { %p150_p2 = scmp.eq.s32.totalorder %s11167_s22, 1  ;;  %p156_p3 = scmp.eq.s32.totalorder %s9123_s23, 1 }
   0x9   : > { %p11176_p4 = por %p43_p1, %p42_p0  ;;  %p9124_p5 = scmp.ge.s32.totalorder %s11107_s21, 1 }
   0xa   : > { %p11181_p6 = por %p156_p3, %p42_p0  ;;  %p163_p7 = scmp.lt.s32.totalorder %s11107_s21, 3 }
   0xb   : > { %s174_s28 = sshll.u32 %s12923_s1, 4  ;;  %s11109_s30 = smov [#allocation8]   ;;  %s175_s28 = int_to_ptr.hbm [resolvable:$true] %s174_s28 }
   0xc   : > { %p11189_p8 = pnand %p9124_p5, %p163_p7  ;;  %s176_s6 = sshll.u32 %s11109_s30, 4  ;;  %s177_s6 = int_to_ptr.vmem [resolvable:$true] %s176_s6 }
   0xd   : > { %s191_s9 = sshll.u32 %s12925_s3, 4  ;;  %s12928_s10 = smov 64   ;;  %s192_s9 = int_to_ptr.hbm [resolvable:$true] %s191_s9 }
   0xe   : > { %p10833_p9 = pneg %p11189_p8  ;;  %s11111_s11 = smov 4  }
   0xf   : > { %s11112_s12 = smov [#allocation10]   ;;  %s11208_s14 = sadd.s32 1, %s11107_s21  }
  0x10   : > { %p10834_p10 = pnand %p10833_p9, %p43_p1  ;;  %s193_s13 = sshll.u32 %s11112_s12, 4  ;;  %s194_s13 = int_to_ptr.vmem [resolvable:$true] %s193_s13 }
  0x11   : > { %s29_s15 = sadd.s32 1, %s11103_s20  ;;  %s26_s16 = ssub.s32 %s11107_s21, %s11208_s14 }
  0x12   : > { %10836 = dma.hbm_to_vmem [thread:$0]  (!%p10834_p10), %s175_s28, 9216, %s177_s6, [#allocation9], %s12928_s10, %s12928_s10, %s11111_s11  }
  0x13   : > { %10839 = dma.hbm_to_vmem [thread:$0]  (!%p10834_p10), %s192_s9, 9216, %s194_s13, [#allocation9], %s12928_s10, %s12928_s10, %s11111_s11  }
  0x14   : > { %p36_p12 = scmp.ne.s32.totalorder %s11103_s20, %s11099_s19  ;;  %p27_p13 = scmp.eq.s32.totalorder %s26_s16, 0 }
  0x15   : > { %p37_p0 = scmp.eq.s32.totalorder %s11107_s21, 0  ;;  %p10850_p5 = scmp.lt.s32.totalorder %s11107_s21, 2 }
  0x16   : > { %p11218_p3 = por %p150_p2, %p36_p12  ;;  %s210_s26 = sand.u32 1, %s11103_s20  }
  0x17   : > { %s11224_s23 = scalar_select %p27_p13, %s11103_s20, %s29_s15  }
  0x18   : > { %p38_p7 = por %p37_p0, %p36_p12  ;;  %s9128_s27 = sshll.u32 %s210_s26, 7 }
  0x19   : > { %s10293_s28 = sshll.u32 %s11107_s21, 7  ;;  %s214_s8 = scalar_lea.vmem [#allocation5], %s9128_s27 }
  0x1a   : > { %s219_s7 = scalar_lea.hbm %s12922_s0, %s10293_s28  ;;  %s222_s9 = sshll.u32 %s214_s8, 4  ;;  %s223_s9 = int_to_ptr.vmem [resolvable:$true] %s222_s9 }
  0x1b   : > { %s220_s12 = sshll.u32 %s219_s7, 4  ;;  %p11231_p2 = pnand %p10850_p5, %p38_p7  ;;  %s221_s12 = int_to_ptr.hbm [resolvable:$true] %s220_s12 }
  0x1c   : > { %s211_s15 = scalar_lea.sflag [#allocation6], %s210_s26  ;;  %s11007_s16 = sshra.s32 %s221_s12, 4  ;;  %s11008_s16 = int_to_ptr.hbm [resolvable:$true] %s11007_s16 }
  0x1d   : > { %s11009_s10 = scalar_lea.hbm %s11008_s16, 128  ;;  %p11011_p10 = pneg %p11231_p2 }
  0x1e   : > { %p11010_p9 = scmp.ne.s32.totalorder %s11008_s16, %s11009_s10  ;;  %s11014_s30 = scalar_lea.hbm %s12922_s0, 256 }
  0x1f   : > { %p11015_p0 = scmp.lt.s32.totalorder %s11008_s16, %s12922_s0  ;;  %p11016_p5 = scmp.lt.s32.totalorder %s11014_s30, %s11009_s10 }
  0x20   : > { %p11012_p12 = pnand %p11011_p10, %p11010_p9 }
  0x21   : > { %p11017_p7 = por %p11016_p5, %p11015_p0 }
  0x22   : > { %p11013_p13 = pneg %p11012_p12 }
  0x24   : > { %p11018_p11 = pnand %p11017_p7, %p11013_p13 }
  0x26   : > { %11021 = shalt.err (!%p11018_p11)
}
  0x27   : > { %s12935_s26 = smov 64   ;;  %234 = sbr.rel (%p11189_p8) target bundleno = 2481 (0x9b1), region = 40 }
  0x28   : > { %10843 = dma.hbm_to_vmem [thread:$0]  (!%p11231_p2), %s221_s12, 2048, %s223_s9, %s211_s15, %s12935_s26, %s12935_s26, %s11111_s11  }
  0x2c   : > { %s11251_s8 = sand.u32 1, %s11099_s19  }
  0x2d   : > { %s9132_s10 = sshll.u32 %s11251_s8, 7  ;;  %s237_s16 = scalar_lea.sflag [#allocation6], %s11251_s8 }
  0x2e   : > { %s11257_s28 = scalar_lea.vmem [#allocation5], %s9132_s10 }
  0x2f   : > { %11082 = dma.done.wait (%p11176_p4), %s237_s16, 2048  }
  0x30   : > { %11084 = vsyncadd (%p11176_p4), %s237_s16, 4294965248 }
  0x31   : > { %11086 = dma.done.wait (%p43_p1), [#allocation9], 18432  }
  0x32   : > { %11088 = vsyncadd (%p43_p1), [#allocation9], 4294948864  ;;  %v11113_v0 = vmov 0   ;;  %v10325_v1 = vld [vmem:[#allocation8 + $0x38] sm:$0xff]  ;;  %v10324_v3 = vld [vmem:[#allocation8 + $0x30] sm:$0xff]  ;;  %v823_v56 = vlaneseq  ;;  %s12726_s15 = scalar_lea.vmem [#allocation11], %s9132_s10 }
  0x33   : > { %297 = vst [vmem:[#allocation2] sm:$0xf] %v11113_v0  ;;  %v10333_v2 = vld [vmem:[#allocation8 + $0x78] sm:$0xff]  ;;  %646 = vmatpush.bf16.msra.mxu0 %v10325_v1  ;;  %10805 = vmatpush.bf16.msra.mxu2 %v10325_v1  ;;  %v10332_v4 = vld [vmem:[#allocation8 + $0x70] sm:$0xff]  ;;  %v10323_v5 = vld [vmem:[#allocation8 + $0x28] sm:$0xff]  ;;  %s10582_s27 = sshll.u32 %s11167_s22, 7 }
  0x34   : > { %298 = vst [vmem:[#allocation2 + $0x4] sm:$0xf] %v11113_v0  ;;  %10813 = vmatpush.bf16.msra.mxu3 %v10333_v2  ;;  %987 = vmatpush.bf16.msra.mxu1 %v10333_v2  ;;  %v10331_v6 = vld [vmem:[#allocation8 + $0x68] sm:$0xff]  ;;  %v10322_v7 = vld [vmem:[#allocation8 + $0x20] sm:$0xff]  ;;  %v10321_v9 = vld [vmem:[#allocation8 + $0x18] sm:$0xff]  ;;  %v11364_v57 = vshrl.u32 %v823_v56, 7  ;;  %s9027_s7 = scalar_lea.hbm %s12927_s5, %s10582_s27 }
  0x35   : > { %279 = vst [vmem:[#allocation2 + $0x8] sm:$0xf] %v11113_v0  ;;  %v10330_v8 = vld [vmem:[#allocation8 + $0x60] sm:$0xff]  ;;  %v10329_v10 = vld [vmem:[#allocation8 + $0x58] sm:$0xff]  ;;  %v10320_v11 = vld [vmem:[#allocation8 + $0x10] sm:$0xff]  ;;  %s9028_s26 = sshll.u32 %s12726_s15, 4  ;;  %s9029_s26 = int_to_ptr.vmem [resolvable:$true] %s9028_s26 }
  0x36   : > { %280 = vst [vmem:[#allocation2 + $0x14] sm:$0xf] %v11113_v0  ;;  %v10328_v12 = vld [vmem:[#allocation8 + $0x50] sm:$0xff]  ;;  %v10319_v13 = vld [vmem:[#allocation8 + $0x8] sm:$0xff]  ;;  %v10318_v15 = vld [vmem:[#allocation8] sm:$0xff]  ;;  %vm825_vm0 = vcmp.lt.s32.totalorder %v11364_v57, 1 }
  0x37   : > { %281 = vst [vmem:[#allocation2 + $0x20] sm:$0xf] %v11113_v0  ;;  %647 = vmatpush.bf16.msra.mxu0 %v10324_v3  ;;  %10806 = vmatpush.bf16.msra.mxu2 %v10324_v3  ;;  %v10327_v14 = vld [vmem:[#allocation8 + $0x48] sm:$0xff]  ;;  %v10326_v16 = vld [vmem:[#allocation8 + $0x40] sm:$0xff]  ;;  %v10341_v17 = vld [vmem:[#allocation8 + $0xb8] sm:$0xff]  ;;  %vm1502_vm1 = vcmp.lt.s32.totalorder %v11364_v57, 7 }
  0x38   : > { %282 = vst [vmem:[#allocation2 + $0x2c] sm:$0xf] %v11113_v0  ;;  %10814 = vmatpush.bf16.msra.mxu3 %v10332_v4  ;;  %988 = vmatpush.bf16.msra.mxu1 %v10332_v4  ;;  %v10340_v19 = vld [vmem:[#allocation8 + $0xb0] sm:$0xff]  ;;  %v339_v20 = vld [vmem:[%s11257_s28 + $0x38] sm:$0xff]   ;;  %v325_v21 = vld [vmem:[%s11257_s28] sm:$0xff]   ;;  %s9030_s10 = sshll.u32 %s9027_s7, 4  ;;  %s9031_s10 = int_to_ptr.hbm [resolvable:$true] %s9030_s10 }
  0x39   : > { %283 = vst [vmem:[#allocation2 + $0x38] sm:$0xf] %v11113_v0  ;;  %v341_v22 = vld [vmem:[%s11257_s28 + $0x40] sm:$0xff]   ;;  %v327_v25 = vld [vmem:[%s11257_s28 + $0x8] sm:$0xff]   ;;  %v329_v30 = vld [vmem:[%s11257_s28 + $0x10] sm:$0xff]   ;;  %s9016_s22 = scalar_lea.sflag [#allocation7], %s11251_s8 }
  0x3a   : > { %284 = vst [vmem:[#allocation2 + $0x44] sm:$0xf] %v11113_v0  ;;  %v343_v26 = vld [vmem:[%s11257_s28 + $0x48] sm:$0xff]   ;;  %v345_v31 = vld [vmem:[%s11257_s28 + $0x50] sm:$0xff]   ;;  %v10338_v34 = vld [vmem:[#allocation8 + $0xa0] sm:$0xff]  ;;  %s11051_s16 = sshra.s32 %s9031_s10, 4  ;;  %s11052_s16 = int_to_ptr.hbm [resolvable:$true] %s11051_s16 }
  0x3b   : > { %285 = vst [vmem:[#allocation2 + $0x50] sm:$0xf] %v11113_v0  ;;  %648 = vmatpush.bf16.msra.mxu0 %v10323_v5  ;;  %10807 = vmatpush.bf16.msra.mxu2 %v10323_v5  ;;  %v11302_v18 = vld [vmem:[#allocation2] sm:$0xff]  ;;  %v10339_v29 = vld [vmem:[#allocation8 + $0xa8] sm:$0xff]  ;;  %v331_v37 = vld [vmem:[%s11257_s28 + $0x18] sm:$0xff]   ;;  %s11057_s11 = scalar_lea.hbm %s12927_s5, 256  ;;  %p11058_p11 = scmp.lt.s32.totalorder %s11052_s16, %s12927_s5 }
  0x3c   : > { %286 = vst [vmem:[#allocation2 + $0x5c] sm:$0xf] %v11113_v0  ;;  %10815 = vmatpush.bf16.msra.mxu3 %v10331_v6  ;;  %989 = vmatpush.bf16.msra.mxu1 %v10331_v6  ;;  %v347_v38 = vld [vmem:[%s11257_s28 + $0x58] sm:$0xff]   ;;  %v333_v42 = vld [vmem:[%s11257_s28 + $0x20] sm:$0xff]   ;;  %v10336_v46 = vld [vmem:[#allocation8 + $0x90] sm:$0xff] }
  0x3d   : > { %287 = vst [vmem:[#allocation2 + $0x68] sm:$0xf] %v11113_v0  ;;  %v10337_v41 = vld [vmem:[#allocation8 + $0x98] sm:$0xff]  ;;  %v349_v43 = vld [vmem:[%s11257_s28 + $0x60] sm:$0xff]   ;;  %v335_v49 = vld [vmem:[%s11257_s28 + $0x28] sm:$0xff]  }
  0x3e   : > { %288 = vst [vmem:[#allocation2 + $0x74] sm:$0xf] %v11113_v0  ;;  %v351_v50 = vld [vmem:[%s11257_s28 + $0x68] sm:$0xff]   ;;  %v337_v58 = vld [vmem:[%s11257_s28 + $0x30] sm:$0xff]   ;;  %v10373_v5 = vld [vmem:[#allocation8 + $0xf8] sm:$0xff] }
  0x3f   : > { %289 = vst [vmem:[#allocation2 + $0x80] sm:$0xf] %v11113_v0  ;;  %649 = vmatpush.bf16.msra.mxu0 %v10322_v7  ;;  %10808 = vmatpush.bf16.msra.mxu2 %v10322_v7  ;;  %v10335_v54 = vld [vmem:[#allocation8 + $0x88] sm:$0xff]  ;;  %v353_v59 = vld [vmem:[%s11257_s28 + $0x70] sm:$0xff]   ;;  %v10381_v7 = vld [vmem:[#allocation8 + $0x138] sm:$0xff] }
  0x40   : > { %290 = vst [vmem:[#allocation2 + $0x8c] sm:$0xf] %v11113_v0  ;;  %10816 = vmatpush.bf16.msra.mxu3 %v10330_v8  ;;  %990 = vmatpush.bf16.msra.mxu1 %v10330_v8 }
  0x41   : > { %291 = vst [vmem:[#allocation2 + $0x98] sm:$0xf] %v11113_v0 }
  0x42   : > { %292 = vst [vmem:[#allocation2 + $0xa4] sm:$0xf] %v11113_v0 }
  0x43   : > { %293 = vst [vmem:[#allocation2 + $0xb0] sm:$0xf] %v11113_v0  ;;  %650 = vmatpush.bf16.msra.mxu0 %v10321_v9  ;;  %10809 = vmatpush.bf16.msra.mxu2 %v10321_v9 }
  0x44   : > { %294 = vst [vmem:[#allocation2 + $0xbc] sm:$0xf] %v11113_v0  ;;  %10817 = vmatpush.bf16.msra.mxu3 %v10329_v10  ;;  %991 = vmatpush.bf16.msra.mxu1 %v10329_v10  ;;  %v10372_v10 = vld [vmem:[#allocation8 + $0xf0] sm:$0xff] }
  0x45   : > { %295 = vst [vmem:[#allocation2 + $0xc8] sm:$0xf] %v11113_v0 }
  0x46   : > { %296 = vst [vmem:[#allocation2 + $0xd4] sm:$0xf] %v11113_v0 }
  0x47   : > { %300 = vst [vmem:[#allocation2 + $0xcc] sm:$0xf] %v11113_v0  ;;  %651 = vmatpush.bf16.msra.mxu0 %v10320_v11  ;;  %10810 = vmatpush.bf16.msra.mxu2 %v10320_v11  ;;  %v10380_v11 = vld [vmem:[#allocation8 + $0x130] sm:$0xff] }
  0x48   : > { %301 = vst [vmem:[#allocation2 + $0xd0] sm:$0xf] %v11113_v0  ;;  %10818 = vmatpush.bf16.msra.mxu3 %v10328_v12  ;;  %992 = vmatpush.bf16.msra.mxu1 %v10328_v12 }
  0x49   : > { %302 = vst [vmem:[#allocation3 + $0x8] sm:$0xf] %v11113_v0 }
  0x4a   : > { %303 = vst [vmem:[#allocation3 + $0x14] sm:$0xf] %v11113_v0 }
  0x4b   : > { %304 = vst [vmem:[#allocation3 + $0x20] sm:$0xf] %v11113_v0  ;;  %652 = vmatpush.bf16.msra.mxu0 %v10319_v13  ;;  %10811 = vmatpush.bf16.msra.mxu2 %v10319_v13 }
  0x4c   : > { %305 = vst [vmem:[#allocation3 + $0x2c] sm:$0xf] %v11113_v0  ;;  %10819 = vmatpush.bf16.msra.mxu3 %v10327_v14  ;;  %993 = vmatpush.bf16.msra.mxu1 %v10327_v14  ;;  %v10334_v14 = vld [vmem:[#allocation8 + $0x80] sm:$0xff] }
  0x4d   : > { %306 = vst [vmem:[#allocation3 + $0x38] sm:$0xf] %v11113_v0 }
  0x4e   : > { %307 = vst [vmem:[#allocation3 + $0x44] sm:$0xf] %v11113_v0 }
  0x4f   : > { %308 = vst [vmem:[#allocation3 + $0x50] sm:$0xf] %v11113_v0  ;;  %653 = vmatpush.bf16.msra.mxu0 %v10318_v15  ;;  %10812 = vmatpush.bf16.msra.mxu2 %v10318_v15  ;;  %v10371_v15 = vld [vmem:[#allocation8 + $0xe8] sm:$0xff] }
  0x50   : > { %309 = vst [vmem:[#allocation3 + $0x5c] sm:$0xf] %v11113_v0  ;;  %10820 = vmatpush.bf16.msra.mxu3 %v10326_v16  ;;  %994 = vmatpush.bf16.msra.mxu1 %v10326_v16 }
  0x51   : > { %310 = vst [vmem:[#allocation3 + $0x68] sm:$0xf] %v11113_v0 }
  0x52   : > { %311 = vst [vmem:[#allocation3 + $0x74] sm:$0xf] %v11113_v0  ;;  %654 = vmatmul.bf16.vlgmr.msra.gmra.mxu0 %v11302_v18 }
  0x53   : > { %312 = vst [vmem:[#allocation3 + $0x80] sm:$0xf] %v11113_v0  ;;  %1325 = vmatpush.bf16.msrb.mxu2 %v10341_v17  ;;  %995 = vmatmul.bf16.vlgmr.msra.gmra.mxu1 %v11302_v18 }
  0x54   : > { %313 = vst [vmem:[#allocation3 + $0x8c] sm:$0xf] %v11113_v0  ;;  %1952 = vmatpush.bf16.msrb.mxu3 %v10373_v5  ;;  %2386 = vmatpush.bf16.msrb.mxu0 %v10381_v7 }
  0x55   : > { %314 = vst [vmem:[#allocation3 + $0x98] sm:$0xf] %v11113_v0 }
  0x56   : > { %315 = vst [vmem:[#allocation3 + $0xa4] sm:$0xf] %v11113_v0 }
  0x57   : > { %316 = vst [vmem:[#allocation3 + $0xb0] sm:$0xf] %v11113_v0  ;;  %1326 = vmatpush.bf16.msrb.mxu2 %v10340_v19  ;;  %v10379_v19 = vld [vmem:[#allocation8 + $0x128] sm:$0xff] }
  0x58   : > { %317 = vst [vmem:[#allocation3 + $0xbc] sm:$0xf] %v11113_v0  ;;  %1953 = vmatpush.bf16.msrb.mxu3 %v10372_v10  ;;  %2387 = vmatpush.bf16.msrb.mxu0 %v10380_v11  ;;  %v10374_v10 = vld [vmem:[#allocation8 + $0x100] sm:$0xff] }
  0x59   : > { %318 = vst [vmem:[#allocation3 + $0xc8] sm:$0xf] %v11113_v0 }
  0x5a   : > { %319 = vst [vmem:[#allocation3 + $0xd4] sm:$0xf] %v11113_v0 }
  0x5b   : > { %320 = vst [vmem:[#allocation3] sm:$0xf] %v11113_v0  ;;  %1327 = vmatpush.bf16.msrb.mxu2 %v10339_v29 }
  0x5c   : > { %321 = vst [vmem:[#allocation3 + $0x4] sm:$0xf] %v11113_v0  ;;  %1954 = vmatpush.bf16.msrb.mxu3 %v10371_v15  ;;  %2388 = vmatpush.bf16.msrb.mxu0 %v10379_v19  ;;  %v10421_v19 = vld [vmem:[#allocation8 + $0x1b8] sm:$0xff] }
  0x5d   : > { %323 = vst [vmem:[#allocation3 + $0xcc] sm:$0xf] %v11113_v0 }
  0x5e   : > { %324 = vst [vmem:[#allocation3 + $0xd0] sm:$0xf] %v11113_v0 }
  0x5f   : > { %372 = vst [vmem:[#allocation2 + $0x60] sm:$0xff] %v339_v20   ;;  %1328 = vmatpush.bf16.msrb.mxu2 %v10338_v34 }
  0x60   : > { %358 = vst [vmem:[#allocation2 + $0xc] sm:$0xff] %v325_v21  }
  0x61   : > { %374 = vst [vmem:[#allocation2 + $0x6c] sm:$0xff] %v341_v22  }
  0x62   : > { %360 = vst [vmem:[#allocation2 + $0x18] sm:$0xff] %v327_v25   ;;  %v10370_v25 = vld [vmem:[#allocation8 + $0xe0] sm:$0xff] }
  0x63   : > { %376 = vst [vmem:[#allocation2 + $0x78] sm:$0xff] %v343_v26   ;;  %1329 = vmatpush.bf16.msrb.mxu2 %v10337_v41  ;;  %v10389_v26 = vld [vmem:[#allocation8 + $0x178] sm:$0xff]  ;;  %1955 = vmatpush.bf16.msrb.mxu3 %v10370_v25 }
  0x64   : > { %362 = vst [vmem:[#allocation2 + $0x24] sm:$0xff] %v329_v30   ;;  %2724 = vmatpush.bf16.msrb.mxu1 %v10389_v26 }
  0x65   : > { %378 = vst [vmem:[#allocation2 + $0x84] sm:$0xff] %v345_v31   ;;  %v10378_v31 = vld [vmem:[#allocation8 + $0x120] sm:$0xff] }
  0x66   : > { %v10306_v23 = vld [vmem:[#allocation2 + $0x60] sm:$0xff]  ;;  %364 = vst [vmem:[#allocation2 + $0x30] sm:$0xff] %v331_v37   ;;  %2389 = vmatpush.bf16.msrb.mxu0 %v10378_v31  ;;  %v10382_v31 = vld [vmem:[#allocation8 + $0x140] sm:$0xff] }
  0x67   : > { %v11318_v24 = vld [vmem:[#allocation2 + $0x8] sm:$0xff]  ;;  %714 = vmatmul.bf16.vlgmr.msra.gmra.mxu2 %v10306_v23  ;;  %1055 = vmatmul.bf16.vlgmr.msra.gmra.mxu3 %v10306_v23  ;;  %v11324_v28 = vld [vmem:[#allocation2 + $0x10] sm:$0xff]  ;;  %380 = vst [vmem:[#allocation2 + $0x90] sm:$0xff] %v347_v38  }
  0x68   : > { %659 = vmatmul.bf16.gmra.mxu0 %v11318_v24  ;;  %1000 = vmatmul.bf16.gmra.mxu1 %v11318_v24  ;;  %v10307_v27 = vld [vmem:[#allocation2 + $0x68] sm:$0xff]  ;;  %v10308_v32 = vld [vmem:[#allocation2 + $0x70] sm:$0xff]  ;;  %366 = vst [vmem:[#allocation2 + $0x3c] sm:$0xff] %v333_v42  }
  0x69   : > { %v11330_v33 = vld [vmem:[#allocation2 + $0x18] sm:$0xff]  ;;  %382 = vst [vmem:[#allocation2 + $0x9c] sm:$0xff] %v349_v43   ;;  %1330 = vmatpush.bf16.msrb.mxu2 %v10336_v46  ;;  %v10369_v38 = vld [vmem:[#allocation8 + $0xd8] sm:$0xff] }
  0x6a   : > { %v10309_v35 = vld [vmem:[#allocation2 + $0x78] sm:$0xff]  ;;  %368 = vst [vmem:[#allocation2 + $0x48] sm:$0xff] %v335_v49   ;;  %1956 = vmatpush.bf16.msrb.mxu3 %v10369_v38  ;;  %v10377_v43 = vld [vmem:[#allocation8 + $0x118] sm:$0xff] }
  0x6b   : > { %v11334_v36 = vld [vmem:[#allocation2 + $0x20] sm:$0xff]  ;;  %v11340_v40 = vld [vmem:[#allocation2 + $0x28] sm:$0xff]  ;;  %384 = vst [vmem:[#allocation2 + $0xa8] sm:$0xff] %v351_v50   ;;  %2390 = vmatpush.bf16.msrb.mxu0 %v10377_v43 }
  0x6c   : > { %v10310_v39 = vld [vmem:[#allocation2 + $0x80] sm:$0xff]  ;;  %v10311_v44 = vld [vmem:[#allocation2 + $0x88] sm:$0xff]  ;;  %370 = vst [vmem:[#allocation2 + $0x54] sm:$0xff] %v337_v58   ;;  %v10367_v58 = vld [vmem:[#allocation8 + $0xc8] sm:$0xff] }
  0x6d   : > { %v11346_v45 = vld [vmem:[#allocation2 + $0x30] sm:$0xff]  ;;  %1331 = vmatpush.bf16.msrb.mxu2 %v10335_v54  ;;  %386 = vst [vmem:[#allocation2 + $0xb4] sm:$0xff] %v353_v59   ;;  %v10368_v50 = vld [vmem:[#allocation8 + $0xd0] sm:$0xff] }
  0x6e   : > { %v10312_v47 = vld [vmem:[#allocation2 + $0x90] sm:$0xff]  ;;  %1957 = vmatpush.bf16.msrb.mxu3 %v10368_v50  ;;  %v10376_v54 = vld [vmem:[#allocation8 + $0x110] sm:$0xff] }
  0x6f   : > { %v11350_v48 = vld [vmem:[#allocation2 + $0x38] sm:$0xff]  ;;  %v11356_v52 = vld [vmem:[#allocation2 + $0x40] sm:$0xff]  ;;  %2391 = vmatpush.bf16.msrb.mxu0 %v10376_v54  ;;  %v10386_v59 = vld [vmem:[#allocation8 + $0x160] sm:$0xff] }
  0x70   : > { %v10313_v51 = vld [vmem:[#allocation2 + $0x98] sm:$0xff]  ;;  %v10314_v2 = vld [vmem:[#allocation2 + $0xa0] sm:$0xff] }
  0x71   : > { %v11376_v3 = vld [vmem:[#allocation2 + $0x48] sm:$0xff]  ;;  %1332 = vmatpush.bf16.msrb.mxu2 %v10334_v14 }
  0x72   : > { %v10315_v30 = vld [vmem:[#allocation2 + $0xa8] sm:$0xff]  ;;  %1958 = vmatpush.bf16.msrb.mxu3 %v10367_v58 }
  0x73   : > { %v11393_v34 = vld [vmem:[#allocation2 + $0x50] sm:$0xff] }
  0x74   : > { %v10316_v7 = vld [vmem:[#allocation2 + $0xb0] sm:$0xff] }
  0x75   : > { %3351 = vmatpush.bf16.msra.mxu2 %v10421_v19 }
  0x77   : > { %719 = vmatmul.bf16.gmra.mxu2 %v10307_v27  ;;  %1060 = vmatmul.bf16.gmra.mxu3 %v10307_v27 }
  0x78   : > { %664 = vmatmul.bf16.gmra.mxu0 %v11324_v28  ;;  %1005 = vmatmul.bf16.gmra.mxu1 %v11324_v28 }
  0x87   : > { %724 = vmatmul.bf16.gmra.mxu2 %v10308_v32  ;;  %1065 = vmatmul.bf16.gmra.mxu3 %v10308_v32 }
  0x88   : > { %669 = vmatmul.bf16.gmra.mxu0 %v11330_v33  ;;  %1010 = vmatmul.bf16.gmra.mxu1 %v11330_v33 }
  0x97   : > { %729 = vmatmul.bf16.gmra.mxu2 %v10309_v35  ;;  %1070 = vmatmul.bf16.gmra.mxu3 %v10309_v35 }
  0x98   : > { %674 = vmatmul.bf16.gmra.mxu0 %v11334_v36  ;;  %1015 = vmatmul.bf16.gmra.mxu1 %v11334_v36 }
  0xa7   : > { %734 = vmatmul.bf16.gmra.mxu2 %v10310_v39  ;;  %1075 = vmatmul.bf16.gmra.mxu3 %v10310_v39  ;;  %v10388_v39 = vld [vmem:[#allocation8 + $0x170] sm:$0xff] }
  0xa8   : > { %679 = vmatmul.bf16.gmra.mxu0 %v11340_v40  ;;  %1020 = vmatmul.bf16.gmra.mxu1 %v11340_v40 }
  0xa9   : > { %2725 = vmatpush.bf16.msrb.mxu1 %v10388_v39 }
  0xb7   : > { %739 = vmatmul.bf16.gmra.mxu2 %v10311_v44  ;;  %1080 = vmatmul.bf16.gmra.mxu3 %v10311_v44 }
  0xb8   : > { %684 = vmatmul.bf16.gmra.mxu0 %v11346_v45  ;;  %1025 = vmatmul.bf16.gmra.mxu1 %v11346_v45 }
  0xc7   : > { %744 = vmatmul.bf16.gmra.mxu2 %v10312_v47  ;;  %1085 = vmatmul.bf16.gmra.mxu3 %v10312_v47 }
  0xc8   : > { %689 = vmatmul.bf16.gmra.mxu0 %v11350_v48  ;;  %1030 = vmatmul.bf16.gmra.mxu1 %v11350_v48 }
  0xcf   : > { %v11358_v53 = vpop.f32.mrf.mxu0 }
  0xd0   : > { %v11360_v55 = vpop.f32.mrf.mxu1  ;;  %v775_v61 = vrot.slane %v11358_v53, 7  ;;  %v10352_v53 = vld [vmem:[#allocation2 + $0x5c] sm:$0xff] }
  0xd7   : > { %749 = vmatmul.bf16.gmra.mxu2 %v10313_v51  ;;  %1090 = vmatmul.bf16.gmra.mxu3 %v10313_v51  ;;  %v657_v60 = vpop.f32.mrf.mxu0  ;;  %v10387_v51 = vld [vmem:[#allocation8 + $0x168] sm:$0xff] }
  0xd8   : > { %694 = vmatmul.bf16.gmra.mxu0 %v11356_v52  ;;  %1035 = vmatmul.bf16.gmra.mxu1 %v11356_v52  ;;  %v776_v62 = vrot.slane %v657_v60, 7  ;;  %v998_v63 = vpop.f32.mrf.mxu1 }
  0xd9   : > { %2726 = vmatpush.bf16.msrb.mxu1 %v10387_v51  ;;  %v10342_v51 = vld [vmem:[#allocation2 + $0xc] sm:$0xff] }
  0xda   : > { %v872_v0 = vsel %vm825_vm0, %v775_v61, %v776_v62  ;;  %v10375_v62 = vld [vmem:[#allocation8 + $0x108] sm:$0xff] }
  0xdb   : > { %v11374_v1 = vadd.f32 %v998_v63, %v872_v0  ;;  %2392 = vmatpush.bf16.msrb.mxu0 %v10375_v62 }
  0xdd   : > { %2727 = vmatpush.bf16.msrb.mxu1 %v10386_v59 }
  0xdf   : > { %2393 = vmatpush.bf16.msrb.mxu0 %v10374_v10 }
  0xe5   : > { %v660_v4 = vpop.f32.mrf.mxu0  ;;  %v1001_v6 = vpop.f32.mrf.mxu1 }
  0xe6   : > { %v777_v12 = vrot.slane %v660_v4, 7  ;;  %v10385_v4 = vld [vmem:[#allocation8 + $0x158] sm:$0xff] }
  0xe7   : > { %754 = vmatmul.bf16.gmra.mxu2 %v10314_v2  ;;  %1095 = vmatmul.bf16.gmra.mxu3 %v10314_v2  ;;  %v10366_v2 = vld [vmem:[#allocation8 + $0xc0] sm:$0xff] }
  0xe8   : > { %699 = vmatmul.bf16.gmra.mxu0 %v11376_v3  ;;  %1040 = vmatmul.bf16.gmra.mxu1 %v11376_v3 }
  0xe9   : > { %1959 = vmatpush.bf16.msrb.mxu3 %v10366_v2  ;;  %2728 = vmatpush.bf16.msrb.mxu1 %v10385_v4 }
  0xea   : > { %v11379_v8 = vpop.f32.mrf.mxu2  ;;  %v11381_v9 = vpop.f32.mrf.mxu3 }
  0xeb   : > { %v799_v27 = vrot.slane %v11379_v8, 7  ;;  %v10418_v8 = vld [vmem:[#allocation8 + $0x1a0] sm:$0xff] }
  0xed   : > { %v662_v13 = vpop.f32.mrf.mxu0  ;;  %v1003_v17 = vpop.f32.mrf.mxu1 }
  0xee   : > { %v778_v16 = vrot.slane %v662_v13, 7  ;;  %v11405_v13 = vld [vmem:[#allocation2 + $0x58] sm:$0xff] }
  0xf0   : > { %v870_v20 = vsel %vm825_vm0, %v777_v12, %v778_v16 }
  0xf1   : > { %v11386_v23 = vadd.f32 %v1003_v17, %v870_v20 }
  0xf2   : > { %v717_v21 = vpop.f32.mrf.mxu2  ;;  %v1058_v22 = vpop.f32.mrf.mxu3 }
  0xf3   : > { %v800_v29 = vrot.slane %v717_v21, 7 }
  0xf5   : > { %v848_v32 = vsel %vm825_vm0, %v799_v27, %v800_v29  ;;  %v665_v37 = vpop.f32.mrf.mxu0  ;;  %v1006_v42 = vpop.f32.mrf.mxu1  ;;  %v10383_v29 = vld [vmem:[#allocation8 + $0x148] sm:$0xff] }
  0xf6   : > { %v11395_v35 = vadd.f32 %v1058_v22, %v848_v32  ;;  %v779_v41 = vrot.slane %v665_v37, 7 }
  0xf7   : > { %759 = vmatmul.bf16.gmra.mxu2 %v10315_v30  ;;  %1100 = vmatmul.bf16.gmra.mxu3 %v10315_v30 }
  0xf8   : > { %704 = vmatmul.bf16.gmra.mxu0 %v11393_v34  ;;  %v869_v44 = vsel %vm825_vm0, %v778_v16, %v779_v41  ;;  %1045 = vmatmul.bf16.gmra.mxu1 %v11393_v34  ;;  %v10384_v16 = vld [vmem:[#allocation8 + $0x150] sm:$0xff] }
  0xf9   : > { %v11400_v49 = vadd.f32 %v1006_v42, %v869_v44  ;;  %2729 = vmatpush.bf16.msrb.mxu1 %v10384_v16 }
  0xfa   : > { %v720_v46 = vpop.f32.mrf.mxu2  ;;  %v1061_v47 = vpop.f32.mrf.mxu3 }
  0xfb   : > { %v801_v5 = vrot.slane %v720_v46, 7  ;;  %v10317_v47 = vld [vmem:[#allocation2 + $0xb8] sm:$0xff] }
  0xfd   : > { %v667_v56 = vpop.f32.mrf.mxu0  ;;  %v1008_v60 = vpop.f32.mrf.mxu1  ;;  %2730 = vmatpush.bf16.msrb.mxu1 %v10383_v29 }
  0xfe   : > { %v780_v12 = vrot.slane %v667_v56, 7 }
 0x101   : > { %2731 = vmatpush.bf16.msrb.mxu1 %v10382_v31 }
 0x102   : > { %v722_v63 = vpop.f32.mrf.mxu2  ;;  %v1063_v0 = vpop.f32.mrf.mxu3 }
 0x103   : > { %v802_v6 = vrot.slane %v722_v63, 7 }
 0x105   : > { %v846_v11 = vsel %vm825_vm0, %v801_v5, %v802_v6  ;;  %v670_v15 = vpop.f32.mrf.mxu0  ;;  %v1011_v20 = vpop.f32.mrf.mxu1 }
 0x106   : > { %v11407_v14 = vadd.f32 %v1063_v0, %v846_v11  ;;  %v781_v17 = vrot.slane %v670_v15, 7 }
 0x107   : > { %764 = vmatmul.bf16.gmra.mxu2 %v10316_v7  ;;  %1105 = vmatmul.bf16.gmra.mxu3 %v10316_v7 }
 0x108   : > { %709 = vmatmul.bf16.gmra.mxu0 %v11405_v13  ;;  %v867_v21 = vsel %vm825_vm0, %v780_v12, %v781_v17  ;;  %1050 = vmatmul.bf16.gmra.mxu1 %v11405_v13 }
 0x109   : > { %v11412_v26 = vadd.f32 %v1011_v20, %v867_v21  ;;  %v10343_v20 = vld [vmem:[#allocation2 + $0x14] sm:$0xff] }
 0x10a   : > { %v725_v22 = vpop.f32.mrf.mxu2  ;;  %v1066_v25 = vpop.f32.mrf.mxu3 }
 0x10b   : > { %v803_v30 = vrot.slane %v725_v22, 7 }
 0x10d   : > { %v845_v32 = vsel %vm825_vm0, %v802_v6, %v803_v30  ;;  %v672_v38 = vpop.f32.mrf.mxu0  ;;  %v1013_v41 = vpop.f32.mrf.mxu1 }
 0x10e   : > { %v11417_v37 = vadd.f32 %v1066_v25, %v845_v32  ;;  %v782_v39 = vrot.slane %v672_v38, 7 }
 0x110   : > { %v866_v42 = vsel %vm825_vm0, %v781_v17, %v782_v39 }
 0x111   : > { %v11421_v46 = vadd.f32 %v1013_v41, %v866_v42 }
 0x112   : > { %v727_v43 = vpop.f32.mrf.mxu2  ;;  %v1068_v44 = vpop.f32.mrf.mxu3 }
 0x113   : > { %v804_v59 = vrot.slane %v727_v43, 7 }
 0x115   : > { %v675_v50 = vpop.f32.mrf.mxu0  ;;  %v1016_v54 = vpop.f32.mrf.mxu1 }
 0x116   : > { %v783_v63 = vrot.slane %v675_v50, 7  ;;  %v10420_v54 = vld [vmem:[#allocation8 + $0x1b0] sm:$0xff] }
 0x117   : > { %769 = vmatmul.bf16.gmra.mxu2 %v10317_v47  ;;  %1110 = vmatmul.bf16.gmra.mxu3 %v10317_v47 }
 0x118   : > { %2394 = vmatmul.bf16.vlgmr.msrb.gmra.mxu0 %v10342_v51  ;;  %2732 = vmatmul.bf16.vlgmr.msrb.gmra.mxu1 %v10342_v51 }
 0x119   : > { %3352 = vmatpush.bf16.msra.mxu2 %v10420_v54 }
 0x11a   : > { %v730_v56 = vpop.f32.mrf.mxu2  ;;  %v1071_v58 = vpop.f32.mrf.mxu3 }
 0x11b   : > { %v805_v60 = vrot.slane %v730_v56, 7 }
 0x11d   : > { %v843_v62 = vsel %vm825_vm0, %v804_v59, %v805_v60  ;;  %v677_v2 = vpop.f32.mrf.mxu0  ;;  %v1018_v5 = vpop.f32.mrf.mxu1 }
 0x11e   : > { %v11425_v0 = vadd.f32 %v1071_v58, %v843_v62  ;;  %v784_v4 = vrot.slane %v677_v2, 7 }
 0x120   : > { %v864_v6 = vsel %vm825_vm0, %v783_v63, %v784_v4 }
 0x121   : > { %v11429_v11 = vadd.f32 %v1018_v5, %v864_v6 }
 0x122   : > { %v732_v7 = vpop.f32.mrf.mxu2  ;;  %v1073_v10 = vpop.f32.mrf.mxu3 }
 0x123   : > { %v806_v12 = vrot.slane %v732_v7, 7 }
 0x125   : > { %v842_v15 = vsel %vm825_vm0, %v805_v60, %v806_v12  ;;  %v680_v17 = vpop.f32.mrf.mxu0  ;;  %v1021_v21 = vpop.f32.mrf.mxu1 }
 0x126   : > { %v11433_v16 = vadd.f32 %v1073_v10, %v842_v15  ;;  %v785_v19 = vrot.slane %v680_v17, 7 }
 0x127   : > { %1333 = vmatmul.bf16.vlgmr.msrb.gmra.mxu2 %v11302_v18  ;;  %1960 = vmatmul.bf16.vlgmr.msrb.gmra.mxu3 %v10342_v51  ;;  %v10344_v51 = vld [vmem:[#allocation2 + $0x1c] sm:$0xff] }
 0x128   : > { %2399 = vmatmul.bf16.gmra.mxu0 %v10343_v20  ;;  %v863_v22 = vsel %vm825_vm0, %v784_v4, %v785_v19  ;;  %2737 = vmatmul.bf16.gmra.mxu1 %v10343_v20  ;;  %v10345_v19 = vld [vmem:[#allocation2 + $0x24] sm:$0xff] }
 0x129   : > { %v11438_v30 = vadd.f32 %v1021_v21, %v863_v22 }
 0x12a   : > { %v735_v25 = vpop.f32.mrf.mxu2  ;;  %v1076_v29 = vpop.f32.mrf.mxu3 }
 0x12b   : > { %v807_v41 = vrot.slane %v735_v25, 7 }
 0x12d   : > { %v682_v31 = vpop.f32.mrf.mxu0  ;;  %v1023_v32 = vpop.f32.mrf.mxu1 }
 0x12e   : > { %v786_v43 = vrot.slane %v682_v31, 7 }
 0x132   : > { %v737_v38 = vpop.f32.mrf.mxu2  ;;  %v1078_v39 = vpop.f32.mrf.mxu3 }
 0x133   : > { %v808_v42 = vrot.slane %v737_v38, 7 }
 0x135   : > { %v840_v18 = vsel %vm825_vm0, %v807_v41, %v808_v42  ;;  %v685_v47 = vpop.f32.mrf.mxu0  ;;  %v1026_v56 = vpop.f32.mrf.mxu1 }
 0x136   : > { %v11442_v44 = vadd.f32 %v1078_v39, %v840_v18  ;;  %v787_v50 = vrot.slane %v685_v47, 7 }
 0x137   : > { %1338 = vmatmul.bf16.gmra.mxu2 %v11318_v24  ;;  %1965 = vmatmul.bf16.gmra.mxu3 %v10343_v20 }
 0x138   : > { %2404 = vmatmul.bf16.gmra.mxu0 %v10344_v51  ;;  %v861_v58 = vsel %vm825_vm0, %v786_v43, %v787_v50  ;;  %2742 = vmatmul.bf16.gmra.mxu1 %v10344_v51 }
 0x139   : > { %v11447_v62 = vadd.f32 %v1026_v56, %v861_v58 }
 0x13a   : > { %v740_v59 = vpop.f32.mrf.mxu2  ;;  %v1081_v60 = vpop.f32.mrf.mxu3 }
 0x13b   : > { %v809_v63 = vrot.slane %v740_v59, 7  ;;  %v10346_v59 = vld [vmem:[#allocation2 + $0x2c] sm:$0xff] }
 0x13d   : > { %v839_v2 = vsel %vm825_vm0, %v808_v42, %v809_v63  ;;  %v687_v4 = vpop.f32.mrf.mxu0  ;;  %v1028_v6 = vpop.f32.mrf.mxu1 }
 0x13e   : > { %v11451_v24 = vadd.f32 %v1081_v60, %v839_v2  ;;  %v788_v5 = vrot.slane %v687_v4, 7 }
 0x140   : > { %v860_v7 = vsel %vm825_vm0, %v787_v50, %v788_v5 }
 0x141   : > { %v11455_v15 = vadd.f32 %v1028_v6, %v860_v7 }
 0x142   : > { %v742_v10 = vpop.f32.mrf.mxu2  ;;  %v1083_v12 = vpop.f32.mrf.mxu3 }
 0x143   : > { %v810_v25 = vrot.slane %v742_v10, 7 }
 0x145   : > { %v690_v17 = vpop.f32.mrf.mxu0  ;;  %v1031_v20 = vpop.f32.mrf.mxu1 }
 0x146   : > { %v789_v32 = vrot.slane %v690_v17, 7 }
 0x147   : > { %1343 = vmatmul.bf16.gmra.mxu2 %v11324_v28  ;;  %1970 = vmatmul.bf16.gmra.mxu3 %v10344_v51 }
 0x148   : > { %2409 = vmatmul.bf16.gmra.mxu0 %v10345_v19  ;;  %2747 = vmatmul.bf16.gmra.mxu1 %v10345_v19 }
 0x14a   : > { %v745_v21 = vpop.f32.mrf.mxu2  ;;  %v1086_v22 = vpop.f32.mrf.mxu3 }
 0x14b   : > { %v811_v29 = vrot.slane %v745_v21, 7 }
 0x14d   : > { %v837_v31 = vsel %vm825_vm0, %v810_v25, %v811_v29  ;;  %v692_v39 = vpop.f32.mrf.mxu0  ;;  %v1033_v42 = vpop.f32.mrf.mxu1 }
 0x14e   : > { %v11460_v38 = vadd.f32 %v1086_v22, %v837_v31  ;;  %v790_v41 = vrot.slane %v692_v39, 7  ;;  %v10419_v31 = vld [vmem:[#allocation8 + $0x1a8] sm:$0xff] }
 0x14f   : > { %3353 = vmatpush.bf16.msra.mxu2 %v10419_v31 }
 0x150   : > { %v858_v28 = vsel %vm825_vm0, %v789_v32, %v790_v41 }
 0x151   : > { %v11464_v47 = vadd.f32 %v1033_v42, %v858_v28 }
 0x152   : > { %v747_v18 = vpop.f32.mrf.mxu2  ;;  %v1088_v43 = vpop.f32.mrf.mxu3 }
 0x153   : > { %v812_v50 = vrot.slane %v747_v18, 7  ;;  %3354 = vmatpush.bf16.msra.mxu2 %v10418_v8 }
 0x155   : > { %v836_v51 = vsel %vm825_vm0, %v811_v29, %v812_v50  ;;  %v695_v56 = vpop.f32.mrf.mxu0  ;;  %v1036_v60 = vpop.f32.mrf.mxu1  ;;  %v10347_v29 = vld [vmem:[#allocation2 + $0x34] sm:$0xff] }
 0x156   : > { %v11468_v54 = vadd.f32 %v1088_v43, %v836_v51  ;;  %v791_v58 = vrot.slane %v695_v56, 7 }
 0x157   : > { %1348 = vmatmul.bf16.gmra.mxu2 %v11330_v33  ;;  %1975 = vmatmul.bf16.gmra.mxu3 %v10345_v19 }
 0x158   : > { %2414 = vmatmul.bf16.gmra.mxu0 %v10346_v59  ;;  %v857_v63 = vsel %vm825_vm0, %v790_v41, %v791_v58  ;;  %2752 = vmatmul.bf16.gmra.mxu1 %v10346_v59 }
 0x159   : > { %v11473_v5 = vadd.f32 %v1036_v60, %v857_v63 }
 0x15a   : > { %v750_v2 = vpop.f32.mrf.mxu2  ;;  %v1091_v4 = vpop.f32.mrf.mxu3 }
 0x15b   : > { %v813_v17 = vrot.slane %v750_v2, 7  ;;  %v10348_v4 = vld [vmem:[#allocation2 + $0x3c] sm:$0xff] }
 0x15d   : > { %v697_v6 = vpop.f32.mrf.mxu0  ;;  %v1038_v7 = vpop.f32.mrf.mxu1 }
 0x15e   : > { %v792_v19 = vrot.slane %v697_v6, 7 }
 0x162   : > { %v752_v10 = vpop.f32.mrf.mxu2  ;;  %v1093_v12 = vpop.f32.mrf.mxu3 }
 0x163   : > { %v814_v20 = vrot.slane %v752_v10, 7 }
 0x165   : > { %v834_v33 = vsel %vm825_vm0, %v813_v17, %v814_v20  ;;  %v700_v22 = vpop.f32.mrf.mxu0  ;;  %v1041_v32 = vpop.f32.mrf.mxu1 }
 0x166   : > { %v11477_v21 = vadd.f32 %v1093_v12, %v834_v33  ;;  %v793_v25 = vrot.slane %v700_v22, 7 }
 0x167   : > { %1353 = vmatmul.bf16.gmra.mxu2 %v11334_v36  ;;  %1980 = vmatmul.bf16.gmra.mxu3 %v10346_v59 }
 0x168   : > { %2419 = vmatmul.bf16.gmra.mxu0 %v10347_v29  ;;  %v855_v39 = vsel %vm825_vm0, %v792_v19, %v793_v25  ;;  %2757 = vmatmul.bf16.gmra.mxu1 %v10347_v29 }
 0x169   : > { %v11482_v28 = vadd.f32 %v1041_v32, %v855_v39 }
 0x16a   : > { %v755_v41 = vpop.f32.mrf.mxu2  ;;  %v1096_v42 = vpop.f32.mrf.mxu3 }
 0x16b   : > { %v815_v18 = vrot.slane %v755_v41, 7 }
 0x16d   : > { %v833_v43 = vsel %vm825_vm0, %v814_v20, %v815_v18  ;;  %v702_v50 = vpop.f32.mrf.mxu0  ;;  %v1043_v56 = vpop.f32.mrf.mxu1 }
 0x16e   : > { %v11486_v36 = vadd.f32 %v1096_v42, %v833_v43  ;;  %v794_v51 = vrot.slane %v702_v50, 7 }
 0x170   : > { %v854_v58 = vsel %vm825_vm0, %v793_v25, %v794_v51  ;;  %v10349_v51 = vld [vmem:[#allocation2 + $0x44] sm:$0xff] }
 0x171   : > { %v11490_v63 = vadd.f32 %v1043_v56, %v854_v58 }
 0x172   : > { %v757_v59 = vpop.f32.mrf.mxu2  ;;  %v1098_v60 = vpop.f32.mrf.mxu3 }
 0x173   : > { %v816_v12 = vrot.slane %v757_v59, 7 }
 0x175   : > { %v705_v2 = vpop.f32.mrf.mxu0  ;;  %v1046_v6 = vpop.f32.mrf.mxu1 }
 0x176   : > { %v795_v33 = vrot.slane %v705_v2, 7 }
 0x177   : > { %1358 = vmatmul.bf16.gmra.mxu2 %v11340_v40  ;;  %1985 = vmatmul.bf16.gmra.mxu3 %v10347_v29 }
 0x178   : > { %2424 = vmatmul.bf16.gmra.mxu0 %v10348_v4  ;;  %2762 = vmatmul.bf16.gmra.mxu1 %v10348_v4 }
 0x17a   : > { %v760_v7 = vpop.f32.mrf.mxu2  ;;  %v1101_v10 = vpop.f32.mrf.mxu3 }
 0x17b   : > { %v817_v17 = vrot.slane %v760_v7, 7 }
 0x17d   : > { %v831_v20 = vsel %vm825_vm0, %v816_v12, %v817_v17  ;;  %v707_v22 = vpop.f32.mrf.mxu0  ;;  %v1048_v31 = vpop.f32.mrf.mxu1 }
 0x17e   : > { %v11495_v19 = vadd.f32 %v1101_v10, %v831_v20  ;;  %v796_v25 = vrot.slane %v707_v22, 7 }
 0x180   : > { %v852_v40 = vsel %vm825_vm0, %v795_v33, %v796_v25 }
 0x181   : > { %v11499_v39 = vadd.f32 %v1048_v31, %v852_v40  ;;  %v10350_v31 = vld [vmem:[#allocation2 + $0x4c] sm:$0xff] }
 0x182   : > { %v762_v29 = vpop.f32.mrf.mxu2  ;;  %v1103_v32 = vpop.f32.mrf.mxu3 }
 0x183   : > { %v818_v41 = vrot.slane %v762_v29, 7 }
 0x185   : > { %v830_v42 = vsel %vm825_vm0, %v817_v17, %v818_v41  ;;  %v710_v43 = vpop.f32.mrf.mxu0  ;;  %v1051_v56 = vpop.f32.mrf.mxu1 }
 0x186   : > { %v11503_v18 = vadd.f32 %v1103_v32, %v830_v42  ;;  %v797_v50 = vrot.slane %v710_v43, 7 }
 0x187   : > { %1363 = vmatmul.bf16.gmra.mxu2 %v11346_v45  ;;  %1990 = vmatmul.bf16.gmra.mxu3 %v10348_v4 }
 0x188   : > { %2429 = vmatmul.bf16.gmra.mxu0 %v10349_v51  ;;  %v851_v58 = vsel %vm825_vm0, %v796_v25, %v797_v50  ;;  %2767 = vmatmul.bf16.gmra.mxu1 %v10349_v51 }
 0x189   : > { %v11508_v2 = vadd.f32 %v1051_v56, %v851_v58 }
 0x18a   : > { %v765_v59 = vpop.f32.mrf.mxu2  ;;  %v1106_v60 = vpop.f32.mrf.mxu3 }
 0x18b   : > { %v819_v17 = vrot.slane %v765_v59, 7 }
 0x18d   : > { %v712_v6 = vpop.f32.mrf.mxu0  ;;  %v1053_v10 = vpop.f32.mrf.mxu1 }
 0x18e   : > { %v798_v7 = vrot.slane %v712_v6, 7  ;;  %v10351_v6 = vld [vmem:[#allocation2 + $0x54] sm:$0xff] }
 0x190   : > { %v11514_v45 = vsel %vm825_vm0, %v798_v7, %v799_v27 }
 0x192   : > { %v767_v4 = vpop.f32.mrf.mxu2  ;;  %v1108_v12 = vpop.f32.mrf.mxu3 }
 0x193   : > { %v820_v20 = vrot.slane %v767_v4, 7 }
 0x195   : > { %v828_v33 = vsel %vm825_vm0, %v819_v17, %v820_v20  ;;  %v11520_v25 = vpop.f32.mrf.mxu0  ;;  %v2733_v40 = vpop.f32.mrf.mxu1 }
 0x196   : > { %v11518_v22 = vadd.f32 %v1108_v12, %v828_v33  ;;  %v2853_v50 = vrot.slane %v2733_v40, 1 }
 0x197   : > { %1368 = vmatmul.bf16.gmra.mxu2 %v11350_v48  ;;  %1995 = vmatmul.bf16.gmra.mxu3 %v10349_v51 }
 0x198   : > { %2434 = vmatmul.bf16.gmra.mxu0 %v10350_v31  ;;  %2772 = vmatmul.bf16.gmra.mxu1 %v10350_v31 }
 0x19a   : > { %v770_v27 = vpop.f32.mrf.mxu2  ;;  %v1111_v29 = vpop.f32.mrf.mxu3 }
 0x19b   : > { %v821_v32 = vrot.slane %v770_v27, 7 }
 0x19d   : > { %v827_v41 = vsel %vm825_vm0, %v820_v20, %v821_v32  ;;  %v2397_v43 = vpop.f32.mrf.mxu0  ;;  %v2735_v56 = vpop.f32.mrf.mxu1 }
 0x19e   : > { %v11525_v42 = vadd.f32 %v1111_v29, %v827_v41  ;;  %v2854_v58 = vrot.slane %v2735_v56, 1 }
 0x1a0   : > { %v11530_v59 = vsel %vm1502_vm1, %v2853_v50, %v2854_v58 }
 0x1a1   : > { %12936 = vst [vmem:[#allocation15_spill] sm:$0xff] %v11530_v59 }
 0x1a2   : > { %v772_v48 = vpop.f32.mrf.mxu2  ;;  %v1113_v51 = vpop.f32.mrf.mxu3 }
 0x1a3   : > { %v822_v20 = vrot.slane %v772_v48, 7 }
 0x1a5   : > { %v2400_v60 = vpop.f32.mrf.mxu0  ;;  %v2738_v7 = vpop.f32.mrf.mxu1 }
 0x1a6   : > { %v2855_v10 = vrot.slane %v2738_v7, 1 }
 0x1a7   : > { %1373 = vmatmul.bf16.gmra.mxu2 %v11356_v52  ;;  %2000 = vmatmul.bf16.gmra.mxu3 %v10350_v31  ;;  %v873_v52 = vsel %vm825_vm0, %v822_v20, %v775_v61 }
 0x1a8   : > { %2439 = vmatmul.bf16.gmra.mxu0 %v10351_v6  ;;  %v2946_v17 = vsel %vm1502_vm1, %v2854_v58, %v2855_v10  ;;  %2777 = vmatmul.bf16.gmra.mxu1 %v10351_v6  ;;  %v1164_v32 = vadd.f32 %v11360_v55, %v873_v52 }
 0x1aa   : > { %v1334_v4 = vpop.f32.mrf.mxu2  ;;  %v11533_v12 = vpop.f32.mrf.mxu3 }
 0x1ab   : > { %v1454_v27 = vrot.slane %v1334_v4, 1  ;;  %v2081_v61 = vrot.slane %v11533_v12, 7 }
 0x1ad   : > { %v11537_v33 = vpop.f32.mrf.mxu0  ;;  %v2740_v8 = vpop.f32.mrf.mxu1 }
 0x1ae   : > { %v2856_v58 = vrot.slane %v2740_v8, 1 }
 0x1b2   : > { %v1336_v31 = vpop.f32.mrf.mxu2  ;;  %v1963_v40 = vpop.f32.mrf.mxu3 }
 0x1b3   : > { %v1455_v29 = vrot.slane %v1336_v31, 1  ;;  %v2082_v51 = vrot.slane %v1963_v40, 7 }
 0x1b5   : > { %v1549_v41 = vsel %vm1502_vm1, %v1454_v27, %v1455_v29  ;;  %v11548_v56 = vpop.f32.mrf.mxu0  ;;  %v2743_v48 = vpop.f32.mrf.mxu1 }
 0x1b6   : > { %v11546_v50 = vadd.f32 %v1549_v41, %v1164_v32  ;;  %v2857_v60 = vrot.slane %v2743_v48, 1 }
 0x1b7   : > { %1378 = vmatmul.bf16.gmra.mxu2 %v11376_v3  ;;  %2005 = vmatmul.bf16.gmra.mxu3 %v10351_v6  ;;  %v2175_v3 = vsel %vm825_vm0, %v2081_v61, %v2082_v51 }
 0x1b8   : > { %2444 = vmatmul.bf16.gmra.mxu0 %v10352_v53  ;;  %v2944_v4 = vsel %vm1502_vm1, %v2856_v58, %v2857_v60  ;;  %2782 = vmatmul.bf16.gmra.mxu1 %v10352_v53 }
 0x1ba   : > { %v1339_v7 = vpop.f32.mrf.mxu2  ;;  %v1966_v55 = vpop.f32.mrf.mxu3 }
 0x1bb   : > { %v1456_v10 = vrot.slane %v1339_v7, 1  ;;  %v2083_v40 = vrot.slane %v1966_v55, 7  ;;  %v10417_v55 = vld [vmem:[#allocation8 + $0x198] sm:$0xff] }
 0x1bc   : > { %3355 = vmatpush.bf16.msra.mxu2 %v10417_v55 }
 0x1bd   : > { %v1548_v6 = vsel %vm1502_vm1, %v1455_v29, %v1456_v10  ;;  %v2407_v8 = vpop.f32.mrf.mxu0  ;;  %v2745_v31 = vpop.f32.mrf.mxu1 }
 0x1be   : > { %v1600_v20 = vadd.f32 %v1548_v6, %v11374_v1  ;;  %v2858_v27 = vrot.slane %v2745_v31, 1  ;;  %v10353_v1 = vld [vmem:[#allocation2 + $0x64] sm:$0xff] }
 0x1c0   : > { %v2226_v52 = vadd.f32 %v2175_v3, %v1600_v20  ;;  %v2943_v7 = vsel %vm1502_vm1, %v2857_v60, %v2858_v27 }
 0x1c2   : > { %v1341_v32 = vpop.f32.mrf.mxu2  ;;  %v1968_v41 = vpop.f32.mrf.mxu3  ;;  %v2564_v48 = vadd.f32 %v2397_v43, %v2226_v52 }
 0x1c3   : > { %v2084_v58 = vrot.slane %v1968_v41, 7  ;;  %v1457_v6 = vrot.slane %v1341_v32, 1 }
 0x1c4   : > { %v11563_v59 = vadd.f32 %v2946_v17, %v2564_v48 }
 0x1c5   : > { %v2173_v51 = vsel %vm825_vm0, %v2083_v40, %v2084_v58  ;;  %v11567_v29 = vpop.f32.mrf.mxu0  ;;  %v2748_v10 = vpop.f32.mrf.mxu1 }
 0x1c6   : > { %v2859_v52 = vrot.slane %v2748_v10, 1 }
 0x1c7   : > { %1383 = vmatmul.bf16.gmra.mxu2 %v11393_v34  ;;  %2010 = vmatmul.bf16.gmra.mxu3 %v10352_v53 }
 0x1c8   : > { %2449 = vmatmul.bf16.gmra.mxu0 %v10353_v1  ;;  %2787 = vmatmul.bf16.gmra.mxu1 %v10353_v1 }
 0x1ca   : > { %v1344_v43 = vpop.f32.mrf.mxu2  ;;  %v1971_v3 = vpop.f32.mrf.mxu3 }
 0x1cb   : > { %v1458_v20 = vrot.slane %v1344_v43, 1  ;;  %v2085_v60 = vrot.slane %v1971_v3, 7 }
 0x1cd   : > { %v1546_v17 = vsel %vm1502_vm1, %v1457_v6, %v1458_v20  ;;  %v2172_v8 = vsel %vm825_vm0, %v2084_v58, %v2085_v60  ;;  %v11575_v53 = vpop.f32.mrf.mxu0  ;;  %v2750_v40 = vpop.f32.mrf.mxu1 }
 0x1ce   : > { %v1602_v34 = vadd.f32 %v1546_v17, %v11386_v23  ;;  %v2860_v27 = vrot.slane %v2750_v40, 1 }
 0x1d0   : > { %v2228_v31 = vadd.f32 %v2173_v51, %v1602_v34  ;;  %v2941_v43 = vsel %vm1502_vm1, %v2859_v52, %v2860_v27  ;;  %v10354_v51 = vld [vmem:[#allocation2 + $0x6c] sm:$0xff] }
 0x1d2   : > { %v1346_v41 = vpop.f32.mrf.mxu2  ;;  %v1973_v48 = vpop.f32.mrf.mxu3  ;;  %v2566_v32 = vadd.f32 %v11537_v33, %v2228_v31 }
 0x1d3   : > { %v1459_v55 = vrot.slane %v1346_v41, 1  ;;  %v2086_v17 = vrot.slane %v1973_v48, 7 }
 0x1d4   : > { %v11580_v3 = vadd.f32 %v2944_v4, %v2566_v32 }
 0x1d5   : > { %v1545_v58 = vsel %vm1502_vm1, %v1458_v20, %v1459_v55  ;;  %v2415_v6 = vpop.f32.mrf.mxu0  ;;  %v2753_v10 = vpop.f32.mrf.mxu1 }
 0x1d6   : > { %v1603_v23 = vadd.f32 %v1545_v58, %v11400_v49  ;;  %v2861_v33 = vrot.slane %v2753_v10, 1  ;;  %v10355_v6 = vld [vmem:[#allocation2 + $0x74] sm:$0xff] }
 0x1d7   : > { %1388 = vmatmul.bf16.gmra.mxu2 %v11405_v13  ;;  %2015 = vmatmul.bf16.gmra.mxu3 %v10353_v1 }
 0x1d8   : > { %v2229_v60 = vadd.f32 %v2172_v8, %v1603_v23  ;;  %2454 = vmatmul.bf16.gmra.mxu0 %v10354_v51  ;;  %v2940_v20 = vsel %vm1502_vm1, %v2860_v27, %v2861_v33  ;;  %2792 = vmatmul.bf16.gmra.mxu1 %v10354_v51  ;;  %v10895_v23 = vld [vmem:[#allocation2 + $0x60] sm:$0xff] }
 0x1da   : > { %v1349_v34 = vpop.f32.mrf.mxu2  ;;  %v1976_v31 = vpop.f32.mrf.mxu3  ;;  %v2567_v4 = vadd.f32 %v11548_v56, %v2229_v60 }
 0x1db   : > { %v2087_v52 = vrot.slane %v1976_v31, 7  ;;  %v1460_v48 = vrot.slane %v1349_v34, 1 }
 0x1dc   : > { %v11589_v49 = vadd.f32 %v2943_v7, %v2567_v4 }
 0x1dd   : > { %v2170_v13 = vsel %vm825_vm0, %v2086_v17, %v2087_v52  ;;  %v11593_v1 = vpop.f32.mrf.mxu0  ;;  %v2755_v8 = vpop.f32.mrf.mxu1 }
 0x1de   : > { %v2862_v10 = vrot.slane %v2755_v8, 1 }
 0x1e2   : > { %v1351_v40 = vpop.f32.mrf.mxu2  ;;  %v1978_v41 = vpop.f32.mrf.mxu3 }
 0x1e3   : > { %v1461_v32 = vrot.slane %v1351_v40, 1  ;;  %v2088_v55 = vrot.slane %v1978_v41, 7 }
 0x1e5   : > { %v1543_v56 = vsel %vm1502_vm1, %v1460_v48, %v1461_v32  ;;  %v2169_v27 = vsel %vm825_vm0, %v2087_v52, %v2088_v55  ;;  %v11600_v58 = vpop.f32.mrf.mxu0  ;;  %v2758_v60 = vpop.f32.mrf.mxu1 }
 0x1e6   : > { %v1605_v7 = vadd.f32 %v1543_v56, %v11412_v26  ;;  %v2863_v33 = vrot.slane %v2758_v60, 1 }
 0x1e7   : > { %1393 = vmatmul.bf16.gmra.mxu2 %v10895_v23  ;;  %2020 = vmatmul.bf16.gmra.mxu3 %v10354_v51 }
 0x1e8   : > { %v2231_v17 = vadd.f32 %v2170_v13, %v1605_v7  ;;  %2459 = vmatmul.bf16.gmra.mxu0 %v10355_v6  ;;  %v2938_v52 = vsel %vm1502_vm1, %v2862_v10, %v2863_v33  ;;  %2797 = vmatmul.bf16.gmra.mxu1 %v10355_v6 }
 0x1ea   : > { %v1354_v34 = vpop.f32.mrf.mxu2  ;;  %v1981_v31 = vpop.f32.mrf.mxu3  ;;  %v2569_v4 = vadd.f32 %v11567_v29, %v2231_v17 }
 0x1eb   : > { %v1462_v40 = vrot.slane %v1354_v34, 1  ;;  %v2089_v55 = vrot.slane %v1981_v31, 7  ;;  %v10416_v34 = vld [vmem:[#allocation8 + $0x190] sm:$0xff] }
 0x1ec   : > { %v11605_v26 = vadd.f32 %v2941_v43, %v2569_v4  ;;  %3356 = vmatpush.bf16.msra.mxu2 %v10416_v34 }
 0x1ed   : > { %v1542_v51 = vsel %vm1502_vm1, %v1461_v32, %v1462_v40  ;;  %v2422_v41 = vpop.f32.mrf.mxu0  ;;  %v2760_v48 = vpop.f32.mrf.mxu1 }
 0x1ee   : > { %v1606_v8 = vadd.f32 %v1542_v51, %v11421_v46  ;;  %v2864_v56 = vrot.slane %v2760_v48, 1  ;;  %v10896_v46 = vld [vmem:[#allocation2 + $0x68] sm:$0xff] }
 0x1f0   : > { %v2232_v13 = vadd.f32 %v2169_v27, %v1606_v8  ;;  %v2937_v10 = vsel %vm1502_vm1, %v2863_v33, %v2864_v56  ;;  %v10356_v27 = vld [vmem:[#allocation2 + $0x7c] sm:$0xff] }
 0x1f2   : > { %v1356_v7 = vpop.f32.mrf.mxu2  ;;  %v1983_v23 = vpop.f32.mrf.mxu3  ;;  %v2570_v29 = vadd.f32 %v11575_v53, %v2232_v13 }
 0x1f3   : > { %v2090_v60 = vrot.slane %v1983_v23, 7  ;;  %v1463_v40 = vrot.slane %v1356_v7, 1 }
 0x1f4   : > { %v11613_v43 = vadd.f32 %v2940_v20, %v2570_v29 }
 0x1f5   : > { %v2167_v32 = vsel %vm825_vm0, %v2089_v55, %v2090_v60  ;;  %v11617_v17 = vpop.f32.mrf.mxu0  ;;  %v2763_v31 = vpop.f32.mrf.mxu1 }
 0x1f6   : > { %v2865_v13 = vrot.slane %v2763_v31, 1  ;;  %v10897_v31 = vld [vmem:[#allocation2 + $0x70] sm:$0xff] }
 0x1f7   : > { %1398 = vmatmul.bf16.gmra.mxu2 %v10896_v46  ;;  %2025 = vmatmul.bf16.gmra.mxu3 %v10355_v6 }
 0x1f8   : > { %2464 = vmatmul.bf16.gmra.mxu0 %v10356_v27  ;;  %2802 = vmatmul.bf16.gmra.mxu1 %v10356_v27 }
 0x1fa   : > { %v1359_v53 = vpop.f32.mrf.mxu2  ;;  %v1986_v4 = vpop.f32.mrf.mxu3 }
 0x1fb   : > { %v1464_v51 = vrot.slane %v1359_v53, 1  ;;  %v2091_v33 = vrot.slane %v1986_v4, 7 }
 0x1fd   : > { %v1540_v20 = vsel %vm1502_vm1, %v1463_v40, %v1464_v51  ;;  %v2166_v8 = vsel %vm825_vm0, %v2090_v60, %v2091_v33  ;;  %v11624_v6 = vpop.f32.mrf.mxu0  ;;  %v2765_v55 = vpop.f32.mrf.mxu1 }
 0x1fe   : > { %v1608_v41 = vadd.f32 %v1540_v20, %v11429_v11  ;;  %v2866_v56 = vrot.slane %v2765_v55, 1 }
 0x200   : > { %v2234_v48 = vadd.f32 %v2167_v32, %v1608_v41  ;;  %v2935_v34 = vsel %vm1502_vm1, %v2865_v13, %v2866_v56  ;;  %v10357_v32 = vld [vmem:[#allocation2 + $0x84] sm:$0xff] }
 0x202   : > { %v1361_v23 = vpop.f32.mrf.mxu2  ;;  %v1988_v29 = vpop.f32.mrf.mxu3  ;;  %v2572_v7 = vadd.f32 %v11593_v1, %v2234_v48 }
 0x203   : > { %v1465_v46 = vrot.slane %v1361_v23, 1  ;;  %v2092_v20 = vrot.slane %v1988_v29, 7 }
 0x204   : > { %v11629_v53 = vadd.f32 %v2938_v52, %v2572_v7 }
 0x205   : > { %v1539_v60 = vsel %vm1502_vm1, %v1464_v51, %v1465_v46  ;;  %v2430_v4 = vpop.f32.mrf.mxu0  ;;  %v2768_v40 = vpop.f32.mrf.mxu1 }
 0x206   : > { %v1609_v11 = vadd.f32 %v1539_v60, %v11438_v30  ;;  %v2867_v1 = vrot.slane %v2768_v40, 1  ;;  %v10898_v4 = vld [vmem:[#allocation2 + $0x78] sm:$0xff] }
 0x207   : > { %1403 = vmatmul.bf16.gmra.mxu2 %v10897_v31  ;;  %2030 = vmatmul.bf16.gmra.mxu3 %v10356_v27  ;;  %v10358_v31 = vld [vmem:[#allocation2 + $0x8c] sm:$0xff] }
 0x208   : > { %v2235_v33 = vadd.f32 %v2166_v8, %v1609_v11  ;;  %2469 = vmatmul.bf16.gmra.mxu0 %v10357_v32  ;;  %v2934_v51 = vsel %vm1502_vm1, %v2866_v56, %v2867_v1  ;;  %2807 = vmatmul.bf16.gmra.mxu1 %v10357_v32 }
 0x20a   : > { %v1364_v41 = vpop.f32.mrf.mxu2  ;;  %v1991_v48 = vpop.f32.mrf.mxu3  ;;  %v2573_v52 = vadd.f32 %v11600_v58, %v2235_v33 }
 0x20b   : > { %v2093_v13 = vrot.slane %v1991_v48, 7  ;;  %v1466_v7 = vrot.slane %v1364_v41, 1 }
 0x20c   : > { %v11637_v30 = vadd.f32 %v2937_v10, %v2573_v52 }
 0x20d   : > { %v2164_v27 = vsel %vm825_vm0, %v2092_v20, %v2093_v13  ;;  %v11641_v55 = vpop.f32.mrf.mxu0  ;;  %v2770_v8 = vpop.f32.mrf.mxu1 }
 0x20e   : > { %v2868_v40 = vrot.slane %v2770_v8, 1 }
 0x212   : > { %v1366_v23 = vpop.f32.mrf.mxu2  ;;  %v1993_v29 = vpop.f32.mrf.mxu3 }
 0x213   : > { %v1467_v46 = vrot.slane %v1366_v23, 1  ;;  %v2094_v60 = vrot.slane %v1993_v29, 7 }
 0x215   : > { %v1537_v58 = vsel %vm1502_vm1, %v1466_v7, %v1467_v46  ;;  %v2163_v56 = vsel %vm825_vm0, %v2093_v13, %v2094_v60  ;;  %v11648_v11 = vpop.f32.mrf.mxu0  ;;  %v2773_v33 = vpop.f32.mrf.mxu1 }
 0x216   : > { %v1611_v10 = vadd.f32 %v1537_v58, %v11447_v62  ;;  %v2869_v1 = vrot.slane %v2773_v33, 1 }
 0x217   : > { %1408 = vmatmul.bf16.gmra.mxu2 %v10898_v4  ;;  %2035 = vmatmul.bf16.gmra.mxu3 %v10357_v32 }
 0x218   : > { %v2237_v20 = vadd.f32 %v2164_v27, %v1611_v10  ;;  %2474 = vmatmul.bf16.gmra.mxu0 %v10358_v31  ;;  %v2932_v13 = vsel %vm1502_vm1, %v2868_v40, %v2869_v1  ;;  %2812 = vmatmul.bf16.gmra.mxu1 %v10358_v31 }
 0x21a   : > { %v1369_v41 = vpop.f32.mrf.mxu2  ;;  %v1996_v48 = vpop.f32.mrf.mxu3  ;;  %v2575_v52 = vadd.f32 %v11617_v17, %v2237_v20 }
 0x21b   : > { %v1468_v23 = vrot.slane %v1369_v41, 1  ;;  %v2095_v60 = vrot.slane %v1996_v48, 7  ;;  %v10415_v41 = vld [vmem:[#allocation8 + $0x188] sm:$0xff] }
 0x21c   : > { %v11653_v62 = vadd.f32 %v2935_v34, %v2575_v52  ;;  %3357 = vmatpush.bf16.msra.mxu2 %v10415_v41 }
 0x21d   : > { %v1536_v32 = vsel %vm1502_vm1, %v1467_v46, %v1468_v23  ;;  %v2437_v29 = vpop.f32.mrf.mxu0  ;;  %v2775_v7 = vpop.f32.mrf.mxu1 }
 0x21e   : > { %v1612_v8 = vadd.f32 %v1536_v32, %v11455_v15  ;;  %v2870_v58 = vrot.slane %v2775_v7, 1  ;;  %v10899_v15 = vld [vmem:[#allocation2 + $0x80] sm:$0xff] }
 0x220   : > { %v2238_v27 = vadd.f32 %v2163_v56, %v1612_v8  ;;  %v2931_v40 = vsel %vm1502_vm1, %v2869_v1, %v2870_v58  ;;  %v10359_v56 = vld [vmem:[#allocation2 + $0x94] sm:$0xff] }
 0x222   : > { %v1371_v10 = vpop.f32.mrf.mxu2  ;;  %v1998_v4 = vpop.f32.mrf.mxu3  ;;  %v2576_v17 = vadd.f32 %v11624_v6, %v2238_v27 }
 0x223   : > { %v2096_v33 = vrot.slane %v1998_v4, 7  ;;  %v1469_v23 = vrot.slane %v1371_v10, 1 }
 0x224   : > { %v11661_v34 = vadd.f32 %v2934_v51, %v2576_v17 }
 0x225   : > { %v2161_v46 = vsel %vm825_vm0, %v2095_v60, %v2096_v33  ;;  %v11665_v20 = vpop.f32.mrf.mxu0  ;;  %v2778_v48 = vpop.f32.mrf.mxu1 }
 0x226   : > { %v2871_v27 = vrot.slane %v2778_v48, 1  ;;  %v10900_v48 = vld [vmem:[#allocation2 + $0x88] sm:$0xff] }
 0x227   : > { %1413 = vmatmul.bf16.gmra.mxu2 %v10899_v15  ;;  %2040 = vmatmul.bf16.gmra.mxu3 %v10358_v31 }
 0x228   : > { %2479 = vmatmul.bf16.gmra.mxu0 %v10359_v56  ;;  %2817 = vmatmul.bf16.gmra.mxu1 %v10359_v56 }
 0x22a   : > { %v1374_v6 = vpop.f32.mrf.mxu2  ;;  %v2001_v52 = vpop.f32.mrf.mxu3 }
 0x22b   : > { %v1470_v32 = vrot.slane %v1374_v6, 1  ;;  %v2097_v1 = vrot.slane %v2001_v52, 7 }
 0x22d   : > { %v1534_v51 = vsel %vm1502_vm1, %v1469_v23, %v1470_v32  ;;  %v2160_v8 = vsel %vm825_vm0, %v2096_v33, %v2097_v1  ;;  %v11672_v31 = vpop.f32.mrf.mxu0  ;;  %v2780_v60 = vpop.f32.mrf.mxu1 }
 0x22e   : > { %v1614_v29 = vadd.f32 %v1534_v51, %v11464_v47  ;;  %v2872_v58 = vrot.slane %v2780_v60, 1 }
 0x230   : > { %v2240_v7 = vadd.f32 %v2161_v46, %v1614_v29  ;;  %v2929_v41 = vsel %vm1502_vm1, %v2871_v27, %v2872_v58  ;;  %v10360_v46 = vld [vmem:[#allocation2 + $0x9c] sm:$0xff] }
 0x232   : > { %v1376_v4 = vpop.f32.mrf.mxu2  ;;  %v2003_v17 = vpop.f32.mrf.mxu3  ;;  %v2578_v10 = vadd.f32 %v11641_v55, %v2240_v7 }
 0x233   : > { %v1471_v15 = vrot.slane %v1376_v4, 1  ;;  %v2098_v51 = vrot.slane %v2003_v17, 7 }
 0x234   : > { %v11677_v6 = vadd.f32 %v2932_v13, %v2578_v10 }
 0x235   : > { %v1533_v33 = vsel %vm1502_vm1, %v1470_v32, %v1471_v15  ;;  %v2445_v52 = vpop.f32.mrf.mxu0  ;;  %v2783_v23 = vpop.f32.mrf.mxu1 }
 0x236   : > { %v1615_v47 = vadd.f32 %v1533_v33, %v11473_v5  ;;  %v2873_v55 = vrot.slane %v2783_v23, 1  ;;  %v10901_v52 = vld [vmem:[#allocation2 + $0x90] sm:$0xff] }
 0x237   : > { %1418 = vmatmul.bf16.gmra.mxu2 %v10900_v48  ;;  %2045 = vmatmul.bf16.gmra.mxu3 %v10359_v56  ;;  %v10361_v48 = vld [vmem:[#allocation2 + $0xa4] sm:$0xff] }
 0x238   : > { %v2241_v1 = vadd.f32 %v2160_v8, %v1615_v47  ;;  %2484 = vmatmul.bf16.gmra.mxu0 %v10360_v46  ;;  %v2928_v32 = vsel %vm1502_vm1, %v2872_v58, %v2873_v55  ;;  %2822 = vmatmul.bf16.gmra.mxu1 %v10360_v46 }
 0x23a   : > { %v1379_v29 = vpop.f32.mrf.mxu2  ;;  %v2006_v7 = vpop.f32.mrf.mxu3  ;;  %v2579_v13 = vadd.f32 %v11648_v11, %v2241_v1 }
 0x23b   : > { %v2099_v27 = vrot.slane %v2006_v7, 7  ;;  %v1472_v10 = vrot.slane %v1379_v29, 1 }
 0x23c   : > { %v11685_v5 = vadd.f32 %v2931_v40, %v2579_v13 }
 0x23d   : > { %v2158_v56 = vsel %vm825_vm0, %v2098_v51, %v2099_v27  ;;  %v11689_v60 = vpop.f32.mrf.mxu0  ;;  %v2785_v8 = vpop.f32.mrf.mxu1 }
 0x23e   : > { %v2874_v23 = vrot.slane %v2785_v8, 1 }
 0x242   : > { %v1381_v4 = vpop.f32.mrf.mxu2  ;;  %v2008_v17 = vpop.f32.mrf.mxu3 }
 0x243   : > { %v1473_v15 = vrot.slane %v1381_v4, 1  ;;  %v2100_v33 = vrot.slane %v2008_v17, 7 }
 0x245   : > { %v1531_v11 = vsel %vm1502_vm1, %v1472_v10, %v1473_v15  ;;  %v2157_v58 = vsel %vm825_vm0, %v2099_v27, %v2100_v33  ;;  %v11696_v47 = vpop.f32.mrf.mxu0  ;;  %v2788_v1 = vpop.f32.mrf.mxu1 }
 0x246   : > { %v1617_v40 = vadd.f32 %v1531_v11, %v11482_v28  ;;  %v2875_v55 = vrot.slane %v2788_v1, 1 }
 0x247   : > { %1423 = vmatmul.bf16.gmra.mxu2 %v10901_v52  ;;  %2050 = vmatmul.bf16.gmra.mxu3 %v10360_v46 }
 0x248   : > { %v2243_v51 = vadd.f32 %v2158_v56, %v1617_v40  ;;  %2489 = vmatmul.bf16.gmra.mxu0 %v10361_v48  ;;  %v2926_v27 = vsel %vm1502_vm1, %v2874_v23, %v2875_v55  ;;  %2827 = vmatmul.bf16.gmra.mxu1 %v10361_v48 }
 0x24a   : > { %v1384_v29 = vpop.f32.mrf.mxu2  ;;  %v2011_v7 = vpop.f32.mrf.mxu3  ;;  %v2581_v13 = vadd.f32 %v11665_v20, %v2243_v51 }
 0x24b   : > { %v1474_v4 = vrot.slane %v1384_v29, 1  ;;  %v2101_v33 = vrot.slane %v2011_v7, 7  ;;  %v10414_v29 = vld [vmem:[#allocation8 + $0x180] sm:$0xff] }
 0x24c   : > { %v11701_v28 = vadd.f32 %v2929_v41, %v2581_v13  ;;  %3358 = vmatpush.bf16.msra.mxu2 %v10414_v29  ;;  %v10903_v29 = vld [vmem:[#allocation2 + $0xa0] sm:$0xff] }
 0x24d   : > { %v1530_v46 = vsel %vm1502_vm1, %v1473_v15, %v1474_v4  ;;  %v2452_v17 = vpop.f32.mrf.mxu0  ;;  %v2790_v10 = vpop.f32.mrf.mxu1 }
 0x24e   : > { %v1618_v8 = vadd.f32 %v1530_v46, %v11490_v63  ;;  %v2876_v11 = vrot.slane %v2790_v10, 1  ;;  %v10902_v63 = vld [vmem:[#allocation2 + $0x98] sm:$0xff] }
 0x250   : > { %v2244_v56 = vadd.f32 %v2157_v58, %v1618_v8  ;;  %v2925_v23 = vsel %vm1502_vm1, %v2875_v55, %v2876_v11  ;;  %v10362_v58 = vld [vmem:[#allocation2 + $0xac] sm:$0xff] }
 0x251   : > { %v355_v8 = vld [vmem:[%s11257_s28 + $0x78] sm:$0xff]  }
 0x252   : > { %v1386_v40 = vpop.f32.mrf.mxu2  ;;  %v2013_v52 = vpop.f32.mrf.mxu3  ;;  %v2582_v20 = vadd.f32 %v11672_v31, %v2244_v56  ;;  %388 = vst [vmem:[#allocation2 + $0xc0] sm:$0xff] %v355_v8  }
 0x253   : > { %v2102_v1 = vrot.slane %v2013_v52, 7  ;;  %v1475_v13 = vrot.slane %v1386_v40, 1 }
 0x254   : > { %v11709_v41 = vadd.f32 %v2928_v32, %v2582_v20 }
 0x255   : > { %v2155_v15 = vsel %vm825_vm0, %v2101_v33, %v2102_v1  ;;  %v11713_v51 = vpop.f32.mrf.mxu0 }
 0x257   : > { %1428 = vmatmul.bf16.gmra.mxu2 %v10902_v63  ;;  %2055 = vmatmul.bf16.gmra.mxu3 %v10361_v48 }
 0x258   : > { %2494 = vmatmul.bf16.gmra.mxu0 %v10362_v58  ;;  %2832 = vmatmul.bf16.gmra.mxu1 %v10362_v58 }
 0x25a   : > { %v1389_v31 = vpop.f32.mrf.mxu2  ;;  %v2016_v7 = vpop.f32.mrf.mxu3 }
 0x25b   : > { %v1476_v4 = vrot.slane %v1389_v31, 1  ;;  %v2103_v55 = vrot.slane %v2016_v7, 7  ;;  %v10437_v31 = vld [vmem:[#allocation8 + $0x238] sm:$0xff] }
 0x25c   : > { %4123 = vmatpush.bf16.msra.mxu0 %v10437_v31 }
 0x25d   : > { %v1528_v32 = vsel %vm1502_vm1, %v1475_v13, %v1476_v4  ;;  %v2154_v46 = vsel %vm825_vm0, %v2102_v1, %v2103_v55  ;;  %v11721_v48 = vpop.f32.mrf.mxu0 }
 0x25e   : > { %v1620_v17 = vadd.f32 %v1528_v32, %v11499_v39  ;;  %v10363_v39 = vld [vmem:[#allocation2 + $0xb4] sm:$0xff]  ;;  %v10429_v32 = vld [vmem:[#allocation8 + $0x1f8] sm:$0xff] }
 0x25f   : > { %3785 = vmatpush.bf16.msra.mxu3 %v10429_v32 }
 0x260   : > { %v2246_v56 = vadd.f32 %v2155_v15, %v1620_v17  ;;  %v10435_v17 = vld [vmem:[#allocation8 + $0x228] sm:$0xff] }
 0x262   : > { %v1391_v10 = vpop.f32.mrf.mxu2  ;;  %v2018_v33 = vpop.f32.mrf.mxu3  ;;  %v2584_v11 = vadd.f32 %v11689_v60, %v2246_v56 }
 0x263   : > { %v1477_v40 = vrot.slane %v1391_v10, 1  ;;  %v2104_v15 = vrot.slane %v2018_v33, 7 }
 0x264   : > { %v11724_v52 = vadd.f32 %v2926_v27, %v2584_v11 }
 0x265   : > { %v1527_v20 = vsel %vm1502_vm1, %v1476_v4, %v1477_v40  ;;  %v2460_v1 = vpop.f32.mrf.mxu0  ;;  %v10436_v4 = vld [vmem:[#allocation8 + $0x230] sm:$0xff]  ;;  %v10427_v40 = vld [vmem:[#allocation8 + $0x1e8] sm:$0xff] }
 0x266   : > { %v1621_v63 = vadd.f32 %v1527_v20, %v11508_v2  ;;  %4124 = vmatpush.bf16.msra.mxu0 %v10436_v4  ;;  %v10434_v20 = vld [vmem:[#allocation8 + $0x220] sm:$0xff]  ;;  %v10425_v4 = vld [vmem:[#allocation8 + $0x1d8] sm:$0xff] }
 0x267   : > { %1433 = vmatmul.bf16.gmra.mxu2 %v10903_v29  ;;  %2060 = vmatmul.bf16.gmra.mxu3 %v10362_v58 }
 0x268   : > { %v2247_v7 = vadd.f32 %v2154_v46, %v1621_v63  ;;  %2499 = vmatmul.bf16.gmra.mxu0 %v10363_v39  ;;  %2837 = vmatmul.bf16.gmra.mxu1 %v10363_v39  ;;  %v10428_v46 = vld [vmem:[#allocation8 + $0x1f0] sm:$0xff] }
 0x269   : > { %3786 = vmatpush.bf16.msra.mxu3 %v10428_v46  ;;  %v10432_v46 = vld [vmem:[#allocation8 + $0x210] sm:$0xff] }
 0x26a   : > { %v1394_v13 = vpop.f32.mrf.mxu2  ;;  %v2021_v55 = vpop.f32.mrf.mxu3  ;;  %v2585_v60 = vadd.f32 %v11696_v47, %v2247_v7  ;;  %4125 = vmatpush.bf16.msra.mxu0 %v10435_v17  ;;  %v10904_v7 = vld [vmem:[#allocation2 + $0xa8] sm:$0xff] }
 0x26b   : > { %v2105_v27 = vrot.slane %v2021_v55, 7  ;;  %v1478_v47 = vrot.slane %v1394_v13, 1  ;;  %v10426_v13 = vld [vmem:[#allocation8 + $0x1e0] sm:$0xff]  ;;  %v10433_v55 = vld [vmem:[#allocation8 + $0x218] sm:$0xff] }
 0x26c   : > { %v11730_v8 = vadd.f32 %v2925_v23, %v2585_v60  ;;  %v1188_v23 = vadd.f32 %v11381_v9, %v11514_v45 }
 0x26d   : > { %v2152_v2 = vsel %vm825_vm0, %v2104_v15, %v2105_v27  ;;  %v11734_v58 = vpop.f32.mrf.mxu0  ;;  %3787 = vmatpush.bf16.msra.mxu3 %v10427_v40  ;;  %v10364_v15 = vld [vmem:[#allocation2 + $0xbc] sm:$0xff] }
 0x26e   : > { %4126 = vmatpush.bf16.msra.mxu0 %v10434_v20 }
 0x271   : > { %3788 = vmatpush.bf16.msra.mxu3 %v10426_v13  ;;  %v10422_v13 = vld [vmem:[#allocation8 + $0x1c0] sm:$0xff] }
 0x272   : > { %v1396_v56 = vpop.f32.mrf.mxu2  ;;  %v2023_v10 = vpop.f32.mrf.mxu3  ;;  %4127 = vmatpush.bf16.msra.mxu0 %v10433_v55 }
 0x273   : > { %v1479_v33 = vrot.slane %v1396_v56, 1  ;;  %v2106_v11 = vrot.slane %v2023_v10, 7 }
 0x275   : > { %v1525_v63 = vsel %vm1502_vm1, %v1478_v47, %v1479_v33  ;;  %v2151_v1 = vsel %vm825_vm0, %v2105_v27, %v2106_v11  ;;  %v11742_v31 = vpop.f32.mrf.mxu0  ;;  %3789 = vmatpush.bf16.msra.mxu3 %v10425_v4  ;;  %v10431_v47 = vld [vmem:[#allocation8 + $0x208] sm:$0xff] }
 0x276   : > { %v1623_v29 = vadd.f32 %v1525_v63, %v1188_v23  ;;  %4128 = vmatpush.bf16.msra.mxu0 %v10432_v46  ;;  %v10423_v63 = vld [vmem:[#allocation8 + $0x1c8] sm:$0xff] }
 0x277   : > { %1438 = vmatmul.bf16.gmra.mxu2 %v10904_v7  ;;  %2065 = vmatmul.bf16.gmra.mxu3 %v10363_v39  ;;  %v10424_v39 = vld [vmem:[#allocation8 + $0x1d0] sm:$0xff]  ;;  %v10905_v7 = vld [vmem:[#allocation2 + $0xb0] sm:$0xff] }
 0x278   : > { %v2249_v60 = vadd.f32 %v2152_v2, %v1623_v29  ;;  %2504 = vmatmul.bf16.gmra.mxu0 %v10364_v15  ;;  %2842 = vmatmul.bf16.gmra.mxu1 %v10364_v15  ;;  %v10430_v29 = vld [vmem:[#allocation8 + $0x200] sm:$0xff] }
 0x279   : > { %3790 = vmatpush.bf16.msra.mxu3 %v10424_v39 }
 0x27a   : > { %v1399_v9 = vpop.f32.mrf.mxu2  ;;  %v2026_v45 = vpop.f32.mrf.mxu3  ;;  %v11745_v32 = vadd.f32 %v11713_v51, %v2249_v60  ;;  %4129 = vmatpush.bf16.msra.mxu0 %v10431_v47 }
 0x27b   : > { %v1480_v27 = vrot.slane %v1399_v9, 1  ;;  %v2107_v11 = vrot.slane %v2026_v45, 7 }
 0x27d   : > { %v1524_v17 = vsel %vm1502_vm1, %v1479_v33, %v1480_v27  ;;  %v2467_v2 = vpop.f32.mrf.mxu0  ;;  %3791 = vmatpush.bf16.msra.mxu3 %v10423_v63 }
 0x27e   : > { %v1624_v56 = vadd.f32 %v1524_v17, %v11395_v35  ;;  %4130 = vmatpush.bf16.msra.mxu0 %v10430_v29 }
 0x280   : > { %v2250_v10 = vadd.f32 %v2151_v1, %v1624_v56  ;;  %v10365_v1 = vld [vmem:[#allocation2 + $0xc4] sm:$0xff] }
 0x281   : > { %3792 = vmatpush.bf16.msra.mxu3 %v10422_v13 }
 0x282   : > { %v1401_v40 = vpop.f32.mrf.mxu2  ;;  %v2028_v51 = vpop.f32.mrf.mxu3  ;;  %v11751_v23 = vadd.f32 %v11721_v48, %v2250_v10 }
 0x283   : > { %v2108_v20 = vrot.slane %v2028_v51, 7  ;;  %v1481_v48 = vrot.slane %v1401_v40, 1  ;;  %v10906_v51 = vld [vmem:[#allocation2 + $0xb8] sm:$0xff] }
 0x285   : > { %v2149_v33 = vsel %vm825_vm0, %v2107_v11, %v2108_v20  ;;  %v2470_v35 = vpop.f32.mrf.mxu0 }
 0x287   : > { %1443 = vmatmul.bf16.gmra.mxu2 %v10905_v7  ;;  %2070 = vmatmul.bf16.gmra.mxu3 %v10364_v15 }
 0x288   : > { %2509 = vmatmul.bf16.gmra.mxu0 %v10365_v1  ;;  %2847 = vmatmul.bf16.gmra.mxu1 %v10365_v1 }
 0x28a   : > { %v1404_v55 = vpop.f32.mrf.mxu2  ;;  %v2031_v60 = vpop.f32.mrf.mxu3 }
 0x28b   : > { %v1482_v9 = vrot.slane %v1404_v55, 1  ;;  %v2109_v45 = vrot.slane %v2031_v60, 7 }
 0x28d   : > { %v1522_v27 = vsel %vm1502_vm1, %v1481_v48, %v1482_v9  ;;  %v2148_v4 = vsel %vm825_vm0, %v2108_v20, %v2109_v45  ;;  %v2472_v17 = vpop.f32.mrf.mxu0  ;;  %v10390_v20 = vld [vmem:[#allocation2 + $0x18] sm:$0xff] }
 0x28e   : > { %v1626_v46 = vadd.f32 %v1522_v27, %v11407_v14 }
 0x290   : > { %v2252_v15 = vadd.f32 %v2149_v33, %v1626_v46  ;;  %v10391_v46 = vld [vmem:[#allocation2 + $0x20] sm:$0xff] }
 0x292   : > { %v1406_v39 = vpop.f32.mrf.mxu2  ;;  %v2033_v56 = vpop.f32.mrf.mxu3  ;;  %v11761_v2 = vadd.f32 %v11734_v58, %v2252_v15 }
 0x293   : > { %v1483_v10 = vrot.slane %v1406_v39, 1  ;;  %v2110_v14 = vrot.slane %v2033_v56, 7 }
 0x295   : > { %v1521_v47 = vsel %vm1502_vm1, %v1482_v9, %v1483_v10  ;;  %v2475_v40 = vpop.f32.mrf.mxu0 }
 0x296   : > { %v1627_v11 = vadd.f32 %v1521_v47, %v11417_v37 }
 0x297   : > { %1448 = vmatmul.bf16.gmra.mxu2 %v10906_v51  ;;  %2075 = vmatmul.bf16.gmra.mxu3 %v10365_v1 }
 0x298   : > { %v2253_v63 = vadd.f32 %v2148_v4, %v1627_v11  ;;  %4131 = vmatmul.bf16.vlgmr.msra.gmra.mxu0 %v10390_v20 }
 0x29a   : > { %v1409_v29 = vpop.f32.mrf.mxu2  ;;  %v2036_v33 = vpop.f32.mrf.mxu3  ;;  %v11767_v7 = vadd.f32 %v11742_v31, %v2253_v63 }
 0x29b   : > { %v2111_v58 = vrot.slane %v2036_v33, 7  ;;  %v1484_v48 = vrot.slane %v1409_v29, 1 }
 0x29d   : > { %v2146_v13 = vsel %vm825_vm0, %v2110_v14, %v2111_v58  ;;  %v2477_v55 = vpop.f32.mrf.mxu0 }
 0x2a2   : > { %v1411_v60 = vpop.f32.mrf.mxu2  ;;  %v2038_v37 = vpop.f32.mrf.mxu3 }
 0x2a3   : > { %v1485_v9 = vrot.slane %v1411_v60, 1  ;;  %v2112_v45 = vrot.slane %v2038_v37, 7 }
 0x2a5   : > { %v1519_v1 = vsel %vm1502_vm1, %v1484_v48, %v1485_v9  ;;  %v2145_v27 = vsel %vm825_vm0, %v2111_v58, %v2112_v45  ;;  %v2480_v31 = vpop.f32.mrf.mxu0 }
 0x2a6   : > { %v1629_v4 = vadd.f32 %v1519_v1, %v11425_v0 }
 0x2a7   : > { %3359 = vmatmul.bf16.vlgmr.msra.gmra.mxu2 %v10390_v20  ;;  %3793 = vmatmul.bf16.vlgmr.msra.gmra.mxu3 %v10390_v20 }
 0x2a8   : > { %v2255_v15 = vadd.f32 %v2146_v13, %v1629_v4  ;;  %4136 = vmatmul.bf16.gmra.mxu0 %v10391_v46 }
 0x2aa   : > { %v1414_v39 = vpop.f32.mrf.mxu2  ;;  %v2041_v56 = vpop.f32.mrf.mxu3  ;;  %v11776_v10 = vadd.f32 %v2470_v35, %v2255_v15  ;;  %v10392_v35 = vld [vmem:[#allocation2 + $0x28] sm:$0xff] }
 0x2ab   : > { %v1486_v47 = vrot.slane %v1414_v39, 1  ;;  %v2113_v14 = vrot.slane %v2041_v56, 7 }
 0x2ad   : > { %v1518_v11 = vsel %vm1502_vm1, %v1485_v9, %v1486_v47  ;;  %v2482_v51 = vpop.f32.mrf.mxu0 }
 0x2ae   : > { %v1630_v40 = vadd.f32 %v1518_v11, %v11433_v16  ;;  %v10393_v51 = vld [vmem:[#allocation2 + $0x30] sm:$0xff] }
 0x2b0   : > { %v2256_v63 = vadd.f32 %v2145_v27, %v1630_v40 }
 0x2b2   : > { %v1416_v0 = vpop.f32.mrf.mxu2  ;;  %v2043_v29 = vpop.f32.mrf.mxu3  ;;  %v11781_v33 = vadd.f32 %v2472_v17, %v2256_v63 }
 0x2b3   : > { %v2114_v20 = vrot.slane %v2043_v29, 7  ;;  %v1487_v48 = vrot.slane %v1416_v0, 1 }
 0x2b5   : > { %v2143_v58 = vsel %vm825_vm0, %v2113_v14, %v2114_v20  ;;  %v2485_v13 = vpop.f32.mrf.mxu0 }
 0x2b7   : > { %3364 = vmatmul.bf16.gmra.mxu2 %v10391_v46  ;;  %3798 = vmatmul.bf16.gmra.mxu3 %v10391_v46 }
 0x2b8   : > { %4141 = vmatmul.bf16.gmra.mxu0 %v10392_v35 }
 0x2ba   : > { %v1419_v60 = vpop.f32.mrf.mxu2  ;;  %v2046_v37 = vpop.f32.mrf.mxu3 }
 0x2bb   : > { %v1488_v16 = vrot.slane %v1419_v60, 1  ;;  %v2115_v9 = vrot.slane %v2046_v37, 7 }
 0x2bd   : > { %v1516_v45 = vsel %vm1502_vm1, %v1487_v48, %v1488_v16  ;;  %v2142_v17 = vsel %vm825_vm0, %v2114_v20, %v2115_v9  ;;  %v2487_v27 = vpop.f32.mrf.mxu0 }
 0x2be   : > { %v1632_v1 = vadd.f32 %v1516_v45, %v11442_v44 }
 0x2c0   : > { %v2258_v4 = vadd.f32 %v2143_v58, %v1632_v1 }
 0x2c2   : > { %v1421_v15 = vpop.f32.mrf.mxu2  ;;  %v2048_v39 = vpop.f32.mrf.mxu3  ;;  %v11790_v46 = vadd.f32 %v2477_v55, %v2258_v4 }
 0x2c3   : > { %v1489_v56 = vrot.slane %v1421_v15, 1  ;;  %v2116_v14 = vrot.slane %v2048_v39, 7 }
 0x2c5   : > { %v1515_v47 = vsel %vm1502_vm1, %v1488_v16, %v1489_v56  ;;  %v2490_v40 = vpop.f32.mrf.mxu0 }
 0x2c6   : > { %v1633_v11 = vadd.f32 %v1515_v47, %v11451_v24 }
 0x2c7   : > { %3369 = vmatmul.bf16.gmra.mxu2 %v10392_v35  ;;  %3803 = vmatmul.bf16.gmra.mxu3 %v10392_v35 }
 0x2c8   : > { %v2259_v63 = vadd.f32 %v2142_v17, %v1633_v11  ;;  %4146 = vmatmul.bf16.gmra.mxu0 %v10393_v51  ;;  %v10394_v17 = vld [vmem:[#allocation2 + $0x38] sm:$0xff] }
 0x2ca   : > { %v1424_v44 = vpop.f32.mrf.mxu2  ;;  %v2051_v0 = vpop.f32.mrf.mxu3  ;;  %v11795_v29 = vadd.f32 %v2480_v31, %v2259_v63 }
 0x2cb   : > { %v2117_v20 = vrot.slane %v2051_v0, 7  ;;  %v1490_v48 = vrot.slane %v1424_v44, 1 }
 0x2cd   : > { %v2140_v55 = vsel %vm825_vm0, %v2116_v14, %v2117_v20  ;;  %v2492_v58 = vpop.f32.mrf.mxu0 }
 0x2d2   : > { %v1426_v60 = vpop.f32.mrf.mxu2  ;;  %v2053_v37 = vpop.f32.mrf.mxu3 }
 0x2d3   : > { %v1491_v24 = vrot.slane %v1426_v60, 1  ;;  %v2118_v16 = vrot.slane %v2053_v37, 7 }
 0x2d5   : > { %v1513_v35 = vsel %vm1502_vm1, %v1490_v48, %v1491_v24  ;;  %v2139_v9 = vsel %vm825_vm0, %v2117_v20, %v2118_v16  ;;  %v2495_v31 = vpop.f32.mrf.mxu0 }
 0x2d6   : > { %v1635_v45 = vadd.f32 %v1513_v35, %v11460_v38 }
 0x2d7   : > { %3374 = vmatmul.bf16.gmra.mxu2 %v10393_v51  ;;  %3808 = vmatmul.bf16.gmra.mxu3 %v10393_v51 }
 0x2d8   : > { %v2261_v1 = vadd.f32 %v2140_v55, %v1635_v45  ;;  %4151 = vmatmul.bf16.gmra.mxu0 %v10394_v17 }
 0x2da   : > { %v1429_v4 = vpop.f32.mrf.mxu2  ;;  %v2056_v15 = vpop.f32.mrf.mxu3  ;;  %v11804_v39 = vadd.f32 %v2485_v13, %v2261_v1  ;;  %v10395_v13 = vld [vmem:[#allocation2 + $0x40] sm:$0xff] }
 0x2db   : > { %v1492_v56 = vrot.slane %v1429_v4, 1  ;;  %v2119_v14 = vrot.slane %v2056_v15, 7 }
 0x2dd   : > { %v1512_v47 = vsel %vm1502_vm1, %v1491_v24, %v1492_v56  ;;  %v2497_v40 = vpop.f32.mrf.mxu0 }
 0x2de   : > { %v1636_v11 = vadd.f32 %v1512_v47, %v11468_v54  ;;  %v10396_v40 = vld [vmem:[#allocation2 + $0x48] sm:$0xff] }
 0x2e0   : > { %v2262_v63 = vadd.f32 %v2139_v9, %v1636_v11 }
 0x2e2   : > { %v1431_v38 = vpop.f32.mrf.mxu2  ;;  %v2058_v44 = vpop.f32.mrf.mxu3  ;;  %v11809_v0 = vadd.f32 %v2487_v27, %v2262_v63 }
 0x2e3   : > { %v2120_v51 = vrot.slane %v2058_v44, 7  ;;  %v1493_v48 = vrot.slane %v1431_v38, 1 }
 0x2e5   : > { %v2137_v20 = vsel %vm825_vm0, %v2119_v14, %v2120_v51  ;;  %v2500_v55 = vpop.f32.mrf.mxu0 }
 0x2e7   : > { %3379 = vmatmul.bf16.gmra.mxu2 %v10394_v17  ;;  %3813 = vmatmul.bf16.gmra.mxu3 %v10394_v17 }
 0x2e8   : > { %4156 = vmatmul.bf16.gmra.mxu0 %v10395_v13 }
 0x2ea   : > { %v1434_v60 = vpop.f32.mrf.mxu2  ;;  %v2061_v37 = vpop.f32.mrf.mxu3 }
 0x2eb   : > { %v1494_v54 = vrot.slane %v1434_v60, 1  ;;  %v2121_v24 = vrot.slane %v2061_v37, 7 }
 0x2ed   : > { %v1510_v16 = vsel %vm1502_vm1, %v1493_v48, %v1494_v54  ;;  %v2136_v27 = vsel %vm825_vm0, %v2120_v51, %v2121_v24  ;;  %v2502_v9 = vpop.f32.mrf.mxu0 }
 0x2ee   : > { %v1638_v35 = vadd.f32 %v1510_v16, %v11477_v21 }
 0x2f0   : > { %v2264_v45 = vadd.f32 %v2137_v20, %v1638_v35 }
 0x2f2   : > { %v1436_v1 = vpop.f32.mrf.mxu2  ;;  %v2063_v4 = vpop.f32.mrf.mxu3  ;;  %v11818_v17 = vadd.f32 %v2492_v58, %v2264_v45 }
 0x2f3   : > { %v1495_v15 = vrot.slane %v1436_v1, 1  ;;  %v2122_v14 = vrot.slane %v2063_v4, 7 }
 0x2f5   : > { %v1509_v56 = vsel %vm1502_vm1, %v1494_v54, %v1495_v15  ;;  %v2505_v11 = vpop.f32.mrf.mxu0 }
 0x2f6   : > { %v1639_v47 = vadd.f32 %v1509_v56, %v11486_v36  ;;  %v10469_v56 = vld [vmem:[#allocation10 + $0x38] sm:$0xff] }
 0x2f7   : > { %3384 = vmatmul.bf16.gmra.mxu2 %v10395_v13  ;;  %3818 = vmatmul.bf16.gmra.mxu3 %v10395_v13 }
 0x2f8   : > { %v2265_v63 = vadd.f32 %v2136_v27, %v1639_v47  ;;  %4161 = vmatmul.bf16.gmra.mxu0 %v10396_v40  ;;  %v10397_v27 = vld [vmem:[#allocation2 + $0x50] sm:$0xff]  ;;  %4913 = vmatpush.bf16.msra.mxu1 %v10469_v56 }
 0x2fa   : > { %v1439_v21 = vpop.f32.mrf.mxu2  ;;  %v2066_v38 = vpop.f32.mrf.mxu3  ;;  %v11823_v44 = vadd.f32 %v2495_v31, %v2265_v63 }
 0x2fb   : > { %v2123_v51 = vrot.slane %v2066_v38, 7  ;;  %v1496_v48 = vrot.slane %v1439_v21, 1 }
 0x2fd   : > { %v2134_v58 = vsel %vm825_vm0, %v2122_v14, %v2123_v51  ;;  %v2507_v20 = vpop.f32.mrf.mxu0 }
 0x302   : > { %v1441_v60 = vpop.f32.mrf.mxu2  ;;  %v2068_v37 = vpop.f32.mrf.mxu3 }
 0x303   : > { %v1497_v36 = vrot.slane %v1441_v60, 1  ;;  %v2124_v54 = vrot.slane %v2068_v37, 7  ;;  %v10398_v60 = vld [vmem:[#allocation2 + $0x58] sm:$0xff] }
 0x305   : > { %v1507_v13 = vsel %vm1502_vm1, %v1496_v48, %v1497_v36  ;;  %v2133_v24 = vsel %vm825_vm0, %v2123_v51, %v2124_v54  ;;  %v2510_v31 = vpop.f32.mrf.mxu0 }
 0x306   : > { %v1641_v16 = vadd.f32 %v1507_v13, %v11495_v19 }
 0x307   : > { %3389 = vmatmul.bf16.gmra.mxu2 %v10396_v40  ;;  %3823 = vmatmul.bf16.gmra.mxu3 %v10396_v40 }
 0x308   : > { %v2267_v35 = vadd.f32 %v2134_v58, %v1641_v16  ;;  %4166 = vmatmul.bf16.gmra.mxu0 %v10397_v27 }
 0x30a   : > { %v1444_v45 = vpop.f32.mrf.mxu2  ;;  %v2071_v1 = vpop.f32.mrf.mxu3  ;;  %v11832_v4 = vadd.f32 %v2500_v55, %v2267_v35 }
 0x30b   : > { %v1498_v15 = vrot.slane %v1444_v45, 1  ;;  %v2125_v14 = vrot.slane %v2071_v1, 7 }
 0x30d   : > { %v1506_v47 = vsel %vm1502_vm1, %v1497_v36, %v1498_v15  ;;  %v2512_v63 = vpop.f32.mrf.mxu0 }
 0x30e   : > { %v1642_v11 = vadd.f32 %v1506_v47, %v11503_v18 }
 0x310   : > { %v2268_v19 = vadd.f32 %v2133_v24, %v1642_v11 }
 0x312   : > { %v1446_v21 = vpop.f32.mrf.mxu2  ;;  %v2073_v40 = vpop.f32.mrf.mxu3  ;;  %v11837_v38 = vadd.f32 %v2502_v9, %v2268_v19 }
 0x313   : > { %v2126_v51 = vrot.slane %v2073_v40, 7  ;;  %v1499_v36 = vrot.slane %v1446_v21, 1 }
 0x315   : > { %v2131_v55 = vsel %vm825_vm0, %v2125_v14, %v2126_v51  ;;  %v4132_v58 = vpop.f32.mrf.mxu0 }
 0x316   : > { %v4252_v24 = vrot.slane %v4132_v58, 1 }
 0x317   : > { %3394 = vmatmul.bf16.gmra.mxu2 %v10397_v27  ;;  %3828 = vmatmul.bf16.gmra.mxu3 %v10397_v27 }
 0x318   : > { %4171 = vmatmul.bf16.gmra.mxu0 %v10398_v60 }
 0x31a   : > { %v1449_v37 = vpop.f32.mrf.mxu2  ;;  %v2076_v48 = vpop.f32.mrf.mxu3 }
 0x31b   : > { %v1500_v18 = vrot.slane %v1449_v37, 1  ;;  %v2127_v54 = vrot.slane %v2076_v48, 7  ;;  %v12937_v48 = vld [vmem:[#allocation15_spill] sm:$0xff] }
 0x31d   : > { %v1504_v13 = vsel %vm1502_vm1, %v1499_v36, %v1500_v18  ;;  %v2130_v9 = vsel %vm825_vm0, %v2126_v51, %v2127_v54  ;;  %v4134_v35 = vpop.f32.mrf.mxu0  ;;  %v10399_v51 = vld [vmem:[#allocation2 + $0x60] sm:$0xff] }
 0x31e   : > { %v1644_v16 = vadd.f32 %v1504_v13, %v11518_v22  ;;  %v4253_v45 = vrot.slane %v4134_v35, 1  ;;  %v11881_v35 = vld [vmem:[%s12924_s2] ss:$0 sm:$0xff] }
 0x320   : > { %v2270_v1 = vadd.f32 %v2131_v55, %v1644_v16  ;;  %v11848_v27 = vsel %vm1502_vm1, %v4252_v24, %v4253_v45  ;;  %v10400_v24 = vld [vmem:[#allocation2 + $0x68] sm:$0xff] }
 0x322   : > { %v1451_v15 = vpop.f32.mrf.mxu2  ;;  %v2078_v56 = vpop.f32.mrf.mxu3  ;;  %v11850_v47 = vadd.f32 %v2507_v20, %v2270_v1 }
 0x323   : > { %v1501_v11 = vrot.slane %v1451_v15, 1  ;;  %v2128_v63 = vrot.slane %v2078_v56, 7 }
 0x325   : > { %v1503_v19 = vsel %vm1502_vm1, %v1500_v18, %v1501_v11  ;;  %v2176_v22 = vsel %vm825_vm0, %v2128_v63, %v2081_v61  ;;  %v4137_v40 = vpop.f32.mrf.mxu0  ;;  %v10468_v11 = vld [vmem:[#allocation10 + $0x30] sm:$0xff] }
 0x326   : > { %v1645_v14 = vadd.f32 %v1503_v19, %v11525_v42  ;;  %v2225_v21 = vadd.f32 %v2176_v22, %v11546_v50  ;;  %v4254_v54 = vrot.slane %v4137_v40, 1  ;;  %4914 = vmatpush.bf16.msra.mxu1 %v10468_v11 }
 0x327   : > { %3399 = vmatmul.bf16.gmra.mxu2 %v10398_v60  ;;  %3833 = vmatmul.bf16.gmra.mxu3 %v10398_v60 }
 0x328   : > { %v2563_v20 = vadd.f32 %v11520_v25, %v2225_v21  ;;  %v2271_v55 = vadd.f32 %v2130_v9, %v1645_v14  ;;  %4176 = vmatmul.bf16.gmra.mxu0 %v10399_v51 }
 0x32a   : > { %v11861_v58 = vpop.f32.mrf.mxu2  ;;  %v11863_v37 = vpop.f32.mrf.mxu3  ;;  %v11865_v12 = vadd.f32 %v2510_v31, %v2271_v55  ;;  %v11868_v61 = vadd.f32 %v12937_v48, %v2563_v20  ;;  %v4345_v31 = vsel %vm1502_vm1, %v4253_v45, %v4254_v54 }
 0x32b   : > { %v3480_v18 = vrot.slane %v11861_v58, 7 }
 0x32d   : > { %v4139_v42 = vpop.f32.mrf.mxu0 }
 0x32e   : > { %v4255_v48 = vrot.slane %v4139_v42, 1 }
 0x332   : > { %v3362_v36 = vpop.f32.mrf.mxu2  ;;  %v3796_v50 = vpop.f32.mrf.mxu3 }
 0x333   : > { %v3481_v60 = vrot.slane %v3362_v36, 7 }
 0x335   : > { %v3574_v25 = vsel %vm825_vm0, %v3480_v18, %v3481_v60  ;;  %v4142_v9 = vpop.f32.mrf.mxu0 }
 0x336   : > { %v3625_v13 = vadd.f32 %v3574_v25, %v11563_v59  ;;  %v4256_v36 = vrot.slane %v4142_v9, 1 }
 0x337   : > { %3404 = vmatmul.bf16.gmra.mxu2 %v10399_v51  ;;  %3838 = vmatmul.bf16.gmra.mxu3 %v10399_v51 }
 0x338   : > { %v3963_v16 = vadd.f32 %v3796_v50, %v3625_v13  ;;  %4181 = vmatmul.bf16.gmra.mxu0 %v10400_v24  ;;  %v10401_v50 = vld [vmem:[#allocation2 + $0x70] sm:$0xff]  ;;  %v4343_v13 = vsel %vm1502_vm1, %v4255_v48, %v4256_v36 }
 0x33a   : > { %v4397_v1 = vadd.f32 %v4345_v31, %v3963_v16  ;;  %v3365_v15 = vpop.f32.mrf.mxu2  ;;  %v3799_v56 = vpop.f32.mrf.mxu3 }
 0x33b   : > { %v3482_v21 = vrot.slane %v3365_v15, 7 }
 0x33c   : > { %v4529_v59 = vadd.f32 %v11881_v35, %v4397_v1 }
 0x33d   : > { %v4144_v19 = vpop.f32.mrf.mxu0 }
 0x33e   : > { %v4561_v63 = vmax.f32 %v4529_v59, 0.0  ;;  %v4257_v16 = vrot.slane %v4144_v19, 1 }
 0x340   : > { %v4593_v22 = vpack.c.bf16 %v4561_v63, %v4561_v63  ;;  %v4342_v9 = vsel %vm1502_vm1, %v4256_v36, %v4257_v16 }
 0x342   : > { %4626 = vst [vmem:[#allocation3 + $0x10] sm:$0xf] %v4593_v22  ;;  %v3367_v45 = vpop.f32.mrf.mxu2  ;;  %v3801_v14 = vpop.f32.mrf.mxu3 }
 0x343   : > { %v3483_v40 = vrot.slane %v3367_v45, 7 }
 0x345   : > { %v3572_v51 = vsel %vm825_vm0, %v3482_v21, %v3483_v40  ;;  %v4147_v55 = vpop.f32.mrf.mxu0  ;;  %v10402_v21 = vld [vmem:[#allocation2 + $0x78] sm:$0xff] }
 0x346   : > { %v3627_v20 = vadd.f32 %v3572_v51, %v11580_v3  ;;  %v4258_v48 = vrot.slane %v4147_v55, 1 }
 0x347   : > { %3409 = vmatmul.bf16.gmra.mxu2 %v10400_v24  ;;  %3843 = vmatmul.bf16.gmra.mxu3 %v10400_v24 }
 0x348   : > { %4186 = vmatmul.bf16.gmra.mxu0 %v10401_v50  ;;  %v3965_v60 = vadd.f32 %v3801_v14, %v3627_v20 }
 0x34a   : > { %v3370_v54 = vpop.f32.mrf.mxu2  ;;  %v3804_v25 = vpop.f32.mrf.mxu3  ;;  %v4399_v15 = vadd.f32 %v4343_v13, %v3965_v60 }
 0x34b   : > { %v3484_v31 = vrot.slane %v3370_v54, 7 }
 0x34c   : > { %v4530_v56 = vadd.f32 %v11881_v35, %v4399_v15 }
 0x34d   : > { %v3571_v1 = vsel %vm825_vm0, %v3483_v40, %v3484_v31  ;;  %v4149_v42 = vpop.f32.mrf.mxu0 }
 0x34e   : > { %v3628_v3 = vadd.f32 %v3571_v1, %v11589_v49  ;;  %v4562_v45 = vmax.f32 %v4530_v56, 0.0  ;;  %v4259_v60 = vrot.slane %v4149_v42, 1 }
 0x350   : > { %v3966_v24 = vadd.f32 %v3804_v25, %v3628_v3  ;;  %v4340_v31 = vsel %vm1502_vm1, %v4258_v48, %v4259_v60 }
 0x352   : > { %v4400_v11 = vadd.f32 %v4342_v9, %v3966_v24  ;;  %v3372_v59 = vpop.f32.mrf.mxu2  ;;  %v3806_v63 = vpop.f32.mrf.mxu3 }
 0x353   : > { %v3485_v20 = vrot.slane %v3372_v59, 7  ;;  %v10403_v59 = vld [vmem:[#allocation2 + $0x80] sm:$0xff] }
 0x354   : > { %v4531_v22 = vadd.f32 %v11881_v35, %v4400_v11 }
 0x355   : > { %v4152_v14 = vpop.f32.mrf.mxu0 }
 0x356   : > { %v4563_v19 = vmax.f32 %v4531_v22, 0.0  ;;  %v4260_v9 = vrot.slane %v4152_v14, 1 }
 0x357   : > { %3414 = vmatmul.bf16.gmra.mxu2 %v10401_v50  ;;  %3848 = vmatmul.bf16.gmra.mxu3 %v10401_v50 }
 0x358   : > { %v10586_v40 = vpack.c.bf16 %v4563_v19, %v4562_v45  ;;  %4191 = vmatmul.bf16.gmra.mxu0 %v10402_v21 }
 0x35a   : > { %10767 = vst [vmem:[#allocation3 + $0x18] sm:$0xff] %v10586_v40   ;;  %v3375_v49 = vpop.f32.mrf.mxu2  ;;  %v3809_v51 = vpop.f32.mrf.mxu3  ;;  %v10467_v40 = vld [vmem:[#allocation10 + $0x28] sm:$0xff] }
 0x35b   : > { %v3486_v36 = vrot.slane %v3375_v49, 7  ;;  %4915 = vmatpush.bf16.msra.mxu1 %v10467_v40 }
 0x35d   : > { %v3569_v54 = vsel %vm825_vm0, %v3485_v20, %v3486_v36  ;;  %v4154_v13 = vpop.f32.mrf.mxu0 }
 0x35e   : > { %v3630_v25 = vadd.f32 %v3569_v54, %v11605_v26  ;;  %v4339_v26 = vsel %vm1502_vm1, %v4259_v60, %v4260_v9 }
 0x360   : > { %v3968_v50 = vadd.f32 %v3809_v51, %v3630_v25 }
 0x362   : > { %v4402_v16 = vadd.f32 %v4340_v31, %v3968_v50  ;;  %v3377_v1 = vpop.f32.mrf.mxu2  ;;  %v3811_v15 = vpop.f32.mrf.mxu3  ;;  %v4261_v50 = vrot.slane %v4154_v13, 1 }
 0x363   : > { %v3487_v3 = vrot.slane %v3377_v1, 7  ;;  %v10404_v1 = vld [vmem:[#allocation2 + $0x88] sm:$0xff] }
 0x364   : > { %v4532_v24 = vadd.f32 %v11881_v35, %v4402_v16 }
 0x365   : > { %v3568_v55 = vsel %vm825_vm0, %v3486_v36, %v3487_v3  ;;  %v4157_v11 = vpop.f32.mrf.mxu0 }
 0x366   : > { %v4564_v42 = vmax.f32 %v4532_v24, 0.0  ;;  %v3631_v56 = vadd.f32 %v3568_v55, %v11613_v43  ;;  %v4262_v16 = vrot.slane %v4157_v11, 1 }
 0x367   : > { %3419 = vmatmul.bf16.gmra.mxu2 %v10402_v21  ;;  %3853 = vmatmul.bf16.gmra.mxu3 %v10402_v21 }
 0x368   : > { %v4596_v63 = vpack.c.bf16 %v4564_v42, %v4564_v42  ;;  %v3969_v22 = vadd.f32 %v3811_v15, %v3631_v56  ;;  %4196 = vmatmul.bf16.gmra.mxu0 %v10403_v59  ;;  %v4337_v24 = vsel %vm1502_vm1, %v4261_v50, %v4262_v16 }
 0x36a   : > { %4629 = vst [vmem:[#allocation3 + $0x24] sm:$0xf] %v4596_v63  ;;  %v4403_v45 = vadd.f32 %v4339_v26, %v3969_v22  ;;  %v3380_v19 = vpop.f32.mrf.mxu2  ;;  %v3814_v14 = vpop.f32.mrf.mxu3 }
 0x36b   : > { %v3488_v60 = vrot.slane %v3380_v19, 7 }
 0x36c   : > { %v4533_v49 = vadd.f32 %v11881_v35, %v4403_v45 }
 0x36d   : > { %v4159_v43 = vpop.f32.mrf.mxu0 }
 0x36e   : > { %v4565_v51 = vmax.f32 %v4533_v49, 0.0  ;;  %v4263_v42 = vrot.slane %v4159_v43, 1  ;;  %v10405_v43 = vld [vmem:[#allocation2 + $0x90] sm:$0xff] }
 0x370   : > { %v4597_v20 = vpack.c.bf16 %v4565_v51, %v4565_v51  ;;  %v4336_v11 = vsel %vm1502_vm1, %v4262_v16, %v4263_v42 }
 0x372   : > { %4630 = vst [vmem:[#allocation3 + $0x28] sm:$0xf] %v4597_v20  ;;  %v3382_v48 = vpop.f32.mrf.mxu2  ;;  %v3816_v36 = vpop.f32.mrf.mxu3 }
 0x373   : > { %v3489_v21 = vrot.slane %v3382_v48, 7 }
 0x375   : > { %v3566_v54 = vsel %vm825_vm0, %v3488_v60, %v3489_v21  ;;  %v4162_v31 = vpop.f32.mrf.mxu0 }
 0x376   : > { %v3633_v25 = vadd.f32 %v3566_v54, %v11629_v53  ;;  %v4264_v60 = vrot.slane %v4162_v31, 1 }
 0x377   : > { %3424 = vmatmul.bf16.gmra.mxu2 %v10403_v59  ;;  %3858 = vmatmul.bf16.gmra.mxu3 %v10403_v59 }
 0x378   : > { %4201 = vmatmul.bf16.gmra.mxu0 %v10404_v1  ;;  %v3971_v15 = vadd.f32 %v3816_v36, %v3633_v25 }
 0x37a   : > { %v3385_v3 = vpop.f32.mrf.mxu2  ;;  %v3819_v9 = vpop.f32.mrf.mxu3  ;;  %v4405_v26 = vadd.f32 %v4337_v24, %v3971_v15 }
 0x37b   : > { %v3490_v55 = vrot.slane %v3385_v3, 7 }
 0x37c   : > { %v4534_v63 = vadd.f32 %v11881_v35, %v4405_v26 }
 0x37d   : > { %v3565_v56 = vsel %vm825_vm0, %v3489_v21, %v3490_v55  ;;  %v4164_v13 = vpop.f32.mrf.mxu0 }
 0x37e   : > { %v3634_v53 = vadd.f32 %v3565_v56, %v11637_v30  ;;  %v4566_v40 = vmax.f32 %v4534_v63, 0.0  ;;  %v4265_v54 = vrot.slane %v4164_v13, 1 }
 0x380   : > { %v3972_v59 = vadd.f32 %v3819_v9, %v3634_v53  ;;  %v4334_v15 = vsel %vm1502_vm1, %v4264_v60, %v4265_v54 }
 0x382   : > { %v4406_v22 = vadd.f32 %v4336_v11, %v3972_v59  ;;  %v3387_v45 = vpop.f32.mrf.mxu2  ;;  %v3821_v19 = vpop.f32.mrf.mxu3  ;;  %v10406_v11 = vld [vmem:[#allocation2 + $0x98] sm:$0xff] }
 0x383   : > { %v3491_v36 = vrot.slane %v3387_v45, 7 }
 0x384   : > { %v4535_v14 = vadd.f32 %v11881_v35, %v4406_v22 }
 0x385   : > { %v4167_v51 = vpop.f32.mrf.mxu0 }
 0x386   : > { %v4567_v49 = vmax.f32 %v4535_v14, 0.0  ;;  %v4266_v42 = vrot.slane %v4167_v51, 1  ;;  %v10466_v14 = vld [vmem:[#allocation10 + $0x20] sm:$0xff] }
 0x387   : > { %3429 = vmatmul.bf16.gmra.mxu2 %v10404_v1  ;;  %3863 = vmatmul.bf16.gmra.mxu3 %v10404_v1 }
 0x388   : > { %v10591_v20 = vpack.c.bf16 %v4567_v49, %v4566_v40  ;;  %4206 = vmatmul.bf16.gmra.mxu0 %v10405_v43  ;;  %4916 = vmatpush.bf16.msra.mxu1 %v10466_v14 }
 0x38a   : > { %10768 = vst [vmem:[#allocation3 + $0x30] sm:$0xff] %v10591_v20   ;;  %v3390_v30 = vpop.f32.mrf.mxu2  ;;  %v3824_v48 = vpop.f32.mrf.mxu3 }
 0x38b   : > { %v3492_v21 = vrot.slane %v3390_v30, 7 }
 0x38d   : > { %v3563_v25 = vsel %vm825_vm0, %v3491_v36, %v3492_v21  ;;  %v4169_v16 = vpop.f32.mrf.mxu0 }
 0x38e   : > { %v3636_v50 = vadd.f32 %v3563_v25, %v11653_v62  ;;  %v4333_v62 = vsel %vm1502_vm1, %v4265_v54, %v4266_v42  ;;  %v4267_v54 = vrot.slane %v4169_v16, 1 }
 0x390   : > { %v3974_v1 = vadd.f32 %v3824_v48, %v3636_v50  ;;  %v10407_v50 = vld [vmem:[#allocation2 + $0xa0] sm:$0xff] }
 0x392   : > { %v4408_v3 = vadd.f32 %v4334_v15, %v3974_v1  ;;  %v3392_v9 = vpop.f32.mrf.mxu2  ;;  %v3826_v24 = vpop.f32.mrf.mxu3 }
 0x393   : > { %v3493_v55 = vrot.slane %v3392_v9, 7  ;;  %v11935_v9 = vpop.f32.mrf.mxu1 }
 0x394   : > { %v4536_v56 = vadd.f32 %v11881_v35, %v4408_v3 }
 0x395   : > { %v3562_v31 = vsel %vm825_vm0, %v3492_v21, %v3493_v55  ;;  %v4172_v13 = vpop.f32.mrf.mxu0 }
 0x396   : > { %v4568_v26 = vmax.f32 %v4536_v56, 0.0  ;;  %v3637_v53 = vadd.f32 %v3562_v31, %v11661_v34  ;;  %v4268_v25 = vrot.slane %v4172_v13, 1 }
 0x397   : > { %3434 = vmatmul.bf16.gmra.mxu2 %v10405_v43  ;;  %3868 = vmatmul.bf16.gmra.mxu3 %v10405_v43 }
 0x398   : > { %v4600_v59 = vpack.c.bf16 %v4568_v26, %v4568_v26  ;;  %v3975_v63 = vadd.f32 %v3826_v24, %v3637_v53  ;;  %4211 = vmatmul.bf16.gmra.mxu0 %v10406_v11  ;;  %v4331_v24 = vsel %vm1502_vm1, %v4267_v54, %v4268_v25 }
 0x39a   : > { %4633 = vst [vmem:[#allocation3 + $0x3c] sm:$0xf] %v4600_v59  ;;  %v4409_v22 = vadd.f32 %v4333_v62, %v3975_v63  ;;  %v3395_v45 = vpop.f32.mrf.mxu2  ;;  %v3829_v19 = vpop.f32.mrf.mxu3 }
 0x39b   : > { %v3494_v48 = vrot.slane %v3395_v45, 7 }
 0x39c   : > { %v4537_v40 = vadd.f32 %v11881_v35, %v4409_v22  ;;  %v11946_v22 = vpop.f32.mrf.mxu1 }
 0x39d   : > { %v4174_v34 = vpop.f32.mrf.mxu0 }
 0x39e   : > { %v4569_v49 = vmax.f32 %v4537_v40, 0.0  ;;  %v4269_v42 = vrot.slane %v4174_v34, 1 }
 0x3a0   : > { %v4601_v51 = vpack.c.bf16 %v4569_v49, %v4569_v49  ;;  %v4330_v26 = vsel %vm1502_vm1, %v4268_v25, %v4269_v42 }
 0x3a2   : > { %4634 = vst [vmem:[#allocation3 + $0x40] sm:$0xf] %v4601_v51  ;;  %v3397_v20 = vpop.f32.mrf.mxu2  ;;  %v3831_v30 = vpop.f32.mrf.mxu3 }
 0x3a3   : > { %v3495_v43 = vrot.slane %v3397_v20, 7 }
 0x3a4   : > { %v11951_v54 = vpop.f32.mrf.mxu1 }
 0x3a5   : > { %v3560_v36 = vsel %vm825_vm0, %v3494_v48, %v3495_v43  ;;  %v4177_v21 = vpop.f32.mrf.mxu0 }
 0x3a6   : > { %v3639_v60 = vadd.f32 %v3560_v36, %v11677_v6  ;;  %v4270_v20 = vrot.slane %v4177_v21, 1 }
 0x3a7   : > { %3439 = vmatmul.bf16.gmra.mxu2 %v10406_v11  ;;  %3873 = vmatmul.bf16.gmra.mxu3 %v10406_v11 }
 0x3a8   : > { %4216 = vmatmul.bf16.gmra.mxu0 %v10407_v50  ;;  %v3977_v15 = vadd.f32 %v3831_v30, %v3639_v60 }
 0x3aa   : > { %v3400_v1 = vpop.f32.mrf.mxu2  ;;  %v3834_v3 = vpop.f32.mrf.mxu3  ;;  %v4411_v56 = vadd.f32 %v4331_v24, %v3977_v15 }
 0x3ab   : > { %v3496_v55 = vrot.slane %v3400_v1, 7 }
 0x3ac   : > { %v4538_v13 = vadd.f32 %v11881_v35, %v4411_v56 }
 0x3ad   : > { %v3559_v6 = vsel %vm825_vm0, %v3495_v43, %v3496_v55  ;;  %v4179_v31 = vpop.f32.mrf.mxu0 }
 0x3ae   : > { %v3640_v16 = vadd.f32 %v3559_v6, %v11685_v5  ;;  %v4570_v45 = vmax.f32 %v4538_v13, 0.0  ;;  %v10408_v5 = vld [vmem:[#allocation2 + $0xa8] sm:$0xff]  ;;  %v4271_v48 = vrot.slane %v4179_v31, 1  ;;  %v10409_v31 = vld [vmem:[#allocation2 + $0xb0] sm:$0xff]  ;;  %v11961_v13 = vpop.f32.mrf.mxu1 }
 0x3b0   : > { %v3978_v53 = vadd.f32 %v3834_v3, %v3640_v16  ;;  %v4328_v25 = vsel %vm1502_vm1, %v4270_v20, %v4271_v48 }
 0x3b2   : > { %v4412_v62 = vadd.f32 %v4330_v26, %v3978_v53  ;;  %v3402_v11 = vpop.f32.mrf.mxu2  ;;  %v3836_v59 = vpop.f32.mrf.mxu3 }
 0x3b3   : > { %v3497_v51 = vrot.slane %v3402_v11, 7 }
 0x3b4   : > { %v4539_v63 = vadd.f32 %v11881_v35, %v4412_v62 }
 0x3b5   : > { %v4182_v14 = vpop.f32.mrf.mxu0 }
 0x3b6   : > { %v4571_v19 = vmax.f32 %v4539_v63, 0.0  ;;  %v4272_v55 = vrot.slane %v4182_v14, 1  ;;  %v10465_v63 = vld [vmem:[#allocation10 + $0x18] sm:$0xff] }
 0x3b7   : > { %3444 = vmatmul.bf16.gmra.mxu2 %v10407_v50  ;;  %3878 = vmatmul.bf16.gmra.mxu3 %v10407_v50 }
 0x3b8   : > { %v10596_v40 = vpack.c.bf16 %v4571_v19, %v4570_v45  ;;  %4221 = vmatmul.bf16.gmra.mxu0 %v10408_v5  ;;  %v4327_v16 = vsel %vm1502_vm1, %v4271_v48, %v4272_v55  ;;  %4917 = vmatpush.bf16.msra.mxu1 %v10465_v63 }
 0x3ba   : > { %10769 = vst [vmem:[#allocation3 + $0x48] sm:$0xff] %v10596_v40   ;;  %v3405_v49 = vpop.f32.mrf.mxu2  ;;  %v3839_v34 = vpop.f32.mrf.mxu3 }
 0x3bb   : > { %v3498_v30 = vrot.slane %v3405_v49, 7  ;;  %v11964_v49 = vpop.f32.mrf.mxu1 }
 0x3bd   : > { %v3557_v43 = vsel %vm825_vm0, %v3497_v51, %v3498_v30  ;;  %v4184_v60 = vpop.f32.mrf.mxu0 }
 0x3be   : > { %v3642_v36 = vadd.f32 %v3557_v43, %v11701_v28  ;;  %v4273_v43 = vrot.slane %v4184_v60, 1 }
 0x3c0   : > { %v3980_v50 = vadd.f32 %v3839_v34, %v3642_v36 }
 0x3c2   : > { %v4414_v15 = vadd.f32 %v4328_v25, %v3980_v50  ;;  %v3407_v1 = vpop.f32.mrf.mxu2  ;;  %v3841_v3 = vpop.f32.mrf.mxu3  ;;  %v10410_v25 = vld [vmem:[#allocation2 + $0xb8] sm:$0xff] }
 0x3c3   : > { %v3499_v24 = vrot.slane %v3407_v1, 7 }
 0x3c4   : > { %v4540_v21 = vadd.f32 %v11881_v35, %v4414_v15 }
 0x3c5   : > { %v3556_v42 = vsel %vm825_vm0, %v3498_v30, %v3499_v24  ;;  %v4187_v56 = vpop.f32.mrf.mxu0 }
 0x3c6   : > { %v4572_v6 = vmax.f32 %v4540_v21, 0.0  ;;  %v3643_v28 = vadd.f32 %v3556_v42, %v11709_v41  ;;  %v4274_v36 = vrot.slane %v4187_v56, 1  ;;  %v11971_v21 = vpop.f32.mrf.mxu1 }
 0x3c7   : > { %3449 = vmatmul.bf16.gmra.mxu2 %v10408_v5  ;;  %3883 = vmatmul.bf16.gmra.mxu3 %v10408_v5 }
 0x3c8   : > { %v4604_v26 = vpack.c.bf16 %v4572_v6, %v4572_v6  ;;  %v3981_v53 = vadd.f32 %v3841_v3, %v3643_v28  ;;  %4226 = vmatmul.bf16.gmra.mxu0 %v10409_v31  ;;  %v4325_v3 = vsel %vm1502_vm1, %v4273_v43, %v4274_v36  ;;  %v2879_v43 = vrot.slane %v11951_v54, 1 }
 0x3ca   : > { %4637 = vst [vmem:[#allocation3 + $0x54] sm:$0xf] %v4604_v26  ;;  %v4415_v62 = vadd.f32 %v4327_v16, %v3981_v53  ;;  %v3410_v11 = vpop.f32.mrf.mxu2  ;;  %v3844_v59 = vpop.f32.mrf.mxu3 }
 0x3cb   : > { %v3500_v34 = vrot.slane %v3410_v11, 7  ;;  %v2877_v11 = vrot.slane %v11935_v9, 1  ;;  %v2878_v59 = vrot.slane %v11946_v22, 1 }
 0x3cc   : > { %v4541_v45 = vadd.f32 %v11881_v35, %v4415_v62 }
 0x3cd   : > { %v4189_v19 = vpop.f32.mrf.mxu0 }
 0x3ce   : > { %v4573_v41 = vmax.f32 %v4541_v45, 0.0  ;;  %v4275_v55 = vrot.slane %v4189_v19, 1  ;;  %v10411_v19 = vld [vmem:[#allocation2 + $0xc0] sm:$0xff] }
 0x3d0   : > { %v4605_v14 = vpack.c.bf16 %v4573_v41, %v4573_v41  ;;  %v4324_v28 = vsel %vm1502_vm1, %v4274_v36, %v4275_v55 }
 0x3d2   : > { %4638 = vst [vmem:[#allocation3 + $0x58] sm:$0xf] %v4605_v14  ;;  %v3412_v40 = vpop.f32.mrf.mxu2  ;;  %v3846_v5 = vpop.f32.mrf.mxu3 }
 0x3d3   : > { %v3501_v51 = vrot.slane %v3412_v40, 7  ;;  %v2923_v40 = vsel %vm1502_vm1, %v2877_v11, %v2878_v59 }
 0x3d5   : > { %v3554_v20 = vsel %vm825_vm0, %v3500_v34, %v3501_v51  ;;  %v4192_v48 = vpop.f32.mrf.mxu0 }
 0x3d6   : > { %v3645_v30 = vadd.f32 %v3554_v20, %v11724_v52  ;;  %v4276_v9 = vrot.slane %v4192_v48, 1 }
 0x3d7   : > { %3454 = vmatmul.bf16.gmra.mxu2 %v10409_v31  ;;  %3888 = vmatmul.bf16.gmra.mxu3 %v10409_v31 }
 0x3d8   : > { %4231 = vmatmul.bf16.gmra.mxu0 %v10410_v25  ;;  %v3983_v50 = vadd.f32 %v3846_v5, %v3645_v30  ;;  %v3021_v30 = vadd.f32 %v2923_v40, %v11745_v32  ;;  %v2881_v40 = vrot.slane %v11964_v49, 1 }
 0x3da   : > { %v3415_v15 = vpop.f32.mrf.mxu2  ;;  %v3849_v1 = vpop.f32.mrf.mxu3  ;;  %v4417_v42 = vadd.f32 %v4325_v3, %v3983_v50  ;;  %v2922_v3 = vsel %vm1502_vm1, %v2878_v59, %v2879_v43 }
 0x3db   : > { %v3502_v24 = vrot.slane %v3415_v15, 7 }
 0x3dc   : > { %v4542_v16 = vadd.f32 %v11881_v35, %v4417_v42 }
 0x3dd   : > { %v3553_v52 = vsel %vm825_vm0, %v3501_v51, %v3502_v24  ;;  %v4194_v6 = vpop.f32.mrf.mxu0 }
 0x3de   : > { %v3646_v60 = vadd.f32 %v3553_v52, %v11730_v8  ;;  %v4574_v63 = vmax.f32 %v4542_v16, 0.0  ;;  %v11982_v8 = vpop.f32.mrf.mxu1  ;;  %v4277_v22 = vrot.slane %v4194_v6, 1 }
 0x3e0   : > { %v3984_v56 = vadd.f32 %v3849_v1, %v3646_v60  ;;  %v4322_v15 = vsel %vm1502_vm1, %v4276_v9, %v4277_v22  ;;  %v3022_v60 = vadd.f32 %v2922_v3, %v11751_v23 }
 0x3e2   : > { %v4418_v31 = vadd.f32 %v4324_v28, %v3984_v56  ;;  %v3417_v26 = vpop.f32.mrf.mxu2  ;;  %v3851_v53 = vpop.f32.mrf.mxu3 }
 0x3e3   : > { %v3503_v51 = vrot.slane %v3417_v26, 7  ;;  %v10412_v26 = vld [vmem:[#allocation2 + $0xc8] sm:$0xff] }
 0x3e4   : > { %v4543_v62 = vadd.f32 %v11881_v35, %v4418_v31 }
 0x3e5   : > { %v4197_v41 = vpop.f32.mrf.mxu0 }
 0x3e6   : > { %v4575_v45 = vmax.f32 %v4543_v62, 0.0  ;;  %v11994_v24 = vpop.f32.mrf.mxu1  ;;  %v4278_v42 = vrot.slane %v4197_v41, 1 }
 0x3e7   : > { %3459 = vmatmul.bf16.gmra.mxu2 %v10410_v25  ;;  %3893 = vmatmul.bf16.gmra.mxu3 %v10410_v25 }
 0x3e8   : > { %v10601_v14 = vpack.c.bf16 %v4575_v45, %v4574_v63  ;;  %4236 = vmatmul.bf16.gmra.mxu0 %v10411_v19  ;;  %v4321_v31 = vsel %vm1502_vm1, %v4277_v22, %v4278_v42  ;;  %v10464_v45 = vld [vmem:[#allocation10 + $0x10] sm:$0xff] }
 0x3e9   : > { %4918 = vmatpush.bf16.msra.mxu1 %v10464_v45  ;;  %v2884_v45 = vrot.slane %v11994_v24, 1 }
 0x3ea   : > { %10770 = vst [vmem:[#allocation3 + $0x60] sm:$0xff] %v10601_v14   ;;  %v3420_v5 = vpop.f32.mrf.mxu2  ;;  %v3854_v34 = vpop.f32.mrf.mxu3  ;;  %v2880_v14 = vrot.slane %v11961_v13, 1 }
 0x3eb   : > { %v3504_v20 = vrot.slane %v3420_v5, 7 }
 0x3ed   : > { %v3551_v36 = vsel %vm825_vm0, %v3503_v51, %v3504_v20  ;;  %v4199_v50 = vpop.f32.mrf.mxu0  ;;  %v2920_v51 = vsel %vm1502_vm1, %v2880_v14, %v2881_v40 }
 0x3ee   : > { %v3648_v25 = vadd.f32 %v3551_v36, %v3021_v30  ;;  %v12002_v23 = vpop.f32.mrf.mxu1  ;;  %v3024_v43 = vadd.f32 %v2920_v51, %v11761_v2  ;;  %v2882_v36 = vrot.slane %v11971_v21, 1 }
 0x3ef   : > { %v2885_v24 = vrot.slane %v12002_v23, 1 }
 0x3f0   : > { %v3986_v1 = vadd.f32 %v3854_v34, %v3648_v25 }
 0x3f2   : > { %v4420_v48 = vadd.f32 %v4322_v15, %v3986_v1  ;;  %v3422_v55 = vpop.f32.mrf.mxu2  ;;  %v3856_v52 = vpop.f32.mrf.mxu3  ;;  %v4279_v1 = vrot.slane %v4199_v50, 1 }
 0x3f3   : > { %v3505_v32 = vrot.slane %v3422_v55, 7  ;;  %v2919_v55 = vsel %vm1502_vm1, %v2881_v40, %v2882_v36 }
 0x3f4   : > { %v4544_v54 = vadd.f32 %v11881_v35, %v4420_v48  ;;  %v10413_v48 = vld [vmem:[#allocation2 + $0xd0] sm:$0xff] }
 0x3f5   : > { %v3550_v6 = vsel %vm825_vm0, %v3504_v20, %v3505_v32  ;;  %v4202_v16 = vpop.f32.mrf.mxu0 }
 0x3f6   : > { %v4576_v28 = vmax.f32 %v4544_v54, 0.0  ;;  %v3649_v56 = vadd.f32 %v3550_v6, %v3022_v60  ;;  %v12011_v25 = vpop.f32.mrf.mxu1  ;;  %v4280_v3 = vrot.slane %v4202_v16, 1  ;;  %v3025_v60 = vadd.f32 %v2919_v55, %v11767_v7 }
 0x3f7   : > { %3464 = vmatmul.bf16.gmra.mxu2 %v10411_v19  ;;  %3898 = vmatmul.bf16.gmra.mxu3 %v10411_v19  ;;  %v2883_v7 = vrot.slane %v11982_v8, 1 }
 0x3f8   : > { %v4608_v53 = vpack.c.bf16 %v4576_v28, %v4576_v28  ;;  %v3987_v62 = vadd.f32 %v3856_v52, %v3649_v56  ;;  %4241 = vmatmul.bf16.gmra.mxu0 %v10412_v26  ;;  %v4319_v21 = vsel %vm1502_vm1, %v4279_v1, %v4280_v3 }
 0x3fa   : > { %4641 = vst [vmem:[#allocation3 + $0x6c] sm:$0xf] %v4608_v53  ;;  %v4421_v11 = vadd.f32 %v4321_v31, %v3987_v62  ;;  %v3425_v59 = vpop.f32.mrf.mxu2  ;;  %v3859_v63 = vpop.f32.mrf.mxu3 }
 0x3fb   : > { %v3506_v22 = vrot.slane %v3425_v59, 7 }
 0x3fc   : > { %v4545_v41 = vadd.f32 %v11881_v35, %v4421_v11 }
 0x3fd   : > { %v4204_v19 = vpop.f32.mrf.mxu0 }
 0x3fe   : > { %v4577_v5 = vmax.f32 %v4545_v41, 0.0  ;;  %v4281_v54 = vrot.slane %v4204_v19, 1  ;;  %v12022_v16 = vpop.f32.mrf.mxu1 }
 0x400   : > { %v4609_v34 = vpack.c.bf16 %v4577_v5, %v4577_v5  ;;  %v4318_v31 = vsel %vm1502_vm1, %v4280_v3, %v4281_v54 }
 0x402   : > { %4642 = vst [vmem:[#allocation3 + $0x70] sm:$0xf] %v4609_v34  ;;  %v3427_v9 = vpop.f32.mrf.mxu2  ;;  %v3861_v20 = vpop.f32.mrf.mxu3  ;;  %v2917_v34 = vsel %vm1502_vm1, %v2883_v7, %v2884_v45 }
 0x403   : > { %v3507_v30 = vrot.slane %v3427_v9, 7  ;;  %v3027_v8 = vadd.f32 %v2917_v34, %v11776_v10 }
 0x405   : > { %v3548_v13 = vsel %vm825_vm0, %v3506_v22, %v3507_v30  ;;  %v4207_v15 = vpop.f32.mrf.mxu0 }
 0x406   : > { %v3651_v49 = vadd.f32 %v3548_v13, %v3024_v43  ;;  %v2820_v19 = vpop.f32.mrf.mxu1  ;;  %v4282_v22 = vrot.slane %v4207_v15, 1 }
 0x407   : > { %3469 = vmatmul.bf16.gmra.mxu2 %v10412_v26  ;;  %3903 = vmatmul.bf16.gmra.mxu3 %v10412_v26 }
 0x408   : > { %4246 = vmatmul.bf16.gmra.mxu0 %v10413_v48  ;;  %v3989_v52 = vadd.f32 %v3861_v20, %v3651_v49 }
 0x40a   : > { %v3430_v2 = vpop.f32.mrf.mxu2  ;;  %v3864_v32 = vpop.f32.mrf.mxu3  ;;  %v4423_v6 = vadd.f32 %v4319_v21, %v3989_v52 }
 0x40b   : > { %v3508_v42 = vrot.slane %v3430_v2, 7 }
 0x40c   : > { %v4546_v53 = vadd.f32 %v11881_v35, %v4423_v6 }
 0x40d   : > { %v3547_v50 = vsel %vm825_vm0, %v3507_v30, %v3508_v42  ;;  %v4209_v56 = vpop.f32.mrf.mxu0 }
 0x40e   : > { %v3652_v28 = vadd.f32 %v3547_v50, %v3025_v60  ;;  %v4578_v41 = vmax.f32 %v4546_v53, 0.0  ;;  %v4283_v43 = vrot.slane %v4209_v56, 1  ;;  %v12040_v2 = vpop.f32.mrf.mxu1 }
 0x410   : > { %v3990_v26 = vadd.f32 %v3864_v32, %v3652_v28  ;;  %v4316_v1 = vsel %vm1502_vm1, %v4282_v22, %v4283_v43 }
 0x412   : > { %v4424_v62 = vadd.f32 %v4318_v31, %v3990_v26  ;;  %v3432_v11 = vpop.f32.mrf.mxu2  ;;  %v3866_v59 = vpop.f32.mrf.mxu3 }
 0x413   : > { %v3509_v20 = vrot.slane %v3432_v11, 7  ;;  %v2887_v59 = vrot.slane %v12022_v16, 1 }
 0x414   : > { %v4547_v63 = vadd.f32 %v11881_v35, %v4424_v62  ;;  %v10463_v62 = vld [vmem:[#allocation10 + $0x8] sm:$0xff] }
 0x415   : > { %v4212_v40 = vpop.f32.mrf.mxu0  ;;  %4919 = vmatpush.bf16.msra.mxu1 %v10463_v62 }
 0x416   : > { %v4579_v14 = vmax.f32 %v4547_v63, 0.0  ;;  %v4284_v32 = vrot.slane %v4212_v40, 1  ;;  %v12051_v63 = vpop.f32.mrf.mxu1 }
 0x417   : > { %3474 = vmatmul.bf16.gmra.mxu2 %v10413_v48  ;;  %3908 = vmatmul.bf16.gmra.mxu3 %v10413_v48  ;;  %v2916_v48 = vsel %vm1502_vm1, %v2884_v45, %v2885_v24 }
 0x418   : > { %v10606_v5 = vpack.c.bf16 %v4579_v14, %v4578_v41  ;;  %v3028_v21 = vadd.f32 %v2916_v48, %v11781_v33  ;;  %v4315_v6 = vsel %vm1502_vm1, %v4283_v43, %v4284_v32  ;;  %v2886_v33 = vrot.slane %v12011_v25, 1 }
 0x41a   : > { %10771 = vst [vmem:[#allocation3 + $0x78] sm:$0xff] %v10606_v5   ;;  %v3435_v51 = vpop.f32.mrf.mxu2  ;;  %v3869_v9 = vpop.f32.mrf.mxu3  ;;  %v2914_v14 = vsel %vm1502_vm1, %v2886_v33, %v2887_v59 }
 0x41b   : > { %v3510_v30 = vrot.slane %v3435_v51, 7 }
 0x41d   : > { %v3545_v36 = vsel %vm825_vm0, %v3509_v20, %v3510_v30  ;;  %v4214_v49 = vpop.f32.mrf.mxu0  ;;  %v2888_v20 = vrot.slane %v2820_v19, 1 }
 0x41e   : > { %v3654_v13 = vadd.f32 %v3545_v36, %v3027_v8  ;;  %v4285_v43 = vrot.slane %v4214_v49, 1 }
 0x41f   : > { %v2913_v24 = vsel %vm1502_vm1, %v2887_v59, %v2888_v20 }
 0x420   : > { %v3992_v3 = vadd.f32 %v3869_v9, %v3654_v13  ;;  %v3030_v9 = vadd.f32 %v2914_v14, %v11790_v46  ;;  %v3031_v19 = vadd.f32 %v2913_v24, %v11795_v29  ;;  %v2889_v29 = vrot.slane %v12040_v2, 1 }
 0x422   : > { %v4426_v55 = vadd.f32 %v4316_v1, %v3992_v3  ;;  %v3437_v15 = vpop.f32.mrf.mxu2  ;;  %v3871_v52 = vpop.f32.mrf.mxu3 }
 0x423   : > { %v3511_v10 = vrot.slane %v3437_v15, 7 }
 0x424   : > { %v4548_v23 = vadd.f32 %v11881_v35, %v4426_v55 }
 0x425   : > { %v3544_v42 = vsel %vm825_vm0, %v3510_v30, %v3511_v10  ;;  %v4217_v50 = vpop.f32.mrf.mxu0  ;;  %v2828_v30 = vpop.f32.mrf.mxu1 }
 0x426   : > { %v4580_v54 = vmax.f32 %v4548_v23, 0.0  ;;  %v3655_v60 = vadd.f32 %v3544_v42, %v3028_v21  ;;  %v4286_v8 = vrot.slane %v4217_v50, 1  ;;  %v2891_v2 = vrot.slane %v2828_v30, 1 }
 0x428   : > { %v4612_v28 = vpack.c.bf16 %v4580_v54, %v4580_v54  ;;  %v3993_v56 = vadd.f32 %v3871_v52, %v3655_v60  ;;  %v4313_v3 = vsel %vm1502_vm1, %v4285_v43, %v4286_v8 }
 0x42a   : > { %4645 = vst [vmem:[#allocation3 + $0x84] sm:$0xf] %v4612_v28  ;;  %v4427_v31 = vadd.f32 %v4315_v6, %v3993_v56  ;;  %v3440_v26 = vpop.f32.mrf.mxu2  ;;  %v3874_v53 = vpop.f32.mrf.mxu3  ;;  %v2890_v6 = vrot.slane %v12051_v63, 1 }
 0x42b   : > { %v3512_v34 = vrot.slane %v3440_v26, 7 }
 0x42c   : > { %v4549_v11 = vadd.f32 %v11881_v35, %v4427_v31  ;;  %v2911_v53 = vsel %vm1502_vm1, %v2889_v29, %v2890_v6 }
 0x42d   : > { %v4219_v45 = vpop.f32.mrf.mxu0  ;;  %v2830_v23 = vpop.f32.mrf.mxu1  ;;  %v3033_v14 = vadd.f32 %v2911_v53, %v11804_v39 }
 0x42e   : > { %v4581_v7 = vmax.f32 %v4549_v11, 0.0  ;;  %v4287_v46 = vrot.slane %v4219_v45, 1 }
 0x430   : > { %v4613_v41 = vpack.c.bf16 %v4581_v7, %v4581_v7  ;;  %v4312_v10 = vsel %vm1502_vm1, %v4286_v8, %v4287_v46 }
 0x432   : > { %4646 = vst [vmem:[#allocation3 + $0x88] sm:$0xf] %v4613_v41  ;;  %v3442_v40 = vpop.f32.mrf.mxu2  ;;  %v3876_v5 = vpop.f32.mrf.mxu3 }
 0x433   : > { %v3513_v51 = vrot.slane %v3442_v40, 7 }
 0x435   : > { %v3542_v25 = vsel %vm825_vm0, %v3512_v34, %v3513_v51  ;;  %v4222_v22 = vpop.f32.mrf.mxu0  ;;  %v2833_v33 = vpop.f32.mrf.mxu1 }
 0x436   : > { %v3657_v16 = vadd.f32 %v3542_v25, %v3030_v9  ;;  %v4288_v7 = vrot.slane %v4222_v22, 1  ;;  %v2910_v9 = vsel %vm1502_vm1, %v2890_v6, %v2891_v2  ;;  %v10485_v2 = vld [vmem:[#allocation10 + $0xb8] sm:$0xff] }
 0x437   : > { %v3034_v30 = vadd.f32 %v2910_v9, %v11809_v0  ;;  %v2892_v0 = vrot.slane %v2830_v23, 1  ;;  %5589 = vmatpush.bf16.msrb.mxu3 %v10485_v2  ;;  %v10479_v2 = vld [vmem:[#allocation10 + $0x88] sm:$0xff] }
 0x438   : > { %v3995_v36 = vadd.f32 %v3876_v5, %v3657_v16 }
 0x43a   : > { %v3445_v13 = vpop.f32.mrf.mxu2  ;;  %v3879_v1 = vpop.f32.mrf.mxu3  ;;  %v4429_v15 = vadd.f32 %v4313_v3, %v3995_v36 }
 0x43b   : > { %v3514_v48 = vrot.slane %v3445_v13, 7 }
 0x43c   : > { %v4550_v21 = vadd.f32 %v11881_v35, %v4429_v15 }
 0x43d   : > { %v3541_v55 = vsel %vm825_vm0, %v3513_v51, %v3514_v48  ;;  %v4224_v49 = vpop.f32.mrf.mxu0  ;;  %v2835_v8 = vpop.f32.mrf.mxu1 }
 0x43e   : > { %v3658_v52 = vadd.f32 %v3541_v55, %v3031_v19  ;;  %v4582_v28 = vmax.f32 %v4550_v21, 0.0  ;;  %v4289_v41 = vrot.slane %v4224_v49, 1  ;;  %v2894_v23 = vrot.slane %v2835_v8, 1 }
 0x440   : > { %v3996_v32 = vadd.f32 %v3879_v1, %v3658_v52  ;;  %v4310_v34 = vsel %vm1502_vm1, %v4288_v7, %v4289_v41  ;;  %v10462_v52 = vld [vmem:[#allocation10] sm:$0xff] }
 0x441   : > { %4920 = vmatpush.bf16.msra.mxu1 %v10462_v52 }
 0x442   : > { %v4430_v42 = vadd.f32 %v4312_v10, %v3996_v32  ;;  %v3447_v54 = vpop.f32.mrf.mxu2  ;;  %v3881_v60 = vpop.f32.mrf.mxu3  ;;  %v2893_v10 = vrot.slane %v2833_v33, 1 }
 0x443   : > { %v3515_v59 = vrot.slane %v3447_v54, 7  ;;  %v10477_v54 = vld [vmem:[#allocation10 + $0x78] sm:$0xff] }
 0x444   : > { %v4551_v50 = vadd.f32 %v11881_v35, %v4430_v42  ;;  %5251 = vmatpush.bf16.msrb.mxu2 %v10477_v54 }
 0x445   : > { %v4227_v31 = vpop.f32.mrf.mxu0  ;;  %v12087_v42 = vpop.f32.mrf.mxu1 }
 0x446   : > { %v4583_v56 = vmax.f32 %v4551_v50, 0.0  ;;  %v4290_v43 = vrot.slane %v4227_v31, 1  ;;  %v2908_v50 = vsel %vm1502_vm1, %v2892_v0, %v2893_v10  ;;  %v10476_v31 = vld [vmem:[#allocation10 + $0x70] sm:$0xff]  ;;  %v10471_v0 = vld [vmem:[#allocation10 + $0x48] sm:$0xff] }
 0x448   : > { %v10611_v26 = vpack.c.bf16 %v4583_v56, %v4582_v28  ;;  %v4309_v3 = vsel %vm1502_vm1, %v4289_v41, %v4290_v43  ;;  %5252 = vmatpush.bf16.msrb.mxu2 %v10476_v31  ;;  %v10470_v31 = vld [vmem:[#allocation10 + $0x40] sm:$0xff] }
 0x44a   : > { %10772 = vst [vmem:[#allocation3 + $0x90] sm:$0xff] %v10611_v26   ;;  %v3450_v62 = vpop.f32.mrf.mxu2  ;;  %v3884_v11 = vpop.f32.mrf.mxu3 }
 0x44b   : > { %v3516_v45 = vrot.slane %v3450_v62, 7 }
 0x44d   : > { %v3539_v63 = vsel %vm825_vm0, %v3515_v59, %v3516_v45  ;;  %v4229_v5 = vpop.f32.mrf.mxu0  ;;  %v10475_v59 = vld [vmem:[#allocation10 + $0x68] sm:$0xff]  ;;  %v12096_v7 = vpop.f32.mrf.mxu1 }
 0x44e   : > { %v3660_v40 = vadd.f32 %v3539_v63, %v3033_v14  ;;  %5253 = vmatpush.bf16.msrb.mxu2 %v10475_v59  ;;  %v10480_v59 = vld [vmem:[#allocation10 + $0x90] sm:$0xff] }
 0x450   : > { %v3998_v51 = vadd.f32 %v3884_v11, %v3660_v40  ;;  %v4291_v11 = vrot.slane %v4229_v5, 1 }
 0x452   : > { %v4432_v20 = vadd.f32 %v4310_v34, %v3998_v51  ;;  %v3452_v25 = vpop.f32.mrf.mxu2  ;;  %v3886_v16 = vpop.f32.mrf.mxu3  ;;  %v10474_v51 = vld [vmem:[#allocation10 + $0x60] sm:$0xff] }
 0x453   : > { %v3517_v22 = vrot.slane %v3452_v25, 7  ;;  %5254 = vmatpush.bf16.msrb.mxu2 %v10474_v51 }
 0x454   : > { %v4552_v39 = vadd.f32 %v11881_v35, %v4432_v20 }
 0x455   : > { %v3538_v24 = vsel %vm825_vm0, %v3516_v45, %v3517_v22  ;;  %v4232_v1 = vpop.f32.mrf.mxu0  ;;  %v2907_v45 = vsel %vm1502_vm1, %v2893_v10, %v2894_v23 }
 0x456   : > { %v4584_v36 = vmax.f32 %v4552_v39, 0.0  ;;  %v3661_v13 = vadd.f32 %v3538_v24, %v3034_v30  ;;  %v4292_v33 = vrot.slane %v4232_v1, 1  ;;  %v3037_v5 = vadd.f32 %v2907_v45, %v11823_v44  ;;  %v10473_v39 = vld [vmem:[#allocation10 + $0x58] sm:$0xff]  ;;  %v12112_v44 = vld [vmem:[%s12924_s2] ss:$0 sm:$0xff]  ;;  %v10483_v1 = vld [vmem:[#allocation10 + $0xa8] sm:$0xff] }
 0x457   : > { %5255 = vmatpush.bf16.msrb.mxu2 %v10473_v39 }
 0x458   : > { %v4616_v48 = vpack.c.bf16 %v4584_v36, %v4584_v36  ;;  %v3999_v46 = vadd.f32 %v3886_v16, %v3661_v13  ;;  %v4307_v63 = vsel %vm1502_vm1, %v4291_v11, %v4292_v33  ;;  %v10484_v16 = vld [vmem:[#allocation10 + $0xb0] sm:$0xff] }
 0x459   : > { %5590 = vmatpush.bf16.msrb.mxu3 %v10484_v16 }
 0x45a   : > { %4649 = vst [vmem:[#allocation3 + $0x9c] sm:$0xf] %v4616_v48  ;;  %v4433_v19 = vadd.f32 %v4309_v3, %v3999_v46  ;;  %v3455_v55 = vpop.f32.mrf.mxu2  ;;  %v3889_v15 = vpop.f32.mrf.mxu3  ;;  %v10472_v48 = vld [vmem:[#allocation10 + $0x50] sm:$0xff] }
 0x45b   : > { %v3518_v28 = vrot.slane %v3455_v55, 7  ;;  %v2843_v3 = vpop.f32.mrf.mxu1  ;;  %v2896_v55 = vrot.slane %v12096_v7, 1  ;;  %5256 = vmatpush.bf16.msrb.mxu2 %v10472_v48  ;;  %v10516_v7 = vld [vmem:[#allocation10 + $0xf0] sm:$0xff] }
 0x45c   : > { %v4553_v49 = vadd.f32 %v11881_v35, %v4433_v19  ;;  %v3036_v35 = vadd.f32 %v2908_v50, %v11818_v17  ;;  %v2895_v19 = vrot.slane %v12087_v42, 1  ;;  %v10481_v50 = vld [vmem:[#allocation10 + $0x98] sm:$0xff]  ;;  %v2897_v23 = vrot.slane %v2843_v3, 1 }
 0x45d   : > { %v4234_v21 = vpop.f32.mrf.mxu0  ;;  %5591 = vmatpush.bf16.msrb.mxu3 %v10483_v1  ;;  %v10513_v1 = vld [vmem:[#allocation10 + $0xd8] sm:$0xff] }
 0x45e   : > { %v4585_v32 = vmax.f32 %v4553_v49, 0.0  ;;  %v4293_v34 = vrot.slane %v4234_v21, 1  ;;  %v10482_v49 = vld [vmem:[#allocation10 + $0xa0] sm:$0xff] }
 0x45f   : > { %5257 = vmatpush.bf16.msrb.mxu2 %v10471_v0 }
 0x460   : > { %v4617_v60 = vpack.c.bf16 %v4585_v32, %v4585_v32  ;;  %v4306_v22 = vsel %vm1502_vm1, %v4292_v33, %v4293_v34  ;;  %v2905_v32 = vsel %vm1502_vm1, %v2895_v19, %v2896_v55  ;;  %v10438_v33 = vld [vmem:[#allocation3] sm:$0xff] }
 0x461   : > { %5592 = vmatpush.bf16.msrb.mxu3 %v10482_v49  ;;  %4921 = vmatmul.bf16.vlgmr.msra.gmra.mxu1 %v10438_v33 }
 0x462   : > { %4650 = vst [vmem:[#allocation3 + $0xa0] sm:$0xf] %v4617_v60  ;;  %v3457_v29 = vpop.f32.mrf.mxu2  ;;  %v3891_v6 = vpop.f32.mrf.mxu3 }
 0x463   : > { %v3519_v56 = vrot.slane %v3457_v29, 7  ;;  %v10517_v29 = vld [vmem:[#allocation10 + $0xf8] sm:$0xff]  ;;  %5258 = vmatpush.bf16.msrb.mxu2 %v10470_v31 }
 0x464   : > { %6215 = vmatpush.bf16.msrb.mxu0 %v10517_v29 }
 0x465   : > { %v3536_v26 = vsel %vm825_vm0, %v3518_v28, %v3519_v56  ;;  %v12094_v62 = vpop.f32.mrf.mxu0  ;;  %5593 = vmatpush.bf16.msrb.mxu3 %v10481_v50 }
 0x466   : > { %v3663_v53 = vadd.f32 %v3536_v26, %v3036_v35  ;;  %v3039_v35 = vadd.f32 %v2905_v32, %v11832_v4  ;;  %v2845_v26 = vpop.f32.mrf.mxu1  ;;  %5259 = vmatmul.bf16.vlgmr.msrb.gmra.mxu2 %v10438_v33  ;;  %v2904_v4 = vsel %vm1502_vm1, %v2896_v55, %v2897_v23 }
 0x467   : > { %v2898_v48 = vrot.slane %v2845_v26, 1 }
 0x468   : > { %v4001_v41 = vadd.f32 %v3891_v6, %v3663_v53  ;;  %v4294_v6 = vrot.slane %v12094_v62, 1  ;;  %6216 = vmatpush.bf16.msrb.mxu0 %v10516_v7 }
 0x469   : > { %5594 = vmatpush.bf16.msrb.mxu3 %v10480_v59 }
 0x46a   : > { %v3460_v14 = vpop.f32.mrf.mxu2  ;;  %v3894_v17 = vpop.f32.mrf.mxu3  ;;  %v4435_v20 = vadd.f32 %v4307_v63, %v4001_v41  ;;  %v10515_v63 = vld [vmem:[#allocation10 + $0xe8] sm:$0xff] }
 0x46b   : > { %v3520_v40 = vrot.slane %v3460_v14, 7 }
 0x46c   : > { %v4554_v8 = vadd.f32 %v12112_v44, %v4435_v20  ;;  %6217 = vmatpush.bf16.msrb.mxu0 %v10515_v63 }
 0x46d   : > { %v3535_v9 = vsel %vm825_vm0, %v3519_v56, %v3520_v40  ;;  %v12107_v43 = vpop.f32.mrf.mxu0  ;;  %5595 = vmatpush.bf16.msrb.mxu3 %v10479_v2 }
 0x46e   : > { %v3664_v25 = vadd.f32 %v3535_v9, %v3037_v5  ;;  %v4586_v15 = vmax.f32 %v4554_v8, 0.0  ;;  %v4295_v56 = vrot.slane %v12107_v43, 1  ;;  %v3040_v5 = vadd.f32 %v2904_v4, %v11837_v38  ;;  %v10514_v43 = vld [vmem:[#allocation10 + $0xe0] sm:$0xff]  ;;  %v2848_v39 = vpop.f32.mrf.mxu1 }
 0x470   : > { %v4002_v30 = vadd.f32 %v3894_v17, %v3664_v25  ;;  %v4304_v62 = vsel %vm1502_vm1, %v4294_v6, %v4295_v56  ;;  %6218 = vmatpush.bf16.msrb.mxu0 %v10514_v43 }
 0x472   : > { %v4436_v24 = vadd.f32 %v4306_v22, %v4002_v30  ;;  %v3462_v36 = vpop.f32.mrf.mxu2  ;;  %v3896_v13 = vpop.f32.mrf.mxu3  ;;  %v10478_v22 = vld [vmem:[#allocation10 + $0x80] sm:$0xff] }
 0x473   : > { %v3521_v42 = vrot.slane %v3462_v36, 7  ;;  %5596 = vmatpush.bf16.msrb.mxu3 %v10478_v22 }
 0x474   : > { %v4555_v46 = vadd.f32 %v12112_v44, %v4436_v24  ;;  %6219 = vmatpush.bf16.msrb.mxu0 %v10513_v1  ;;  %v10443_v1 = vld [vmem:[#allocation3 + $0x28] sm:$0xff] }
 0x475   : > { %v4242_v21 = vpop.f32.mrf.mxu0 }
 0x476   : > { %v4587_v52 = vmax.f32 %v4555_v46, 0.0  ;;  %v4296_v34 = vrot.slane %v4242_v21, 1  ;;  %5597 = vmatmul.bf16.vlgmr.msrb.gmra.mxu3 %v10438_v33  ;;  %v2899_v46 = vrot.slane %v2848_v39, 1  ;;  %v2850_v0 = vpop.f32.mrf.mxu1  ;;  %v10525_v21 = vld [vmem:[#allocation10 + $0x138] sm:$0xff] }
 0x477   : > { %6649 = vmatpush.bf16.msrb.mxu1 %v10525_v21 }
 0x478   : > { %v10616_v10 = vpack.c.bf16 %v4587_v52, %v4586_v15  ;;  %v4303_v30 = vsel %vm1502_vm1, %v4295_v56, %v4296_v34  ;;  %v10512_v15 = vld [vmem:[#allocation10 + $0xd0] sm:$0xff]  ;;  %v2902_v49 = vsel %vm1502_vm1, %v2898_v48, %v2899_v46  ;;  %v10444_v48 = vld [vmem:[#allocation3 + $0x30] sm:$0xff] }
 0x479   : > { %6220 = vmatpush.bf16.msrb.mxu0 %v10512_v15  ;;  %v3042_v29 = vadd.f32 %v2902_v49, %v11850_v47  ;;  %v10522_v15 = vld [vmem:[#allocation10 + $0x120] sm:$0xff]  ;;  %v10446_v49 = vld [vmem:[#allocation3 + $0x40] sm:$0xff] }
 0x47a   : > { %10773 = vst [vmem:[#allocation3 + $0xa8] sm:$0xff] %v10616_v10   ;;  %v3465_v54 = vpop.f32.mrf.mxu2  ;;  %v3899_v60 = vpop.f32.mrf.mxu3 }
 0x47b   : > { %v3522_v28 = vrot.slane %v3465_v54, 7  ;;  %v10511_v54 = vld [vmem:[#allocation10 + $0xc8] sm:$0xff] }
 0x47d   : > { %v3533_v53 = vsel %vm825_vm0, %v3521_v42, %v3522_v28  ;;  %v4244_v9 = vpop.f32.mrf.mxu0  ;;  %v2900_v42 = vrot.slane %v2850_v0, 1  ;;  %6221 = vmatpush.bf16.msrb.mxu0 %v10511_v54  ;;  %v10493_v0 = vld [vmem:[#allocation3 + $0x44] sm:$0xff] }
 0x47e   : > { %v3666_v11 = vadd.f32 %v3533_v53, %v3039_v35  ;;  %v4297_v31 = vrot.slane %v4244_v9, 1 }
 0x47f   : > { %v2901_v26 = vsel %vm1502_vm1, %v2899_v46, %v2900_v42  ;;  %v10491_v46 = vld [vmem:[#allocation3 + $0x34] sm:$0xff]  ;;  %v10447_v42 = vld [vmem:[#allocation3 + $0x48] sm:$0xff] }
 0x480   : > { %v4004_v45 = vadd.f32 %v3899_v60, %v3666_v11 }
 0x482   : > { %v4438_v41 = vadd.f32 %v4304_v62, %v4004_v45  ;;  %v3467_v14 = vpop.f32.mrf.mxu2  ;;  %v3901_v17 = vpop.f32.mrf.mxu3  ;;  %v3043_v62 = vadd.f32 %v2901_v26, %v11865_v12 }
 0x483   : > { %v3523_v40 = vrot.slane %v3467_v14, 7 }
 0x484   : > { %v4556_v51 = vadd.f32 %v12112_v44, %v4438_v41 }
 0x485   : > { %v3532_v20 = vsel %vm825_vm0, %v3522_v28, %v3523_v40  ;;  %v4247_v55 = vpop.f32.mrf.mxu0  ;;  %v10510_v28 = vld [vmem:[#allocation10 + $0xc0] sm:$0xff] }
 0x486   : > { %v4588_v25 = vmax.f32 %v4556_v51, 0.0  ;;  %v3667_v16 = vadd.f32 %v3532_v20, %v3040_v5  ;;  %v4298_v35 = vrot.slane %v4247_v55, 1  ;;  %6222 = vmatpush.bf16.msrb.mxu0 %v10510_v28  ;;  %v10492_v55 = vld [vmem:[#allocation3 + $0x3c] sm:$0xff] }
 0x488   : > { %v4620_v8 = vpack.c.bf16 %v4588_v25, %v4588_v25  ;;  %v4005_v24 = vadd.f32 %v3901_v17, %v3667_v16  ;;  %v4301_v47 = vsel %vm1502_vm1, %v4297_v31, %v4298_v35 }
 0x48a   : > { %4653 = vst [vmem:[#allocation3 + $0xb4] sm:$0xf] %v4620_v8  ;;  %v4439_v38 = vadd.f32 %v4303_v30, %v4005_v24  ;;  %v3470_v36 = vpop.f32.mrf.mxu2  ;;  %v3904_v13 = vpop.f32.mrf.mxu3 }
 0x48b   : > { %v3524_v60 = vrot.slane %v3470_v36, 7  ;;  %v10489_v36 = vld [vmem:[#allocation3 + $0x24] sm:$0xff] }
 0x48c   : > { %v4557_v3 = vadd.f32 %v12112_v44, %v4439_v38  ;;  %v10487_v38 = vld [vmem:[#allocation3 + $0x14] sm:$0xff]  ;;  %v10523_v13 = vld [vmem:[#allocation10 + $0x128] sm:$0xff] }
 0x48d   : > { %v4249_v23 = vpop.f32.mrf.mxu0 }
 0x48e   : > { %v4589_v19 = vmax.f32 %v4557_v3, 0.0  ;;  %v4299_v7 = vrot.slane %v4249_v23, 1  ;;  %v10490_v3 = vld [vmem:[#allocation3 + $0x2c] sm:$0xff] }
 0x490   : > { %v4621_v52 = vpack.c.bf16 %v4589_v19, %v4589_v19  ;;  %v4300_v14 = vsel %vm1502_vm1, %v4298_v35, %v4299_v7  ;;  %v10445_v19 = vld [vmem:[#allocation3 + $0x38] sm:$0xff] }
 0x492   : > { %4654 = vst [vmem:[#allocation3 + $0xb8] sm:$0xf] %v4621_v52  ;;  %v3472_v10 = vpop.f32.mrf.mxu2  ;;  %v3906_v32 = vpop.f32.mrf.mxu3 }
 0x493   : > { %v3525_v50 = vrot.slane %v3472_v10, 7 }
 0x495   : > { %v3530_v6 = vsel %vm825_vm0, %v3524_v60, %v3525_v50 }
 0x496   : > { %v3669_v56 = vadd.f32 %v3530_v6, %v3042_v29 }
 0x498   : > { %v4007_v53 = vadd.f32 %v3906_v32, %v3669_v56  ;;  %v10494_v56 = vld [vmem:[#allocation3 + $0x4c] sm:$0xff] }
 0x49a   : > { %v3475_v11 = vpop.f32.mrf.mxu2  ;;  %v3909_v33 = vpop.f32.mrf.mxu3  ;;  %v4441_v4 = vadd.f32 %v4301_v47, %v4007_v53 }
 0x49b   : > { %v3526_v59 = vrot.slane %v3475_v11, 7 }
 0x49c   : > { %v4558_v2 = vadd.f32 %v12112_v44, %v4441_v4 }
 0x49d   : > { %v3529_v45 = vsel %vm825_vm0, %v3525_v50, %v3526_v59 }
 0x49e   : > { %v3670_v41 = vadd.f32 %v3529_v45, %v3043_v62  ;;  %v4590_v9 = vmax.f32 %v4558_v2, 0.0 }
 0x4a0   : > { %v4008_v17 = vadd.f32 %v3909_v33, %v3670_v41 }
 0x4a2   : > { %v4442_v63 = vadd.f32 %v4300_v14, %v4008_v17  ;;  %v3477_v40 = vpop.f32.mrf.mxu2  ;;  %v3911_v34 = vpop.f32.mrf.mxu3 }
 0x4a3   : > { %v3527_v51 = vrot.slane %v3477_v40, 7 }
 0x4a4   : > { %v4559_v5 = vadd.f32 %v12112_v44, %v4442_v63 }
 0x4a5   : > { %v3575_v12 = vsel %vm825_vm0, %v3527_v51, %v3480_v18  ;;  %v10524_v18 = vld [vmem:[#allocation10 + $0x130] sm:$0xff] }
 0x4a6   : > { %v4591_v20 = vmax.f32 %v4559_v5, 0.0  ;;  %v3624_v25 = vadd.f32 %v3575_v12, %v11868_v61  ;;  %6650 = vmatpush.bf16.msrb.mxu1 %v10524_v18  ;;  %v10440_v61 = vld [vmem:[#allocation3 + $0x10] sm:$0xff] }
 0x4a8   : > { %v10621_v16 = vpack.c.bf16 %v4591_v20, %v4590_v9  ;;  %v3962_v22 = vadd.f32 %v11863_v37, %v3624_v25  ;;  %v10488_v37 = vld [vmem:[#allocation3 + $0x1c] sm:$0xff]  ;;  %v10448_v9 = vld [vmem:[#allocation3 + $0x50] sm:$0xff] }
 0x4a9   : > { %v10495_v20 = vld [vmem:[#allocation3 + $0x54] sm:$0xff] }
 0x4aa   : > { %10774 = vst [vmem:[#allocation3 + $0xc0] sm:$0xff] %v10621_v16   ;;  %v4396_v43 = vadd.f32 %v11848_v27, %v3962_v22  ;;  %v10441_v27 = vld [vmem:[#allocation3 + $0x18] sm:$0xff]  ;;  %6651 = vmatpush.bf16.msrb.mxu1 %v10523_v13  ;;  %v10521_v16 = vld [vmem:[#allocation10 + $0x118] sm:$0xff] }
 0x4ac   : > { %v4528_v39 = vadd.f32 %v12112_v44, %v4396_v43  ;;  %v10442_v44 = vld [vmem:[#allocation3 + $0x20] sm:$0xff] }
 0x4ae   : > { %v4560_v30 = vmax.f32 %v4528_v39, 0.0  ;;  %6652 = vmatpush.bf16.msrb.mxu1 %v10522_v15 }
 0x4b0   : > { %v4592_v8 = vpack.c.bf16 %v4560_v30, %v4560_v30 }
 0x4b2   : > { %4625 = vst [vmem:[#allocation3 + $0xc] sm:$0xf] %v4592_v8  ;;  %6653 = vmatpush.bf16.msrb.mxu1 %v10521_v16 }
 0x4b9   : > { %v10439_v24 = vld [vmem:[#allocation3 + $0x8] sm:$0xff] }
 0x4ba   : > { %v10486_v58 = vld [vmem:[#allocation3 + $0xc] sm:$0xff]  ;;  %4926 = vmatmul.bf16.gmra.mxu1 %v10439_v24  ;;  %5264 = vmatmul.bf16.gmra.mxu2 %v10439_v24 }
 0x4bb   : > { %5602 = vmatmul.bf16.gmra.mxu3 %v10439_v24  ;;  %6223 = vmatmul.bf16.vlgmr.msrb.gmra.mxu0 %v10486_v58 }
 0x4ca   : > { %4931 = vmatmul.bf16.gmra.mxu1 %v10440_v61  ;;  %5269 = vmatmul.bf16.gmra.mxu2 %v10440_v61 }
 0x4cb   : > { %5607 = vmatmul.bf16.gmra.mxu3 %v10440_v61  ;;  %6228 = vmatmul.bf16.gmra.mxu0 %v10487_v38 }
 0x4da   : > { %4936 = vmatmul.bf16.gmra.mxu1 %v10441_v27  ;;  %5274 = vmatmul.bf16.gmra.mxu2 %v10441_v27 }
 0x4db   : > { %5612 = vmatmul.bf16.gmra.mxu3 %v10441_v27  ;;  %6233 = vmatmul.bf16.gmra.mxu0 %v10488_v37 }
 0x4de   : > { %v12160_v52 = vpop.f32.mrf.mxu1 }
 0x4df   : > { %v5042_v6 = vrot.slane %v12160_v52, 7 }
 0x4e6   : > { %v4924_v21 = vpop.f32.mrf.mxu1 }
 0x4e7   : > { %v5043_v28 = vrot.slane %v4924_v21, 7 }
 0x4e9   : > { %v12164_v32 = vpop.f32.mrf.mxu2  ;;  %v5136_v31 = vsel %vm825_vm0, %v5042_v6, %v5043_v28 }
 0x4ea   : > { %4941 = vmatmul.bf16.gmra.mxu1 %v10442_v44  ;;  %5279 = vmatmul.bf16.gmra.mxu2 %v10442_v44 }
 0x4eb   : > { %5617 = vmatmul.bf16.gmra.mxu3 %v10442_v44  ;;  %6238 = vmatmul.bf16.gmra.mxu0 %v10489_v36 }
 0x4f1   : > { %v5262_v60 = vpop.f32.mrf.mxu2 }
 0x4f2   : > { %v5429_v33 = vadd.f32 %v5262_v60, %v5136_v31 }
 0x4f9   : > { %v12162_v10 = vpop.f32.mrf.mxu3 }
 0x4fa   : > { %4946 = vmatmul.bf16.gmra.mxu1 %v10443_v1  ;;  %5284 = vmatmul.bf16.gmra.mxu2 %v10443_v1 }
 0x4fb   : > { %5622 = vmatmul.bf16.gmra.mxu3 %v10443_v1  ;;  %6243 = vmatmul.bf16.gmra.mxu0 %v10490_v3 }
 0x501   : > { %v12166_v54 = vpop.f32.mrf.mxu3 }
 0x502   : > { %v5719_v35 = vrot.slane %v12166_v54, 1 }
 0x50a   : > { %4951 = vmatmul.bf16.gmra.mxu1 %v10444_v48  ;;  %5289 = vmatmul.bf16.gmra.mxu2 %v10444_v48 }
 0x50b   : > { %5627 = vmatmul.bf16.gmra.mxu3 %v10444_v48  ;;  %6248 = vmatmul.bf16.gmra.mxu0 %v10491_v46 }
 0x51a   : > { %4956 = vmatmul.bf16.gmra.mxu1 %v10445_v19  ;;  %5294 = vmatmul.bf16.gmra.mxu2 %v10445_v19 }
 0x51b   : > { %5632 = vmatmul.bf16.gmra.mxu3 %v10445_v19  ;;  %6253 = vmatmul.bf16.gmra.mxu0 %v10492_v55  ;;  %v10449_v55 = vld [vmem:[#allocation3 + $0x58] sm:$0xff] }
 0x52a   : > { %4961 = vmatmul.bf16.gmra.mxu1 %v10446_v49  ;;  %5299 = vmatmul.bf16.gmra.mxu2 %v10446_v49 }
 0x52b   : > { %5637 = vmatmul.bf16.gmra.mxu3 %v10446_v49  ;;  %6258 = vmatmul.bf16.gmra.mxu0 %v10493_v0  ;;  %v10496_v49 = vld [vmem:[#allocation3 + $0x5c] sm:$0xff] }
 0x537   : > { %v4927_v50 = vpop.f32.mrf.mxu1 }
 0x538   : > { %v12168_v29 = vpop.f32.mrf.mxu0  ;;  %v5044_v47 = vrot.slane %v4927_v50, 7 }
 0x539   : > { %v6344_v62 = vrot.slane %v12168_v29, 7 }
 0x53a   : > { %4966 = vmatmul.bf16.gmra.mxu1 %v10447_v42  ;;  %5304 = vmatmul.bf16.gmra.mxu2 %v10447_v42 }
 0x53b   : > { %5642 = vmatmul.bf16.gmra.mxu3 %v10447_v42  ;;  %6263 = vmatmul.bf16.gmra.mxu0 %v10494_v56 }
 0x53d   : > { %v5265_v23 = vpop.f32.mrf.mxu2 }
 0x53e   : > { %v5603_v26 = vpop.f32.mrf.mxu3 }
 0x53f   : > { %v5720_v53 = vrot.slane %v5603_v26, 1  ;;  %v4929_v11 = vpop.f32.mrf.mxu1 }
 0x540   : > { %v5045_v59 = vrot.slane %v4929_v11, 7  ;;  %v6226_v7 = vpop.f32.mrf.mxu0 }
 0x541   : > { %v5811_v45 = vsel %vm1502_vm1, %v5719_v35, %v5720_v53  ;;  %v6345_v4 = vrot.slane %v6226_v7, 7 }
 0x542   : > { %v5134_v41 = vsel %vm825_vm0, %v5044_v47, %v5045_v59  ;;  %v5863_v14 = vadd.f32 %v5811_v45, %v5429_v33 }
 0x543   : > { %v6438_v17 = vsel %vm825_vm0, %v6344_v62, %v6345_v4 }
 0x544   : > { %v12187_v2 = vadd.f32 %v6438_v17, %v5863_v14  ;;  %v10450_v14 = vld [vmem:[#allocation3 + $0x60] sm:$0xff] }
 0x545   : > { %v5267_v63 = vpop.f32.mrf.mxu2 }
 0x546   : > { %v5431_v40 = vadd.f32 %v5267_v63, %v5134_v41  ;;  %v5605_v34 = vpop.f32.mrf.mxu3 }
 0x547   : > { %v4932_v51 = vpop.f32.mrf.mxu1  ;;  %v5721_v30 = vrot.slane %v5605_v34, 1 }
 0x548   : > { %v5046_v5 = vrot.slane %v4932_v51, 7  ;;  %v6229_v12 = vpop.f32.mrf.mxu0 }
 0x549   : > { %v6346_v18 = vrot.slane %v6229_v12, 7 }
 0x54a   : > { %4971 = vmatmul.bf16.gmra.mxu1 %v10448_v9  ;;  %5309 = vmatmul.bf16.gmra.mxu2 %v10448_v9  ;;  %v5133_v25 = vsel %vm825_vm0, %v5045_v59, %v5046_v5 }
 0x54b   : > { %5647 = vmatmul.bf16.gmra.mxu3 %v10448_v9  ;;  %6268 = vmatmul.bf16.gmra.mxu0 %v10495_v20 }
 0x54d   : > { %v5270_v22 = vpop.f32.mrf.mxu2 }
 0x54e   : > { %v5432_v43 = vadd.f32 %v5270_v22, %v5133_v25  ;;  %v5608_v39 = vpop.f32.mrf.mxu3 }
 0x54f   : > { %v5722_v8 = vrot.slane %v5608_v39, 1  ;;  %v4934_v24 = vpop.f32.mrf.mxu1 }
 0x550   : > { %v6231_v58 = vpop.f32.mrf.mxu0  ;;  %v5047_v48 = vrot.slane %v4934_v24, 7 }
 0x551   : > { %v5809_v61 = vsel %vm1502_vm1, %v5721_v30, %v5722_v8  ;;  %v6347_v38 = vrot.slane %v6231_v58, 7 }
 0x552   : > { %v5865_v27 = vadd.f32 %v5809_v61, %v5431_v40  ;;  %v10497_v40 = vld [vmem:[#allocation3 + $0x64] sm:$0xff] }
 0x553   : > { %v6436_v37 = vsel %vm825_vm0, %v6346_v18, %v6347_v38 }
 0x554   : > { %v12195_v44 = vadd.f32 %v6436_v37, %v5865_v27 }
 0x555   : > { %v5272_v36 = vpop.f32.mrf.mxu2 }
 0x556   : > { %v5610_v13 = vpop.f32.mrf.mxu3 }
 0x557   : > { %v5723_v1 = vrot.slane %v5610_v13, 1  ;;  %v4937_v3 = vpop.f32.mrf.mxu1 }
 0x558   : > { %v5048_v46 = vrot.slane %v4937_v3, 7  ;;  %v6234_v19 = vpop.f32.mrf.mxu0  ;;  %v10451_v3 = vld [vmem:[#allocation3 + $0x68] sm:$0xff] }
 0x559   : > { %v6348_v15 = vrot.slane %v6234_v19, 7  ;;  %v5808_v0 = vsel %vm1502_vm1, %v5722_v8, %v5723_v1  ;;  %v10520_v19 = vld [vmem:[#allocation10 + $0x110] sm:$0xff] }
 0x55a   : > { %4976 = vmatmul.bf16.gmra.mxu1 %v10449_v55  ;;  %5314 = vmatmul.bf16.gmra.mxu2 %v10449_v55  ;;  %v5131_v21 = vsel %vm825_vm0, %v5047_v48, %v5048_v46  ;;  %v5866_v60 = vadd.f32 %v5808_v0, %v5432_v43  ;;  %v10498_v48 = vld [vmem:[#allocation3 + $0x6c] sm:$0xff] }
 0x55b   : > { %5652 = vmatmul.bf16.gmra.mxu3 %v10449_v55  ;;  %6273 = vmatmul.bf16.gmra.mxu0 %v10496_v49  ;;  %v6435_v50 = vsel %vm825_vm0, %v6347_v38, %v6348_v15 }
 0x55c   : > { %v12203_v42 = vadd.f32 %v6435_v50, %v5866_v60  ;;  %6654 = vmatpush.bf16.msrb.mxu1 %v10520_v19 }
 0x55d   : > { %v5275_v28 = vpop.f32.mrf.mxu2 }
 0x55e   : > { %v5434_v56 = vadd.f32 %v5275_v28, %v5131_v21  ;;  %v5613_v31 = vpop.f32.mrf.mxu3 }
 0x55f   : > { %v4939_v23 = vpop.f32.mrf.mxu1  ;;  %v5724_v7 = vrot.slane %v5613_v31, 1 }
 0x560   : > { %v5049_v26 = vrot.slane %v4939_v23, 7  ;;  %v6236_v53 = vpop.f32.mrf.mxu0 }
 0x561   : > { %v6349_v17 = vrot.slane %v6236_v53, 7 }
 0x562   : > { %v5130_v11 = vsel %vm825_vm0, %v5048_v46, %v5049_v26 }
 0x565   : > { %v5277_v33 = vpop.f32.mrf.mxu2 }
 0x566   : > { %v5435_v47 = vadd.f32 %v5277_v33, %v5130_v11  ;;  %v5615_v59 = vpop.f32.mrf.mxu3 }
 0x567   : > { %v5725_v45 = vrot.slane %v5615_v59, 1  ;;  %v4942_v4 = vpop.f32.mrf.mxu1 }
 0x568   : > { %v6239_v41 = vpop.f32.mrf.mxu0  ;;  %v5050_v22 = vrot.slane %v4942_v4, 7 }
 0x569   : > { %v6350_v63 = vrot.slane %v6239_v41, 7  ;;  %v5806_v34 = vsel %vm1502_vm1, %v5724_v7, %v5725_v45  ;;  %v10452_v41 = vld [vmem:[#allocation3 + $0x70] sm:$0xff] }
 0x56a   : > { %4981 = vmatmul.bf16.gmra.mxu1 %v10450_v14  ;;  %5319 = vmatmul.bf16.gmra.mxu2 %v10450_v14  ;;  %v5868_v51 = vadd.f32 %v5806_v34, %v5434_v56 }
 0x56b   : > { %5657 = vmatmul.bf16.gmra.mxu3 %v10450_v14  ;;  %6278 = vmatmul.bf16.gmra.mxu0 %v10497_v40  ;;  %v6433_v5 = vsel %vm825_vm0, %v6349_v17, %v6350_v63  ;;  %v10499_v17 = vld [vmem:[#allocation3 + $0x74] sm:$0xff] }
 0x56c   : > { %v12211_v12 = vadd.f32 %v6433_v5, %v5868_v51 }
 0x56d   : > { %v5280_v9 = vpop.f32.mrf.mxu2 }
 0x56e   : > { %v5618_v20 = vpop.f32.mrf.mxu3 }
 0x56f   : > { %v5726_v25 = vrot.slane %v5618_v20, 1  ;;  %v4944_v16 = vpop.f32.mrf.mxu1 }
 0x570   : > { %v5051_v43 = vrot.slane %v4944_v16, 7  ;;  %v6241_v39 = vpop.f32.mrf.mxu0 }
 0x571   : > { %v5805_v30 = vsel %vm1502_vm1, %v5725_v45, %v5726_v25  ;;  %v6351_v8 = vrot.slane %v6241_v39, 7 }
 0x572   : > { %v5128_v24 = vsel %vm825_vm0, %v5050_v22, %v5051_v43  ;;  %v5869_v58 = vadd.f32 %v5805_v30, %v5435_v47 }
 0x573   : > { %v6432_v18 = vsel %vm825_vm0, %v6350_v63, %v6351_v8 }
 0x574   : > { %v12219_v61 = vadd.f32 %v6432_v18, %v5869_v58 }
 0x575   : > { %v5282_v38 = vpop.f32.mrf.mxu2 }
 0x576   : > { %v5437_v27 = vadd.f32 %v5282_v38, %v5128_v24  ;;  %v5620_v37 = vpop.f32.mrf.mxu3 }
 0x577   : > { %v4947_v36 = vpop.f32.mrf.mxu1  ;;  %v5727_v0 = vrot.slane %v5620_v37, 1  ;;  %v10453_v37 = vld [vmem:[#allocation3 + $0x78] sm:$0xff] }
 0x578   : > { %v5052_v13 = vrot.slane %v4947_v36, 7  ;;  %v6244_v1 = vpop.f32.mrf.mxu0 }
 0x579   : > { %v6352_v28 = vrot.slane %v6244_v1, 7  ;;  %v10500_v1 = vld [vmem:[#allocation3 + $0x7c] sm:$0xff] }
 0x57a   : > { %4986 = vmatmul.bf16.gmra.mxu1 %v10451_v3  ;;  %5324 = vmatmul.bf16.gmra.mxu2 %v10451_v3  ;;  %v5127_v46 = vsel %vm825_vm0, %v5051_v43, %v5052_v13 }
 0x57b   : > { %5662 = vmatmul.bf16.gmra.mxu3 %v10451_v3  ;;  %6283 = vmatmul.bf16.gmra.mxu0 %v10498_v48 }
 0x57d   : > { %v5285_v55 = vpop.f32.mrf.mxu2 }
 0x57e   : > { %v5438_v15 = vadd.f32 %v5285_v55, %v5127_v46  ;;  %v5623_v49 = vpop.f32.mrf.mxu3 }
 0x57f   : > { %v5728_v21 = vrot.slane %v5623_v49, 1  ;;  %v4949_v60 = vpop.f32.mrf.mxu1 }
 0x580   : > { %v6246_v50 = vpop.f32.mrf.mxu0  ;;  %v5053_v7 = vrot.slane %v4949_v60, 7 }
 0x581   : > { %v5803_v56 = vsel %vm1502_vm1, %v5727_v0, %v5728_v21  ;;  %v6353_v31 = vrot.slane %v6246_v50, 7 }
 0x582   : > { %v5871_v23 = vadd.f32 %v5803_v56, %v5437_v27 }
 0x583   : > { %v6430_v26 = vsel %vm825_vm0, %v6352_v28, %v6353_v31 }
 0x584   : > { %v12227_v53 = vadd.f32 %v6430_v26, %v5871_v23 }
 0x585   : > { %v5287_v11 = vpop.f32.mrf.mxu2 }
 0x586   : > { %v5625_v33 = vpop.f32.mrf.mxu3 }
 0x587   : > { %v5729_v47 = vrot.slane %v5625_v33, 1  ;;  %v4952_v59 = vpop.f32.mrf.mxu1 }
 0x588   : > { %v5054_v45 = vrot.slane %v4952_v59, 7  ;;  %v6249_v4 = vpop.f32.mrf.mxu0 }
 0x589   : > { %v6354_v14 = vrot.slane %v6249_v4, 7  ;;  %v5802_v63 = vsel %vm1502_vm1, %v5728_v21, %v5729_v47 }
 0x58a   : > { %4991 = vmatmul.bf16.gmra.mxu1 %v10452_v41  ;;  %5329 = vmatmul.bf16.gmra.mxu2 %v10452_v41  ;;  %v5125_v40 = vsel %vm825_vm0, %v5053_v7, %v5054_v45  ;;  %v5872_v34 = vadd.f32 %v5802_v63, %v5438_v15  ;;  %v10519_v63 = vld [vmem:[#allocation10 + $0x108] sm:$0xff] }
 0x58b   : > { %5667 = vmatmul.bf16.gmra.mxu3 %v10452_v41  ;;  %6288 = vmatmul.bf16.gmra.mxu0 %v10499_v17  ;;  %v6429_v51 = vsel %vm825_vm0, %v6353_v31, %v6354_v14  ;;  %v10454_v41 = vld [vmem:[#allocation3 + $0x80] sm:$0xff] }
 0x58c   : > { %v12235_v5 = vadd.f32 %v6429_v51, %v5872_v34  ;;  %v10501_v14 = vld [vmem:[#allocation3 + $0x84] sm:$0xff]  ;;  %6655 = vmatpush.bf16.msrb.mxu1 %v10519_v63  ;;  %v10503_v63 = vld [vmem:[#allocation3 + $0x94] sm:$0xff] }
 0x58d   : > { %v5290_v9 = vpop.f32.mrf.mxu2 }
 0x58e   : > { %v5440_v20 = vadd.f32 %v5290_v9, %v5125_v40  ;;  %v5628_v25 = vpop.f32.mrf.mxu3 }
 0x58f   : > { %v4954_v16 = vpop.f32.mrf.mxu1  ;;  %v5730_v58 = vrot.slane %v5628_v25, 1 }
 0x590   : > { %v5055_v22 = vrot.slane %v4954_v16, 7  ;;  %v6251_v43 = vpop.f32.mrf.mxu0 }
 0x591   : > { %v6355_v36 = vrot.slane %v6251_v43, 7 }
 0x592   : > { %v5124_v39 = vsel %vm825_vm0, %v5054_v45, %v5055_v22 }
 0x595   : > { %v5292_v30 = vpop.f32.mrf.mxu2 }
 0x596   : > { %v5441_v8 = vadd.f32 %v5292_v30, %v5124_v39  ;;  %v5630_v24 = vpop.f32.mrf.mxu3 }
 0x597   : > { %v5731_v18 = vrot.slane %v5630_v24, 1  ;;  %v4957_v38 = vpop.f32.mrf.mxu1 }
 0x598   : > { %v6254_v27 = vpop.f32.mrf.mxu0  ;;  %v5056_v21 = vrot.slane %v4957_v38, 7 }
 0x599   : > { %v6356_v13 = vrot.slane %v6254_v27, 7  ;;  %v5800_v3 = vsel %vm1502_vm1, %v5730_v58, %v5731_v18 }
 0x59a   : > { %4996 = vmatmul.bf16.gmra.mxu1 %v10453_v37  ;;  %5334 = vmatmul.bf16.gmra.mxu2 %v10453_v37  ;;  %v5874_v48 = vadd.f32 %v5800_v3, %v5440_v20 }
 0x59b   : > { %5672 = vmatmul.bf16.gmra.mxu3 %v10453_v37  ;;  %6293 = vmatmul.bf16.gmra.mxu0 %v10500_v1  ;;  %v6427_v46 = vsel %vm825_vm0, %v6355_v36, %v6356_v13  ;;  %v10455_v1 = vld [vmem:[#allocation3 + $0x88] sm:$0xff] }
 0x59c   : > { %v12243_v19 = vadd.f32 %v6427_v46, %v5874_v48  ;;  %v10502_v48 = vld [vmem:[#allocation3 + $0x8c] sm:$0xff] }
 0x59d   : > { %v5295_v55 = vpop.f32.mrf.mxu2 }
 0x59e   : > { %v5633_v15 = vpop.f32.mrf.mxu3 }
 0x59f   : > { %v5732_v49 = vrot.slane %v5633_v15, 1  ;;  %v4959_v0 = vpop.f32.mrf.mxu1 }
 0x5a0   : > { %v5057_v60 = vrot.slane %v4959_v0, 7  ;;  %v6256_v50 = vpop.f32.mrf.mxu0 }
 0x5a1   : > { %v5799_v28 = vsel %vm1502_vm1, %v5731_v18, %v5732_v49  ;;  %v6357_v56 = vrot.slane %v6256_v50, 7 }
 0x5a2   : > { %v5122_v31 = vsel %vm825_vm0, %v5056_v21, %v5057_v60  ;;  %v5875_v23 = vadd.f32 %v5799_v28, %v5441_v8 }
 0x5a3   : > { %v6426_v26 = vsel %vm825_vm0, %v6356_v13, %v6357_v56 }
 0x5a4   : > { %v12251_v11 = vadd.f32 %v6426_v26, %v5875_v23 }
 0x5a5   : > { %v5297_v33 = vpop.f32.mrf.mxu2 }
 0x5a6   : > { %v5443_v47 = vadd.f32 %v5297_v33, %v5122_v31  ;;  %v5635_v59 = vpop.f32.mrf.mxu3 }
 0x5a7   : > { %v4962_v7 = vpop.f32.mrf.mxu1  ;;  %v5733_v9 = vrot.slane %v5635_v59, 1 }
 0x5a8   : > { %v5058_v45 = vrot.slane %v4962_v7, 7  ;;  %v6259_v4 = vpop.f32.mrf.mxu0 }
 0x5a9   : > { %v6358_v22 = vrot.slane %v6259_v4, 7 }
 0x5aa   : > { %5001 = vmatmul.bf16.gmra.mxu1 %v10454_v41  ;;  %5339 = vmatmul.bf16.gmra.mxu2 %v10454_v41  ;;  %v5121_v17 = vsel %vm825_vm0, %v5057_v60, %v5058_v45 }
 0x5ab   : > { %5677 = vmatmul.bf16.gmra.mxu3 %v10454_v41  ;;  %6298 = vmatmul.bf16.gmra.mxu0 %v10501_v14  ;;  %v10456_v41 = vld [vmem:[#allocation3 + $0x90] sm:$0xff] }
 0x5ad   : > { %v5300_v40 = vpop.f32.mrf.mxu2 }
 0x5ae   : > { %v5444_v34 = vadd.f32 %v5300_v40, %v5121_v17  ;;  %v5638_v51 = vpop.f32.mrf.mxu3 }
 0x5af   : > { %v5734_v20 = vrot.slane %v5638_v51, 1  ;;  %v4964_v25 = vpop.f32.mrf.mxu1 }
 0x5b0   : > { %v6261_v16 = vpop.f32.mrf.mxu0  ;;  %v5059_v37 = vrot.slane %v4964_v25, 7 }
 0x5b1   : > { %v5797_v43 = vsel %vm1502_vm1, %v5733_v9, %v5734_v20  ;;  %v6359_v39 = vrot.slane %v6261_v16, 7 }
 0x5b2   : > { %v5877_v30 = vadd.f32 %v5797_v43, %v5443_v47 }
 0x5b3   : > { %v6424_v8 = vsel %vm825_vm0, %v6358_v22, %v6359_v39 }
 0x5b4   : > { %v12259_v24 = vadd.f32 %v6424_v8, %v5877_v30 }
 0x5b5   : > { %v5302_v58 = vpop.f32.mrf.mxu2 }
 0x5b6   : > { %v5640_v18 = vpop.f32.mrf.mxu3 }
 0x5b7   : > { %v5735_v38 = vrot.slane %v5640_v18, 1  ;;  %v4967_v27 = vpop.f32.mrf.mxu1 }
 0x5b8   : > { %v5060_v36 = vrot.slane %v4967_v27, 7  ;;  %v6264_v13 = vpop.f32.mrf.mxu0 }
 0x5b9   : > { %v6360_v3 = vrot.slane %v6264_v13, 7  ;;  %v5796_v46 = vsel %vm1502_vm1, %v5734_v20, %v5735_v38 }
 0x5ba   : > { %5006 = vmatmul.bf16.gmra.mxu1 %v10455_v1  ;;  %5344 = vmatmul.bf16.gmra.mxu2 %v10455_v1  ;;  %v5119_v55 = vsel %vm825_vm0, %v5059_v37, %v5060_v36  ;;  %v5878_v15 = vadd.f32 %v5796_v46, %v5444_v34 }
 0x5bb   : > { %5682 = vmatmul.bf16.gmra.mxu3 %v10455_v1  ;;  %6303 = vmatmul.bf16.gmra.mxu0 %v10502_v48  ;;  %v6423_v49 = vsel %vm825_vm0, %v6359_v39, %v6360_v3 }
 0x5bc   : > { %v12267_v0 = vadd.f32 %v6423_v49, %v5878_v15  ;;  %v10504_v15 = vld [vmem:[#allocation3 + $0x9c] sm:$0xff] }
 0x5bd   : > { %v5305_v21 = vpop.f32.mrf.mxu2 }
 0x5be   : > { %v5446_v60 = vadd.f32 %v5305_v21, %v5119_v55  ;;  %v5643_v50 = vpop.f32.mrf.mxu3  ;;  %v10457_v55 = vld [vmem:[#allocation3 + $0x98] sm:$0xff] }
 0x5bf   : > { %v4969_v28 = vpop.f32.mrf.mxu1  ;;  %v5736_v59 = vrot.slane %v5643_v50, 1  ;;  %v10518_v21 = vld [vmem:[#allocation10 + $0x100] sm:$0xff] }
 0x5c0   : > { %v5061_v56 = vrot.slane %v4969_v28, 7  ;;  %v6266_v31 = vpop.f32.mrf.mxu0  ;;  %6656 = vmatpush.bf16.msrb.mxu1 %v10518_v21 }
 0x5c1   : > { %v6361_v14 = vrot.slane %v6266_v31, 7 }
 0x5c2   : > { %v5118_v23 = vsel %vm825_vm0, %v5060_v36, %v5061_v56 }
 0x5c5   : > { %v5307_v26 = vpop.f32.mrf.mxu2 }
 0x5c6   : > { %v5447_v33 = vadd.f32 %v5307_v26, %v5118_v23  ;;  %v5645_v47 = vpop.f32.mrf.mxu3 }
 0x5c7   : > { %v5737_v7 = vrot.slane %v5645_v47, 1  ;;  %v4972_v45 = vpop.f32.mrf.mxu1 }
 0x5c8   : > { %v6269_v4 = vpop.f32.mrf.mxu0  ;;  %v5062_v43 = vrot.slane %v4972_v45, 7 }
 0x5c9   : > { %v6362_v17 = vrot.slane %v6269_v4, 7  ;;  %v5794_v40 = vsel %vm1502_vm1, %v5736_v59, %v5737_v7 }
 0x5ca   : > { %5011 = vmatmul.bf16.gmra.mxu1 %v10456_v41  ;;  %5349 = vmatmul.bf16.gmra.mxu2 %v10456_v41  ;;  %v5880_v34 = vadd.f32 %v5794_v40, %v5446_v60 }
 0x5cb   : > { %5687 = vmatmul.bf16.gmra.mxu3 %v10456_v41  ;;  %6308 = vmatmul.bf16.gmra.mxu0 %v10503_v63  ;;  %v6421_v51 = vsel %vm825_vm0, %v6361_v14, %v6362_v17 }
 0x5cc   : > { %v12275_v9 = vadd.f32 %v6421_v51, %v5880_v34 }
 0x5cd   : > { %v5310_v20 = vpop.f32.mrf.mxu2 }
 0x5ce   : > { %v5648_v25 = vpop.f32.mrf.mxu3  ;;  %v10458_v20 = vld [vmem:[#allocation3 + $0xa0] sm:$0xff] }
 0x5cf   : > { %v5738_v16 = vrot.slane %v5648_v25, 1  ;;  %v4974_v22 = vpop.f32.mrf.mxu1 }
 0x5d0   : > { %v5063_v39 = vrot.slane %v4974_v22, 7  ;;  %v6271_v30 = vpop.f32.mrf.mxu0 }
 0x5d1   : > { %v5793_v8 = vsel %vm1502_vm1, %v5737_v7, %v5738_v16  ;;  %v6363_v58 = vrot.slane %v6271_v30, 7  ;;  %v10505_v16 = vld [vmem:[#allocation3 + $0xa4] sm:$0xff]  ;;  %v10565_v30 = vld [vmem:[#allocation10 + $0x1b8] sm:$0xff] }
 0x5d2   : > { %v5116_v18 = vsel %vm825_vm0, %v5062_v43, %v5063_v39  ;;  %v5881_v38 = vadd.f32 %v5793_v8, %v5447_v33  ;;  %7614 = vmatpush.bf16.msra.mxu3 %v10565_v30 }
 0x5d3   : > { %v6420_v27 = vsel %vm825_vm0, %v6362_v17, %v6363_v58 }
 0x5d4   : > { %v12283_v37 = vadd.f32 %v6420_v27, %v5881_v38 }
 0x5d5   : > { %v5312_v36 = vpop.f32.mrf.mxu2 }
 0x5d6   : > { %v5449_v13 = vadd.f32 %v5312_v36, %v5116_v18  ;;  %v5650_v1 = vpop.f32.mrf.mxu3 }
 0x5d7   : > { %v4977_v3 = vpop.f32.mrf.mxu1  ;;  %v5739_v56 = vrot.slane %v5650_v1, 1  ;;  %v10564_v1 = vld [vmem:[#allocation10 + $0x1b0] sm:$0xff] }
 0x5d8   : > { %v5064_v48 = vrot.slane %v4977_v3, 7  ;;  %v6274_v46 = vpop.f32.mrf.mxu0  ;;  %7615 = vmatpush.bf16.msra.mxu3 %v10564_v1  ;;  %v10559_v1 = vld [vmem:[#allocation10 + $0x188] sm:$0xff] }
 0x5d9   : > { %v6364_v33 = vrot.slane %v6274_v46, 7 }
 0x5da   : > { %5016 = vmatmul.bf16.gmra.mxu1 %v10457_v55  ;;  %5354 = vmatmul.bf16.gmra.mxu2 %v10457_v55  ;;  %v5115_v49 = vsel %vm825_vm0, %v5063_v39, %v5064_v48  ;;  %v10533_v39 = vld [vmem:[#allocation10 + $0x178] sm:$0xff] }
 0x5db   : > { %5692 = vmatmul.bf16.gmra.mxu3 %v10457_v55  ;;  %6313 = vmatmul.bf16.gmra.mxu0 %v10504_v15  ;;  %v10531_v55 = vld [vmem:[#allocation10 + $0x168] sm:$0xff] }
 0x5dc   : > { %6987 = vmatpush.bf16.msra.mxu2 %v10533_v39  ;;  %v10563_v15 = vld [vmem:[#allocation10 + $0x1a8] sm:$0xff] }
 0x5dd   : > { %v5315_v60 = vpop.f32.mrf.mxu2  ;;  %7616 = vmatpush.bf16.msra.mxu3 %v10563_v15 }
 0x5de   : > { %v5450_v50 = vadd.f32 %v5315_v60, %v5115_v49  ;;  %v5653_v28 = vpop.f32.mrf.mxu3 }
 0x5df   : > { %v5740_v31 = vrot.slane %v5653_v28, 1  ;;  %v4979_v23 = vpop.f32.mrf.mxu1  ;;  %v10530_v28 = vld [vmem:[#allocation10 + $0x160] sm:$0xff] }
 0x5e0   : > { %v6276_v26 = vpop.f32.mrf.mxu0  ;;  %v5065_v40 = vrot.slane %v4979_v23, 7 }
 0x5e1   : > { %v5791_v47 = vsel %vm1502_vm1, %v5739_v56, %v5740_v31  ;;  %v6365_v59 = vrot.slane %v6276_v26, 7  ;;  %v10562_v56 = vld [vmem:[#allocation10 + $0x1a0] sm:$0xff] }
 0x5e2   : > { %v5883_v7 = vadd.f32 %v5791_v47, %v5449_v13  ;;  %v10532_v13 = vld [vmem:[#allocation10 + $0x170] sm:$0xff]  ;;  %7617 = vmatpush.bf16.msra.mxu3 %v10562_v56  ;;  %v10558_v56 = vld [vmem:[#allocation10 + $0x180] sm:$0xff] }
 0x5e3   : > { %v6418_v45 = vsel %vm825_vm0, %v6364_v33, %v6365_v59  ;;  %6988 = vmatpush.bf16.msra.mxu2 %v10532_v13  ;;  %v10459_v47 = vld [vmem:[#allocation3 + $0xa8] sm:$0xff]  ;;  %v10527_v13 = vld [vmem:[#allocation10 + $0x148] sm:$0xff] }
 0x5e4   : > { %v12291_v4 = vadd.f32 %v6418_v45, %v5883_v7  ;;  %v10506_v45 = vld [vmem:[#allocation3 + $0xac] sm:$0xff] }
 0x5e5   : > { %v5317_v41 = vpop.f32.mrf.mxu2 }
 0x5e6   : > { %v5655_v14 = vpop.f32.mrf.mxu3 }
 0x5e7   : > { %v5741_v17 = vrot.slane %v5655_v14, 1  ;;  %v4982_v63 = vpop.f32.mrf.mxu1  ;;  %6989 = vmatpush.bf16.msra.mxu2 %v10531_v55  ;;  %v10529_v14 = vld [vmem:[#allocation10 + $0x158] sm:$0xff] }
 0x5e8   : > { %v5066_v34 = vrot.slane %v4982_v63, 7  ;;  %v6279_v51 = vpop.f32.mrf.mxu0  ;;  %v10573_v63 = vld [vmem:[#allocation10 + $0x1f8] sm:$0xff] }
 0x5e9   : > { %v6366_v25 = vrot.slane %v6279_v51, 7  ;;  %v5790_v22 = vsel %vm1502_vm1, %v5740_v31, %v5741_v17  ;;  %v10561_v17 = vld [vmem:[#allocation10 + $0x198] sm:$0xff]  ;;  %8048 = vmatpush.bf16.msra.mxu0 %v10573_v63  ;;  %v10568_v63 = vld [vmem:[#allocation10 + $0x1d0] sm:$0xff] }
 0x5ea   : > { %5021 = vmatmul.bf16.gmra.mxu1 %v10458_v20  ;;  %5359 = vmatmul.bf16.gmra.mxu2 %v10458_v20  ;;  %v5113_v43 = vsel %vm825_vm0, %v5065_v40, %v5066_v34  ;;  %v5884_v8 = vadd.f32 %v5790_v22, %v5450_v50  ;;  %v10560_v22 = vld [vmem:[#allocation10 + $0x190] sm:$0xff] }
 0x5eb   : > { %5697 = vmatmul.bf16.gmra.mxu3 %v10458_v20  ;;  %6318 = vmatmul.bf16.gmra.mxu0 %v10505_v16  ;;  %v6417_v58 = vsel %vm825_vm0, %v6365_v59, %v6366_v25  ;;  %v10528_v16 = vld [vmem:[#allocation10 + $0x150] sm:$0xff] }
 0x5ec   : > { %v12299_v18 = vadd.f32 %v6417_v58, %v5884_v8  ;;  %6990 = vmatpush.bf16.msra.mxu2 %v10530_v28  ;;  %7618 = vmatpush.bf16.msra.mxu3 %v10561_v17  ;;  %v10526_v28 = vld [vmem:[#allocation10 + $0x140] sm:$0xff] }
 0x5ed   : > { %v5320_v38 = vpop.f32.mrf.mxu2 }
 0x5ee   : > { %v5452_v27 = vadd.f32 %v5320_v38, %v5113_v43  ;;  %v5658_v36 = vpop.f32.mrf.mxu3  ;;  %v10572_v43 = vld [vmem:[#allocation10 + $0x1f0] sm:$0xff] }
 0x5ef   : > { %v4984_v3 = vpop.f32.mrf.mxu1  ;;  %v5742_v31 = vrot.slane %v5658_v36, 1  ;;  %8049 = vmatpush.bf16.msra.mxu0 %v10572_v43 }
 0x5f0   : > { %v5067_v48 = vrot.slane %v4984_v3, 7  ;;  %v6281_v46 = vpop.f32.mrf.mxu0  ;;  %6991 = vmatpush.bf16.msra.mxu2 %v10529_v14  ;;  %7619 = vmatpush.bf16.msra.mxu3 %v10560_v22  ;;  %v10571_v3 = vld [vmem:[#allocation10 + $0x1e8] sm:$0xff] }
 0x5f1   : > { %v6367_v59 = vrot.slane %v6281_v46, 7 }
 0x5f2   : > { %v5112_v49 = vsel %vm825_vm0, %v5066_v34, %v5067_v48 }
 0x5f3   : > { %8050 = vmatpush.bf16.msra.mxu0 %v10571_v3 }
 0x5f4   : > { %6992 = vmatpush.bf16.msra.mxu2 %v10528_v16  ;;  %7620 = vmatpush.bf16.msra.mxu3 %v10559_v1 }
 0x5f5   : > { %v5322_v21 = vpop.f32.mrf.mxu2 }
 0x5f6   : > { %v5453_v60 = vadd.f32 %v5322_v21, %v5112_v49  ;;  %v5660_v50 = vpop.f32.mrf.mxu3 }
 0x5f7   : > { %v5743_v23 = vrot.slane %v5660_v50, 1  ;;  %v4987_v26 = vpop.f32.mrf.mxu1 }
 0x5f8   : > { %v6284_v33 = vpop.f32.mrf.mxu0  ;;  %v5068_v8 = vrot.slane %v4987_v26, 7  ;;  %6993 = vmatpush.bf16.msra.mxu2 %v10527_v13  ;;  %7621 = vmatpush.bf16.msra.mxu3 %v10558_v56 }
 0x5f9   : > { %v6368_v7 = vrot.slane %v6284_v33, 7  ;;  %v5788_v41 = vsel %vm1502_vm1, %v5742_v31, %v5743_v23  ;;  %v10570_v31 = vld [vmem:[#allocation10 + $0x1e0] sm:$0xff] }
 0x5fa   : > { %5026 = vmatmul.bf16.gmra.mxu1 %v10459_v47  ;;  %5364 = vmatmul.bf16.gmra.mxu2 %v10459_v47  ;;  %v5886_v40 = vadd.f32 %v5788_v41, %v5452_v27 }
 0x5fb   : > { %5702 = vmatmul.bf16.gmra.mxu3 %v10459_v47  ;;  %6323 = vmatmul.bf16.gmra.mxu0 %v10506_v45  ;;  %v6415_v34 = vsel %vm825_vm0, %v6367_v59, %v6368_v7  ;;  %v10460_v47 = vld [vmem:[#allocation3 + $0xb0] sm:$0xff] }
 0x5fc   : > { %v12307_v51 = vadd.f32 %v6415_v34, %v5886_v40  ;;  %6994 = vmatpush.bf16.msra.mxu2 %v10526_v28  ;;  %8051 = vmatpush.bf16.msra.mxu0 %v10570_v31  ;;  %v10581_v45 = vld [vmem:[#allocation10 + $0x238] sm:$0xff] }
 0x5fd   : > { %v5325_v20 = vpop.f32.mrf.mxu2  ;;  %8386 = vmatpush.bf16.msra.mxu1 %v10581_v45 }
 0x5fe   : > { %v5663_v25 = vpop.f32.mrf.mxu3 }
 0x5ff   : > { %v5744_v39 = vrot.slane %v5663_v25, 1  ;;  %v4989_v30 = vpop.f32.mrf.mxu1 }
 0x600   : > { %v5069_v58 = vrot.slane %v4989_v30, 7  ;;  %v6286_v38 = vpop.f32.mrf.mxu0 }
 0x601   : > { %v5787_v27 = vsel %vm1502_vm1, %v5743_v23, %v5744_v39  ;;  %v6369_v36 = vrot.slane %v6286_v38, 7  ;;  %v10567_v39 = vld [vmem:[#allocation10 + $0x1c8] sm:$0xff] }
 0x602   : > { %v5110_v48 = vsel %vm825_vm0, %v5068_v8, %v5069_v58  ;;  %v5887_v46 = vadd.f32 %v5787_v27, %v5453_v60  ;;  %v10507_v60 = vld [vmem:[#allocation3 + $0xb4] sm:$0xff] }
 0x603   : > { %v6414_v55 = vsel %vm825_vm0, %v6368_v7, %v6369_v36  ;;  %v10569_v7 = vld [vmem:[#allocation10 + $0x1d8] sm:$0xff]  ;;  %v10566_v36 = vld [vmem:[#allocation10 + $0x1c0] sm:$0xff] }
 0x604   : > { %v12315_v15 = vadd.f32 %v6414_v55, %v5887_v46  ;;  %8052 = vmatpush.bf16.msra.mxu0 %v10569_v7  ;;  %v10461_v55 = vld [vmem:[#allocation3 + $0xb8] sm:$0xff] }
 0x605   : > { %v5327_v49 = vpop.f32.mrf.mxu2 }
 0x606   : > { %v5455_v21 = vadd.f32 %v5327_v49, %v5110_v48  ;;  %v5665_v50 = vpop.f32.mrf.mxu3 }
 0x607   : > { %v4992_v23 = vpop.f32.mrf.mxu1  ;;  %v5745_v40 = vrot.slane %v5665_v50, 1  ;;  %v10508_v50 = vld [vmem:[#allocation3 + $0xbc] sm:$0xff] }
 0x608   : > { %v5070_v26 = vrot.slane %v4992_v23, 7  ;;  %v6289_v33 = vpop.f32.mrf.mxu0  ;;  %8053 = vmatpush.bf16.msra.mxu0 %v10568_v63 }
 0x609   : > { %v6370_v16 = vrot.slane %v6289_v33, 7 }
 0x60a   : > { %5031 = vmatmul.bf16.gmra.mxu1 %v10460_v47  ;;  %5369 = vmatmul.bf16.gmra.mxu2 %v10460_v47  ;;  %v5109_v59 = vsel %vm825_vm0, %v5069_v58, %v5070_v26 }
 0x60b   : > { %5707 = vmatmul.bf16.gmra.mxu3 %v10460_v47  ;;  %6328 = vmatmul.bf16.gmra.mxu0 %v10507_v60 }
 0x60c   : > { %8054 = vmatpush.bf16.msra.mxu0 %v10567_v39 }
 0x60d   : > { %v5330_v41 = vpop.f32.mrf.mxu2 }
 0x60e   : > { %v5456_v14 = vadd.f32 %v5330_v41, %v5109_v59  ;;  %v5668_v17 = vpop.f32.mrf.mxu3 }
 0x60f   : > { %v5746_v34 = vrot.slane %v5668_v17, 1  ;;  %v4994_v20 = vpop.f32.mrf.mxu1 }
 0x610   : > { %v6291_v25 = vpop.f32.mrf.mxu0  ;;  %v5071_v3 = vrot.slane %v4994_v20, 7  ;;  %8055 = vmatpush.bf16.msra.mxu0 %v10566_v36 }
 0x611   : > { %v5785_v22 = vsel %vm1502_vm1, %v5745_v40, %v5746_v34  ;;  %v6371_v43 = vrot.slane %v6291_v25, 7 }
 0x612   : > { %v5889_v30 = vadd.f32 %v5785_v22, %v5455_v21  ;;  %v10509_v22 = vld [vmem:[#allocation3 + $0xc4] sm:$0xff] }
 0x613   : > { %v6412_v8 = vsel %vm825_vm0, %v6370_v16, %v6371_v43 }
 0x614   : > { %v12323_v58 = vadd.f32 %v6412_v8, %v5889_v30  ;;  %v10908_v30 = vld [vmem:[#allocation3 + $0xc] sm:$0xff] }
 0x615   : > { %v5332_v38 = vpop.f32.mrf.mxu2 }
 0x616   : > { %v5670_v27 = vpop.f32.mrf.mxu3 }
 0x617   : > { %v5747_v13 = vrot.slane %v5670_v27, 1  ;;  %v4997_v1 = vpop.f32.mrf.mxu1 }
 0x618   : > { %v5072_v48 = vrot.slane %v4997_v1, 7  ;;  %v6294_v46 = vpop.f32.mrf.mxu0 }
 0x619   : > { %v6372_v49 = vrot.slane %v6294_v46, 7  ;;  %v5784_v21 = vsel %vm1502_vm1, %v5746_v34, %v5747_v13 }
 0x61a   : > { %5036 = vmatmul.bf16.gmra.mxu1 %v10461_v55  ;;  %5374 = vmatmul.bf16.gmra.mxu2 %v10461_v55  ;;  %v5107_v28 = vsel %vm825_vm0, %v5071_v3, %v5072_v48  ;;  %v5890_v56 = vadd.f32 %v5784_v21, %v5456_v14 }
 0x61b   : > { %5712 = vmatmul.bf16.gmra.mxu3 %v10461_v55  ;;  %6333 = vmatmul.bf16.gmra.mxu0 %v10508_v50  ;;  %v6411_v31 = vsel %vm825_vm0, %v6371_v43, %v6372_v49  ;;  %v10534_v43 = vld [vmem:[#allocation3 + $0x18] sm:$0xff] }
 0x61c   : > { %v12331_v23 = vadd.f32 %v6411_v31, %v5890_v56 }
 0x61d   : > { %v5335_v26 = vpop.f32.mrf.mxu2 }
 0x61e   : > { %v5458_v33 = vadd.f32 %v5335_v26, %v5107_v28  ;;  %v5673_v47 = vpop.f32.mrf.mxu3 }
 0x61f   : > { %v4999_v60 = vpop.f32.mrf.mxu1  ;;  %v5748_v14 = vrot.slane %v5673_v47, 1 }
 0x620   : > { %v5073_v59 = vrot.slane %v4999_v60, 7  ;;  %v6296_v7 = vpop.f32.mrf.mxu0 }
 0x621   : > { %v6373_v25 = vrot.slane %v6296_v7, 7 }
 0x622   : > { %v5106_v45 = vsel %vm825_vm0, %v5072_v48, %v5073_v59 }
 0x625   : > { %v5337_v41 = vpop.f32.mrf.mxu2 }
 0x626   : > { %v5459_v17 = vadd.f32 %v5337_v41, %v5106_v45  ;;  %v5675_v63 = vpop.f32.mrf.mxu3  ;;  %v10535_v45 = vld [vmem:[#allocation3 + $0x20] sm:$0xff]  ;;  %v10909_v41 = vld [vmem:[#allocation3 + $0x14] sm:$0xff] }
 0x627   : > { %v5749_v40 = vrot.slane %v5675_v63, 1  ;;  %v5002_v34 = vpop.f32.mrf.mxu1 }
 0x628   : > { %v6299_v20 = vpop.f32.mrf.mxu0  ;;  %v5074_v48 = vrot.slane %v5002_v34, 7 }
 0x629   : > { %v6374_v16 = vrot.slane %v6299_v20, 7  ;;  %v5782_v39 = vsel %vm1502_vm1, %v5748_v14, %v5749_v40 }
 0x62a   : > { %6657 = vmatmul.bf16.vlgmr.msrb.gmra.mxu1 %v10908_v30  ;;  %6995 = vmatmul.bf16.vlgmr.msra.gmra.mxu2 %v10908_v30  ;;  %v5892_v8 = vadd.f32 %v5782_v39, %v5458_v33 }
 0x62b   : > { %6338 = vmatmul.bf16.gmra.mxu0 %v10509_v22  ;;  %7622 = vmatmul.bf16.vlgmr.msra.gmra.mxu3 %v10534_v43  ;;  %v6409_v38 = vsel %vm825_vm0, %v6373_v25, %v6374_v16 }
 0x62c   : > { %v12339_v27 = vadd.f32 %v6409_v38, %v5892_v8 }
 0x62d   : > { %v5340_v36 = vpop.f32.mrf.mxu2 }
 0x62e   : > { %v5678_v13 = vpop.f32.mrf.mxu3 }
 0x62f   : > { %v5750_v1 = vrot.slane %v5678_v13, 1  ;;  %v5004_v3 = vpop.f32.mrf.mxu1 }
 0x630   : > { %v5075_v46 = vrot.slane %v5004_v3, 7  ;;  %v6301_v55 = vpop.f32.mrf.mxu0 }
 0x631   : > { %v5781_v49 = vsel %vm1502_vm1, %v5749_v40, %v5750_v1  ;;  %v6375_v50 = vrot.slane %v6301_v55, 7 }
 0x632   : > { %v5104_v21 = vsel %vm825_vm0, %v5074_v48, %v5075_v46  ;;  %v5893_v28 = vadd.f32 %v5781_v49, %v5459_v17  ;;  %v10580_v17 = vld [vmem:[#allocation10 + $0x230] sm:$0xff] }
 0x633   : > { %v6408_v56 = vsel %vm825_vm0, %v6374_v16, %v6375_v50  ;;  %8387 = vmatpush.bf16.msra.mxu1 %v10580_v17 }
 0x634   : > { %v12347_v31 = vadd.f32 %v6408_v56, %v5893_v28  ;;  %v10910_v56 = vld [vmem:[#allocation3 + $0x1c] sm:$0xff] }
 0x635   : > { %v5342_v26 = vpop.f32.mrf.mxu2 }
 0x636   : > { %v5461_v33 = vadd.f32 %v5342_v26, %v5104_v21  ;;  %v5680_v47 = vpop.f32.mrf.mxu3  ;;  %v10536_v21 = vld [vmem:[#allocation3 + $0x28] sm:$0xff] }
 0x637   : > { %v5007_v60 = vpop.f32.mrf.mxu1  ;;  %v5751_v20 = vrot.slane %v5680_v47, 1 }
 0x638   : > { %v5076_v59 = vrot.slane %v5007_v60, 7  ;;  %v6304_v7 = vpop.f32.mrf.mxu0 }
 0x639   : > { %v6376_v39 = vrot.slane %v6304_v7, 7 }
 0x63a   : > { %6662 = vmatmul.bf16.gmra.mxu1 %v10909_v41  ;;  %7000 = vmatmul.bf16.gmra.mxu2 %v10909_v41  ;;  %v5103_v63 = vsel %vm825_vm0, %v5075_v46, %v5076_v59 }
 0x63b   : > { %7627 = vmatmul.bf16.gmra.mxu3 %v10535_v45  ;;  %8056 = vmatmul.bf16.vlgmr.msra.gmra.mxu0 %v10534_v43 }
 0x63d   : > { %v5345_v14 = vpop.f32.mrf.mxu2 }
 0x63e   : > { %v5462_v40 = vadd.f32 %v5345_v14, %v5103_v63  ;;  %v5683_v34 = vpop.f32.mrf.mxu3 }
 0x63f   : > { %v5752_v25 = vrot.slane %v5683_v34, 1  ;;  %v5009_v16 = vpop.f32.mrf.mxu1 }
 0x640   : > { %v6306_v22 = vpop.f32.mrf.mxu0  ;;  %v5077_v46 = vrot.slane %v5009_v16, 7 }
 0x641   : > { %v5779_v30 = vsel %vm1502_vm1, %v5751_v20, %v5752_v25  ;;  %v6377_v8 = vrot.slane %v6306_v22, 7 }
 0x642   : > { %v5895_v38 = vadd.f32 %v5779_v30, %v5461_v33 }
 0x643   : > { %v6406_v36 = vsel %vm825_vm0, %v6376_v39, %v6377_v8 }
 0x644   : > { %v12355_v13 = vadd.f32 %v6406_v36, %v5895_v38  ;;  %v10537_v38 = vld [vmem:[#allocation3 + $0x30] sm:$0xff] }
 0x645   : > { %v5347_v43 = vpop.f32.mrf.mxu2 }
 0x646   : > { %v5685_v1 = vpop.f32.mrf.mxu3  ;;  %v10911_v43 = vld [vmem:[#allocation3 + $0x24] sm:$0xff] }
 0x647   : > { %v5753_v3 = vrot.slane %v5685_v1, 1  ;;  %v5012_v48 = vpop.f32.mrf.mxu1 }
 0x648   : > { %v5078_v55 = vrot.slane %v5012_v48, 7  ;;  %v6309_v49 = vpop.f32.mrf.mxu0 }
 0x649   : > { %v6378_v50 = vrot.slane %v6309_v49, 7  ;;  %v5778_v28 = vsel %vm1502_vm1, %v5752_v25, %v5753_v3 }
 0x64a   : > { %6667 = vmatmul.bf16.gmra.mxu1 %v10910_v56  ;;  %7005 = vmatmul.bf16.gmra.mxu2 %v10910_v56  ;;  %v5101_v26 = vsel %vm825_vm0, %v5077_v46, %v5078_v55  ;;  %v5896_v33 = vadd.f32 %v5778_v28, %v5462_v40 }
 0x64b   : > { %7632 = vmatmul.bf16.gmra.mxu3 %v10536_v21  ;;  %8061 = vmatmul.bf16.gmra.mxu0 %v10535_v45  ;;  %v6405_v47 = vsel %vm825_vm0, %v6377_v8, %v6378_v50 }
 0x64c   : > { %v12363_v60 = vadd.f32 %v6405_v47, %v5896_v33 }
 0x64d   : > { %v5350_v59 = vpop.f32.mrf.mxu2 }
 0x64e   : > { %v5464_v7 = vadd.f32 %v5350_v59, %v5101_v26  ;;  %v5688_v41 = vpop.f32.mrf.mxu3 }
 0x64f   : > { %v5014_v63 = vpop.f32.mrf.mxu1  ;;  %v5754_v40 = vrot.slane %v5688_v41, 1 }
 0x650   : > { %v5079_v17 = vrot.slane %v5014_v63, 7  ;;  %v6311_v14 = vpop.f32.mrf.mxu0 }
 0x651   : > { %v6379_v30 = vrot.slane %v6311_v14, 7 }
 0x652   : > { %v5100_v34 = vsel %vm825_vm0, %v5078_v55, %v5079_v17 }
 0x655   : > { %v5352_v20 = vpop.f32.mrf.mxu2 }
 0x656   : > { %v5465_v25 = vadd.f32 %v5352_v20, %v5100_v34  ;;  %v5690_v16 = vpop.f32.mrf.mxu3 }
 0x657   : > { %v5755_v22 = vrot.slane %v5690_v16, 1  ;;  %v5017_v45 = vpop.f32.mrf.mxu1 }
 0x658   : > { %v6314_v39 = vpop.f32.mrf.mxu0  ;;  %v5080_v28 = vrot.slane %v5017_v45, 7  ;;  %v10912_v45 = vld [vmem:[#allocation3 + $0x2c] sm:$0xff] }
 0x659   : > { %v6380_v8 = vrot.slane %v6314_v39, 7  ;;  %v5776_v36 = vsel %vm1502_vm1, %v5754_v40, %v5755_v22  ;;  %v10538_v40 = vld [vmem:[#allocation3 + $0x38] sm:$0xff] }
 0x65a   : > { %6672 = vmatmul.bf16.gmra.mxu1 %v10911_v43  ;;  %7010 = vmatmul.bf16.gmra.mxu2 %v10911_v43  ;;  %v5898_v1 = vadd.f32 %v5776_v36, %v5464_v7 }
 0x65b   : > { %7637 = vmatmul.bf16.gmra.mxu3 %v10537_v38  ;;  %8066 = vmatmul.bf16.gmra.mxu0 %v10536_v21  ;;  %v6403_v3 = vsel %vm825_vm0, %v6379_v30, %v6380_v8 }
 0x65c   : > { %v12371_v48 = vadd.f32 %v6403_v3, %v5898_v1 }
 0x65d   : > { %v5355_v46 = vpop.f32.mrf.mxu2 }
 0x65e   : > { %v5693_v55 = vpop.f32.mrf.mxu3 }
 0x65f   : > { %v5756_v49 = vrot.slane %v5693_v55, 1  ;;  %v5019_v50 = vpop.f32.mrf.mxu1 }
 0x660   : > { %v5081_v56 = vrot.slane %v5019_v50, 7  ;;  %v6316_v26 = vpop.f32.mrf.mxu0 }
 0x661   : > { %v5775_v33 = vsel %vm1502_vm1, %v5755_v22, %v5756_v49  ;;  %v6381_v47 = vrot.slane %v6316_v26, 7 }
 0x662   : > { %v5098_v59 = vsel %vm825_vm0, %v5080_v28, %v5081_v56  ;;  %v5899_v21 = vadd.f32 %v5775_v33, %v5465_v25  ;;  %v10579_v25 = vld [vmem:[#allocation10 + $0x228] sm:$0xff] }
 0x663   : > { %v6402_v7 = vsel %vm825_vm0, %v6380_v8, %v6381_v47  ;;  %8388 = vmatpush.bf16.msra.mxu1 %v10579_v25 }
 0x664   : > { %v12379_v41 = vadd.f32 %v6402_v7, %v5899_v21 }
 0x665   : > { %v5357_v63 = vpop.f32.mrf.mxu2 }
 0x666   : > { %v5467_v17 = vadd.f32 %v5357_v63, %v5098_v59  ;;  %v5695_v14 = vpop.f32.mrf.mxu3 }
 0x667   : > { %v5022_v34 = vpop.f32.mrf.mxu1  ;;  %v5757_v36 = vrot.slane %v5695_v14, 1  ;;  %v10539_v14 = vld [vmem:[#allocation3 + $0x40] sm:$0xff] }
 0x668   : > { %v5082_v20 = vrot.slane %v5022_v34, 7  ;;  %v6319_v16 = vpop.f32.mrf.mxu0 }
 0x669   : > { %v6382_v46 = vrot.slane %v6319_v16, 7 }
 0x66a   : > { %6677 = vmatmul.bf16.gmra.mxu1 %v10912_v45  ;;  %7015 = vmatmul.bf16.gmra.mxu2 %v10912_v45  ;;  %v5097_v22 = vsel %vm825_vm0, %v5081_v56, %v5082_v20  ;;  %v10913_v20 = vld [vmem:[#allocation3 + $0x34] sm:$0xff] }
 0x66b   : > { %7642 = vmatmul.bf16.gmra.mxu3 %v10538_v40  ;;  %8071 = vmatmul.bf16.gmra.mxu0 %v10537_v38 }
 0x66d   : > { %v5360_v39 = vpop.f32.mrf.mxu2 }
 0x66e   : > { %v5468_v30 = vadd.f32 %v5360_v39, %v5097_v22  ;;  %v5698_v8 = vpop.f32.mrf.mxu3 }
 0x66f   : > { %v5758_v43 = vrot.slane %v5698_v8, 1  ;;  %v5024_v1 = vpop.f32.mrf.mxu1 }
 0x670   : > { %v6321_v3 = vpop.f32.mrf.mxu0  ;;  %v5083_v59 = vrot.slane %v5024_v1, 7 }
 0x671   : > { %v5773_v55 = vsel %vm1502_vm1, %v5757_v36, %v5758_v43  ;;  %v6383_v49 = vrot.slane %v6321_v3, 7 }
 0x672   : > { %v5901_v50 = vadd.f32 %v5773_v55, %v5467_v17 }
 0x673   : > { %v6400_v28 = vsel %vm825_vm0, %v6382_v46, %v6383_v49 }
 0x674   : > { %v12387_v56 = vadd.f32 %v6400_v28, %v5901_v50 }
 0x675   : > { %v5362_v38 = vpop.f32.mrf.mxu2 }
 0x676   : > { %v5700_v26 = vpop.f32.mrf.mxu3 }
 0x677   : > { %v5759_v33 = vrot.slane %v5700_v26, 1  ;;  %v5027_v47 = vpop.f32.mrf.mxu1 }
 0x678   : > { %v5084_v21 = vrot.slane %v5027_v47, 7  ;;  %v6324_v7 = vpop.f32.mrf.mxu0 }
 0x679   : > { %v6384_v63 = vrot.slane %v6324_v7, 7  ;;  %v5772_v34 = vsel %vm1502_vm1, %v5758_v43, %v5759_v33  ;;  %v10540_v33 = vld [vmem:[#allocation3 + $0x48] sm:$0xff] }
 0x67a   : > { %6682 = vmatmul.bf16.gmra.mxu1 %v10913_v20  ;;  %7020 = vmatmul.bf16.gmra.mxu2 %v10913_v20  ;;  %v5095_v17 = vsel %vm825_vm0, %v5083_v59, %v5084_v21  ;;  %v5902_v16 = vadd.f32 %v5772_v34, %v5468_v30  ;;  %v10914_v59 = vld [vmem:[#allocation3 + $0x3c] sm:$0xff] }
 0x67b   : > { %7647 = vmatmul.bf16.gmra.mxu3 %v10539_v14  ;;  %8076 = vmatmul.bf16.gmra.mxu0 %v10538_v40  ;;  %v6399_v45 = vsel %vm825_vm0, %v6383_v49, %v6384_v63 }
 0x67c   : > { %v12395_v22 = vadd.f32 %v6399_v45, %v5902_v16 }
 0x67d   : > { %v5365_v25 = vpop.f32.mrf.mxu2 }
 0x67e   : > { %v5470_v39 = vadd.f32 %v5365_v25, %v5095_v17  ;;  %v5703_v8 = vpop.f32.mrf.mxu3 }
 0x67f   : > { %v5029_v36 = vpop.f32.mrf.mxu1  ;;  %v5760_v30 = vrot.slane %v5703_v8, 1 }
 0x680   : > { %v5085_v1 = vrot.slane %v5029_v36, 7  ;;  %v6326_v43 = vpop.f32.mrf.mxu0 }
 0x681   : > { %v6385_v26 = vrot.slane %v6326_v43, 7 }
 0x682   : > { %v5094_v3 = vsel %vm825_vm0, %v5084_v21, %v5085_v1 }
 0x685   : > { %v5367_v46 = vpop.f32.mrf.mxu2 }
 0x686   : > { %v5471_v55 = vadd.f32 %v5367_v46, %v5094_v3  ;;  %v5705_v50 = vpop.f32.mrf.mxu3 }
 0x687   : > { %v5761_v28 = vrot.slane %v5705_v50, 1  ;;  %v5032_v40 = vpop.f32.mrf.mxu1 }
 0x688   : > { %v6329_v38 = vpop.f32.mrf.mxu0  ;;  %v5086_v45 = vrot.slane %v5032_v40, 7 }
 0x689   : > { %v6386_v49 = vrot.slane %v6329_v38, 7  ;;  %v5770_v47 = vsel %vm1502_vm1, %v5760_v30, %v5761_v28 }
 0x68a   : > { %6687 = vmatmul.bf16.gmra.mxu1 %v10914_v59  ;;  %7025 = vmatmul.bf16.gmra.mxu2 %v10914_v59  ;;  %v5904_v7 = vadd.f32 %v5770_v47, %v5470_v39  ;;  %v10541_v47 = vld [vmem:[#allocation3 + $0x50] sm:$0xff]  ;;  %v10915_v59 = vld [vmem:[#allocation3 + $0x44] sm:$0xff] }
 0x68b   : > { %7652 = vmatmul.bf16.gmra.mxu3 %v10540_v33  ;;  %8081 = vmatmul.bf16.gmra.mxu0 %v10539_v14  ;;  %v6397_v21 = vsel %vm825_vm0, %v6385_v26, %v6386_v49 }
 0x68c   : > { %v12403_v63 = vadd.f32 %v6397_v21, %v5904_v7 }
 0x68d   : > { %v5370_v34 = vpop.f32.mrf.mxu2 }
 0x68e   : > { %v5708_v20 = vpop.f32.mrf.mxu3 }
 0x68f   : > { %v5762_v17 = vrot.slane %v5708_v20, 1  ;;  %v5034_v16 = vpop.f32.mrf.mxu1 }
 0x690   : > { %v5087_v25 = vrot.slane %v5034_v16, 7  ;;  %v6331_v8 = vpop.f32.mrf.mxu0 }
 0x691   : > { %v5769_v36 = vsel %vm1502_vm1, %v5761_v28, %v5762_v17  ;;  %v6387_v1 = vrot.slane %v6331_v8, 7 }
 0x692   : > { %v5092_v39 = vsel %vm825_vm0, %v5086_v45, %v5087_v25  ;;  %v5905_v14 = vadd.f32 %v5769_v36, %v5471_v55  ;;  %v10578_v55 = vld [vmem:[#allocation10 + $0x220] sm:$0xff] }
 0x693   : > { %v6396_v43 = vsel %vm825_vm0, %v6386_v49, %v6387_v1  ;;  %8389 = vmatpush.bf16.msra.mxu1 %v10578_v55  ;;  %v5718_v49 = vrot.slane %v12162_v10, 1 }
 0x694   : > { %v12411_v3 = vadd.f32 %v6396_v43, %v5905_v14 }
 0x695   : > { %v5372_v46 = vpop.f32.mrf.mxu2 }
 0x696   : > { %v5473_v50 = vadd.f32 %v5372_v46, %v5092_v39  ;;  %v5710_v30 = vpop.f32.mrf.mxu3 }
 0x697   : > { %v5037_v38 = vpop.f32.mrf.mxu1  ;;  %v5763_v20 = vrot.slane %v5710_v30, 1 }
 0x698   : > { %v5088_v40 = vrot.slane %v5037_v38, 7  ;;  %v6334_v26 = vpop.f32.mrf.mxu0 }
 0x699   : > { %v6388_v36 = vrot.slane %v6334_v26, 7 }
 0x69a   : > { %6692 = vmatmul.bf16.gmra.mxu1 %v10915_v59  ;;  %7030 = vmatmul.bf16.gmra.mxu2 %v10915_v59  ;;  %v5091_v28 = vsel %vm825_vm0, %v5087_v25, %v5088_v40 }
 0x69b   : > { %7657 = vmatmul.bf16.gmra.mxu3 %v10541_v47  ;;  %8086 = vmatmul.bf16.gmra.mxu0 %v10540_v33  ;;  %v5812_v33 = vsel %vm1502_vm1, %v5718_v49, %v5719_v35 }
 0x69d   : > { %v5375_v7 = vpop.f32.mrf.mxu2 }
 0x69e   : > { %v5474_v21 = vadd.f32 %v5375_v7, %v5091_v28  ;;  %v5713_v34 = vpop.f32.mrf.mxu3  ;;  %v10542_v28 = vld [vmem:[#allocation3 + $0x58] sm:$0xff] }
 0x69f   : > { %v5764_v17 = vrot.slane %v5713_v34, 1  ;;  %v5039_v16 = vpop.f32.mrf.mxu1 }
 0x6a0   : > { %v5089_v45 = vrot.slane %v5039_v16, 7  ;;  %v6336_v8 = vpop.f32.mrf.mxu0 }
 0x6a1   : > { %v5767_v1 = vsel %vm1502_vm1, %v5763_v20, %v5764_v17  ;;  %v6389_v39 = vrot.slane %v6336_v8, 7 }
 0x6a2   : > { %v5137_v10 = vsel %vm825_vm0, %v5089_v45, %v5042_v6  ;;  %v5907_v25 = vadd.f32 %v5767_v1, %v5473_v50  ;;  %v10916_v6 = vld [vmem:[#allocation3 + $0x4c] sm:$0xff] }
 0x6a3   : > { %v5428_v14 = vadd.f32 %v12164_v32, %v5137_v10  ;;  %v6394_v43 = vsel %vm825_vm0, %v6388_v36, %v6389_v39 }
 0x6a4   : > { %v12429_v46 = vadd.f32 %v6394_v43, %v5907_v25  ;;  %v10543_v43 = vld [vmem:[#allocation3 + $0x60] sm:$0xff] }
 0x6a5   : > { %v5377_v30 = vpop.f32.mrf.mxu2  ;;  %v5862_v38 = vadd.f32 %v5812_v33, %v5428_v14 }
 0x6a6   : > { %v5715_v40 = vpop.f32.mrf.mxu3  ;;  %v10917_v30 = vld [vmem:[#allocation3 + $0x54] sm:$0xff] }
 0x6a7   : > { %v5765_v54 = vrot.slane %v5715_v40, 1  ;;  %v6658_v26 = vpop.f32.mrf.mxu1 }
 0x6a8   : > { %v6339_v59 = vpop.f32.mrf.mxu0 }
 0x6a9   : > { %v6390_v35 = vrot.slane %v6339_v59, 7  ;;  %v5766_v52 = vsel %vm1502_vm1, %v5764_v17, %v5765_v54 }
 0x6aa   : > { %6697 = vmatmul.bf16.gmra.mxu1 %v10916_v6  ;;  %7035 = vmatmul.bf16.gmra.mxu2 %v10916_v6  ;;  %v5908_v32 = vadd.f32 %v5766_v52, %v5474_v21 }
 0x6ab   : > { %7662 = vmatmul.bf16.gmra.mxu3 %v10542_v28  ;;  %8091 = vmatmul.bf16.gmra.mxu0 %v10541_v47  ;;  %v6393_v50 = vsel %vm825_vm0, %v6389_v39, %v6390_v35 }
 0x6ac   : > { %v12435_v55 = vadd.f32 %v6393_v50, %v5908_v32 }
 0x6ad   : > { %v6996_v7 = vpop.f32.mrf.mxu2 }
 0x6ae   : > { %v12437_v49 = vpop.f32.mrf.mxu3  ;;  %v7116_v8 = vrot.slane %v6996_v7, 1 }
 0x6af   : > { %v6660_v34 = vpop.f32.mrf.mxu1  ;;  %v12929_v33 = vrot.slane %v12437_v49, 7 }
 0x6b0   : > { %v6341_v20 = vpop.f32.mrf.mxu0  ;;  %v6827_v16 = vadd.f32 %v6660_v34, %v12187_v2 }
 0x6b1   : > { %v6391_v45 = vrot.slane %v6341_v20, 7 }
 0x6b3   : > { %v6439_v21 = vsel %vm825_vm0, %v6391_v45, %v6344_v62 }
 0x6b4   : > { %v6488_v17 = vadd.f32 %v6439_v21, %v5862_v38 }
 0x6b5   : > { %v6998_v47 = vpop.f32.mrf.mxu2 }
 0x6b6   : > { %v7117_v36 = vrot.slane %v6998_v47, 1  ;;  %v7625_v1 = vpop.f32.mrf.mxu3  ;;  %v6826_v39 = vadd.f32 %v6658_v26, %v6488_v17  ;;  %v10544_v47 = vld [vmem:[#allocation3 + $0x68] sm:$0xff] }
 0x6b7   : > { %v7744_v10 = vrot.slane %v7625_v1, 7  ;;  %v6663_v25 = vpop.f32.mrf.mxu1 }
 0x6b8   : > { %v7210_v14 = vsel %vm1502_vm1, %v7116_v8, %v7117_v36  ;;  %v12447_v2 = vpop.f32.mrf.mxu0 }
 0x6b9   : > { %v7837_v29 = vsel %vm825_vm0, %v12929_v33, %v7744_v10  ;;  %v12453_v62 = vadd.f32 %v7210_v14, %v6826_v39  ;;  %v10933_v33 = vld [vmem:[#allocation3 + $0x20] sm:$0xff] }
 0x6ba   : > { %6702 = vmatmul.bf16.gmra.mxu1 %v10917_v30  ;;  %7040 = vmatmul.bf16.gmra.mxu2 %v10917_v30 }
 0x6bb   : > { %7667 = vmatmul.bf16.gmra.mxu3 %v10543_v43  ;;  %8096 = vmatmul.bf16.gmra.mxu0 %v10542_v28 }
 0x6bd   : > { %v7001_v38 = vpop.f32.mrf.mxu2 }
 0x6be   : > { %v7118_v40 = vrot.slane %v7001_v38, 1  ;;  %v7628_v54 = vpop.f32.mrf.mxu3 }
 0x6bf   : > { %v6665_v26 = vpop.f32.mrf.mxu1  ;;  %v7745_v20 = vrot.slane %v7628_v54, 7 }
 0x6c0   : > { %v7209_v59 = vsel %vm1502_vm1, %v7117_v36, %v7118_v40  ;;  %v6829_v35 = vadd.f32 %v6665_v26, %v12195_v44  ;;  %v8059_v52 = vpop.f32.mrf.mxu0  ;;  %v10918_v36 = vld [vmem:[#allocation3 + $0x5c] sm:$0xff] }
 0x6c1   : > { %v7261_v6 = vadd.f32 %v7209_v59, %v6827_v16  ;;  %v10577_v16 = vld [vmem:[#allocation10 + $0x218] sm:$0xff] }
 0x6c2   : > { %8390 = vmatpush.bf16.msra.mxu1 %v10577_v16 }
 0x6c3   : > { %v7888_v32 = vadd.f32 %v7837_v29, %v7261_v6 }
 0x6c5   : > { %v12458_v50 = vadd.f32 %v8059_v52, %v7888_v32  ;;  %v7003_v7 = vpop.f32.mrf.mxu2 }
 0x6c6   : > { %v7630_v34 = vpop.f32.mrf.mxu3  ;;  %v7119_v1 = vrot.slane %v7003_v7, 1 }
 0x6c7   : > { %v7746_v45 = vrot.slane %v7630_v34, 7  ;;  %v6668_v21 = vpop.f32.mrf.mxu1 }
 0x6c8   : > { %v6830_v28 = vadd.f32 %v6668_v21, %v12203_v42  ;;  %v8062_v17 = vpop.f32.mrf.mxu0  ;;  %v10919_v21 = vld [vmem:[#allocation3 + $0x64] sm:$0xff] }
 0x6c9   : > { %v7835_v8 = vsel %vm825_vm0, %v7745_v20, %v7746_v45  ;;  %v10545_v20 = vld [vmem:[#allocation3 + $0x70] sm:$0xff] }
 0x6ca   : > { %6707 = vmatmul.bf16.gmra.mxu1 %v10918_v36  ;;  %7045 = vmatmul.bf16.gmra.mxu2 %v10918_v36 }
 0x6cb   : > { %7672 = vmatmul.bf16.gmra.mxu3 %v10544_v47  ;;  %8101 = vmatmul.bf16.gmra.mxu0 %v10543_v43 }
 0x6cd   : > { %v7006_v44 = vpop.f32.mrf.mxu2 }
 0x6ce   : > { %v7120_v39 = vrot.slane %v7006_v44, 1  ;;  %v7633_v10 = vpop.f32.mrf.mxu3 }
 0x6cf   : > { %v7747_v25 = vrot.slane %v7633_v10, 7  ;;  %v6670_v14 = vpop.f32.mrf.mxu1 }
 0x6d0   : > { %v7207_v42 = vsel %vm1502_vm1, %v7119_v1, %v7120_v39  ;;  %v8064_v29 = vpop.f32.mrf.mxu0 }
 0x6d1   : > { %v7263_v30 = vadd.f32 %v7207_v42, %v6829_v35  ;;  %v7834_v38 = vsel %vm825_vm0, %v7746_v45, %v7747_v25 }
 0x6d3   : > { %v7890_v40 = vadd.f32 %v7835_v8, %v7263_v30 }
 0x6d5   : > { %v12467_v54 = vadd.f32 %v8064_v29, %v7890_v40  ;;  %v7008_v43 = vpop.f32.mrf.mxu2  ;;  %v10546_v40 = vld [vmem:[#allocation3 + $0x78] sm:$0xff] }
 0x6d6   : > { %v7121_v26 = vrot.slane %v7008_v43, 1  ;;  %v7635_v59 = vpop.f32.mrf.mxu3 }
 0x6d7   : > { %v6673_v52 = vpop.f32.mrf.mxu1  ;;  %v7748_v36 = vrot.slane %v7635_v59, 7 }
 0x6d8   : > { %v6832_v6 = vadd.f32 %v6673_v52, %v12211_v12  ;;  %v7206_v32 = vsel %vm1502_vm1, %v7120_v39, %v7121_v26  ;;  %v8067_v7 = vpop.f32.mrf.mxu0 }
 0x6d9   : > { %v7264_v34 = vadd.f32 %v7206_v32, %v6830_v28 }
 0x6da   : > { %6712 = vmatmul.bf16.gmra.mxu1 %v10919_v21  ;;  %7050 = vmatmul.bf16.gmra.mxu2 %v10919_v21 }
 0x6db   : > { %v7891_v35 = vadd.f32 %v7834_v38, %v7264_v34  ;;  %7677 = vmatmul.bf16.gmra.mxu3 %v10545_v20  ;;  %8106 = vmatmul.bf16.gmra.mxu0 %v10544_v47 }
 0x6dd   : > { %v12472_v45 = vadd.f32 %v8067_v7, %v7891_v35  ;;  %v7011_v17 = vpop.f32.mrf.mxu2 }
 0x6de   : > { %v7638_v8 = vpop.f32.mrf.mxu3  ;;  %v7122_v10 = vrot.slane %v7011_v17, 1 }
 0x6df   : > { %v7749_v44 = vrot.slane %v7638_v8, 7  ;;  %v6675_v16 = vpop.f32.mrf.mxu1 }
 0x6e0   : > { %v6833_v12 = vadd.f32 %v6675_v16, %v12219_v61  ;;  %v8069_v1 = vpop.f32.mrf.mxu0  ;;  %v10920_v61 = vld [vmem:[#allocation3 + $0x6c] sm:$0xff] }
 0x6e1   : > { %v7832_v28 = vsel %vm825_vm0, %v7748_v36, %v7749_v44 }
 0x6e5   : > { %v7013_v39 = vpop.f32.mrf.mxu2 }
 0x6e6   : > { %v7123_v25 = vrot.slane %v7013_v39, 1  ;;  %v7640_v14 = vpop.f32.mrf.mxu3 }
 0x6e7   : > { %v7750_v42 = vrot.slane %v7640_v14, 7  ;;  %v6678_v29 = vpop.f32.mrf.mxu1  ;;  %v10547_v14 = vld [vmem:[#allocation3 + $0x80] sm:$0xff] }
 0x6e8   : > { %v7204_v47 = vsel %vm1502_vm1, %v7122_v10, %v7123_v25  ;;  %v8072_v30 = vpop.f32.mrf.mxu0 }
 0x6e9   : > { %v7266_v38 = vadd.f32 %v7204_v47, %v6832_v6  ;;  %v7831_v43 = vsel %vm825_vm0, %v7749_v44, %v7750_v42 }
 0x6ea   : > { %6717 = vmatmul.bf16.gmra.mxu1 %v10920_v61  ;;  %7055 = vmatmul.bf16.gmra.mxu2 %v10920_v61 }
 0x6eb   : > { %v7893_v26 = vadd.f32 %v7832_v28, %v7266_v38  ;;  %7682 = vmatmul.bf16.gmra.mxu3 %v10546_v40  ;;  %8111 = vmatmul.bf16.gmra.mxu0 %v10545_v20 }
 0x6ed   : > { %v12481_v59 = vadd.f32 %v8072_v30, %v7893_v26  ;;  %v7016_v52 = vpop.f32.mrf.mxu2 }
 0x6ee   : > { %v7124_v32 = vrot.slane %v7016_v52, 1  ;;  %v7643_v7 = vpop.f32.mrf.mxu3 }
 0x6ef   : > { %v6680_v34 = vpop.f32.mrf.mxu1  ;;  %v7751_v1 = vrot.slane %v7643_v7, 7 }
 0x6f0   : > { %v7203_v21 = vsel %vm1502_vm1, %v7123_v25, %v7124_v32  ;;  %v6835_v6 = vadd.f32 %v6680_v34, %v12227_v53  ;;  %v8074_v35 = vpop.f32.mrf.mxu0  ;;  %v10921_v25 = vld [vmem:[#allocation3 + $0x74] sm:$0xff] }
 0x6f1   : > { %v7267_v17 = vadd.f32 %v7203_v21, %v6833_v12  ;;  %v10576_v12 = vld [vmem:[#allocation10 + $0x210] sm:$0xff] }
 0x6f2   : > { %8391 = vmatpush.bf16.msra.mxu1 %v10576_v12 }
 0x6f3   : > { %v7894_v8 = vadd.f32 %v7831_v43, %v7267_v17 }
 0x6f5   : > { %v12486_v36 = vadd.f32 %v8074_v35, %v7894_v8  ;;  %v7018_v44 = vpop.f32.mrf.mxu2 }
 0x6f6   : > { %v7645_v16 = vpop.f32.mrf.mxu3  ;;  %v7125_v29 = vrot.slane %v7018_v44, 1 }
 0x6f7   : > { %v7752_v20 = vrot.slane %v7645_v16, 7  ;;  %v6683_v28 = vpop.f32.mrf.mxu1 }
 0x6f8   : > { %v6836_v39 = vadd.f32 %v6683_v28, %v12235_v5  ;;  %v8077_v10 = vpop.f32.mrf.mxu0  ;;  %v10922_v28 = vld [vmem:[#allocation3 + $0x7c] sm:$0xff] }
 0x6f9   : > { %v7829_v42 = vsel %vm825_vm0, %v7751_v1, %v7752_v20  ;;  %v10548_v1 = vld [vmem:[#allocation3 + $0x88] sm:$0xff] }
 0x6fa   : > { %6722 = vmatmul.bf16.gmra.mxu1 %v10921_v25  ;;  %7060 = vmatmul.bf16.gmra.mxu2 %v10921_v25 }
 0x6fb   : > { %7687 = vmatmul.bf16.gmra.mxu3 %v10547_v14  ;;  %8116 = vmatmul.bf16.gmra.mxu0 %v10546_v40 }
 0x6fd   : > { %v7021_v53 = vpop.f32.mrf.mxu2 }
 0x6fe   : > { %v7126_v47 = vrot.slane %v7021_v53, 1  ;;  %v7648_v30 = vpop.f32.mrf.mxu3 }
 0x6ff   : > { %v7753_v38 = vrot.slane %v7648_v30, 7  ;;  %v6685_v43 = vpop.f32.mrf.mxu1 }
 0x700   : > { %v7201_v5 = vsel %vm1502_vm1, %v7125_v29, %v7126_v47  ;;  %v8079_v61 = vpop.f32.mrf.mxu0 }
 0x701   : > { %v7269_v26 = vadd.f32 %v7201_v5, %v6835_v6  ;;  %v7828_v52 = vsel %vm825_vm0, %v7752_v20, %v7753_v38 }
 0x703   : > { %v7896_v32 = vadd.f32 %v7829_v42, %v7269_v26 }
 0x705   : > { %v12495_v7 = vadd.f32 %v8079_v61, %v7896_v32  ;;  %v7023_v40 = vpop.f32.mrf.mxu2  ;;  %v12507_v32 = vld [vmem:[#allocation3 + $0x90] sm:$0xff] }
 0x706   : > { %v7127_v34 = vrot.slane %v7023_v40, 1  ;;  %v7650_v21 = vpop.f32.mrf.mxu3  ;;  %v10923_v40 = vld [vmem:[#allocation3 + $0x84] sm:$0xff] }
 0x707   : > { %v6688_v35 = vpop.f32.mrf.mxu1  ;;  %v7754_v25 = vrot.slane %v7650_v21, 7 }
 0x708   : > { %v6838_v17 = vadd.f32 %v6688_v35, %v12243_v19  ;;  %v7200_v8 = vsel %vm1502_vm1, %v7126_v47, %v7127_v34  ;;  %v8082_v44 = vpop.f32.mrf.mxu0 }
 0x709   : > { %v7270_v16 = vadd.f32 %v7200_v8, %v6836_v39 }
 0x70a   : > { %6727 = vmatmul.bf16.gmra.mxu1 %v10922_v28  ;;  %7065 = vmatmul.bf16.gmra.mxu2 %v10922_v28 }
 0x70b   : > { %v7897_v6 = vadd.f32 %v7828_v52, %v7270_v16  ;;  %7692 = vmatmul.bf16.gmra.mxu3 %v10548_v1  ;;  %8121 = vmatmul.bf16.gmra.mxu0 %v10547_v14 }
 0x70d   : > { %v12500_v20 = vadd.f32 %v8082_v44, %v7897_v6  ;;  %v7026_v10 = vpop.f32.mrf.mxu2 }
 0x70e   : > { %v7653_v42 = vpop.f32.mrf.mxu3  ;;  %v7128_v30 = vrot.slane %v7026_v10, 1 }
 0x70f   : > { %v7755_v53 = vrot.slane %v7653_v42, 7  ;;  %v6690_v12 = vpop.f32.mrf.mxu1 }
 0x710   : > { %v6839_v19 = vadd.f32 %v6690_v12, %v12251_v11  ;;  %v8084_v29 = vpop.f32.mrf.mxu0 }
 0x711   : > { %v7826_v39 = vsel %vm825_vm0, %v7754_v25, %v7755_v53 }
 0x715   : > { %v7028_v47 = vpop.f32.mrf.mxu2 }
 0x716   : > { %v7129_v38 = vrot.slane %v7028_v47, 1  ;;  %v7655_v43 = vpop.f32.mrf.mxu3 }
 0x717   : > { %v7756_v5 = vrot.slane %v7655_v43, 7  ;;  %v6693_v61 = vpop.f32.mrf.mxu1  ;;  %v12520_v43 = vld [vmem:[#allocation3 + $0x98] sm:$0xff] }
 0x718   : > { %v7198_v14 = vsel %vm1502_vm1, %v7128_v30, %v7129_v38  ;;  %v8087_v26 = vpop.f32.mrf.mxu0 }
 0x719   : > { %v7272_v52 = vadd.f32 %v7198_v14, %v6838_v17  ;;  %v7825_v11 = vsel %vm825_vm0, %v7755_v53, %v7756_v5  ;;  %v10924_v5 = vld [vmem:[#allocation3 + $0x8c] sm:$0xff] }
 0x71a   : > { %6732 = vmatmul.bf16.gmra.mxu1 %v10923_v40  ;;  %7070 = vmatmul.bf16.gmra.mxu2 %v10923_v40 }
 0x71b   : > { %v7899_v34 = vadd.f32 %v7826_v39, %v7272_v52  ;;  %7697 = vmatmul.bf16.gmra.mxu3 %v12507_v32  ;;  %8126 = vmatmul.bf16.gmra.mxu0 %v10548_v1 }
 0x71d   : > { %v12512_v21 = vadd.f32 %v8087_v26, %v7899_v34  ;;  %v7031_v35 = vpop.f32.mrf.mxu2 }
 0x71e   : > { %v7130_v8 = vrot.slane %v7031_v35, 1  ;;  %v7658_v44 = vpop.f32.mrf.mxu3 }
 0x71f   : > { %v6695_v16 = vpop.f32.mrf.mxu1  ;;  %v7757_v29 = vrot.slane %v7658_v44, 7 }
 0x720   : > { %v7197_v17 = vsel %vm1502_vm1, %v7129_v38, %v7130_v8  ;;  %v6841_v28 = vadd.f32 %v6695_v16, %v12259_v24  ;;  %v8089_v6 = vpop.f32.mrf.mxu0 }
 0x721   : > { %v7273_v10 = vadd.f32 %v7197_v17, %v6839_v19  ;;  %v10575_v19 = vld [vmem:[#allocation10 + $0x208] sm:$0xff] }
 0x722   : > { %8392 = vmatpush.bf16.msra.mxu1 %v10575_v19 }
 0x723   : > { %v7900_v42 = vadd.f32 %v7825_v11, %v7273_v10 }
 0x725   : > { %v12517_v25 = vadd.f32 %v8089_v6, %v7900_v42  ;;  %v7033_v53 = vpop.f32.mrf.mxu2 }
 0x726   : > { %v7660_v12 = vpop.f32.mrf.mxu3  ;;  %v7131_v61 = vrot.slane %v7033_v53, 1 }
 0x727   : > { %v7758_v1 = vrot.slane %v7660_v12, 7  ;;  %v6698_v39 = vpop.f32.mrf.mxu1 }
 0x728   : > { %v6842_v47 = vadd.f32 %v6698_v39, %v12267_v0  ;;  %v8092_v30 = vpop.f32.mrf.mxu0  ;;  %v12535_v39 = vld [vmem:[#allocation3 + $0xa0] sm:$0xff] }
 0x729   : > { %v7823_v38 = vsel %vm825_vm0, %v7757_v29, %v7758_v1 }
 0x72a   : > { %6737 = vmatmul.bf16.gmra.mxu1 %v10924_v5  ;;  %7075 = vmatmul.bf16.gmra.mxu2 %v10924_v5 }
 0x72b   : > { %7702 = vmatmul.bf16.gmra.mxu3 %v12520_v43  ;;  %8131 = vmatmul.bf16.gmra.mxu0 %v12507_v32 }
 0x72d   : > { %v7036_v24 = vpop.f32.mrf.mxu2 }
 0x72e   : > { %v7132_v14 = vrot.slane %v7036_v24, 1  ;;  %v7663_v26 = vpop.f32.mrf.mxu3 }
 0x72f   : > { %v7759_v52 = vrot.slane %v7663_v26, 7  ;;  %v6700_v0 = vpop.f32.mrf.mxu1 }
 0x730   : > { %v7195_v11 = vsel %vm1502_vm1, %v7131_v61, %v7132_v14  ;;  %v8094_v40 = vpop.f32.mrf.mxu0 }
 0x731   : > { %v7275_v34 = vadd.f32 %v7195_v11, %v6841_v28  ;;  %v7822_v35 = vsel %vm825_vm0, %v7758_v1, %v7759_v52  ;;  %v10925_v28 = vld [vmem:[#allocation3 + $0x94] sm:$0xff] }
 0x733   : > { %v7902_v8 = vadd.f32 %v7823_v38, %v7275_v34 }
 0x735   : > { %v12530_v44 = vadd.f32 %v8094_v40, %v7902_v8  ;;  %v7038_v16 = vpop.f32.mrf.mxu2 }
 0x736   : > { %v7133_v17 = vrot.slane %v7038_v16, 1  ;;  %v7665_v6 = vpop.f32.mrf.mxu3 }
 0x737   : > { %v6703_v10 = vpop.f32.mrf.mxu1 }
 0x738   : > { %v6844_v42 = vadd.f32 %v6703_v10, %v12275_v9  ;;  %v7194_v53 = vsel %vm1502_vm1, %v7132_v14, %v7133_v17  ;;  %v8097_v12 = vpop.f32.mrf.mxu0  ;;  %v7760_v9 = vrot.slane %v7665_v6, 7  ;;  %v12546_v17 = vld [vmem:[#allocation3 + $0xa8] sm:$0xff]  ;;  %v10926_v6 = vld [vmem:[#allocation3 + $0x9c] sm:$0xff] }
 0x739   : > { %v7276_v29 = vadd.f32 %v7194_v53, %v6842_v47 }
 0x73a   : > { %6742 = vmatmul.bf16.gmra.mxu1 %v10925_v28  ;;  %7080 = vmatmul.bf16.gmra.mxu2 %v10925_v28 }
 0x73b   : > { %v7903_v1 = vadd.f32 %v7822_v35, %v7276_v29  ;;  %7707 = vmatmul.bf16.gmra.mxu3 %v12535_v39  ;;  %8136 = vmatmul.bf16.gmra.mxu0 %v12520_v43 }
 0x73d   : > { %v12539_v30 = vadd.f32 %v8097_v12, %v7903_v1  ;;  %v7041_v38 = vpop.f32.mrf.mxu2 }
 0x73e   : > { %v7668_v5 = vpop.f32.mrf.mxu3  ;;  %v7134_v52 = vrot.slane %v7041_v38, 1 }
 0x73f   : > { %v7761_v24 = vrot.slane %v7668_v5, 7  ;;  %v6705_v19 = vpop.f32.mrf.mxu1 }
 0x740   : > { %v6845_v61 = vadd.f32 %v6705_v19, %v12283_v37  ;;  %v8099_v47 = vpop.f32.mrf.mxu0 }
 0x741   : > { %v7820_v14 = vsel %vm825_vm0, %v7760_v9, %v7761_v24 }
 0x745   : > { %v7043_v26 = vpop.f32.mrf.mxu2 }
 0x746   : > { %v7135_v0 = vrot.slane %v7043_v26, 1  ;;  %v7670_v11 = vpop.f32.mrf.mxu3 }
 0x747   : > { %v7762_v40 = vrot.slane %v7670_v11, 7  ;;  %v6708_v34 = vpop.f32.mrf.mxu1 }
 0x748   : > { %v7192_v35 = vsel %vm1502_vm1, %v7134_v52, %v7135_v0  ;;  %v8102_v8 = vpop.f32.mrf.mxu0 }
 0x749   : > { %v7278_v16 = vadd.f32 %v7192_v35, %v6844_v42  ;;  %v7819_v37 = vsel %vm825_vm0, %v7761_v24, %v7762_v40  ;;  %v12560_v35 = vld [vmem:[#allocation3 + $0xb0] sm:$0xff] }
 0x74a   : > { %6747 = vmatmul.bf16.gmra.mxu1 %v10926_v6  ;;  %7085 = vmatmul.bf16.gmra.mxu2 %v10926_v6 }
 0x74b   : > { %v7905_v10 = vadd.f32 %v7820_v14, %v7278_v16  ;;  %7712 = vmatmul.bf16.gmra.mxu3 %v12546_v17  ;;  %8141 = vmatmul.bf16.gmra.mxu0 %v12535_v39 }
 0x74d   : > { %v12552_v53 = vadd.f32 %v8102_v8, %v7905_v10  ;;  %v7046_v12 = vpop.f32.mrf.mxu2  ;;  %v10927_v8 = vld [vmem:[#allocation3 + $0xa4] sm:$0xff] }
 0x74e   : > { %v7136_v29 = vrot.slane %v7046_v12, 1  ;;  %v7673_v28 = vpop.f32.mrf.mxu3 }
 0x74f   : > { %v6710_v1 = vpop.f32.mrf.mxu1  ;;  %v7763_v26 = vrot.slane %v7673_v28, 7 }
 0x750   : > { %v7191_v42 = vsel %vm1502_vm1, %v7135_v0, %v7136_v29  ;;  %v6847_v38 = vadd.f32 %v6710_v1, %v12291_v4  ;;  %v8104_v5 = vpop.f32.mrf.mxu0 }
 0x751   : > { %v7279_v9 = vadd.f32 %v7191_v42, %v6845_v61  ;;  %v10574_v61 = vld [vmem:[#allocation10 + $0x200] sm:$0xff] }
 0x752   : > { %8393 = vmatpush.bf16.msra.mxu1 %v10574_v61 }
 0x753   : > { %v7906_v24 = vadd.f32 %v7819_v37, %v7279_v9 }
 0x755   : > { %v12557_v19 = vadd.f32 %v8104_v5, %v7906_v24  ;;  %v7048_v47 = vpop.f32.mrf.mxu2 }
 0x756   : > { %v7675_v14 = vpop.f32.mrf.mxu3  ;;  %v7137_v16 = vrot.slane %v7048_v47, 1 }
 0x757   : > { %v7764_v52 = vrot.slane %v7675_v14, 7  ;;  %v6713_v11 = vpop.f32.mrf.mxu1 }
 0x758   : > { %v6848_v40 = vadd.f32 %v6713_v11, %v12299_v18  ;;  %v8107_v34 = vpop.f32.mrf.mxu0 }
 0x759   : > { %v7817_v0 = vsel %vm825_vm0, %v7763_v26, %v7764_v52 }
 0x75a   : > { %6752 = vmatmul.bf16.gmra.mxu1 %v10927_v8  ;;  %7090 = vmatmul.bf16.gmra.mxu2 %v10927_v8 }
 0x75b   : > { %7717 = vmatmul.bf16.gmra.mxu3 %v12560_v35  ;;  %8146 = vmatmul.bf16.gmra.mxu0 %v12546_v17 }
 0x75d   : > { %v7051_v4 = vpop.f32.mrf.mxu2 }
 0x75e   : > { %v7138_v37 = vrot.slane %v7051_v4, 1  ;;  %v7678_v6 = vpop.f32.mrf.mxu3  ;;  %v12575_v4 = vld [vmem:[#allocation3 + $0xb8] sm:$0xff] }
 0x75f   : > { %v7765_v10 = vrot.slane %v7678_v6, 7  ;;  %v6715_v18 = vpop.f32.mrf.mxu1 }
 0x760   : > { %v7189_v12 = vsel %vm1502_vm1, %v7137_v16, %v7138_v37  ;;  %v8109_v29 = vpop.f32.mrf.mxu0 }
 0x761   : > { %v7281_v28 = vadd.f32 %v7189_v12, %v6847_v38  ;;  %v7816_v1 = vsel %vm825_vm0, %v7764_v52, %v7765_v10  ;;  %v10928_v38 = vld [vmem:[#allocation3 + $0xac] sm:$0xff] }
 0x763   : > { %v7908_v42 = vadd.f32 %v7817_v0, %v7281_v28 }
 0x765   : > { %v12570_v5 = vadd.f32 %v8109_v29, %v7908_v42  ;;  %v7053_v9 = vpop.f32.mrf.mxu2 }
 0x766   : > { %v7139_v24 = vrot.slane %v7053_v9, 1  ;;  %v7680_v14 = vpop.f32.mrf.mxu3 }
 0x767   : > { %v6718_v47 = vpop.f32.mrf.mxu1 }
 0x768   : > { %v6850_v26 = vadd.f32 %v6718_v47, %v12307_v51  ;;  %v7188_v11 = vsel %vm1502_vm1, %v7138_v37, %v7139_v24  ;;  %v8112_v34 = vpop.f32.mrf.mxu0  ;;  %v7766_v51 = vrot.slane %v7680_v14, 7  ;;  %v12586_v14 = vld [vmem:[#allocation3 + $0xc0] sm:$0xff] }
 0x769   : > { %v7282_v8 = vadd.f32 %v7188_v11, %v6848_v40 }
 0x76a   : > { %6757 = vmatmul.bf16.gmra.mxu1 %v10928_v38  ;;  %7095 = vmatmul.bf16.gmra.mxu2 %v10928_v38 }
 0x76b   : > { %v7909_v52 = vadd.f32 %v7816_v1, %v7282_v8  ;;  %7722 = vmatmul.bf16.gmra.mxu3 %v12575_v4  ;;  %8151 = vmatmul.bf16.gmra.mxu0 %v12560_v35 }
 0x76d   : > { %v12579_v0 = vadd.f32 %v8112_v34, %v7909_v52  ;;  %v7056_v61 = vpop.f32.mrf.mxu2  ;;  %v10929_v34 = vld [vmem:[#allocation3 + $0xb4] sm:$0xff] }
 0x76e   : > { %v7683_v16 = vpop.f32.mrf.mxu3  ;;  %v7140_v29 = vrot.slane %v7056_v61, 1 }
 0x76f   : > { %v7767_v6 = vrot.slane %v7683_v16, 7  ;;  %v6720_v10 = vpop.f32.mrf.mxu1 }
 0x770   : > { %v6851_v37 = vadd.f32 %v6720_v10, %v12315_v15  ;;  %v8114_v40 = vpop.f32.mrf.mxu0 }
 0x771   : > { %v7814_v18 = vsel %vm825_vm0, %v7766_v51, %v7767_v6 }
 0x775   : > { %v7058_v12 = vpop.f32.mrf.mxu2 }
 0x776   : > { %v7141_v28 = vrot.slane %v7058_v12, 1  ;;  %v7685_v1 = vpop.f32.mrf.mxu3 }
 0x777   : > { %v7768_v42 = vrot.slane %v7685_v1, 7  ;;  %v6723_v9 = vpop.f32.mrf.mxu1 }
 0x778   : > { %v7186_v24 = vsel %vm1502_vm1, %v7140_v29, %v7141_v28  ;;  %v8117_v47 = vpop.f32.mrf.mxu0 }
 0x779   : > { %v7284_v11 = vadd.f32 %v7186_v24, %v6850_v26  ;;  %v7813_v15 = vsel %vm825_vm0, %v7767_v6, %v7768_v42 }
 0x77a   : > { %6762 = vmatmul.bf16.gmra.mxu1 %v10929_v34  ;;  %7100 = vmatmul.bf16.gmra.mxu2 %v10929_v34 }
 0x77b   : > { %v7911_v8 = vadd.f32 %v7814_v18, %v7284_v11  ;;  %7727 = vmatmul.bf16.gmra.mxu3 %v12586_v14  ;;  %8156 = vmatmul.bf16.gmra.mxu0 %v12575_v4 }
 0x77d   : > { %v12592_v38 = vadd.f32 %v8117_v47, %v7911_v8  ;;  %v7061_v52 = vpop.f32.mrf.mxu2  ;;  %v12599_v47 = vld [vmem:[#allocation3 + $0xc8] sm:$0xff]  ;;  %v10930_v8 = vld [vmem:[#allocation3 + $0xbc] sm:$0xff] }
 0x77e   : > { %v7142_v61 = vrot.slane %v7061_v52, 1  ;;  %v7688_v16 = vpop.f32.mrf.mxu3 }
 0x77f   : > { %v6725_v51 = vpop.f32.mrf.mxu1  ;;  %v7769_v42 = vrot.slane %v7688_v16, 7 }
 0x780   : > { %v7185_v26 = vsel %vm1502_vm1, %v7141_v28, %v7142_v61  ;;  %v6853_v10 = vadd.f32 %v6725_v51, %v12323_v58  ;;  %v8119_v6 = vpop.f32.mrf.mxu0 }
 0x781   : > { %v7285_v40 = vadd.f32 %v7185_v26, %v6851_v37 }
 0x783   : > { %v7912_v12 = vadd.f32 %v7813_v15, %v7285_v40 }
 0x785   : > { %v12597_v29 = vadd.f32 %v8119_v6, %v7912_v12  ;;  %v7063_v18 = vpop.f32.mrf.mxu2 }
 0x786   : > { %v7690_v1 = vpop.f32.mrf.mxu3  ;;  %v7143_v37 = vrot.slane %v7063_v18, 1  ;;  %v12612_v18 = vld [vmem:[#allocation3 + $0xd0] sm:$0xff] }
 0x787   : > { %v7770_v9 = vrot.slane %v7690_v1, 7  ;;  %v6728_v24 = vpop.f32.mrf.mxu1 }
 0x788   : > { %v6854_v11 = vadd.f32 %v6728_v24, %v12331_v23  ;;  %v8122_v34 = vpop.f32.mrf.mxu0 }
 0x789   : > { %v7811_v28 = vsel %vm825_vm0, %v7769_v42, %v7770_v9 }
 0x78a   : > { %6767 = vmatmul.bf16.gmra.mxu1 %v10930_v8  ;;  %7105 = vmatmul.bf16.gmra.mxu2 %v10930_v8 }
 0x78b   : > { %7732 = vmatmul.bf16.gmra.mxu3 %v12599_v47  ;;  %8161 = vmatmul.bf16.gmra.mxu0 %v12586_v14 }
 0x78d   : > { %v7066_v58 = vpop.f32.mrf.mxu2 }
 0x78e   : > { %v7144_v15 = vrot.slane %v7066_v58, 1  ;;  %v7693_v52 = vpop.f32.mrf.mxu3 }
 0x78f   : > { %v7771_v61 = vrot.slane %v7693_v52, 7  ;;  %v6730_v16 = vpop.f32.mrf.mxu1 }
 0x790   : > { %v7183_v23 = vsel %vm1502_vm1, %v7143_v37, %v7144_v15  ;;  %v8124_v51 = vpop.f32.mrf.mxu0 }
 0x791   : > { %v7287_v26 = vadd.f32 %v7183_v23, %v6853_v10  ;;  %v7810_v6 = vsel %vm825_vm0, %v7770_v9, %v7771_v61  ;;  %v10931_v10 = vld [vmem:[#allocation3 + $0xc4] sm:$0xff] }
 0x793   : > { %v7914_v40 = vadd.f32 %v7811_v28, %v7287_v26 }
 0x795   : > { %v12610_v12 = vadd.f32 %v8124_v51, %v7914_v40  ;;  %v7068_v1 = vpop.f32.mrf.mxu2 }
 0x796   : > { %v7145_v42 = vrot.slane %v7068_v1, 1  ;;  %v7695_v24 = vpop.f32.mrf.mxu3 }
 0x797   : > { %v6733_v34 = vpop.f32.mrf.mxu1  ;;  %v7772_v23 = vrot.slane %v7695_v24, 7 }
 0x798   : > { %v7182_v8 = vsel %vm1502_vm1, %v7144_v15, %v7145_v42  ;;  %v6856_v58 = vadd.f32 %v6733_v34, %v12339_v27  ;;  %v8127_v37 = vpop.f32.mrf.mxu0 }
 0x799   : > { %v7288_v52 = vadd.f32 %v7182_v8, %v6854_v11 }
 0x79a   : > { %6772 = vmatmul.bf16.gmra.mxu1 %v10931_v10  ;;  %7110 = vmatmul.bf16.gmra.mxu2 %v10931_v10 }
 0x79b   : > { %v7915_v9 = vadd.f32 %v7810_v6, %v7288_v52  ;;  %7737 = vmatmul.bf16.gmra.mxu3 %v12612_v18  ;;  %8166 = vmatmul.bf16.gmra.mxu0 %v12599_v47 }
 0x79d   : > { %v12619_v28 = vadd.f32 %v8127_v37, %v7915_v9  ;;  %v7071_v61 = vpop.f32.mrf.mxu2  ;;  %v10932_v9 = vld [vmem:[#allocation3 + $0x18] sm:$0xff] }
 0x79e   : > { %v7698_v16 = vpop.f32.mrf.mxu3  ;;  %v7146_v1 = vrot.slane %v7071_v61, 1 }
 0x79f   : > { %v7773_v51 = vrot.slane %v7698_v16, 7  ;;  %v6735_v26 = vpop.f32.mrf.mxu1 }
 0x7a0   : > { %v6857_v15 = vadd.f32 %v6735_v26, %v12347_v31  ;;  %v8129_v27 = vpop.f32.mrf.mxu0 }
 0x7a1   : > { %v7808_v11 = vsel %vm825_vm0, %v7772_v23, %v7773_v51 }
 0x7a5   : > { %v7073_v40 = vpop.f32.mrf.mxu2 }
 0x7a6   : > { %v7147_v6 = vrot.slane %v7073_v40, 1  ;;  %v7700_v42 = vpop.f32.mrf.mxu3 }
 0x7a7   : > { %v7774_v34 = vrot.slane %v7700_v42, 7  ;;  %v6738_v8 = vpop.f32.mrf.mxu1 }
 0x7a8   : > { %v7180_v37 = vsel %vm1502_vm1, %v7146_v1, %v7147_v6  ;;  %v8132_v52 = vpop.f32.mrf.mxu0 }
 0x7a9   : > { %v7290_v10 = vadd.f32 %v7180_v37, %v6856_v58  ;;  %v7807_v24 = vsel %vm825_vm0, %v7773_v51, %v7774_v34 }
 0x7aa   : > { %8394 = vmatmul.bf16.vlgmr.msra.gmra.mxu1 %v10932_v9 }
 0x7ab   : > { %v7917_v31 = vadd.f32 %v7808_v11, %v7290_v10  ;;  %8171 = vmatmul.bf16.gmra.mxu0 %v12612_v18 }
 0x7ad   : > { %v12629_v16 = vadd.f32 %v8132_v52, %v7917_v31  ;;  %v7076_v61 = vpop.f32.mrf.mxu2 }
 0x7ae   : > { %v7148_v23 = vrot.slane %v7076_v61, 1  ;;  %v7703_v26 = vpop.f32.mrf.mxu3 }
 0x7af   : > { %v6740_v27 = vpop.f32.mrf.mxu1  ;;  %v7775_v37 = vrot.slane %v7703_v26, 7 }
 0x7b0   : > { %v7179_v40 = vsel %vm1502_vm1, %v7147_v6, %v7148_v23  ;;  %v6859_v1 = vadd.f32 %v6740_v27, %v12355_v13  ;;  %v8134_v58 = vpop.f32.mrf.mxu0 }
 0x7b1   : > { %v7291_v42 = vadd.f32 %v7179_v40, %v6857_v15 }
 0x7b3   : > { %v7918_v8 = vadd.f32 %v7807_v24, %v7291_v42 }
 0x7b5   : > { %v12634_v51 = vadd.f32 %v8134_v58, %v7918_v8  ;;  %v7078_v34 = vpop.f32.mrf.mxu2 }
 0x7b6   : > { %v7705_v11 = vpop.f32.mrf.mxu3  ;;  %v7149_v13 = vrot.slane %v7078_v34, 1 }
 0x7b7   : > { %v7776_v10 = vrot.slane %v7705_v11, 7  ;;  %v6743_v52 = vpop.f32.mrf.mxu1 }
 0x7b8   : > { %v6860_v9 = vadd.f32 %v6743_v52, %v12363_v60  ;;  %v8137_v31 = vpop.f32.mrf.mxu0 }
 0x7b9   : > { %v7805_v61 = vsel %vm825_vm0, %v7775_v37, %v7776_v10 }
 0x7ba   : > { %8399 = vmatmul.bf16.gmra.mxu1 %v10933_v33 }
 0x7bd   : > { %v7081_v6 = vpop.f32.mrf.mxu2 }
 0x7be   : > { %v7150_v23 = vrot.slane %v7081_v6, 1  ;;  %v7708_v15 = vpop.f32.mrf.mxu3 }
 0x7bf   : > { %v7777_v24 = vrot.slane %v7708_v15, 7  ;;  %v6745_v27 = vpop.f32.mrf.mxu1 }
 0x7c0   : > { %v7177_v40 = vsel %vm1502_vm1, %v7149_v13, %v7150_v23  ;;  %v8139_v26 = vpop.f32.mrf.mxu0  ;;  %v10934_v13 = vld [vmem:[#allocation3 + $0x28] sm:$0xff] }
 0x7c1   : > { %v7293_v58 = vadd.f32 %v7177_v40, %v6859_v1  ;;  %v7804_v60 = vsel %vm825_vm0, %v7776_v10, %v7777_v24 }
 0x7c3   : > { %v7920_v42 = vadd.f32 %v7805_v61, %v7293_v58 }
 0x7c5   : > { %v12643_v8 = vadd.f32 %v8139_v26, %v7920_v42  ;;  %v7083_v11 = vpop.f32.mrf.mxu2 }
 0x7c6   : > { %v7151_v37 = vrot.slane %v7083_v11, 1  ;;  %v7710_v33 = vpop.f32.mrf.mxu3 }
 0x7c7   : > { %v6748_v52 = vpop.f32.mrf.mxu1  ;;  %v7778_v24 = vrot.slane %v7710_v33, 7 }
 0x7c8   : > { %v7176_v34 = vsel %vm1502_vm1, %v7150_v23, %v7151_v37  ;;  %v6862_v31 = vadd.f32 %v6748_v52, %v12371_v48  ;;  %v8142_v6 = vpop.f32.mrf.mxu0 }
 0x7c9   : > { %v7294_v15 = vadd.f32 %v7176_v34, %v6860_v9 }
 0x7ca   : > { %8404 = vmatmul.bf16.gmra.mxu1 %v10934_v13  ;;  %v10935_v13 = vld [vmem:[#allocation3 + $0x30] sm:$0xff] }
 0x7cb   : > { %v7921_v1 = vadd.f32 %v7804_v60, %v7294_v15 }
 0x7cd   : > { %v12648_v27 = vadd.f32 %v8142_v6, %v7921_v1  ;;  %v7086_v10 = vpop.f32.mrf.mxu2 }
 0x7ce   : > { %v7713_v61 = vpop.f32.mrf.mxu3  ;;  %v7152_v48 = vrot.slane %v7086_v10, 1 }
 0x7cf   : > { %v7779_v40 = vrot.slane %v7713_v61, 7  ;;  %v6750_v26 = vpop.f32.mrf.mxu1 }
 0x7d0   : > { %v6863_v58 = vadd.f32 %v6750_v26, %v12379_v41  ;;  %v8144_v42 = vpop.f32.mrf.mxu0 }
 0x7d1   : > { %v7802_v23 = vsel %vm825_vm0, %v7778_v24, %v7779_v40 }
 0x7d5   : > { %v7088_v11 = vpop.f32.mrf.mxu2 }
 0x7d6   : > { %v7153_v37 = vrot.slane %v7088_v11, 1  ;;  %v7715_v9 = vpop.f32.mrf.mxu3 }
 0x7d7   : > { %v7780_v52 = vrot.slane %v7715_v9, 7  ;;  %v6753_v34 = vpop.f32.mrf.mxu1 }
 0x7d8   : > { %v7174_v60 = vsel %vm1502_vm1, %v7152_v48, %v7153_v37  ;;  %v8147_v6 = vpop.f32.mrf.mxu0 }
 0x7d9   : > { %v7296_v15 = vadd.f32 %v7174_v60, %v6862_v31  ;;  %v7801_v33 = vsel %vm825_vm0, %v7779_v40, %v7780_v52 }
 0x7da   : > { %8409 = vmatmul.bf16.gmra.mxu1 %v10935_v13 }
 0x7db   : > { %v7923_v41 = vadd.f32 %v7802_v23, %v7296_v15 }
 0x7dd   : > { %v12657_v1 = vadd.f32 %v8147_v6, %v7923_v41  ;;  %v7091_v61 = vpop.f32.mrf.mxu2 }
 0x7de   : > { %v7154_v24 = vrot.slane %v7091_v61, 1  ;;  %v7718_v10 = vpop.f32.mrf.mxu3  ;;  %v10936_v61 = vld [vmem:[#allocation3 + $0x38] sm:$0xff] }
 0x7df   : > { %v6755_v26 = vpop.f32.mrf.mxu1  ;;  %v7781_v60 = vrot.slane %v7718_v10, 7 }
 0x7e0   : > { %v7173_v42 = vsel %vm1502_vm1, %v7153_v37, %v7154_v24  ;;  %v6865_v11 = vadd.f32 %v6755_v26, %v12387_v56  ;;  %v8149_v48 = vpop.f32.mrf.mxu0 }
 0x7e1   : > { %v7297_v9 = vadd.f32 %v7173_v42, %v6863_v58 }
 0x7e3   : > { %v7924_v31 = vadd.f32 %v7801_v33, %v7297_v9 }
 0x7e5   : > { %v12662_v34 = vadd.f32 %v8149_v48, %v7924_v31  ;;  %v7093_v40 = vpop.f32.mrf.mxu2 }
 0x7e6   : > { %v7720_v52 = vpop.f32.mrf.mxu3  ;;  %v7155_v56 = vrot.slane %v7093_v40, 1 }
 0x7e7   : > { %v7782_v23 = vrot.slane %v7720_v52, 7  ;;  %v6758_v6 = vpop.f32.mrf.mxu1 }
 0x7e8   : > { %v6866_v15 = vadd.f32 %v6758_v6, %v12395_v22  ;;  %v8152_v13 = vpop.f32.mrf.mxu0 }
 0x7e9   : > { %v7799_v41 = vsel %vm825_vm0, %v7781_v60, %v7782_v23 }
 0x7ea   : > { %8414 = vmatmul.bf16.gmra.mxu1 %v10936_v61 }
 0x7ed   : > { %v7096_v37 = vpop.f32.mrf.mxu2 }
 0x7ee   : > { %v7156_v24 = vrot.slane %v7096_v37, 1  ;;  %v7723_v58 = vpop.f32.mrf.mxu3 }
 0x7ef   : > { %v7783_v33 = vrot.slane %v7723_v58, 7  ;;  %v6760_v26 = vpop.f32.mrf.mxu1 }
 0x7f0   : > { %v7171_v42 = vsel %vm1502_vm1, %v7155_v56, %v7156_v24  ;;  %v8154_v10 = vpop.f32.mrf.mxu0  ;;  %v10937_v56 = vld [vmem:[#allocation3 + $0x40] sm:$0xff] }
 0x7f1   : > { %v7299_v48 = vadd.f32 %v7171_v42, %v6865_v11  ;;  %v7798_v22 = vsel %vm825_vm0, %v7782_v23, %v7783_v33 }
 0x7f3   : > { %v7926_v9 = vadd.f32 %v7799_v41, %v7299_v48 }
 0x7f5   : > { %v12671_v31 = vadd.f32 %v8154_v10, %v7926_v9  ;;  %v7098_v52 = vpop.f32.mrf.mxu2 }
 0x7f6   : > { %v7157_v60 = vrot.slane %v7098_v52, 1  ;;  %v7725_v6 = vpop.f32.mrf.mxu3 }
 0x7f7   : > { %v6763_v13 = vpop.f32.mrf.mxu1  ;;  %v7784_v33 = vrot.slane %v7725_v6, 7 }
 0x7f8   : > { %v7170_v40 = vsel %vm1502_vm1, %v7156_v24, %v7157_v60  ;;  %v6868_v61 = vadd.f32 %v6763_v13, %v12403_v63  ;;  %v8157_v37 = vpop.f32.mrf.mxu0 }
 0x7f9   : > { %v7300_v58 = vadd.f32 %v7170_v40, %v6866_v15 }
 0x7fa   : > { %8419 = vmatmul.bf16.gmra.mxu1 %v10937_v56  ;;  %v10938_v56 = vld [vmem:[#allocation3 + $0x48] sm:$0xff] }
 0x7fb   : > { %v7927_v11 = vadd.f32 %v7798_v22, %v7300_v58 }
 0x7fd   : > { %v12676_v26 = vadd.f32 %v8157_v37, %v7927_v11  ;;  %v7101_v23 = vpop.f32.mrf.mxu2 }
 0x7fe   : > { %v7728_v41 = vpop.f32.mrf.mxu3  ;;  %v7158_v63 = vrot.slane %v7101_v23, 1 }
 0x7ff   : > { %v7785_v42 = vrot.slane %v7728_v41, 7  ;;  %v6765_v10 = vpop.f32.mrf.mxu1 }
 0x800   : > { %v6869_v48 = vadd.f32 %v6765_v10, %v12411_v3  ;;  %v8159_v9 = vpop.f32.mrf.mxu0 }
 0x801   : > { %v7796_v24 = vsel %vm825_vm0, %v7784_v33, %v7785_v42 }
 0x805   : > { %v7103_v52 = vpop.f32.mrf.mxu2 }
 0x806   : > { %v7159_v60 = vrot.slane %v7103_v52, 1  ;;  %v7730_v15 = vpop.f32.mrf.mxu3 }
 0x807   : > { %v7786_v13 = vrot.slane %v7730_v15, 7  ;;  %v6768_v40 = vpop.f32.mrf.mxu1 }
 0x808   : > { %v7168_v22 = vsel %vm1502_vm1, %v7158_v63, %v7159_v60  ;;  %v8162_v37 = vpop.f32.mrf.mxu0 }
 0x809   : > { %v7302_v58 = vadd.f32 %v7168_v22, %v6868_v61  ;;  %v7795_v6 = vsel %vm825_vm0, %v7785_v42, %v7786_v13 }
 0x80a   : > { %8424 = vmatmul.bf16.gmra.mxu1 %v10938_v56 }
 0x80b   : > { %v7929_v3 = vadd.f32 %v7796_v24, %v7302_v58 }
 0x80d   : > { %v12685_v11 = vadd.f32 %v8162_v37, %v7929_v3  ;;  %v7106_v41 = vpop.f32.mrf.mxu2 }
 0x80e   : > { %v7160_v33 = vrot.slane %v7106_v41, 1  ;;  %v7733_v23 = vpop.f32.mrf.mxu3  ;;  %v10939_v41 = vld [vmem:[#allocation3 + $0x50] sm:$0xff] }
 0x80f   : > { %v6770_v10 = vpop.f32.mrf.mxu1  ;;  %v7787_v40 = vrot.slane %v7733_v23, 7 }
 0x810   : > { %v7167_v9 = vsel %vm1502_vm1, %v7159_v60, %v7160_v33  ;;  %v6871_v52 = vadd.f32 %v6770_v10, %v12429_v46  ;;  %v8164_v63 = vpop.f32.mrf.mxu0 }
 0x811   : > { %v7303_v15 = vadd.f32 %v7167_v9, %v6869_v48 }
 0x813   : > { %v7930_v61 = vadd.f32 %v7795_v6, %v7303_v15 }
 0x815   : > { %v12690_v22 = vadd.f32 %v8164_v63, %v7930_v61  ;;  %v7108_v42 = vpop.f32.mrf.mxu2 }
 0x816   : > { %v7735_v13 = vpop.f32.mrf.mxu3  ;;  %v7161_v46 = vrot.slane %v7108_v42, 1 }
 0x817   : > { %v7788_v24 = vrot.slane %v7735_v13, 7  ;;  %v6773_v37 = vpop.f32.mrf.mxu1 }
 0x818   : > { %v6872_v58 = vadd.f32 %v6773_v37, %v12435_v55  ;;  %v8167_v56 = vpop.f32.mrf.mxu0 }
 0x819   : > { %v7793_v3 = vsel %vm825_vm0, %v7787_v40, %v7788_v24 }
 0x81a   : > { %8429 = vmatmul.bf16.gmra.mxu1 %v10939_v41 }
 0x81d   : > { %v7111_v60 = vpop.f32.mrf.mxu2 }
 0x81e   : > { %v7162_v33 = vrot.slane %v7111_v60, 1  ;;  %v7738_v48 = vpop.f32.mrf.mxu3 }
 0x81f   : > { %v7789_v6 = vrot.slane %v7738_v48, 7  ;;  %v6775_v23 = vpop.f32.mrf.mxu1  ;;  %v12938_v48 = vrot.slane %v12437_v49, 7 }
 0x820   : > { %v7165_v10 = vsel %vm1502_vm1, %v7161_v46, %v7162_v33  ;;  %v8169_v9 = vpop.f32.mrf.mxu0 }
 0x821   : > { %v7305_v63 = vadd.f32 %v7165_v10, %v6871_v52  ;;  %v7792_v55 = vsel %vm825_vm0, %v7788_v24, %v7789_v6 }
 0x823   : > { %v7932_v15 = vadd.f32 %v7793_v3, %v7305_v63  ;;  %v10940_v3 = vld [vmem:[#allocation3 + $0x58] sm:$0xff] }
 0x825   : > { %v12699_v61 = vadd.f32 %v8169_v9, %v7932_v15  ;;  %v7113_v40 = vpop.f32.mrf.mxu2 }
 0x826   : > { %v7163_v13 = vrot.slane %v7113_v40, 1  ;;  %v7740_v37 = vpop.f32.mrf.mxu3 }
 0x827   : > { %v7790_v56 = vrot.slane %v7740_v37, 7  ;;  %v8395_v42 = vpop.f32.mrf.mxu1 }
 0x828   : > { %v7164_v41 = vsel %vm1502_vm1, %v7162_v33, %v7163_v13  ;;  %v8172_v60 = vpop.f32.mrf.mxu0  ;;  %v8515_v9 = vrot.slane %v8395_v42, 1 }
 0x829   : > { %v7838_v52 = vsel %vm825_vm0, %v7790_v56, %v12938_v48  ;;  %v7306_v46 = vadd.f32 %v7164_v41, %v6872_v58  ;;  %v12716_v58 = vld [vmem:[%s12926_s4] ss:$0 sm:$0xff]  ;;  %v10941_v41 = vld [vmem:[#allocation3 + $0x60] sm:$0xff] }
 0x82a   : > { %v7887_v24 = vadd.f32 %v7838_v52, %v12453_v62  ;;  %8434 = vmatmul.bf16.gmra.mxu1 %v10940_v3  ;;  %v10624_v62 = vld [vmem:[%s11257_s28] sm:$0xff]  }
 0x82b   : > { %v7933_v6 = vadd.f32 %v7792_v55, %v7306_v46  ;;  %v10625_v37 = vunpack.c.l.bf16 %v10624_v62 }
 0x82c   : > { %v8225_v49 = vadd.f32 %v12447_v2, %v7887_v24 }
 0x82d   : > { %v12708_v23 = vadd.f32 %v8172_v60, %v7933_v6  ;;  %v10626_v60 = vunpack.c.h.bf16 %v10624_v62 }
 0x82f   : > { %v8397_v10 = vpop.f32.mrf.mxu1 }
 0x830   : > { %v8516_v63 = vrot.slane %v8397_v10, 1  ;;  %v8174_v15 = vpop.f32.mrf.mxu0 }
 0x832   : > { %v8609_v33 = vsel %vm1502_vm1, %v8515_v9, %v8516_v63 }
 0x833   : > { %v8659_v40 = vadd.f32 %v8609_v33, %v8225_v49  ;;  %v10942_v33 = vld [vmem:[#allocation3 + $0x68] sm:$0xff] }
 0x835   : > { %v8855_v56 = vadd.f32 %v12716_v58, %v8659_v40  ;;  %v10775_v40 = vld [vmem:[%s11257_s28 + $0x8] sm:$0xff]  }
 0x837   : > { %v8400_v13 = vpop.f32.mrf.mxu1  ;;  %v8887_v48 = vadd.f32 %v10625_v37, %v8855_v56 }
 0x838   : > { %v8517_v55 = vrot.slane %v8400_v13, 1 }
 0x839   : > { %v8919_v3 = vmax.f32 %v8887_v48, 0.0 }
 0x83a   : > { %v8608_v42 = vsel %vm1502_vm1, %v8516_v63, %v8517_v55  ;;  %8439 = vmatmul.bf16.gmra.mxu1 %v10941_v41  ;;  %v10629_v55 = vunpack.c.l.bf16 %v10775_v40  ;;  %v10630_v41 = vunpack.c.h.bf16 %v10775_v40 }
 0x83b   : > { %v8660_v2 = vadd.f32 %v8608_v42, %v12458_v50 }
 0x83d   : > { %v8856_v52 = vadd.f32 %v12716_v58, %v8660_v2 }
 0x83f   : > { %v8888_v46 = vadd.f32 %v10626_v60, %v8856_v52  ;;  %v8402_v24 = vpop.f32.mrf.mxu1 }
 0x840   : > { %v8518_v63 = vrot.slane %v8402_v24, 1  ;;  %v10943_v24 = vld [vmem:[#allocation3 + $0x70] sm:$0xff] }
 0x841   : > { %v8920_v6 = vmax.f32 %v8888_v46, 0.0 }
 0x843   : > { %v10690_v10 = vpack.c.bf16 %v8920_v6, %v8919_v3 }
 0x845   : > { %10691 = vst [vmem:[%s12726_s15] sm:$0xff] %v10690_v10  }
 0x847   : > { %v8405_v9 = vpop.f32.mrf.mxu1 }
 0x848   : > { %v8519_v15 = vrot.slane %v8405_v9, 1 }
 0x84a   : > { %v8606_v50 = vsel %vm1502_vm1, %v8518_v63, %v8519_v15  ;;  %8444 = vmatmul.bf16.gmra.mxu1 %v10942_v33 }
 0x84b   : > { %v8662_v49 = vadd.f32 %v8606_v50, %v12467_v54 }
 0x84d   : > { %v8857_v37 = vadd.f32 %v12716_v58, %v8662_v49 }
 0x84f   : > { %v8407_v62 = vpop.f32.mrf.mxu1  ;;  %v8889_v2 = vadd.f32 %v10629_v55, %v8857_v37 }
 0x850   : > { %v8520_v13 = vrot.slane %v8407_v62, 1 }
 0x851   : > { %v8921_v54 = vmax.f32 %v8889_v2, 0.0 }
 0x852   : > { %v8605_v56 = vsel %vm1502_vm1, %v8519_v15, %v8520_v13  ;;  %v10776_v15 = vld [vmem:[%s11257_s28 + $0x10] sm:$0xff]   ;;  %v10944_v13 = vld [vmem:[#allocation3 + $0x78] sm:$0xff] }
 0x853   : > { %v8663_v42 = vadd.f32 %v8605_v56, %v12472_v45  ;;  %v10633_v49 = vunpack.c.l.bf16 %v10776_v15  ;;  %v10634_v37 = vunpack.c.h.bf16 %v10776_v15 }
 0x855   : > { %v8858_v60 = vadd.f32 %v12716_v58, %v8663_v42 }
 0x857   : > { %v8890_v48 = vadd.f32 %v10630_v41, %v8858_v60  ;;  %v8410_v52 = vpop.f32.mrf.mxu1 }
 0x858   : > { %v8521_v10 = vrot.slane %v8410_v52, 1 }
 0x859   : > { %v8922_v46 = vmax.f32 %v8890_v48, 0.0 }
 0x85a   : > { %8449 = vmatmul.bf16.gmra.mxu1 %v10943_v24 }
 0x85b   : > { %v10695_v3 = vpack.c.bf16 %v8922_v46, %v8921_v54 }
 0x85d   : > { %10790 = vst [vmem:[%s12726_s15 + $0x8] sm:$0xff] %v10695_v3   ;;  %v10945_v3 = vld [vmem:[#allocation3 + $0x80] sm:$0xff] }
 0x85f   : > { %v8412_v6 = vpop.f32.mrf.mxu1 }
 0x860   : > { %v8522_v9 = vrot.slane %v8412_v6, 1  ;;  %v10777_v6 = vld [vmem:[%s11257_s28 + $0x18] sm:$0xff]  }
 0x862   : > { %v8603_v63 = vsel %vm1502_vm1, %v8521_v10, %v8522_v9 }
 0x863   : > { %v8665_v45 = vadd.f32 %v8603_v63, %v12481_v59  ;;  %v10637_v63 = vunpack.c.l.bf16 %v10777_v6 }
 0x865   : > { %v8859_v40 = vadd.f32 %v12716_v58, %v8665_v45 }
 0x867   : > { %v8415_v50 = vpop.f32.mrf.mxu1  ;;  %v8891_v56 = vadd.f32 %v10633_v49, %v8859_v40 }
 0x868   : > { %v8523_v33 = vrot.slane %v8415_v50, 1 }
 0x869   : > { %v8923_v2 = vmax.f32 %v8891_v56, 0.0 }
 0x86a   : > { %v8602_v62 = vsel %vm1502_vm1, %v8522_v9, %v8523_v33  ;;  %8454 = vmatmul.bf16.gmra.mxu1 %v10944_v13  ;;  %v10638_v33 = vunpack.c.h.bf16 %v10777_v6 }
 0x86b   : > { %v8666_v55 = vadd.f32 %v8602_v62, %v12486_v36 }
 0x86d   : > { %v8860_v42 = vadd.f32 %v12716_v58, %v8666_v55 }
 0x86f   : > { %v8892_v59 = vadd.f32 %v10634_v37, %v8860_v42  ;;  %v8417_v41 = vpop.f32.mrf.mxu1  ;;  %v10946_v37 = vld [vmem:[#allocation3 + $0x88] sm:$0xff] }
 0x870   : > { %v8524_v54 = vrot.slane %v8417_v41, 1 }
 0x871   : > { %v8924_v60 = vmax.f32 %v8892_v59, 0.0 }
 0x873   : > { %v10700_v48 = vpack.c.bf16 %v8924_v60, %v8923_v2  ;;  %v10778_v60 = vld [vmem:[%s11257_s28 + $0x20] sm:$0xff]  }
 0x875   : > { %10791 = vst [vmem:[%s12726_s15 + $0x10] sm:$0xff] %v10700_v48  }
 0x877   : > { %v8420_v52 = vpop.f32.mrf.mxu1 }
 0x878   : > { %v8525_v46 = vrot.slane %v8420_v52, 1 }
 0x87a   : > { %v8600_v24 = vsel %vm1502_vm1, %v8524_v54, %v8525_v46  ;;  %8459 = vmatmul.bf16.gmra.mxu1 %v10945_v3  ;;  %v10641_v54 = vunpack.c.l.bf16 %v10778_v60 }
 0x87b   : > { %v8668_v36 = vadd.f32 %v8600_v24, %v12495_v7 }
 0x87d   : > { %v8861_v45 = vadd.f32 %v12716_v58, %v8668_v36  ;;  %v10642_v36 = vunpack.c.h.bf16 %v10778_v60 }
 0x87f   : > { %v8422_v10 = vpop.f32.mrf.mxu1  ;;  %v8893_v49 = vadd.f32 %v10637_v63, %v8861_v45 }
 0x880   : > { %v8526_v9 = vrot.slane %v8422_v10, 1 }
 0x881   : > { %v8925_v7 = vmax.f32 %v8893_v49, 0.0 }
 0x882   : > { %v8599_v15 = vsel %vm1502_vm1, %v8525_v46, %v8526_v9 }
 0x883   : > { %v8669_v50 = vadd.f32 %v8599_v15, %v12500_v20 }
 0x885   : > { %v8862_v40 = vadd.f32 %v12716_v58, %v8669_v50 }
 0x887   : > { %v8894_v62 = vadd.f32 %v10638_v33, %v8862_v40  ;;  %v8425_v13 = vpop.f32.mrf.mxu1 }
 0x888   : > { %v8527_v59 = vrot.slane %v8425_v13, 1 }
 0x889   : > { %v8926_v55 = vmax.f32 %v8894_v62, 0.0 }
 0x88a   : > { %8464 = vmatmul.bf16.gmra.mxu1 %v10946_v37 }
 0x88b   : > { %v10705_v56 = vpack.c.bf16 %v8926_v55, %v8925_v7 }
 0x88d   : > { %10792 = vst [vmem:[%s12726_s15 + $0x18] sm:$0xff] %v10705_v56  }
 0x88f   : > { %v8427_v42 = vpop.f32.mrf.mxu1 }
 0x890   : > { %v8528_v41 = vrot.slane %v8427_v42, 1 }
 0x892   : > { %v8597_v2 = vsel %vm1502_vm1, %v8527_v59, %v8528_v41 }
 0x893   : > { %v8671_v20 = vadd.f32 %v8597_v2, %v12512_v21 }
 0x895   : > { %v8863_v46 = vadd.f32 %v12716_v58, %v8671_v20 }
 0x897   : > { %v8430_v48 = vpop.f32.mrf.mxu1  ;;  %v8895_v6 = vadd.f32 %v10641_v54, %v8863_v46 }
 0x898   : > { %v8529_v52 = vrot.slane %v8430_v48, 1 }
 0x899   : > { %v8927_v63 = vmax.f32 %v8895_v6, 0.0 }
 0x89a   : > { %v8596_v24 = vsel %vm1502_vm1, %v8528_v41, %v8529_v52  ;;  %8469 = vmatmul.bf16.gmra.mxu1 %v12507_v32 }
 0x89b   : > { %v8672_v3 = vadd.f32 %v8596_v24, %v12517_v25  ;;  %v10779_v25 = vld [vmem:[%s11257_s28 + $0x28] sm:$0xff]   ;;  %v10780_v24 = vld [vmem:[%s11257_s28 + $0x30] sm:$0xff]  }
 0x89c   : > { %v10645_v7 = vunpack.c.l.bf16 %v10779_v25  ;;  %v10646_v42 = vunpack.c.h.bf16 %v10779_v25  ;;  %v10649_v6 = vunpack.c.l.bf16 %v10780_v24 }
 0x89d   : > { %v8864_v10 = vadd.f32 %v12716_v58, %v8672_v3 }
 0x89f   : > { %v8896_v21 = vadd.f32 %v10642_v36, %v8864_v10  ;;  %v8432_v9 = vpop.f32.mrf.mxu1 }
 0x8a0   : > { %v8530_v33 = vrot.slane %v8432_v9, 1  ;;  %v10650_v9 = vunpack.c.h.bf16 %v10780_v24 }
 0x8a1   : > { %v8928_v45 = vmax.f32 %v8896_v21, 0.0 }
 0x8a3   : > { %v10710_v15 = vpack.c.bf16 %v8928_v45, %v8927_v63 }
 0x8a5   : > { %10793 = vst [vmem:[%s12726_s15 + $0x20] sm:$0xff] %v10710_v15  }
 0x8a7   : > { %v8435_v50 = vpop.f32.mrf.mxu1 }
 0x8a8   : > { %v8531_v49 = vrot.slane %v8435_v50, 1 }
 0x8aa   : > { %v8594_v40 = vsel %vm1502_vm1, %v8530_v33, %v8531_v49  ;;  %8474 = vmatmul.bf16.gmra.mxu1 %v12520_v43 }
 0x8ab   : > { %v8674_v32 = vadd.f32 %v8594_v40, %v12530_v44 }
 0x8ad   : > { %v8865_v55 = vadd.f32 %v12716_v58, %v8674_v32 }
 0x8af   : > { %v8437_v62 = vpop.f32.mrf.mxu1  ;;  %v8897_v59 = vadd.f32 %v10645_v7, %v8865_v55 }
 0x8b0   : > { %v8532_v13 = vrot.slane %v8437_v62, 1 }
 0x8b1   : > { %v8929_v44 = vmax.f32 %v8897_v59, 0.0 }
 0x8b2   : > { %v8593_v37 = vsel %vm1502_vm1, %v8531_v49, %v8532_v13 }
 0x8b3   : > { %v8675_v56 = vadd.f32 %v8593_v37, %v12539_v30 }
 0x8b5   : > { %v8866_v41 = vadd.f32 %v12716_v58, %v8675_v56 }
 0x8b7   : > { %v8898_v43 = vadd.f32 %v10646_v42, %v8866_v41  ;;  %v8440_v2 = vpop.f32.mrf.mxu1 }
 0x8b8   : > { %v8533_v52 = vrot.slane %v8440_v2, 1 }
 0x8b9   : > { %v8930_v20 = vmax.f32 %v8898_v43, 0.0 }
 0x8ba   : > { %8479 = vmatmul.bf16.gmra.mxu1 %v12535_v39 }
 0x8bb   : > { %v10715_v60 = vpack.c.bf16 %v8930_v20, %v8929_v44 }
 0x8bd   : > { %10794 = vst [vmem:[%s12726_s15 + $0x28] sm:$0xff] %v10715_v60  }
 0x8bf   : > { %v8442_v48 = vpop.f32.mrf.mxu1 }
 0x8c0   : > { %v8534_v54 = vrot.slane %v8442_v48, 1 }
 0x8c2   : > { %v8591_v46 = vsel %vm1502_vm1, %v8533_v52, %v8534_v54 }
 0x8c3   : > { %v8677_v30 = vadd.f32 %v8591_v46, %v12552_v53  ;;  %v10782_v46 = vld [vmem:[%s11257_s28 + $0x40] sm:$0xff]  }
 0x8c5   : > { %v8867_v10 = vadd.f32 %v12716_v58, %v8677_v30 }
 0x8c7   : > { %v8445_v3 = vpop.f32.mrf.mxu1  ;;  %v8899_v63 = vadd.f32 %v10649_v6, %v8867_v10  ;;  %v10658_v10 = vunpack.c.h.bf16 %v10782_v46 }
 0x8c8   : > { %v8535_v36 = vrot.slane %v8445_v3, 1  ;;  %v10657_v3 = vunpack.c.l.bf16 %v10782_v46 }
 0x8c9   : > { %v8931_v50 = vmax.f32 %v8899_v63, 0.0 }
 0x8ca   : > { %v8590_v39 = vsel %vm1502_vm1, %v8534_v54, %v8535_v36  ;;  %8484 = vmatmul.bf16.gmra.mxu1 %v12546_v17 }
 0x8cb   : > { %v8678_v21 = vadd.f32 %v8590_v39, %v12557_v19  ;;  %v10781_v19 = vld [vmem:[%s11257_s28 + $0x38] sm:$0xff]  }
 0x8cc   : > { %v10653_v55 = vunpack.c.l.bf16 %v10781_v19  ;;  %v10654_v59 = vunpack.c.h.bf16 %v10781_v19 }
 0x8cd   : > { %v8868_v45 = vadd.f32 %v12716_v58, %v8678_v21 }
 0x8cf   : > { %v8900_v53 = vadd.f32 %v10650_v9, %v8868_v45  ;;  %v8447_v15 = vpop.f32.mrf.mxu1 }
 0x8d0   : > { %v8536_v32 = vrot.slane %v8447_v15, 1 }
 0x8d1   : > { %v8932_v33 = vmax.f32 %v8900_v53, 0.0 }
 0x8d3   : > { %v10720_v49 = vpack.c.bf16 %v8932_v33, %v8931_v50 }
 0x8d5   : > { %10795 = vst [vmem:[%s12726_s15 + $0x30] sm:$0xff] %v10720_v49  }
 0x8d7   : > { %v8450_v40 = vpop.f32.mrf.mxu1 }
 0x8d8   : > { %v8537_v25 = vrot.slane %v8450_v40, 1 }
 0x8da   : > { %v8588_v62 = vsel %vm1502_vm1, %v8536_v32, %v8537_v25  ;;  %8489 = vmatmul.bf16.gmra.mxu1 %v12560_v35 }
 0x8db   : > { %v8680_v17 = vadd.f32 %v8588_v62, %v12570_v5 }
 0x8dd   : > { %v8869_v37 = vadd.f32 %v12716_v58, %v8680_v17 }
 0x8df   : > { %v8452_v13 = vpop.f32.mrf.mxu1  ;;  %v8901_v41 = vadd.f32 %v10653_v55, %v8869_v37 }
 0x8e0   : > { %v8538_v7 = vrot.slane %v8452_v13, 1 }
 0x8e1   : > { %v8933_v5 = vmax.f32 %v8901_v41, 0.0 }
 0x8e2   : > { %v8587_v56 = vsel %vm1502_vm1, %v8537_v25, %v8538_v7 }
 0x8e3   : > { %v8681_v42 = vadd.f32 %v8587_v56, %v12579_v0 }
 0x8e5   : > { %v8870_v43 = vadd.f32 %v12716_v58, %v8681_v42 }
 0x8e7   : > { %v8902_v35 = vadd.f32 %v10654_v59, %v8870_v43  ;;  %v8455_v2 = vpop.f32.mrf.mxu1 }
 0x8e8   : > { %v8539_v48 = vrot.slane %v8455_v2, 1  ;;  %v10784_v2 = vld [vmem:[%s11257_s28 + $0x50] sm:$0xff]  }
 0x8e9   : > { %v8934_v44 = vmax.f32 %v8902_v35, 0.0 }
 0x8ea   : > { %8494 = vmatmul.bf16.gmra.mxu1 %v12575_v4 }
 0x8eb   : > { %v10725_v20 = vpack.c.bf16 %v8934_v44, %v8933_v5 }
 0x8ed   : > { %10796 = vst [vmem:[%s12726_s15 + $0x38] sm:$0xff] %v10725_v20   ;;  %v10665_v20 = vunpack.c.l.bf16 %v10784_v2 }
 0x8ef   : > { %v8457_v60 = vpop.f32.mrf.mxu1 }
 0x8f0   : > { %v8540_v52 = vrot.slane %v8457_v60, 1 }
 0x8f2   : > { %v8585_v54 = vsel %vm1502_vm1, %v8539_v48, %v8540_v52 }
 0x8f3   : > { %v8683_v0 = vadd.f32 %v8585_v54, %v12592_v38 }
 0x8f5   : > { %v8871_v36 = vadd.f32 %v12716_v58, %v8683_v0 }
 0x8f7   : > { %v8460_v30 = vpop.f32.mrf.mxu1  ;;  %v8903_v39 = vadd.f32 %v10657_v3, %v8871_v36 }
 0x8f8   : > { %v8541_v24 = vrot.slane %v8460_v30, 1 }
 0x8f9   : > { %v8935_v63 = vmax.f32 %v8903_v39, 0.0 }
 0x8fa   : > { %v8584_v4 = vsel %vm1502_vm1, %v8540_v52, %v8541_v24  ;;  %8499 = vmatmul.bf16.gmra.mxu1 %v12586_v14  ;;  %v10666_v52 = vunpack.c.h.bf16 %v10784_v2 }
 0x8fb   : > { %v8684_v6 = vadd.f32 %v8584_v4, %v12597_v29  ;;  %v10783_v29 = vld [vmem:[%s11257_s28 + $0x48] sm:$0xff]  }
 0x8fc   : > { %v10661_v25 = vunpack.c.l.bf16 %v10783_v29  ;;  %v10662_v13 = vunpack.c.h.bf16 %v10783_v29 }
 0x8fd   : > { %v8872_v21 = vadd.f32 %v12716_v58, %v8684_v6 }
 0x8ff   : > { %v8904_v38 = vadd.f32 %v10658_v10, %v8872_v21  ;;  %v8462_v9 = vpop.f32.mrf.mxu1 }
 0x900   : > { %v8542_v50 = vrot.slane %v8462_v9, 1 }
 0x901   : > { %v8936_v45 = vmax.f32 %v8904_v38, 0.0 }
 0x903   : > { %v10730_v53 = vpack.c.bf16 %v8936_v45, %v8935_v63 }
 0x905   : > { %10797 = vst [vmem:[%s12726_s15 + $0x40] sm:$0xff] %v10730_v53  }
 0x907   : > { %v8465_v15 = vpop.f32.mrf.mxu1 }
 0x908   : > { %v8543_v33 = vrot.slane %v8465_v15, 1 }
 0x90a   : > { %v8582_v49 = vsel %vm1502_vm1, %v8542_v50, %v8543_v33  ;;  %8504 = vmatmul.bf16.gmra.mxu1 %v12599_v47 }
 0x90b   : > { %v8686_v14 = vadd.f32 %v8582_v49, %v12610_v12 }
 0x90d   : > { %v8873_v62 = vadd.f32 %v12716_v58, %v8686_v14 }
 0x90f   : > { %v8467_v40 = vpop.f32.mrf.mxu1  ;;  %v8905_v7 = vadd.f32 %v10661_v25, %v8873_v62 }
 0x910   : > { %v8544_v32 = vrot.slane %v8467_v40, 1 }
 0x911   : > { %v8937_v12 = vmax.f32 %v8905_v7, 0.0 }
 0x912   : > { %v8581_v17 = vsel %vm1502_vm1, %v8543_v33, %v8544_v32 }
 0x913   : > { %v8687_v19 = vadd.f32 %v8581_v17, %v12619_v28 }
 0x915   : > { %v8874_v55 = vadd.f32 %v12716_v58, %v8687_v19 }
 0x917   : > { %v8906_v47 = vadd.f32 %v10662_v13, %v8874_v55  ;;  %v8470_v37 = vpop.f32.mrf.mxu1 }
 0x918   : > { %v8545_v41 = vrot.slane %v8470_v37, 1 }
 0x919   : > { %v8938_v56 = vmax.f32 %v8906_v47, 0.0 }
 0x91a   : > { %8509 = vmatmul.bf16.gmra.mxu1 %v12612_v18 }
 0x91b   : > { %v10735_v42 = vpack.c.bf16 %v8938_v56, %v8937_v12 }
 0x91d   : > { %10798 = vst [vmem:[%s12726_s15 + $0x48] sm:$0xff] %v10735_v42  }
 0x91f   : > { %v8472_v59 = vpop.f32.mrf.mxu1 }
 0x920   : > { %v8546_v43 = vrot.slane %v8472_v59, 1 }
 0x922   : > { %v8579_v35 = vsel %vm1502_vm1, %v8545_v41, %v8546_v43 }
 0x923   : > { %v8689_v28 = vadd.f32 %v8579_v35, %v12629_v16 }
 0x925   : > { %v8875_v60 = vadd.f32 %v12716_v58, %v8689_v28 }
 0x927   : > { %v8475_v5 = vpop.f32.mrf.mxu1  ;;  %v8907_v54 = vadd.f32 %v10665_v20, %v8875_v60 }
 0x928   : > { %v8547_v44 = vrot.slane %v8475_v5, 1 }
 0x929   : > { %v8939_v16 = vmax.f32 %v8907_v54, 0.0 }
 0x92a   : > { %v8578_v18 = vsel %vm1502_vm1, %v8546_v43, %v8547_v44 }
 0x92b   : > { %v8690_v48 = vadd.f32 %v8578_v18, %v12634_v51  ;;  %v10785_v51 = vld [vmem:[%s11257_s28 + $0x58] sm:$0xff]  }
 0x92c   : > { %v10669_v9 = vunpack.c.l.bf16 %v10785_v51  ;;  %v10670_v15 = vunpack.c.h.bf16 %v10785_v51 }
 0x92d   : > { %v8876_v0 = vadd.f32 %v12716_v58, %v8690_v48 }
 0x92f   : > { %v8908_v46 = vadd.f32 %v10666_v52, %v8876_v0  ;;  %v8477_v30 = vpop.f32.mrf.mxu1 }
 0x930   : > { %v8548_v4 = vrot.slane %v8477_v30, 1 }
 0x931   : > { %v8940_v24 = vmax.f32 %v8908_v46, 0.0 }
 0x933   : > { %v10740_v3 = vpack.c.bf16 %v8940_v24, %v8939_v16 }
 0x935   : > { %10799 = vst [vmem:[%s12726_s15 + $0x50] sm:$0xff] %v10740_v3  }
 0x937   : > { %v8480_v36 = vpop.f32.mrf.mxu1 }
 0x938   : > { %v8549_v6 = vrot.slane %v8480_v36, 1 }
 0x93a   : > { %v8576_v10 = vsel %vm1502_vm1, %v8548_v4, %v8549_v6 }
 0x93b   : > { %v8692_v39 = vadd.f32 %v8576_v10, %v12643_v8 }
 0x93d   : > { %v8877_v63 = vadd.f32 %v12716_v58, %v8692_v39 }
 0x93f   : > { %v8482_v21 = vpop.f32.mrf.mxu1  ;;  %v8909_v50 = vadd.f32 %v10669_v9, %v8877_v63 }
 0x940   : > { %v8550_v38 = vrot.slane %v8482_v21, 1 }
 0x941   : > { %v8941_v8 = vmax.f32 %v8909_v50, 0.0 }
 0x942   : > { %v8575_v45 = vsel %vm1502_vm1, %v8549_v6, %v8550_v38 }
 0x943   : > { %v8693_v53 = vadd.f32 %v8575_v45, %v12648_v27  ;;  %v10786_v27 = vld [vmem:[%s11257_s28 + $0x60] sm:$0xff]  }
 0x944   : > { %v10673_v55 = vunpack.c.l.bf16 %v10786_v27  ;;  %v10674_v56 = vunpack.c.h.bf16 %v10786_v27  ;;  %v10789_v27 = vld [vmem:[%s11257_s28 + $0x78] sm:$0xff]  }
 0x945   : > { %v8878_v33 = vadd.f32 %v12716_v58, %v8693_v53 }
 0x947   : > { %v8910_v49 = vadd.f32 %v10670_v15, %v8878_v33  ;;  %v8485_v14 = vpop.f32.mrf.mxu1 }
 0x948   : > { %v8551_v25 = vrot.slane %v8485_v14, 1 }
 0x949   : > { %v8942_v29 = vmax.f32 %v8910_v49, 0.0 }
 0x94b   : > { %v10745_v40 = vpack.c.bf16 %v8942_v29, %v8941_v8 }
 0x94d   : > { %10800 = vst [vmem:[%s12726_s15 + $0x58] sm:$0xff] %v10745_v40  }
 0x94f   : > { %v8487_v32 = vpop.f32.mrf.mxu1 }
 0x950   : > { %v8552_v62 = vrot.slane %v8487_v32, 1 }
 0x952   : > { %v8573_v17 = vsel %vm1502_vm1, %v8551_v25, %v8552_v62 }
 0x953   : > { %v8695_v19 = vadd.f32 %v8573_v17, %v12657_v1 }
 0x955   : > { %v8879_v47 = vadd.f32 %v12716_v58, %v8695_v19 }
 0x957   : > { %v8490_v13 = vpop.f32.mrf.mxu1  ;;  %v8911_v42 = vadd.f32 %v10673_v55, %v8879_v47  ;;  %v10685_v55 = vunpack.c.l.bf16 %v10789_v27 }
 0x958   : > { %v8553_v7 = vrot.slane %v8490_v13, 1 }
 0x959   : > { %v8943_v1 = vmax.f32 %v8911_v42, 0.0 }
 0x95a   : > { %v8572_v37 = vsel %vm1502_vm1, %v8552_v62, %v8553_v7 }
 0x95b   : > { %v8696_v12 = vadd.f32 %v8572_v37, %v12662_v34  ;;  %v10787_v34 = vld [vmem:[%s11257_s28 + $0x68] sm:$0xff]  }
 0x95c   : > { %v10677_v52 = vunpack.c.l.bf16 %v10787_v34  ;;  %v10678_v30 = vunpack.c.h.bf16 %v10787_v34 }
 0x95d   : > { %v8880_v59 = vadd.f32 %v12716_v58, %v8696_v12 }
 0x95f   : > { %v8912_v41 = vadd.f32 %v10674_v56, %v8880_v59  ;;  %v8492_v43 = vpop.f32.mrf.mxu1  ;;  %v10686_v56 = vunpack.c.h.bf16 %v10789_v27 }
 0x960   : > { %v8554_v5 = vrot.slane %v8492_v43, 1 }
 0x961   : > { %v8944_v35 = vmax.f32 %v8912_v41, 0.0 }
 0x963   : > { %v10750_v28 = vpack.c.bf16 %v8944_v35, %v8943_v1 }
 0x965   : > { %10801 = vst [vmem:[%s12726_s15 + $0x60] sm:$0xff] %v10750_v28  }
 0x967   : > { %v8495_v2 = vpop.f32.mrf.mxu1 }
 0x968   : > { %v8555_v44 = vrot.slane %v8495_v2, 1 }
 0x96a   : > { %v8570_v20 = vsel %vm1502_vm1, %v8554_v5, %v8555_v44 }
 0x96b   : > { %v8698_v60 = vadd.f32 %v8570_v20, %v12671_v31 }
 0x96d   : > { %v8881_v54 = vadd.f32 %v12716_v58, %v8698_v60 }
 0x96f   : > { %v8497_v18 = vpop.f32.mrf.mxu1  ;;  %v8913_v16 = vadd.f32 %v10677_v52, %v8881_v54 }
 0x970   : > { %v8556_v48 = vrot.slane %v8497_v18, 1 }
 0x971   : > { %v8945_v31 = vmax.f32 %v8913_v16, 0.0 }
 0x972   : > { %v8569_v0 = vsel %vm1502_vm1, %v8555_v44, %v8556_v48 }
 0x973   : > { %v8699_v46 = vadd.f32 %v8569_v0, %v12676_v26  ;;  %v10788_v26 = vld [vmem:[%s11257_s28 + $0x70] sm:$0xff]   ;;  %s11053_s28 = scalar_lea.hbm %s11052_s16, 128 }
 0x974   : > { %v10681_v45 = vunpack.c.l.bf16 %v10788_v26  ;;  %v10682_v33 = vunpack.c.h.bf16 %v10788_v26  ;;  %p11054_p1 = scmp.ne.s32.totalorder %s11052_s16, %s11053_s28  ;;  %p11059_p2 = scmp.lt.s32.totalorder %s11057_s11, %s11053_s28 }
 0x975   : > { %v8882_v24 = vadd.f32 %v12716_v58, %v8699_v46 }
 0x976   : > { %p11055_p4 = pnand %p11054_p1, %p11218_p3  ;;  %p11060_p9 = por %p11059_p2, %p11058_p11 }
 0x977   : > { %v8914_v3 = vadd.f32 %v10678_v30, %v8882_v24  ;;  %v8500_v36 = vpop.f32.mrf.mxu1 }
 0x978   : > { %v8557_v39 = vrot.slane %v8500_v36, 1  ;;  %p11056_p8 = pneg %p11055_p4 }
 0x979   : > { %v8946_v4 = vmax.f32 %v8914_v3, 0.0 }
 0x97a   : > { %p11061_p10 = pnand %p11060_p9, %p11056_p8 }
 0x97b   : > { %v10755_v6 = vpack.c.bf16 %v8946_v4, %v8945_v31 }
 0x97d   : > { %10802 = vst [vmem:[%s12726_s15 + $0x68] sm:$0xff] %v10755_v6  }
 0x97f   : > { %v8502_v10 = vpop.f32.mrf.mxu1 }
 0x980   : > { %v8558_v51 = vrot.slane %v8502_v10, 1 }
 0x982   : > { %v8567_v21 = vsel %vm1502_vm1, %v8557_v39, %v8558_v51 }
 0x983   : > { %v8701_v38 = vadd.f32 %v8567_v21, %v12685_v11 }
 0x985   : > { %v8883_v53 = vadd.f32 %v12716_v58, %v8701_v38 }
 0x987   : > { %v8505_v9 = vpop.f32.mrf.mxu1  ;;  %v8915_v49 = vadd.f32 %v10681_v45, %v8883_v53 }
 0x988   : > { %v8559_v63 = vrot.slane %v8505_v9, 1 }
 0x989   : > { %v8947_v29 = vmax.f32 %v8915_v49, 0.0 }
 0x98a   : > { %v8566_v15 = vsel %vm1502_vm1, %v8558_v51, %v8559_v63 }
 0x98b   : > { %v8702_v50 = vadd.f32 %v8566_v15, %v12690_v22 }
 0x98d   : > { %v8884_v14 = vadd.f32 %v12716_v58, %v8702_v50 }
 0x98f   : > { %v8916_v8 = vadd.f32 %v10682_v33, %v8884_v14  ;;  %v8507_v11 = vpop.f32.mrf.mxu1 }
 0x990   : > { %v8560_v62 = vrot.slane %v8507_v11, 1 }
 0x991   : > { %v8948_v40 = vmax.f32 %v8916_v8, 0.0 }
 0x993   : > { %v10760_v32 = vpack.c.bf16 %v8948_v40, %v8947_v29 }
 0x995   : > { %10803 = vst [vmem:[%s12726_s15 + $0x70] sm:$0xff] %v10760_v32  }
 0x997   : > { %v8510_v25 = vpop.f32.mrf.mxu1 }
 0x998   : > { %v8561_v17 = vrot.slane %v8510_v25, 1 }
 0x99a   : > { %v8564_v19 = vsel %vm1502_vm1, %v8560_v62, %v8561_v17 }
 0x99b   : > { %v8704_v22 = vadd.f32 %v8564_v19, %v12699_v61 }
 0x99d   : > { %v8885_v47 = vadd.f32 %v12716_v58, %v8704_v22 }
 0x99f   : > { %v8512_v13 = vpop.f32.mrf.mxu1  ;;  %v8917_v61 = vadd.f32 %v10685_v55, %v8885_v47 }
 0x9a0   : > { %v8562_v7 = vrot.slane %v8512_v13, 1 }
 0x9a1   : > { %v8949_v41 = vmax.f32 %v8917_v61, 0.0 }
 0x9a2   : > { %v8563_v37 = vsel %vm1502_vm1, %v8561_v17, %v8562_v7 }
 0x9a3   : > { %v8705_v12 = vadd.f32 %v8563_v37, %v12708_v23 }
 0x9a5   : > { %v8886_v42 = vadd.f32 %v12716_v58, %v8705_v12 }
 0x9a7   : > { %v8918_v59 = vadd.f32 %v10686_v56, %v8886_v42 }
 0x9a9   : > { %v8950_v43 = vmax.f32 %v8918_v59, 0.0 }
 0x9ab   : > { %v10765_v57 = vpack.c.bf16 %v8950_v43, %v8949_v41 }
 0x9ad   : > { %10804 = vst [vmem:[%s12726_s15 + $0x78] sm:$0xff] %v10765_v57  }
 0x9ae   : > { %11064 = shalt.err (!%p11061_p10)
}
 0x9af   : > { %s11114_s8 = smov 64   ;;  %s11115_s13 = smov 4  }
 0x9b0   : > { %10831 = dma.vmem_to_hbm [thread:$0]  (%p11218_p3), %s9029_s26, 2048, %s9031_s10, %s9016_s22, %s11114_s8, %s11114_s8, %s11115_s13  }
 0x9b1 PF: > { %s9045_s15 = sand.u32 1, %s11095_s18   ;;  %p12939_p12 = scmp.ge.s32.totalorder %s11107_s21, 2 }
 0x9b2   : > { %s9046_s27 = scalar_lea.sflag [#allocation7], %s9045_s15 }
 0x9b3   : > { %p10845_p13 = pnand %p12939_p12, %p11181_p6 }
 0x9b5   : > { %p10846_p0 = pneg %p10845_p13 }
 0x9b7   : > { %11090 = dma.done.wait (%p10846_p0), %s9046_s27, 2048  }
 0x9b8   : > { %11092 = vsyncadd (%p10846_p0), %s9046_s27, 4294965248  ;;  %p19_p5 = scmp.ge.s32.totalorder %s11208_s14, 4   ;;  %s12940_s18 = smov %s11099_s19 }
 0x9b9   : > { %s12941_s19 = smov %s11103_s20  ;;  %s12942_s20 = smov %s11224_s23 }
 0x9ba   : > { %s12943_s21 = smov %s11208_s14  ;;  %21 = sbr.rel (!%p19_p5) target bundleno = 6 (0x6), region = 115 }
 0x9bf   :  { %9052 = vsyncpa [#allocation6], 1 }
 0x9c0   :  { %9054 = vsyncpa [#allocation6 + $0x1], 1 }
 0x9c1   :  { %9055 = vsyncpa [#allocation9], 1 }
 0x9c2   :  { %9056 = vsyncpa [#allocation7], 1 }
 0x9c3   :  { %9058 = vsyncpa [#allocation7 + $0x1], 1 }

</bundles_post_ra>
